<compile_context>
chip_gen: v6e
topology: v6e:2x2x1
jax: 0.10.0
libtpu: 0.0.40
codegen_flags: <defaults>
</compile_context>

<pallas_src>
import numpy as np
import jax
import jax.numpy as jnp
from jax import lax
from jax.experimental import pallas as pl
from jax.experimental.pallas import tpu as pltpu


# ----------------------------------------------------------------------------
# Fused kernel: 3 x (3x3 conv -> ReLU -> BN affine -> AvgPool 2x2/2)
# ----------------------------------------------------------------------------
def _build_fused_kernel(H0, W0, c_in, couts, b_tile):
    assert len(couts) == 3
    dims = []
    H, W, cin = H0, W0, c_in
    for c in couts:
        assert H >= 4 and W >= 4 and H % 2 == 0 and W % 2 == 0, (H, W)
        Ho, Wo = H - 2, W - 2
        Hp, Wp = Ho // 2, Wo // 2
        # Wrap-column guard: the flat conv produces W columns per output row but
        # only [0, W-2) are valid; the pool reads column indices up to 2*Wp-1
        # == W-3, so the two garbage wrap columns are never touched.
        assert 2 * Wp - 1 < W - 2
        dims.append(dict(H=H, W=W, Ho=Ho, Hp=Hp, Wp=Wp, Cin=cin, Cout=c))
        H, W, cin = Hp, Wp, c
    out_rows = dims[-1]["Hp"] * dims[-1]["Wp"]

    def scratch_for(d, pooled_pad):
        M = d["Ho"] * d["W"]
        shapes = [
            pltpu.VMEM((M + 2, 3 * d["Cout"]), jnp.float32),   # kx-stacked tap acc
            pltpu.VMEM((M, d["Cout"]), jnp.float32),           # conv->relu->bn
            pltpu.VMEM((M // 2, d["Cout"]), jnp.float32),      # horizontal pool sum
        ]
        if pooled_pad is not None:                             # pooled (next input)
            shapes.append(pltpu.VMEM((d["Hp"] * d["Wp"] + pooled_pad, d["Cout"]),
                                     jnp.bfloat16))
        return shapes

    scratch_shapes = (scratch_for(dims[0], 2) + scratch_for(dims[1], 2)
                      + scratch_for(dims[2], None))

    def conv_block(get_lhs, w_ref, s_ref, b_ref, S, conv, hsum, dst,
                   d, npad, dst_dtype):
        W, Cout = d["W"], d["Cout"]
        Ho, Hp, Wp = d["Ho"], d["Hp"], d["Wp"]
        M = Ho * W          # flat conv-output rows (incl. wrap cols)
        M2 = M + 2          # rows of the kx-stacked accumulator
        Wh = W // 2         # hsum row length (incl. 1 wrap col)

        # 3x3 VALID conv = 3 MXU matmuls (bf16 x bf16 -> f32): the 3 kx taps are
        # stacked along N, and the ky taps accumulate in place into S.
        S[...] = jnp.dot(get_lhs(0, M2), w_ref[0],
                         preferred_element_type=jnp.float32)
        S[...] += jnp.dot(get_lhs(W, M2), w_ref[1],
                          preferred_element_type=jnp.float32)
        S[...] += jnp.dot(get_lhs(2 * W, M2), w_ref[2],
                          preferred_element_type=jnp.float32)

        # Fold the 3 kx column groups with flat-row shifts 0/1/2, then fused
        # ReLU + folded eval-mode BatchNorm affine (torch order: relu->bn->pool).
        acc = (S[pl.ds(0, M), pl.ds(0, Cout)]
               + S[pl.ds(1, M), pl.ds(Cout, Cout)]
               + S[pl.ds(2, M), pl.ds(2 * Cout, Cout)])
        conv[...] = jnp.maximum(acc, 0.0) * s_ref[...] + b_ref[...]

        # 2x2 / stride-2 average pool.
        # Phase 1: horizontal pair-sum, two whole-array stride-2 reads.
        hsum[...] = conv[pl.ds(0, M // 2, 2), :] + conv[pl.ds(1, M // 2, 2), :]
        # Phase 2: vertical pairing with contiguous row slices.
        for p in range(Hp):
            r = (hsum[pl.ds((2 * p) * Wh, Wp), :]
                 + hsum[pl.ds((2 * p + 1) * Wh, Wp), :]) * 0.25
            dst[pl.ds(p * Wp, Wp), :] = r.astype(dst_dtype)
        if npad:  # zero pad rows so the next block's ky=2 slices stay in range
            dst[pl.ds(Hp * Wp, npad), :] = jnp.zeros((npad, Cout), dst_dtype)

    def kernel(x_ref, w1_ref, w2_ref, w3_ref,
               s1_ref, b1_ref, s2_ref, b2_ref, s3_ref, b3_ref,
               o_ref,
               S1, c1, h1, p1, S2, c2, h2, p2, S3, c3, h3):
        for bt in range(b_tile):
            conv_block(lambda s, n: x_ref[bt, pl.ds(s, n), :],
                       w1_ref, s1_ref, b1_ref, S1, c1, h1, p1,
                       dims[0], npad=2, dst_dtype=jnp.bfloat16)
            conv_block(lambda s, n: p1[pl.ds(s, n), :],
                       w2_ref, s2_ref, b2_ref, S2, c2, h2, p2,
                       dims[1], npad=2, dst_dtype=jnp.bfloat16)
            conv_block(lambda s, n: p2[pl.ds(s, n), :],
                       w3_ref, s3_ref, b3_ref, S3, c3, h3, o_ref.at[bt],
                       dims[2], npad=0, dst_dtype=jnp.float32)

    return kernel, scratch_shapes, out_rows, couts[-1]


def eegnet_forward(x_nchw, blocks, b_tile=1):
    # blocks: list of (w_hwio (3,3,Cin,Cout), bn_scale (1,Cout), bn_bias (1,Cout))
    N, C0, H0, W0 = x_nchw.shape
    assert N % b_tile == 0
    couts = [w.shape[-1] for (w, _, _) in blocks]
    kernel, scratch_shapes, out_rows, c_last = _build_fused_kernel(
        H0, W0, C0, couts, b_tile)

    # NCHW -> NHWC, flatten spatial, append 2 zero pad rows, cast to bf16.
    xf = jnp.transpose(x_nchw, (0, 2, 3, 1)).reshape(N, H0 * W0, C0)
    xf = jnp.pad(xf, ((0, 0), (0, 2), (0, 0))).astype(jnp.bfloat16)

    # (3,3,Cin,Cout) -> (ky, Cin, 3*Cout): kx taps stacked along the N axis.
    ws = [jnp.transpose(w, (0, 2, 1, 3))
             .reshape(3, w.shape[2], 3 * w.shape[3]).astype(jnp.bfloat16)
          for (w, _, _) in blocks]
    ss = [s for (_, s, _) in blocks]
    bs = [b for (_, _, b) in blocks]

    out = pl.pallas_call(
        kernel,
        out_shape=jax.ShapeDtypeStruct((N, out_rows, c_last), jnp.float32),
        grid=(N // b_tile,),
        in_specs=[
            pl.BlockSpec((b_tile, H0 * W0 + 2, C0), lambda n: (n, 0, 0)),
            pl.BlockSpec(ws[0].shape, lambda n: (0, 0, 0)),
            pl.BlockSpec(ws[1].shape, lambda n: (0, 0, 0)),
            pl.BlockSpec(ws[2].shape, lambda n: (0, 0, 0)),
            pl.BlockSpec(ss[0].shape, lambda n: (0, 0)),
            pl.BlockSpec(bs[0].shape, lambda n: (0, 0)),
            pl.BlockSpec(ss[1].shape, lambda n: (0, 0)),
            pl.BlockSpec(bs[1].shape, lambda n: (0, 0)),
            pl.BlockSpec(ss[2].shape, lambda n: (0, 0)),
            pl.BlockSpec(bs[2].shape, lambda n: (0, 0)),
        ],
        out_specs=pl.BlockSpec((b_tile, out_rows, c_last), lambda n: (n, 0, 0)),
        scratch_shapes=scratch_shapes,
        compiler_params=pltpu.CompilerParams(
            dimension_semantics=("parallel",),
            vmem_limit_bytes=32 * 1024 * 1024,   # safe on v5e/v6e/v7x
        ),
    )(xf, ws[0], ws[1], ws[2], ss[0], bs[0], ss[1], bs[1], ss[2], bs[2])

    # (N, HW, C) NHWC-flat  ->  torch's x.view(B, -1) on NCHW data.
    return jnp.transpose(out, (0, 2, 1)).reshape(N, -1)


# ----------------------------------------------------------------------------
# Pure-JAX f32 reference (sanity check)
# ----------------------------------------------------------------------------
def ref_forward(x_nchw, blocks):
    x = jnp.transpose(x_nchw, (0, 2, 3, 1))
    for (w_hwio, scale, bias) in blocks:
        y = lax.conv_general_dilated(
            x, w_hwio, window_strides=(1, 1), padding="VALID",
            dimension_numbers=("NHWC", "HWIO", "NHWC"),
            precision=lax.Precision.HIGHEST)
        y = jnp.maximum(y, 0.0) * scale.reshape(1, 1, 1, -1) + bias.reshape(1, 1, 1, -1)
        N, H, W, C = y.shape
        x = y.reshape(N, H // 2, 2, W // 2, 2, C).mean(axis=(2, 4))
    return jnp.transpose(x, (0, 3, 1, 2)).reshape(x.shape[0], -1)


# ----------------------------------------------------------------------------
# Parameter construction
# ----------------------------------------------------------------------------
def fold_bn(gamma, beta, rmean, rvar, eps=1e-5):
    scale = gamma / jnp.sqrt(rvar + eps)
    bias = beta - rmean * scale
    return scale.reshape(1, -1), bias.reshape(1, -1)


def make_params(key):
    chans = [(128, 64), (64, 32), (32, 16)]
    blocks = []
    for (cin, cout) in chans:
        key, kw, kg, kb, km, kv = jax.random.split(key, 6)
        w = 0.05 * jax.random.normal(kw, (3, 3, cin, cout), jnp.float32)
        gamma = 1.0 + 0.1 * jax.random.normal(kg, (cout,), jnp.float32)
        beta = 0.1 * jax.random.normal(kb, (cout,), jnp.float32)
        rmean = 0.05 * jax.random.normal(km, (cout,), jnp.float32)
        rvar = jax.random.uniform(kv, (cout,), jnp.float32, 0.5, 1.5)
        scale, bias = fold_bn(gamma, beta, rmean, rvar)
        blocks.append((w, scale, bias))
    return blocks


if __name__ == "__main__":
    key = jax.random.PRNGKey(0)
    key, kx = jax.random.split(key)
    # NCHW input for Conv2d(in_channels=128, ...): batch 2, spatial 30x30.
    x = jax.random.normal(kx, (2, 128, 30, 30), jnp.float32)
    blocks = make_params(key)

    # Pre-round x and conv weights to the bf16 grid so the bf16-MXU kernel and
    # the f32 reference see identical operands (inter-layer activations still
    # carry a small bf16 cast error, well inside the tolerance).
    rb = lambda a: a.astype(jnp.bfloat16).astype(jnp.float32)
    x = rb(x)
    blocks = [(rb(w), s, b) for (w, s, b) in blocks]

    out = jax.block_until_ready(jax.jit(eegnet_forward)(x, blocks))
    ref = jax.block_until_ready(jax.jit(ref_forward)(x, blocks))

    assert out.shape == ref.shape, (out.shape, ref.shape)
    np.testing.assert_allclose(np.asarray(out), np.asarray(ref), rtol=2e-2, atol=2e-2)

    print("KERNEL_OK")
</pallas_src>

<mosaic_0001>
module attributes {stable_mosaic.version = 11 : i64} {
  func.func @kernel(%arg0: i32, %arg1: memref<1x902x128xbf16, #tpu.memory_space<vmem>>, %arg2: memref<3x128x192xbf16, #tpu.memory_space<vmem>>, %arg3: memref<3x64x96xbf16, #tpu.memory_space<vmem>>, %arg4: memref<3x32x48xbf16, #tpu.memory_space<vmem>>, %arg5: memref<1x64xf32, #tpu.memory_space<vmem>>, %arg6: memref<1x64xf32, #tpu.memory_space<vmem>>, %arg7: memref<1x32xf32, #tpu.memory_space<vmem>>, %arg8: memref<1x32xf32, #tpu.memory_space<vmem>>, %arg9: memref<1x16xf32, #tpu.memory_space<vmem>>, %arg10: memref<1x16xf32, #tpu.memory_space<vmem>>, %arg11: memref<1x4x16xf32, #tpu.memory_space<vmem>>, %arg12: memref<842x192xf32, #tpu.memory_space<vmem>>, %arg13: memref<840x64xf32, #tpu.memory_space<vmem>>, %arg14: memref<420x64xf32, #tpu.memory_space<vmem>>, %arg15: memref<198x64xbf16, #tpu.memory_space<vmem>>, %arg16: memref<170x96xf32, #tpu.memory_space<vmem>>, %arg17: memref<168x32xf32, #tpu.memory_space<vmem>>, %arg18: memref<84x32xf32, #tpu.memory_space<vmem>>, %arg19: memref<38x32xbf16, #tpu.memory_space<vmem>>, %arg20: memref<26x48xf32, #tpu.memory_space<vmem>>, %arg21: memref<24x16xf32, #tpu.memory_space<vmem>>, %arg22: memref<12x16xf32, #tpu.memory_space<vmem>>) attributes {dimension_semantics = [#tpu.dimension_semantics<parallel>], iteration_bounds = array<i64: 2>, scalar_prefetch = 0 : i64, scratch_operands = 11 : i64, tpu.core_type = #tpu.core_type<tc>, window_params = [{transform_indices = @transform_0, window_bounds = array<i64: 1, 902, 128>}, {pipeline_mode = #tpu.pipeline_mode<synchronous>, transform_indices = @transform_1, window_bounds = array<i64: 3, 128, 192>}, {pipeline_mode = #tpu.pipeline_mode<synchronous>, transform_indices = @transform_2, window_bounds = array<i64: 3, 64, 96>}, {pipeline_mode = #tpu.pipeline_mode<synchronous>, transform_indices = @transform_3, window_bounds = array<i64: 3, 32, 48>}, {pipeline_mode = #tpu.pipeline_mode<synchronous>, transform_indices = @transform_4, window_bounds = array<i64: 1, 64>}, {pipeline_mode = #tpu.pipeline_mode<synchronous>, transform_indices = @transform_5, window_bounds = array<i64: 1, 64>}, {pipeline_mode = #tpu.pipeline_mode<synchronous>, transform_indices = @transform_6, window_bounds = array<i64: 1, 32>}, {pipeline_mode = #tpu.pipeline_mode<synchronous>, transform_indices = @transform_7, window_bounds = array<i64: 1, 32>}, {pipeline_mode = #tpu.pipeline_mode<synchronous>, transform_indices = @transform_8, window_bounds = array<i64: 1, 16>}, {pipeline_mode = #tpu.pipeline_mode<synchronous>, transform_indices = @transform_9, window_bounds = array<i64: 1, 16>}, {transform_indices = @transform_10, window_bounds = array<i64: 1, 4, 16>}]} {
    %c0 = arith.constant 0 : index
    %c0_0 = arith.constant 0 : index
    %c0_1 = arith.constant 0 : index
    %0 = vector.load %arg1[%c0, %c0_0, %c0_1] : memref<1x902x128xbf16, #tpu.memory_space<vmem>>, vector<1x842x128xbf16>
    %1 = vector.shape_cast %0 : vector<1x842x128xbf16> to vector<842x128xbf16>
    %c0_2 = arith.constant 0 : index
    %c0_3 = arith.constant 0 : index
    %c0_4 = arith.constant 0 : index
    %2 = vector.load %arg2[%c0_2, %c0_3, %c0_4] : memref<3x128x192xbf16, #tpu.memory_space<vmem>>, vector<1x128x192xbf16>
    %3 = vector.shape_cast %2 : vector<1x128x192xbf16> to vector<128x192xbf16>
    %cst = arith.constant dense<0.000000e+00> : vector<842x192xf32>
    %4 = tpu.matmul %1, %3, %cst {dimension_numbers = #tpu.dot_dimension_numbers<[1], [0], [0], [1], [0, 0, 1, 1], [], []>} : vector<842x128xbf16>, vector<128x192xbf16>, vector<842x192xf32> -> vector<842x192xf32>
    %c0_5 = arith.constant 0 : index
    %c0_6 = arith.constant 0 : index
    %5 = vector.load %arg12[%c0_5, %c0_6] : memref<842x192xf32, #tpu.memory_space<vmem>>, vector<842x192xf32>
    tpu.vector_store %arg12[%c0_5, %c0_6], %4 {strides = array<i32>} : memref<842x192xf32, #tpu.memory_space<vmem>>, vector<842x192xf32>,
    %c0_7 = arith.constant 0 : index
    %c0_8 = arith.constant 0 : index
    %6 = vector.load %arg12[%c0_7, %c0_8] : memref<842x192xf32, #tpu.memory_space<vmem>>, vector<842x192xf32>
    %c0_9 = arith.constant 0 : index
    %c30 = arith.constant 30 : index
    %c0_10 = arith.constant 0 : index
    %7 = vector.load %arg1[%c0_9, %c30, %c0_10] : memref<1x902x128xbf16, #tpu.memory_space<vmem>>, vector<1x842x128xbf16>
    %8 = vector.shape_cast %7 : vector<1x842x128xbf16> to vector<842x128xbf16>
    %c1 = arith.constant 1 : index
    %c0_11 = arith.constant 0 : index
    %c0_12 = arith.constant 0 : index
    %9 = vector.load %arg2[%c1, %c0_11, %c0_12] : memref<3x128x192xbf16, #tpu.memory_space<vmem>>, vector<1x128x192xbf16>
    %10 = vector.shape_cast %9 : vector<1x128x192xbf16> to vector<128x192xbf16>
    %cst_13 = arith.constant dense<0.000000e+00> : vector<842x192xf32>
    %11 = tpu.matmul %8, %10, %cst_13 {dimension_numbers = #tpu.dot_dimension_numbers<[1], [0], [0], [1], [0, 0, 1, 1], [], []>} : vector<842x128xbf16>, vector<128x192xbf16>, vector<842x192xf32> -> vector<842x192xf32>
    %12 = arith.addf %6, %11 : vector<842x192xf32>
    %c0_14 = arith.constant 0 : index
    %c0_15 = arith.constant 0 : index
    %13 = vector.load %arg12[%c0_14, %c0_15] : memref<842x192xf32, #tpu.memory_space<vmem>>, vector<842x192xf32>
    tpu.vector_store %arg12[%c0_14, %c0_15], %12 {strides = array<i32>} : memref<842x192xf32, #tpu.memory_space<vmem>>, vector<842x192xf32>,
    %c0_16 = arith.constant 0 : index
    %c0_17 = arith.constant 0 : index
    %14 = vector.load %arg12[%c0_16, %c0_17] : memref<842x192xf32, #tpu.memory_space<vmem>>, vector<842x192xf32>
    %c0_18 = arith.constant 0 : index
    %c60 = arith.constant 60 : index
    %c0_19 = arith.constant 0 : index
    %15 = vector.load %arg1[%c0_18, %c60, %c0_19] : memref<1x902x128xbf16, #tpu.memory_space<vmem>>, vector<1x842x128xbf16>
    %16 = vector.shape_cast %15 : vector<1x842x128xbf16> to vector<842x128xbf16>
    %c2 = arith.constant 2 : index
    %c0_20 = arith.constant 0 : index
    %c0_21 = arith.constant 0 : index
    %17 = vector.load %arg2[%c2, %c0_20, %c0_21] : memref<3x128x192xbf16, #tpu.memory_space<vmem>>, vector<1x128x192xbf16>
    %18 = vector.shape_cast %17 : vector<1x128x192xbf16> to vector<128x192xbf16>
    %cst_22 = arith.constant dense<0.000000e+00> : vector<842x192xf32>
    %19 = tpu.matmul %16, %18, %cst_22 {dimension_numbers = #tpu.dot_dimension_numbers<[1], [0], [0], [1], [0, 0, 1, 1], [], []>} : vector<842x128xbf16>, vector<128x192xbf16>, vector<842x192xf32> -> vector<842x192xf32>
    %20 = arith.addf %14, %19 : vector<842x192xf32>
    %c0_23 = arith.constant 0 : index
    %c0_24 = arith.constant 0 : index
    %21 = vector.load %arg12[%c0_23, %c0_24] : memref<842x192xf32, #tpu.memory_space<vmem>>, vector<842x192xf32>
    tpu.vector_store %arg12[%c0_23, %c0_24], %20 {strides = array<i32>} : memref<842x192xf32, #tpu.memory_space<vmem>>, vector<842x192xf32>,
    %c0_25 = arith.constant 0 : index
    %c0_26 = arith.constant 0 : index
    %22 = vector.load %arg12[%c0_25, %c0_26] : memref<842x192xf32, #tpu.memory_space<vmem>>, vector<840x64xf32>
    %c1_27 = arith.constant 1 : index
    %c64 = arith.constant 64 : index
    %23 = vector.load %arg12[%c1_27, %c64] : memref<842x192xf32, #tpu.memory_space<vmem>>, vector<840x64xf32>
    %24 = arith.addf %22, %23 : vector<840x64xf32>
    %c2_28 = arith.constant 2 : index
    %c128 = arith.constant 128 : index
    %25 = vector.load %arg12[%c2_28, %c128] : memref<842x192xf32, #tpu.memory_space<vmem>>, vector<840x64xf32>
    %26 = arith.addf %24, %25 : vector<840x64xf32>
    %cst_29 = arith.constant 0.000000e+00 : f32
    %27 = vector.broadcast %cst_29 : f32 to vector<840x64xf32>
    %28 = arith.maximumf %26, %27 : vector<840x64xf32>
    %c0_30 = arith.constant 0 : index
    %c0_31 = arith.constant 0 : index
    %29 = vector.load %arg5[%c0_30, %c0_31] : memref<1x64xf32, #tpu.memory_space<vmem>>, vector<1x64xf32>
    %30 = vector.broadcast %29 : vector<1x64xf32> to vector<840x64xf32>
    %31 = arith.mulf %28, %30 : vector<840x64xf32>
    %c0_32 = arith.constant 0 : index
    %c0_33 = arith.constant 0 : index
    %32 = vector.load %arg6[%c0_32, %c0_33] : memref<1x64xf32, #tpu.memory_space<vmem>>, vector<1x64xf32>
    %33 = vector.broadcast %32 : vector<1x64xf32> to vector<840x64xf32>
    %34 = arith.addf %31, %33 : vector<840x64xf32>
    %c0_34 = arith.constant 0 : index
    %c0_35 = arith.constant 0 : index
    %35 = vector.load %arg13[%c0_34, %c0_35] : memref<840x64xf32, #tpu.memory_space<vmem>>, vector<840x64xf32>
    tpu.vector_store %arg13[%c0_34, %c0_35], %34 {strides = array<i32>} : memref<840x64xf32, #tpu.memory_space<vmem>>, vector<840x64xf32>,
    %c0_36 = arith.constant 0 : index
    %c0_37 = arith.constant 0 : index
    %36 = tpu.strided_load %arg13[%c0_36, %c0_37] {strides = array<i32: 2, 1>} : memref<840x64xf32, #tpu.memory_space<vmem>>, vector<420x64xf32>
    %c1_38 = arith.constant 1 : index
    %c0_39 = arith.constant 0 : index
    %37 = tpu.strided_load %arg13[%c1_38, %c0_39] {strides = array<i32: 2, 1>} : memref<840x64xf32, #tpu.memory_space<vmem>>, vector<420x64xf32>
    %38 = arith.addf %36, %37 : vector<420x64xf32>
    %c0_40 = arith.constant 0 : index
    %c0_41 = arith.constant 0 : index
    %39 = vector.load %arg14[%c0_40, %c0_41] : memref<420x64xf32, #tpu.memory_space<vmem>>, vector<420x64xf32>
    tpu.vector_store %arg14[%c0_40, %c0_41], %38 {strides = array<i32>} : memref<420x64xf32, #tpu.memory_space<vmem>>, vector<420x64xf32>,
    %c0_42 = arith.constant 0 : index
    %c0_43 = arith.constant 0 : index
    %40 = vector.load %arg14[%c0_42, %c0_43] : memref<420x64xf32, #tpu.memory_space<vmem>>, vector<14x64xf32>
    %c15 = arith.constant 15 : index
    %c0_44 = arith.constant 0 : index
    %41 = vector.load %arg14[%c15, %c0_44] : memref<420x64xf32, #tpu.memory_space<vmem>>, vector<14x64xf32>
    %42 = arith.addf %40, %41 : vector<14x64xf32>
    %cst_45 = arith.constant 2.500000e-01 : f32
    %43 = vector.broadcast %cst_45 : f32 to vector<14x64xf32>
    %44 = arith.mulf %42, %43 : vector<14x64xf32>
    %45 = arith.truncf %44 : vector<14x64xf32> to vector<14x64xbf16>
    %c0_46 = arith.constant 0 : index
    %c0_47 = arith.constant 0 : index
    %46 = vector.load %arg15[%c0_46, %c0_47] : memref<198x64xbf16, #tpu.memory_space<vmem>>, vector<14x64xbf16>
    tpu.vector_store %arg15[%c0_46, %c0_47], %45 {strides = array<i32>} : memref<198x64xbf16, #tpu.memory_space<vmem>>, vector<14x64xbf16>,
    %c30_48 = arith.constant 30 : index
    %c0_49 = arith.constant 0 : index
    %47 = vector.load %arg14[%c30_48, %c0_49] : memref<420x64xf32, #tpu.memory_space<vmem>>, vector<14x64xf32>
    %c45 = arith.constant 45 : index
    %c0_50 = arith.constant 0 : index
    %48 = vector.load %arg14[%c45, %c0_50] : memref<420x64xf32, #tpu.memory_space<vmem>>, vector<14x64xf32>
    %49 = arith.addf %47, %48 : vector<14x64xf32>
    %cst_51 = arith.constant 2.500000e-01 : f32
    %50 = vector.broadcast %cst_51 : f32 to vector<14x64xf32>
    %51 = arith.mulf %49, %50 : vector<14x64xf32>
    %52 = arith.truncf %51 : vector<14x64xf32> to vector<14x64xbf16>
    %c14 = arith.constant 14 : index
    %c0_52 = arith.constant 0 : index
    %53 = vector.load %arg15[%c14, %c0_52] : memref<198x64xbf16, #tpu.memory_space<vmem>>, vector<14x64xbf16>
    tpu.vector_store %arg15[%c14, %c0_52], %52 {strides = array<i32>} : memref<198x64xbf16, #tpu.memory_space<vmem>>, vector<14x64xbf16>,
    %c60_53 = arith.constant 60 : index
    %c0_54 = arith.constant 0 : index
    %54 = vector.load %arg14[%c60_53, %c0_54] : memref<420x64xf32, #tpu.memory_space<vmem>>, vector<14x64xf32>
    %c75 = arith.constant 75 : index
    %c0_55 = arith.constant 0 : index
    %55 = vector.load %arg14[%c75, %c0_55] : memref<420x64xf32, #tpu.memory_space<vmem>>, vector<14x64xf32>
    %56 = arith.addf %54, %55 : vector<14x64xf32>
    %cst_56 = arith.constant 2.500000e-01 : f32
    %57 = vector.broadcast %cst_56 : f32 to vector<14x64xf32>
    %58 = arith.mulf %56, %57 : vector<14x64xf32>
    %59 = arith.truncf %58 : vector<14x64xf32> to vector<14x64xbf16>
    %c28 = arith.constant 28 : index
    %c0_57 = arith.constant 0 : index
    %60 = vector.load %arg15[%c28, %c0_57] : memref<198x64xbf16, #tpu.memory_space<vmem>>, vector<14x64xbf16>
    tpu.vector_store %arg15[%c28, %c0_57], %59 {strides = array<i32>} : memref<198x64xbf16, #tpu.memory_space<vmem>>, vector<14x64xbf16>,
    %c90 = arith.constant 90 : index
    %c0_58 = arith.constant 0 : index
    %61 = vector.load %arg14[%c90, %c0_58] : memref<420x64xf32, #tpu.memory_space<vmem>>, vector<14x64xf32>
    %c105 = arith.constant 105 : index
    %c0_59 = arith.constant 0 : index
    %62 = vector.load %arg14[%c105, %c0_59] : memref<420x64xf32, #tpu.memory_space<vmem>>, vector<14x64xf32>
    %63 = arith.addf %61, %62 : vector<14x64xf32>
    %cst_60 = arith.constant 2.500000e-01 : f32
    %64 = vector.broadcast %cst_60 : f32 to vector<14x64xf32>
    %65 = arith.mulf %63, %64 : vector<14x64xf32>
    %66 = arith.truncf %65 : vector<14x64xf32> to vector<14x64xbf16>
    %c42 = arith.constant 42 : index
    %c0_61 = arith.constant 0 : index
    %67 = vector.load %arg15[%c42, %c0_61] : memref<198x64xbf16, #tpu.memory_space<vmem>>, vector<14x64xbf16>
    tpu.vector_store %arg15[%c42, %c0_61], %66 {strides = array<i32>} : memref<198x64xbf16, #tpu.memory_space<vmem>>, vector<14x64xbf16>,
    %c120 = arith.constant 120 : index
    %c0_62 = arith.constant 0 : index
    %68 = vector.load %arg14[%c120, %c0_62] : memref<420x64xf32, #tpu.memory_space<vmem>>, vector<14x64xf32>
    %c135 = arith.constant 135 : index
    %c0_63 = arith.constant 0 : index
    %69 = vector.load %arg14[%c135, %c0_63] : memref<420x64xf32, #tpu.memory_space<vmem>>, vector<14x64xf32>
    %70 = arith.addf %68, %69 : vector<14x64xf32>
    %cst_64 = arith.constant 2.500000e-01 : f32
    %71 = vector.broadcast %cst_64 : f32 to vector<14x64xf32>
    %72 = arith.mulf %70, %71 : vector<14x64xf32>
    %73 = arith.truncf %72 : vector<14x64xf32> to vector<14x64xbf16>
    %c56 = arith.constant 56 : index
    %c0_65 = arith.constant 0 : index
    %74 = vector.load %arg15[%c56, %c0_65] : memref<198x64xbf16, #tpu.memory_space<vmem>>, vector<14x64xbf16>
    tpu.vector_store %arg15[%c56, %c0_65], %73 {strides = array<i32>} : memref<198x64xbf16, #tpu.memory_space<vmem>>, vector<14x64xbf16>,
    %c150 = arith.constant 150 : index
    %c0_66 = arith.constant 0 : index
    %75 = vector.load %arg14[%c150, %c0_66] : memref<420x64xf32, #tpu.memory_space<vmem>>, vector<14x64xf32>
    %c165 = arith.constant 165 : index
    %c0_67 = arith.constant 0 : index
    %76 = vector.load %arg14[%c165, %c0_67] : memref<420x64xf32, #tpu.memory_space<vmem>>, vector<14x64xf32>
    %77 = arith.addf %75, %76 : vector<14x64xf32>
    %cst_68 = arith.constant 2.500000e-01 : f32
    %78 = vector.broadcast %cst_68 : f32 to vector<14x64xf32>
    %79 = arith.mulf %77, %78 : vector<14x64xf32>
    %80 = arith.truncf %79 : vector<14x64xf32> to vector<14x64xbf16>
    %c70 = arith.constant 70 : index
    %c0_69 = arith.constant 0 : index
    %81 = vector.load %arg15[%c70, %c0_69] : memref<198x64xbf16, #tpu.memory_space<vmem>>, vector<14x64xbf16>
    tpu.vector_store %arg15[%c70, %c0_69], %80 {strides = array<i32>} : memref<198x64xbf16, #tpu.memory_space<vmem>>, vector<14x64xbf16>,
    %c180 = arith.constant 180 : index
    %c0_70 = arith.constant 0 : index
    %82 = vector.load %arg14[%c180, %c0_70] : memref<420x64xf32, #tpu.memory_space<vmem>>, vector<14x64xf32>
    %c195 = arith.constant 195 : index
    %c0_71 = arith.constant 0 : index
    %83 = vector.load %arg14[%c195, %c0_71] : memref<420x64xf32, #tpu.memory_space<vmem>>, vector<14x64xf32>
    %84 = arith.addf %82, %83 : vector<14x64xf32>
    %cst_72 = arith.constant 2.500000e-01 : f32
    %85 = vector.broadcast %cst_72 : f32 to vector<14x64xf32>
    %86 = arith.mulf %84, %85 : vector<14x64xf32>
    %87 = arith.truncf %86 : vector<14x64xf32> to vector<14x64xbf16>
    %c84 = arith.constant 84 : index
    %c0_73 = arith.constant 0 : index
    %88 = vector.load %arg15[%c84, %c0_73] : memref<198x64xbf16, #tpu.memory_space<vmem>>, vector<14x64xbf16>
    tpu.vector_store %arg15[%c84, %c0_73], %87 {strides = array<i32>} : memref<198x64xbf16, #tpu.memory_space<vmem>>, vector<14x64xbf16>,
    %c210 = arith.constant 210 : index
    %c0_74 = arith.constant 0 : index
    %89 = vector.load %arg14[%c210, %c0_74] : memref<420x64xf32, #tpu.memory_space<vmem>>, vector<14x64xf32>
    %c225 = arith.constant 225 : index
    %c0_75 = arith.constant 0 : index
    %90 = vector.load %arg14[%c225, %c0_75] : memref<420x64xf32, #tpu.memory_space<vmem>>, vector<14x64xf32>
    %91 = arith.addf %89, %90 : vector<14x64xf32>
    %cst_76 = arith.constant 2.500000e-01 : f32
    %92 = vector.broadcast %cst_76 : f32 to vector<14x64xf32>
    %93 = arith.mulf %91, %92 : vector<14x64xf32>
    %94 = arith.truncf %93 : vector<14x64xf32> to vector<14x64xbf16>
    %c98 = arith.constant 98 : index
    %c0_77 = arith.constant 0 : index
    %95 = vector.load %arg15[%c98, %c0_77] : memref<198x64xbf16, #tpu.memory_space<vmem>>, vector<14x64xbf16>
    tpu.vector_store %arg15[%c98, %c0_77], %94 {strides = array<i32>} : memref<198x64xbf16, #tpu.memory_space<vmem>>, vector<14x64xbf16>,
    %c240 = arith.constant 240 : index
    %c0_78 = arith.constant 0 : index
    %96 = vector.load %arg14[%c240, %c0_78] : memref<420x64xf32, #tpu.memory_space<vmem>>, vector<14x64xf32>
    %c255 = arith.constant 255 : index
    %c0_79 = arith.constant 0 : index
    %97 = vector.load %arg14[%c255, %c0_79] : memref<420x64xf32, #tpu.memory_space<vmem>>, vector<14x64xf32>
    %98 = arith.addf %96, %97 : vector<14x64xf32>
    %cst_80 = arith.constant 2.500000e-01 : f32
    %99 = vector.broadcast %cst_80 : f32 to vector<14x64xf32>
    %100 = arith.mulf %98, %99 : vector<14x64xf32>
    %101 = arith.truncf %100 : vector<14x64xf32> to vector<14x64xbf16>
    %c112 = arith.constant 112 : index
    %c0_81 = arith.constant 0 : index
    %102 = vector.load %arg15[%c112, %c0_81] : memref<198x64xbf16, #tpu.memory_space<vmem>>, vector<14x64xbf16>
    tpu.vector_store %arg15[%c112, %c0_81], %101 {strides = array<i32>} : memref<198x64xbf16, #tpu.memory_space<vmem>>, vector<14x64xbf16>,
    %c270 = arith.constant 270 : index
    %c0_82 = arith.constant 0 : index
    %103 = vector.load %arg14[%c270, %c0_82] : memref<420x64xf32, #tpu.memory_space<vmem>>, vector<14x64xf32>
    %c285 = arith.constant 285 : index
    %c0_83 = arith.constant 0 : index
    %104 = vector.load %arg14[%c285, %c0_83] : memref<420x64xf32, #tpu.memory_space<vmem>>, vector<14x64xf32>
    %105 = arith.addf %103, %104 : vector<14x64xf32>
    %cst_84 = arith.constant 2.500000e-01 : f32
    %106 = vector.broadcast %cst_84 : f32 to vector<14x64xf32>
    %107 = arith.mulf %105, %106 : vector<14x64xf32>
    %108 = arith.truncf %107 : vector<14x64xf32> to vector<14x64xbf16>
    %c126 = arith.constant 126 : index
    %c0_85 = arith.constant 0 : index
    %109 = vector.load %arg15[%c126, %c0_85] : memref<198x64xbf16, #tpu.memory_space<vmem>>, vector<14x64xbf16>
    tpu.vector_store %arg15[%c126, %c0_85], %108 {strides = array<i32>} : memref<198x64xbf16, #tpu.memory_space<vmem>>, vector<14x64xbf16>,
    %c300 = arith.constant 300 : index
    %c0_86 = arith.constant 0 : index
    %110 = vector.load %arg14[%c300, %c0_86] : memref<420x64xf32, #tpu.memory_space<vmem>>, vector<14x64xf32>
    %c315 = arith.constant 315 : index
    %c0_87 = arith.constant 0 : index
    %111 = vector.load %arg14[%c315, %c0_87] : memref<420x64xf32, #tpu.memory_space<vmem>>, vector<14x64xf32>
    %112 = arith.addf %110, %111 : vector<14x64xf32>
    %cst_88 = arith.constant 2.500000e-01 : f32
    %113 = vector.broadcast %cst_88 : f32 to vector<14x64xf32>
    %114 = arith.mulf %112, %113 : vector<14x64xf32>
    %115 = arith.truncf %114 : vector<14x64xf32> to vector<14x64xbf16>
    %c140 = arith.constant 140 : index
    %c0_89 = arith.constant 0 : index
    %116 = vector.load %arg15[%c140, %c0_89] : memref<198x64xbf16, #tpu.memory_space<vmem>>, vector<14x64xbf16>
    tpu.vector_store %arg15[%c140, %c0_89], %115 {strides = array<i32>} : memref<198x64xbf16, #tpu.memory_space<vmem>>, vector<14x64xbf16>,
    %c330 = arith.constant 330 : index
    %c0_90 = arith.constant 0 : index
    %117 = vector.load %arg14[%c330, %c0_90] : memref<420x64xf32, #tpu.memory_space<vmem>>, vector<14x64xf32>
    %c345 = arith.constant 345 : index
    %c0_91 = arith.constant 0 : index
    %118 = vector.load %arg14[%c345, %c0_91] : memref<420x64xf32, #tpu.memory_space<vmem>>, vector<14x64xf32>
    %119 = arith.addf %117, %118 : vector<14x64xf32>
    %cst_92 = arith.constant 2.500000e-01 : f32
    %120 = vector.broadcast %cst_92 : f32 to vector<14x64xf32>
    %121 = arith.mulf %119, %120 : vector<14x64xf32>
    %122 = arith.truncf %121 : vector<14x64xf32> to vector<14x64xbf16>
    %c154 = arith.constant 154 : index
    %c0_93 = arith.constant 0 : index
    %123 = vector.load %arg15[%c154, %c0_93] : memref<198x64xbf16, #tpu.memory_space<vmem>>, vector<14x64xbf16>
    tpu.vector_store %arg15[%c154, %c0_93], %122 {strides = array<i32>} : memref<198x64xbf16, #tpu.memory_space<vmem>>, vector<14x64xbf16>,
    %c360 = arith.constant 360 : index
    %c0_94 = arith.constant 0 : index
    %124 = vector.load %arg14[%c360, %c0_94] : memref<420x64xf32, #tpu.memory_space<vmem>>, vector<14x64xf32>
    %c375 = arith.constant 375 : index
    %c0_95 = arith.constant 0 : index
    %125 = vector.load %arg14[%c375, %c0_95] : memref<420x64xf32, #tpu.memory_space<vmem>>, vector<14x64xf32>
    %126 = arith.addf %124, %125 : vector<14x64xf32>
    %cst_96 = arith.constant 2.500000e-01 : f32
    %127 = vector.broadcast %cst_96 : f32 to vector<14x64xf32>
    %128 = arith.mulf %126, %127 : vector<14x64xf32>
    %129 = arith.truncf %128 : vector<14x64xf32> to vector<14x64xbf16>
    %c168 = arith.constant 168 : index
    %c0_97 = arith.constant 0 : index
    %130 = vector.load %arg15[%c168, %c0_97] : memref<198x64xbf16, #tpu.memory_space<vmem>>, vector<14x64xbf16>
    tpu.vector_store %arg15[%c168, %c0_97], %129 {strides = array<i32>} : memref<198x64xbf16, #tpu.memory_space<vmem>>, vector<14x64xbf16>,
    %c390 = arith.constant 390 : index
    %c0_98 = arith.constant 0 : index
    %131 = vector.load %arg14[%c390, %c0_98] : memref<420x64xf32, #tpu.memory_space<vmem>>, vector<14x64xf32>
    %c405 = arith.constant 405 : index
    %c0_99 = arith.constant 0 : index
    %132 = vector.load %arg14[%c405, %c0_99] : memref<420x64xf32, #tpu.memory_space<vmem>>, vector<14x64xf32>
    %133 = arith.addf %131, %132 : vector<14x64xf32>
    %cst_100 = arith.constant 2.500000e-01 : f32
    %134 = vector.broadcast %cst_100 : f32 to vector<14x64xf32>
    %135 = arith.mulf %133, %134 : vector<14x64xf32>
    %136 = arith.truncf %135 : vector<14x64xf32> to vector<14x64xbf16>
    %c182 = arith.constant 182 : index
    %c0_101 = arith.constant 0 : index
    %137 = vector.load %arg15[%c182, %c0_101] : memref<198x64xbf16, #tpu.memory_space<vmem>>, vector<14x64xbf16>
    tpu.vector_store %arg15[%c182, %c0_101], %136 {strides = array<i32>} : memref<198x64xbf16, #tpu.memory_space<vmem>>, vector<14x64xbf16>,
    %cst_102 = arith.constant 0.000000e+00 : bf16
    %138 = vector.broadcast %cst_102 : bf16 to vector<2x64xbf16>
    %c196 = arith.constant 196 : index
    %c0_103 = arith.constant 0 : index
    %139 = vector.load %arg15[%c196, %c0_103] : memref<198x64xbf16, #tpu.memory_space<vmem>>, vector<2x64xbf16>
    tpu.vector_store %arg15[%c196, %c0_103], %138 {strides = array<i32>} : memref<198x64xbf16, #tpu.memory_space<vmem>>, vector<2x64xbf16>,
    %c0_104 = arith.constant 0 : index
    %c0_105 = arith.constant 0 : index
    %140 = vector.load %arg15[%c0_104, %c0_105] : memref<198x64xbf16, #tpu.memory_space<vmem>>, vector<170x64xbf16>
    %c0_106 = arith.constant 0 : index
    %c0_107 = arith.constant 0 : index
    %c0_108 = arith.constant 0 : index
    %141 = vector.load %arg3[%c0_106, %c0_107, %c0_108] : memref<3x64x96xbf16, #tpu.memory_space<vmem>>, vector<1x64x96xbf16>
    %142 = vector.shape_cast %141 : vector<1x64x96xbf16> to vector<64x96xbf16>
    %cst_109 = arith.constant dense<0.000000e+00> : vector<170x96xf32>
    %143 = tpu.matmul %140, %142, %cst_109 {dimension_numbers = #tpu.dot_dimension_numbers<[1], [0], [0], [1], [0, 0, 1, 1], [], []>} : vector<170x64xbf16>, vector<64x96xbf16>, vector<170x96xf32> -> vector<170x96xf32>
    %c0_110 = arith.constant 0 : index
    %c0_111 = arith.constant 0 : index
    %144 = vector.load %arg16[%c0_110, %c0_111] : memref<170x96xf32, #tpu.memory_space<vmem>>, vector<170x96xf32>
    tpu.vector_store %arg16[%c0_110, %c0_111], %143 {strides = array<i32>} : memref<170x96xf32, #tpu.memory_space<vmem>>, vector<170x96xf32>,
    %c0_112 = arith.constant 0 : index
    %c0_113 = arith.constant 0 : index
    %145 = vector.load %arg16[%c0_112, %c0_113] : memref<170x96xf32, #tpu.memory_space<vmem>>, vector<170x96xf32>
    %c14_114 = arith.constant 14 : index
    %c0_115 = arith.constant 0 : index
    %146 = vector.load %arg15[%c14_114, %c0_115] : memref<198x64xbf16, #tpu.memory_space<vmem>>, vector<170x64xbf16>
    %c1_116 = arith.constant 1 : index
    %c0_117 = arith.constant 0 : index
    %c0_118 = arith.constant 0 : index
    %147 = vector.load %arg3[%c1_116, %c0_117, %c0_118] : memref<3x64x96xbf16, #tpu.memory_space<vmem>>, vector<1x64x96xbf16>
    %148 = vector.shape_cast %147 : vector<1x64x96xbf16> to vector<64x96xbf16>
    %cst_119 = arith.constant dense<0.000000e+00> : vector<170x96xf32>
    %149 = tpu.matmul %146, %148, %cst_119 {dimension_numbers = #tpu.dot_dimension_numbers<[1], [0], [0], [1], [0, 0, 1, 1], [], []>} : vector<170x64xbf16>, vector<64x96xbf16>, vector<170x96xf32> -> vector<170x96xf32>
    %150 = arith.addf %145, %149 : vector<170x96xf32>
    %c0_120 = arith.constant 0 : index
    %c0_121 = arith.constant 0 : index
    %151 = vector.load %arg16[%c0_120, %c0_121] : memref<170x96xf32, #tpu.memory_space<vmem>>, vector<170x96xf32>
    tpu.vector_store %arg16[%c0_120, %c0_121], %150 {strides = array<i32>} : memref<170x96xf32, #tpu.memory_space<vmem>>, vector<170x96xf32>,
    %c0_122 = arith.constant 0 : index
    %c0_123 = arith.constant 0 : index
    %152 = vector.load %arg16[%c0_122, %c0_123] : memref<170x96xf32, #tpu.memory_space<vmem>>, vector<170x96xf32>
    %c28_124 = arith.constant 28 : index
    %c0_125 = arith.constant 0 : index
    %153 = vector.load %arg15[%c28_124, %c0_125] : memref<198x64xbf16, #tpu.memory_space<vmem>>, vector<170x64xbf16>
    %c2_126 = arith.constant 2 : index
    %c0_127 = arith.constant 0 : index
    %c0_128 = arith.constant 0 : index
    %154 = vector.load %arg3[%c2_126, %c0_127, %c0_128] : memref<3x64x96xbf16, #tpu.memory_space<vmem>>, vector<1x64x96xbf16>
    %155 = vector.shape_cast %154 : vector<1x64x96xbf16> to vector<64x96xbf16>
    %cst_129 = arith.constant dense<0.000000e+00> : vector<170x96xf32>
    %156 = tpu.matmul %153, %155, %cst_129 {dimension_numbers = #tpu.dot_dimension_numbers<[1], [0], [0], [1], [0, 0, 1, 1], [], []>} : vector<170x64xbf16>, vector<64x96xbf16>, vector<170x96xf32> -> vector<170x96xf32>
    %157 = arith.addf %152, %156 : vector<170x96xf32>
    %c0_130 = arith.constant 0 : index
    %c0_131 = arith.constant 0 : index
    %158 = vector.load %arg16[%c0_130, %c0_131] : memref<170x96xf32, #tpu.memory_space<vmem>>, vector<170x96xf32>
    tpu.vector_store %arg16[%c0_130, %c0_131], %157 {strides = array<i32>} : memref<170x96xf32, #tpu.memory_space<vmem>>, vector<170x96xf32>,
    %c0_132 = arith.constant 0 : index
    %c0_133 = arith.constant 0 : index
    %159 = vector.load %arg16[%c0_132, %c0_133] : memref<170x96xf32, #tpu.memory_space<vmem>>, vector<168x32xf32>
    %c1_134 = arith.constant 1 : index
    %c32 = arith.constant 32 : index
    %160 = vector.load %arg16[%c1_134, %c32] : memref<170x96xf32, #tpu.memory_space<vmem>>, vector<168x32xf32>
    %161 = arith.addf %159, %160 : vector<168x32xf32>
    %c2_135 = arith.constant 2 : index
    %c64_136 = arith.constant 64 : index
    %162 = vector.load %arg16[%c2_135, %c64_136] : memref<170x96xf32, #tpu.memory_space<vmem>>, vector<168x32xf32>
    %163 = arith.addf %161, %162 : vector<168x32xf32>
    %cst_137 = arith.constant 0.000000e+00 : f32
    %164 = vector.broadcast %cst_137 : f32 to vector<168x32xf32>
    %165 = arith.maximumf %163, %164 : vector<168x32xf32>
    %c0_138 = arith.constant 0 : index
    %c0_139 = arith.constant 0 : index
    %166 = vector.load %arg7[%c0_138, %c0_139] : memref<1x32xf32, #tpu.memory_space<vmem>>, vector<1x32xf32>
    %167 = vector.broadcast %166 : vector<1x32xf32> to vector<168x32xf32>
    %168 = arith.mulf %165, %167 : vector<168x32xf32>
    %c0_140 = arith.constant 0 : index
    %c0_141 = arith.constant 0 : index
    %169 = vector.load %arg8[%c0_140, %c0_141] : memref<1x32xf32, #tpu.memory_space<vmem>>, vector<1x32xf32>
    %170 = vector.broadcast %169 : vector<1x32xf32> to vector<168x32xf32>
    %171 = arith.addf %168, %170 : vector<168x32xf32>
    %c0_142 = arith.constant 0 : index
    %c0_143 = arith.constant 0 : index
    %172 = vector.load %arg17[%c0_142, %c0_143] : memref<168x32xf32, #tpu.memory_space<vmem>>, vector<168x32xf32>
    tpu.vector_store %arg17[%c0_142, %c0_143], %171 {strides = array<i32>} : memref<168x32xf32, #tpu.memory_space<vmem>>, vector<168x32xf32>,
    %c0_144 = arith.constant 0 : index
    %c0_145 = arith.constant 0 : index
    %173 = tpu.strided_load %arg17[%c0_144, %c0_145] {strides = array<i32: 2, 1>} : memref<168x32xf32, #tpu.memory_space<vmem>>, vector<84x32xf32>
    %c1_146 = arith.constant 1 : index
    %c0_147 = arith.constant 0 : index
    %174 = tpu.strided_load %arg17[%c1_146, %c0_147] {strides = array<i32: 2, 1>} : memref<168x32xf32, #tpu.memory_space<vmem>>, vector<84x32xf32>
    %175 = arith.addf %173, %174 : vector<84x32xf32>
    %c0_148 = arith.constant 0 : index
    %c0_149 = arith.constant 0 : index
    %176 = vector.load %arg18[%c0_148, %c0_149] : memref<84x32xf32, #tpu.memory_space<vmem>>, vector<84x32xf32>
    tpu.vector_store %arg18[%c0_148, %c0_149], %175 {strides = array<i32>} : memref<84x32xf32, #tpu.memory_space<vmem>>, vector<84x32xf32>,
    %c0_150 = arith.constant 0 : index
    %c0_151 = arith.constant 0 : index
    %177 = vector.load %arg18[%c0_150, %c0_151] : memref<84x32xf32, #tpu.memory_space<vmem>>, vector<6x32xf32>
    %c7 = arith.constant 7 : index
    %c0_152 = arith.constant 0 : index
    %178 = vector.load %arg18[%c7, %c0_152] : memref<84x32xf32, #tpu.memory_space<vmem>>, vector<6x32xf32>
    %179 = arith.addf %177, %178 : vector<6x32xf32>
    %cst_153 = arith.constant 2.500000e-01 : f32
    %180 = vector.broadcast %cst_153 : f32 to vector<6x32xf32>
    %181 = arith.mulf %179, %180 : vector<6x32xf32>
    %182 = arith.truncf %181 : vector<6x32xf32> to vector<6x32xbf16>
    %c0_154 = arith.constant 0 : index
    %c0_155 = arith.constant 0 : index
    %183 = vector.load %arg19[%c0_154, %c0_155] : memref<38x32xbf16, #tpu.memory_space<vmem>>, vector<6x32xbf16>
    tpu.vector_store %arg19[%c0_154, %c0_155], %182 {strides = array<i32>} : memref<38x32xbf16, #tpu.memory_space<vmem>>, vector<6x32xbf16>,
    %c14_156 = arith.constant 14 : index
    %c0_157 = arith.constant 0 : index
    %184 = vector.load %arg18[%c14_156, %c0_157] : memref<84x32xf32, #tpu.memory_space<vmem>>, vector<6x32xf32>
    %c21 = arith.constant 21 : index
    %c0_158 = arith.constant 0 : index
    %185 = vector.load %arg18[%c21, %c0_158] : memref<84x32xf32, #tpu.memory_space<vmem>>, vector<6x32xf32>
    %186 = arith.addf %184, %185 : vector<6x32xf32>
    %cst_159 = arith.constant 2.500000e-01 : f32
    %187 = vector.broadcast %cst_159 : f32 to vector<6x32xf32>
    %188 = arith.mulf %186, %187 : vector<6x32xf32>
    %189 = arith.truncf %188 : vector<6x32xf32> to vector<6x32xbf16>
    %c6 = arith.constant 6 : index
    %c0_160 = arith.constant 0 : index
    %190 = vector.load %arg19[%c6, %c0_160] : memref<38x32xbf16, #tpu.memory_space<vmem>>, vector<6x32xbf16>
    tpu.vector_store %arg19[%c6, %c0_160], %189 {strides = array<i32>} : memref<38x32xbf16, #tpu.memory_space<vmem>>, vector<6x32xbf16>,
    %c28_161 = arith.constant 28 : index
    %c0_162 = arith.constant 0 : index
    %191 = vector.load %arg18[%c28_161, %c0_162] : memref<84x32xf32, #tpu.memory_space<vmem>>, vector<6x32xf32>
    %c35 = arith.constant 35 : index
    %c0_163 = arith.constant 0 : index
    %192 = vector.load %arg18[%c35, %c0_163] : memref<84x32xf32, #tpu.memory_space<vmem>>, vector<6x32xf32>
    %193 = arith.addf %191, %192 : vector<6x32xf32>
    %cst_164 = arith.constant 2.500000e-01 : f32
    %194 = vector.broadcast %cst_164 : f32 to vector<6x32xf32>
    %195 = arith.mulf %193, %194 : vector<6x32xf32>
    %196 = arith.truncf %195 : vector<6x32xf32> to vector<6x32xbf16>
    %c12 = arith.constant 12 : index
    %c0_165 = arith.constant 0 : index
    %197 = vector.load %arg19[%c12, %c0_165] : memref<38x32xbf16, #tpu.memory_space<vmem>>, vector<6x32xbf16>
    tpu.vector_store %arg19[%c12, %c0_165], %196 {strides = array<i32>} : memref<38x32xbf16, #tpu.memory_space<vmem>>, vector<6x32xbf16>,
    %c42_166 = arith.constant 42 : index
    %c0_167 = arith.constant 0 : index
    %198 = vector.load %arg18[%c42_166, %c0_167] : memref<84x32xf32, #tpu.memory_space<vmem>>, vector<6x32xf32>
    %c49 = arith.constant 49 : index
    %c0_168 = arith.constant 0 : index
    %199 = vector.load %arg18[%c49, %c0_168] : memref<84x32xf32, #tpu.memory_space<vmem>>, vector<6x32xf32>
    %200 = arith.addf %198, %199 : vector<6x32xf32>
    %cst_169 = arith.constant 2.500000e-01 : f32
    %201 = vector.broadcast %cst_169 : f32 to vector<6x32xf32>
    %202 = arith.mulf %200, %201 : vector<6x32xf32>
    %203 = arith.truncf %202 : vector<6x32xf32> to vector<6x32xbf16>
    %c18 = arith.constant 18 : index
    %c0_170 = arith.constant 0 : index
    %204 = vector.load %arg19[%c18, %c0_170] : memref<38x32xbf16, #tpu.memory_space<vmem>>, vector<6x32xbf16>
    tpu.vector_store %arg19[%c18, %c0_170], %203 {strides = array<i32>} : memref<38x32xbf16, #tpu.memory_space<vmem>>, vector<6x32xbf16>,
    %c56_171 = arith.constant 56 : index
    %c0_172 = arith.constant 0 : index
    %205 = vector.load %arg18[%c56_171, %c0_172] : memref<84x32xf32, #tpu.memory_space<vmem>>, vector<6x32xf32>
    %c63 = arith.constant 63 : index
    %c0_173 = arith.constant 0 : index
    %206 = vector.load %arg18[%c63, %c0_173] : memref<84x32xf32, #tpu.memory_space<vmem>>, vector<6x32xf32>
    %207 = arith.addf %205, %206 : vector<6x32xf32>
    %cst_174 = arith.constant 2.500000e-01 : f32
    %208 = vector.broadcast %cst_174 : f32 to vector<6x32xf32>
    %209 = arith.mulf %207, %208 : vector<6x32xf32>
    %210 = arith.truncf %209 : vector<6x32xf32> to vector<6x32xbf16>
    %c24 = arith.constant 24 : index
    %c0_175 = arith.constant 0 : index
    %211 = vector.load %arg19[%c24, %c0_175] : memref<38x32xbf16, #tpu.memory_space<vmem>>, vector<6x32xbf16>
    tpu.vector_store %arg19[%c24, %c0_175], %210 {strides = array<i32>} : memref<38x32xbf16, #tpu.memory_space<vmem>>, vector<6x32xbf16>,
    %c70_176 = arith.constant 70 : index
    %c0_177 = arith.constant 0 : index
    %212 = vector.load %arg18[%c70_176, %c0_177] : memref<84x32xf32, #tpu.memory_space<vmem>>, vector<6x32xf32>
    %c77 = arith.constant 77 : index
    %c0_178 = arith.constant 0 : index
    %213 = vector.load %arg18[%c77, %c0_178] : memref<84x32xf32, #tpu.memory_space<vmem>>, vector<6x32xf32>
    %214 = arith.addf %212, %213 : vector<6x32xf32>
    %cst_179 = arith.constant 2.500000e-01 : f32
    %215 = vector.broadcast %cst_179 : f32 to vector<6x32xf32>
    %216 = arith.mulf %214, %215 : vector<6x32xf32>
    %217 = arith.truncf %216 : vector<6x32xf32> to vector<6x32xbf16>
    %c30_180 = arith.constant 30 : index
    %c0_181 = arith.constant 0 : index
    %218 = vector.load %arg19[%c30_180, %c0_181] : memref<38x32xbf16, #tpu.memory_space<vmem>>, vector<6x32xbf16>
    tpu.vector_store %arg19[%c30_180, %c0_181], %217 {strides = array<i32>} : memref<38x32xbf16, #tpu.memory_space<vmem>>, vector<6x32xbf16>,
    %cst_182 = arith.constant 0.000000e+00 : bf16
    %219 = vector.broadcast %cst_182 : bf16 to vector<2x32xbf16>
    %c36 = arith.constant 36 : index
    %c0_183 = arith.constant 0 : index
    %220 = vector.load %arg19[%c36, %c0_183] : memref<38x32xbf16, #tpu.memory_space<vmem>>, vector<2x32xbf16>
    tpu.vector_store %arg19[%c36, %c0_183], %219 {strides = array<i32>} : memref<38x32xbf16, #tpu.memory_space<vmem>>, vector<2x32xbf16>,
    %c0_184 = arith.constant 0 : index
    %c0_185 = arith.constant 0 : index
    %221 = vector.load %arg19[%c0_184, %c0_185] : memref<38x32xbf16, #tpu.memory_space<vmem>>, vector<26x32xbf16>
    %c0_186 = arith.constant 0 : index
    %c0_187 = arith.constant 0 : index
    %c0_188 = arith.constant 0 : index
    %222 = vector.load %arg4[%c0_186, %c0_187, %c0_188] : memref<3x32x48xbf16, #tpu.memory_space<vmem>>, vector<1x32x48xbf16>
    %223 = vector.shape_cast %222 : vector<1x32x48xbf16> to vector<32x48xbf16>
    %cst_189 = arith.constant dense<0.000000e+00> : vector<26x48xf32>
    %224 = tpu.matmul %221, %223, %cst_189 {dimension_numbers = #tpu.dot_dimension_numbers<[1], [0], [0], [1], [0, 0, 1, 1], [], []>} : vector<26x32xbf16>, vector<32x48xbf16>, vector<26x48xf32> -> vector<26x48xf32>
    %c0_190 = arith.constant 0 : index
    %c0_191 = arith.constant 0 : index
    %225 = vector.load %arg20[%c0_190, %c0_191] : memref<26x48xf32, #tpu.memory_space<vmem>>, vector<26x48xf32>
    tpu.vector_store %arg20[%c0_190, %c0_191], %224 {strides = array<i32>} : memref<26x48xf32, #tpu.memory_space<vmem>>, vector<26x48xf32>,
    %c0_192 = arith.constant 0 : index
    %c0_193 = arith.constant 0 : index
    %226 = vector.load %arg20[%c0_192, %c0_193] : memref<26x48xf32, #tpu.memory_space<vmem>>, vector<26x48xf32>
    %c6_194 = arith.constant 6 : index
    %c0_195 = arith.constant 0 : index
    %227 = vector.load %arg19[%c6_194, %c0_195] : memref<38x32xbf16, #tpu.memory_space<vmem>>, vector<26x32xbf16>
    %c1_196 = arith.constant 1 : index
    %c0_197 = arith.constant 0 : index
    %c0_198 = arith.constant 0 : index
    %228 = vector.load %arg4[%c1_196, %c0_197, %c0_198] : memref<3x32x48xbf16, #tpu.memory_space<vmem>>, vector<1x32x48xbf16>
    %229 = vector.shape_cast %228 : vector<1x32x48xbf16> to vector<32x48xbf16>
    %cst_199 = arith.constant dense<0.000000e+00> : vector<26x48xf32>
    %230 = tpu.matmul %227, %229, %cst_199 {dimension_numbers = #tpu.dot_dimension_numbers<[1], [0], [0], [1], [0, 0, 1, 1], [], []>} : vector<26x32xbf16>, vector<32x48xbf16>, vector<26x48xf32> -> vector<26x48xf32>
    %231 = arith.addf %226, %230 : vector<26x48xf32>
    %c0_200 = arith.constant 0 : index
    %c0_201 = arith.constant 0 : index
    %232 = vector.load %arg20[%c0_200, %c0_201] : memref<26x48xf32, #tpu.memory_space<vmem>>, vector<26x48xf32>
    tpu.vector_store %arg20[%c0_200, %c0_201], %231 {strides = array<i32>} : memref<26x48xf32, #tpu.memory_space<vmem>>, vector<26x48xf32>,
    %c0_202 = arith.constant 0 : index
    %c0_203 = arith.constant 0 : index
    %233 = vector.load %arg20[%c0_202, %c0_203] : memref<26x48xf32, #tpu.memory_space<vmem>>, vector<26x48xf32>
    %c12_204 = arith.constant 12 : index
    %c0_205 = arith.constant 0 : index
    %234 = vector.load %arg19[%c12_204, %c0_205] : memref<38x32xbf16, #tpu.memory_space<vmem>>, vector<26x32xbf16>
    %c2_206 = arith.constant 2 : index
    %c0_207 = arith.constant 0 : index
    %c0_208 = arith.constant 0 : index
    %235 = vector.load %arg4[%c2_206, %c0_207, %c0_208] : memref<3x32x48xbf16, #tpu.memory_space<vmem>>, vector<1x32x48xbf16>
    %236 = vector.shape_cast %235 : vector<1x32x48xbf16> to vector<32x48xbf16>
    %cst_209 = arith.constant dense<0.000000e+00> : vector<26x48xf32>
    %237 = tpu.matmul %234, %236, %cst_209 {dimension_numbers = #tpu.dot_dimension_numbers<[1], [0], [0], [1], [0, 0, 1, 1], [], []>} : vector<26x32xbf16>, vector<32x48xbf16>, vector<26x48xf32> -> vector<26x48xf32>
    %238 = arith.addf %233, %237 : vector<26x48xf32>
    %c0_210 = arith.constant 0 : index
    %c0_211 = arith.constant 0 : index
    %239 = vector.load %arg20[%c0_210, %c0_211] : memref<26x48xf32, #tpu.memory_space<vmem>>, vector<26x48xf32>
    tpu.vector_store %arg20[%c0_210, %c0_211], %238 {strides = array<i32>} : memref<26x48xf32, #tpu.memory_space<vmem>>, vector<26x48xf32>,
    %c0_212 = arith.constant 0 : index
    %c0_213 = arith.constant 0 : index
    %240 = vector.load %arg20[%c0_212, %c0_213] : memref<26x48xf32, #tpu.memory_space<vmem>>, vector<24x16xf32>
    %c1_214 = arith.constant 1 : index
    %c16 = arith.constant 16 : index
    %241 = vector.load %arg20[%c1_214, %c16] : memref<26x48xf32, #tpu.memory_space<vmem>>, vector<24x16xf32>
    %242 = arith.addf %240, %241 : vector<24x16xf32>
    %c2_215 = arith.constant 2 : index
    %c32_216 = arith.constant 32 : index
    %243 = vector.load %arg20[%c2_215, %c32_216] : memref<26x48xf32, #tpu.memory_space<vmem>>, vector<24x16xf32>
    %244 = arith.addf %242, %243 : vector<24x16xf32>
    %cst_217 = arith.constant 0.000000e+00 : f32
    %245 = vector.broadcast %cst_217 : f32 to vector<24x16xf32>
    %246 = arith.maximumf %244, %245 : vector<24x16xf32>
    %c0_218 = arith.constant 0 : index
    %c0_219 = arith.constant 0 : index
    %247 = vector.load %arg9[%c0_218, %c0_219] : memref<1x16xf32, #tpu.memory_space<vmem>>, vector<1x16xf32>
    %248 = vector.broadcast %247 : vector<1x16xf32> to vector<24x16xf32>
    %249 = arith.mulf %246, %248 : vector<24x16xf32>
    %c0_220 = arith.constant 0 : index
    %c0_221 = arith.constant 0 : index
    %250 = vector.load %arg10[%c0_220, %c0_221] : memref<1x16xf32, #tpu.memory_space<vmem>>, vector<1x16xf32>
    %251 = vector.broadcast %250 : vector<1x16xf32> to vector<24x16xf32>
    %252 = arith.addf %249, %251 : vector<24x16xf32>
    %c0_222 = arith.constant 0 : index
    %c0_223 = arith.constant 0 : index
    %253 = vector.load %arg21[%c0_222, %c0_223] : memref<24x16xf32, #tpu.memory_space<vmem>>, vector<24x16xf32>
    tpu.vector_store %arg21[%c0_222, %c0_223], %252 {strides = array<i32>} : memref<24x16xf32, #tpu.memory_space<vmem>>, vector<24x16xf32>,
    %c0_224 = arith.constant 0 : index
    %c0_225 = arith.constant 0 : index
    %254 = tpu.strided_load %arg21[%c0_224, %c0_225] {strides = array<i32: 2, 1>} : memref<24x16xf32, #tpu.memory_space<vmem>>, vector<12x16xf32>
    %c1_226 = arith.constant 1 : index
    %c0_227 = arith.constant 0 : index
    %255 = tpu.strided_load %arg21[%c1_226, %c0_227] {strides = array<i32: 2, 1>} : memref<24x16xf32, #tpu.memory_space<vmem>>, vector<12x16xf32>
    %256 = arith.addf %254, %255 : vector<12x16xf32>
    %c0_228 = arith.constant 0 : index
    %c0_229 = arith.constant 0 : index
    %257 = vector.load %arg22[%c0_228, %c0_229] : memref<12x16xf32, #tpu.memory_space<vmem>>, vector<12x16xf32>
    tpu.vector_store %arg22[%c0_228, %c0_229], %256 {strides = array<i32>} : memref<12x16xf32, #tpu.memory_space<vmem>>, vector<12x16xf32>,
    %c0_230 = arith.constant 0 : index
    %c0_231 = arith.constant 0 : index
    %258 = vector.load %arg22[%c0_230, %c0_231] : memref<12x16xf32, #tpu.memory_space<vmem>>, vector<2x16xf32>
    %c3 = arith.constant 3 : index
    %c0_232 = arith.constant 0 : index
    %259 = vector.load %arg22[%c3, %c0_232] : memref<12x16xf32, #tpu.memory_space<vmem>>, vector<2x16xf32>
    %260 = arith.addf %258, %259 : vector<2x16xf32>
    %cst_233 = arith.constant 2.500000e-01 : f32
    %261 = vector.broadcast %cst_233 : f32 to vector<2x16xf32>
    %262 = arith.mulf %260, %261 : vector<2x16xf32>
    %c0_i32 = arith.constant 0 : i32
    %c0_i32_234 = arith.constant 0 : i32
    %c0_i32_235 = arith.constant 0 : i32
    %263 = tpu.memref_slice %arg11[%c0_i32, %c0_i32_234, %c0_i32_235] : memref<1x4x16xf32, #tpu.memory_space<vmem>> -> memref<1x4x16xf32, #tpu.memory_space<vmem>>
    %264 = tpu.memref_squeeze %263 : memref<1x4x16xf32, #tpu.memory_space<vmem>> -> memref<4x16xf32, #tpu.memory_space<vmem>>
    %c0_236 = arith.constant 0 : index
    %c0_237 = arith.constant 0 : index
    %265 = vector.load %264[%c0_236, %c0_237] : memref<4x16xf32, #tpu.memory_space<vmem>>, vector<2x16xf32>
    tpu.vector_store %264[%c0_236, %c0_237], %262 {strides = array<i32>} : memref<4x16xf32, #tpu.memory_space<vmem>>, vector<2x16xf32>,
    %c6_238 = arith.constant 6 : index
    %c0_239 = arith.constant 0 : index
    %266 = vector.load %arg22[%c6_238, %c0_239] : memref<12x16xf32, #tpu.memory_space<vmem>>, vector<2x16xf32>
    %c9 = arith.constant 9 : index
    %c0_240 = arith.constant 0 : index
    %267 = vector.load %arg22[%c9, %c0_240] : memref<12x16xf32, #tpu.memory_space<vmem>>, vector<2x16xf32>
    %268 = arith.addf %266, %267 : vector<2x16xf32>
    %cst_241 = arith.constant 2.500000e-01 : f32
    %269 = vector.broadcast %cst_241 : f32 to vector<2x16xf32>
    %270 = arith.mulf %268, %269 : vector<2x16xf32>
    %c0_i32_242 = arith.constant 0 : i32
    %c0_i32_243 = arith.constant 0 : i32
    %c0_i32_244 = arith.constant 0 : i32
    %271 = tpu.memref_slice %arg11[%c0_i32_242, %c0_i32_243, %c0_i32_244] : memref<1x4x16xf32, #tpu.memory_space<vmem>> -> memref<1x4x16xf32, #tpu.memory_space<vmem>>
    %272 = tpu.memref_squeeze %271 : memref<1x4x16xf32, #tpu.memory_space<vmem>> -> memref<4x16xf32, #tpu.memory_space<vmem>>
    %c2_245 = arith.constant 2 : index
    %c0_246 = arith.constant 0 : index
    %273 = vector.load %272[%c2_245, %c0_246] : memref<4x16xf32, #tpu.memory_space<vmem>>, vector<2x16xf32>
    tpu.vector_store %272[%c2_245, %c0_246], %270 {strides = array<i32>} : memref<4x16xf32, #tpu.memory_space<vmem>>, vector<2x16xf32>,
    return
  }
  func.func @transform_0(%arg0: i32) -> (i32, i32, i32) {
    %c0_i32 = arith.constant 0 : i32
    %c0_i32_0 = arith.constant 0 : i32
    %c0_i32_1 = arith.constant 0 : i32
    return %arg0, %c0_i32, %c0_i32_0 : i32, i32, i32
  }
  func.func @transform_1(%arg0: i32) -> (i32, i32, i32) {
    %c0_i32 = arith.constant 0 : i32
    %c0_i32_0 = arith.constant 0 : i32
    %c0_i32_1 = arith.constant 0 : i32
    %c0_i32_2 = arith.constant 0 : i32
    return %c0_i32, %c0_i32_0, %c0_i32_1 : i32, i32, i32
  }
  func.func @transform_2(%arg0: i32) -> (i32, i32, i32) {
    %c0_i32 = arith.constant 0 : i32
    %c0_i32_0 = arith.constant 0 : i32
    %c0_i32_1 = arith.constant 0 : i32
    %c0_i32_2 = arith.constant 0 : i32
    return %c0_i32, %c0_i32_0, %c0_i32_1 : i32, i32, i32
  }
  func.func @transform_3(%arg0: i32) -> (i32, i32, i32) {
    %c0_i32 = arith.constant 0 : i32
    %c0_i32_0 = arith.constant 0 : i32
    %c0_i32_1 = arith.constant 0 : i32
    %c0_i32_2 = arith.constant 0 : i32
    return %c0_i32, %c0_i32_0, %c0_i32_1 : i32, i32, i32
  }
  func.func @transform_4(%arg0: i32) -> (i32, i32) {
    %c0_i32 = arith.constant 0 : i32
    %c0_i32_0 = arith.constant 0 : i32
    %c0_i32_1 = arith.constant 0 : i32
    return %c0_i32, %c0_i32_0 : i32, i32
  }
  func.func @transform_5(%arg0: i32) -> (i32, i32) {
    %c0_i32 = arith.constant 0 : i32
    %c0_i32_0 = arith.constant 0 : i32
    %c0_i32_1 = arith.constant 0 : i32
    return %c0_i32, %c0_i32_0 : i32, i32
  }
  func.func @transform_6(%arg0: i32) -> (i32, i32) {
    %c0_i32 = arith.constant 0 : i32
    %c0_i32_0 = arith.constant 0 : i32
    %c0_i32_1 = arith.constant 0 : i32
    return %c0_i32, %c0_i32_0 : i32, i32
  }
  func.func @transform_7(%arg0: i32) -> (i32, i32) {
    %c0_i32 = arith.constant 0 : i32
    %c0_i32_0 = arith.constant 0 : i32
    %c0_i32_1 = arith.constant 0 : i32
    return %c0_i32, %c0_i32_0 : i32, i32
  }
  func.func @transform_8(%arg0: i32) -> (i32, i32) {
    %c0_i32 = arith.constant 0 : i32
    %c0_i32_0 = arith.constant 0 : i32
    %c0_i32_1 = arith.constant 0 : i32
    return %c0_i32, %c0_i32_0 : i32, i32
  }
  func.func @transform_9(%arg0: i32) -> (i32, i32) {
    %c0_i32 = arith.constant 0 : i32
    %c0_i32_0 = arith.constant 0 : i32
    %c0_i32_1 = arith.constant 0 : i32
    return %c0_i32, %c0_i32_0 : i32, i32
  }
  func.func @transform_10(%arg0: i32) -> (i32, i32, i32) {
    %c0_i32 = arith.constant 0 : i32
    %c0_i32_0 = arith.constant 0 : i32
    %c0_i32_1 = arith.constant 0 : i32
    return %arg0, %c0_i32, %c0_i32_0 : i32, i32, i32
  }
}

</mosaic_0001>

<bundles_post_ra>
// kernel: eegnet_forward.1
= control target key start
LH: loop header
LB: loop body
LE: loop exit
PB: predicated region body
PF: predicated region fallthrough
CT: control target
= control target key end

     0   :  { %s10978_s13 = smov 0   ;;  %s13979_s0 = inlined_call_operand.vmem [shape: bf16[2,902,128], index: 0, kind: input, shape index: {}]   ;;  %s13980_s1 = inlined_call_operand.vmem [shape: bf16[3,128,192], index: 1, kind: input, shape index: {}]   ;;  %s13981_s2 = inlined_call_operand.vmem [shape: bf16[3,64,96], index: 2, kind: input, shape index: {}]   ;;  %s13982_s3 = inlined_call_operand.vmem [shape: bf16[3,32,48], index: 3, kind: input, shape index: {}]   ;;  %s13983_s4 = inlined_call_operand.vmem [shape: f32[1,64], index: 4, kind: input, shape index: {}]   ;;  %s13984_s5 = inlined_call_operand.vmem [shape: f32[1,64], index: 5, kind: input, shape index: {}]   ;;  %s13985_s6 = inlined_call_operand.vmem [shape: f32[1,32], index: 6, kind: input, shape index: {}]   ;;  %s13986_s7 = inlined_call_operand.vmem [shape: f32[1,32], index: 7, kind: input, shape index: {}]   ;;  %s13987_s8 = inlined_call_operand.vmem [shape: f32[1,16], index: 8, kind: input, shape index: {}]   ;;  %s13988_s9 = inlined_call_operand.vmem [shape: f32[1,16], index: 9, kind: input, shape index: {}]   ;;  %s13989_s10 = inlined_call_operand.vmem [shape: f32[2,4,16], index: 10, kind: output, shape index: {}]  }
   0x1 LB: > { %s9803_s14 = sadd.s32 4294967295, %s10915_s13   ;;  %p9807_p0 = scmp.ge.s32.totalorder %s10915_s13, 1  ;;  %s10915_s13 = sphi %s10978_s13, %s20_s13  }
   0x2   : > { %p312_p1 = scmp.lt.s32.totalorder %s10915_s13, 3 }
   0x4   : > { %p313_p2 = pnand %p9807_p0, %p312_p1 }
   0x5   : > { %p349_p3 = scmp.lt.s32.totalorder (!%p313_p2), %s9803_s14, 1  ;;  %s10919_s11 = smov (!%p313_p2), 64  }
   0x6   : > { %316 = sbr.rel (%p313_p2) target bundleno = 2068 (0x814), region = 60  ;;  %s10921_s23 = smov (!%p313_p2), 96  }
   0x7   : > { %s10922_s22 = smov (!%p313_p2), 112  }
   0xb   : > { %v10509_v0 = vld [vmem:[%s13980_s1 + $0x74] ss:$8 sps:$4 sm:$0xff]   ;;  %v10511_v1 = vld [vmem:[%s13980_s1 + $0x70] ss:$8 sps:$4 sm:$0xff]   ;;  %v10917_v2 = vmov 0   ;;  %s14009_s14 = smov (!%p349_p3, %s9803_s14), 1 }
   0xc   : > { %911 = vmatprep.mubr.bf16.mxu0 %v10917_v2  ;;  %1361 = vmatprep.mubr.bf16.mxu1 %v10917_v2  ;;  %v10512_v3 = vld [vmem:[%s13980_s1 + $0x64] ss:$8 sps:$4 sm:$0xff]   ;;  %v10514_v4 = vld [vmem:[%s13980_s1 + $0x60] ss:$8 sps:$4 sm:$0xff]   ;;  %v10515_v5 = vld [vmem:[%s13980_s1 + $0x54] ss:$8 sps:$4 sm:$0xff]  }
   0xd   : > { %879 = vmatprep.subr.bf16.mxu0 %v10509_v0  ;;  %10478 = vmatprep.subr.bf16.mxu1 %v10509_v0  ;;  %s10494_s25 = smul.u32 452, %s14009_s14  ;;  %v10517_v6 = vld [vmem:[%s13980_s1 + $0x50] ss:$8 sps:$4 sm:$0xff]   ;;  %v10518_v7 = vld [vmem:[%s13980_s1 + $0x44] ss:$8 sps:$4 sm:$0xff]   ;;  %vm13990_vm0 = vcmask 1044480  }
   0xe   : > { %880 = vmatpush1.bf16.msra.mxu0 %v10511_v1  ;;  %10486 = vmatpush1.bf16.msra.mxu1 %v10511_v1  ;;  %v10520_v8 = vld [vmem:[%s13980_s1 + $0x40] ss:$8 sps:$4 sm:$0xff]   ;;  %v10521_v9 = vld [vmem:[%s13980_s1 + $0x34] ss:$8 sps:$4 sm:$0xff]   ;;  %v10523_v10 = vld [vmem:[%s13980_s1 + $0x30] ss:$8 sps:$4 sm:$0xff]  }
   0xf   : > { %881 = vmatprep.subr.bf16.mxu0 %v10512_v3  ;;  %10479 = vmatprep.subr.bf16.mxu1 %v10512_v3  ;;  %s11015_s12 = scalar_lea.vmem %s13979_s0, %s10494_s25  ;;  %v10524_v11 = vld [vmem:[%s13980_s1 + $0x24] ss:$8 sps:$4 sm:$0xff]   ;;  %v10526_v12 = vld [vmem:[%s13980_s1 + $0x20] ss:$8 sps:$4 sm:$0xff]   ;;  %v10527_v13 = vld [vmem:[%s13980_s1 + $0x14] ss:$8 sps:$4 sm:$0xff]  }
  0x10   : > { %v10529_v14 = vld [vmem:[%s13980_s1 + $0x10] ss:$8 sps:$4 sm:$0xff]   ;;  %v10530_v15 = vld [vmem:[%s13980_s1 + $0x4] ss:$8 sps:$4 sm:$0xff]   ;;  %v10532_v16 = vld [vmem:[%s13980_s1] ss:$8 sps:$4 sm:$0xff]  }
  0x11   : > { %v10537_v17 = vld [vmem:[%s13980_s1 + $0x174] ss:$8 sps:$4 sm:$0xff]   ;;  %v10533_v19 = vld [vmem:[%s11015_s12] sm:$0xff]   ;;  %v10534_v20 = vld [vmem:[%s11015_s12 + $0x168] sm:$0xff]   ;;  %vm1443_vm1 = vcmask 523264   ;;  %vm1654_vm2 = vcmask 517120  }
  0x12   : > { %882 = vmatpush1.bf16.msra.mxu0 %v10514_v4  ;;  %10487 = vmatpush1.bf16.msra.mxu1 %v10514_v4  ;;  %v10548_v18 = vld [vmem:[%s13980_s1 + $0xf4] ss:$8 sps:$4 sm:$0xff]   ;;  %v10535_v21 = vld [vmem:[%s13980_s1 + $0x170] ss:$8 sps:$4 sm:$0xff]   ;;  %v10551_v23 = vld [vmem:[%s13980_s1 + $0xe4] ss:$8 sps:$4 sm:$0xff]  }
  0x13   : > { %883 = vmatprep.subr.bf16.mxu0 %v10515_v5  ;;  %10480 = vmatprep.subr.bf16.mxu1 %v10515_v5  ;;  %v10546_v22 = vld [vmem:[%s13980_s1 + $0xf0] ss:$8 sps:$4 sm:$0xff]   ;;  %v10562_v24 = vld [vmem:[%s13980_s1 + $0x164] ss:$8 sps:$4 sm:$0xff]   ;;  %v10560_v25 = vld [vmem:[%s13980_s1 + $0x160] ss:$8 sps:$4 sm:$0xff]  }
  0x14   : > { %v10549_v26 = vld [vmem:[%s13980_s1 + $0xe0] ss:$8 sps:$4 sm:$0xff]   ;;  %v10556_v27 = vld [vmem:[%s13980_s1 + $0xd4] ss:$8 sps:$4 sm:$0xff]   ;;  %v10554_v30 = vld [vmem:[%s13980_s1 + $0xd0] ss:$8 sps:$4 sm:$0xff]  }
  0x15   : > { %v10538_v28 = vld [vmem:[%s11015_s12 + $0x8] sm:$0xff]   ;;  %v10539_v29 = vld [vmem:[%s11015_s12 + $0x170] sm:$0xff]   ;;  %v10541_v35 = vld [vmem:[%s11015_s12 + $0x178] sm:$0xff]   ;;  %vm4082_vm3 = vcmask 1045504   ;;  %vm5521_vm4 = vcmask 1046528   ;;  %vm10920_vm5 = vmmov 0  }
  0x16   : > { %884 = vmatpush1.bf16.msra.mxu0 %v10517_v6  ;;  %10488 = vmatpush1.bf16.msra.mxu1 %v10517_v6  ;;  %v10559_v31 = vld [vmem:[%s13980_s1 + $0xc4] ss:$8 sps:$4 sm:$0xff]   ;;  %v10540_v32 = vld [vmem:[%s11015_s12 + $0x10] sm:$0xff]   ;;  %v10557_v33 = vld [vmem:[%s13980_s1 + $0xc0] ss:$8 sps:$4 sm:$0xff]   ;;  %vm7537_vm6 = vcmask 519168  }
  0x17   : > { %885 = vmatprep.subr.bf16.mxu0 %v10518_v7  ;;  %10481 = vmatprep.subr.bf16.mxu1 %v10518_v7  ;;  %v10567_v34 = vld [vmem:[%s13980_s1 + $0xb4] ss:$8 sps:$4 sm:$0xff]   ;;  %v10565_v36 = vld [vmem:[%s13980_s1 + $0xb0] ss:$8 sps:$4 sm:$0xff]   ;;  %v10570_v37 = vld [vmem:[%s13980_s1 + $0xa4] ss:$8 sps:$4 sm:$0xff]  }
  0x18   : > { %v10588_v38 = vld [vmem:[%s13980_s1 + $0x150] ss:$8 sps:$4 sm:$0xff]   ;;  %v10590_v39 = vld [vmem:[%s13980_s1 + $0x154] ss:$8 sps:$4 sm:$0xff]   ;;  %v10568_v41 = vld [vmem:[%s13980_s1 + $0xa0] ss:$8 sps:$4 sm:$0xff]  }
  0x19   : > { %v10542_v40 = vld [vmem:[%s11015_s12 + $0x18] sm:$0xff]   ;;  %v10543_v43 = vld [vmem:[%s11015_s12 + $0x180] sm:$0xff]   ;;  %v10545_v50 = vld [vmem:[%s11015_s12 + $0x188] sm:$0xff]   ;;  %vm7556_vm7 = vcmask 518144   ;;  %vm7583_vm8 = vcmask 519171   ;;  %vm7572_vm9 = vcmask 1042432  }
  0x1a   : > { %886 = vmatpush1.bf16.msra.mxu0 %v10520_v8  ;;  %10489 = vmatpush1.bf16.msra.mxu1 %v10520_v8  ;;  %v10575_v42 = vld [vmem:[%s13980_s1 + $0x94] ss:$8 sps:$4 sm:$0xff]   ;;  %v10573_v44 = vld [vmem:[%s13980_s1 + $0x90] ss:$8 sps:$4 sm:$0xff]   ;;  %v10578_v45 = vld [vmem:[%s13980_s1 + $0x84] ss:$8 sps:$4 sm:$0xff]  }
  0x1b   : > { %887 = vmatprep.subr.bf16.mxu0 %v10521_v9  ;;  %10482 = vmatprep.subr.bf16.mxu1 %v10521_v9  ;;  %v10544_v46 = vld [vmem:[%s11015_s12 + $0x20] sm:$0xff]   ;;  %v10552_v51 = vld [vmem:[%s11015_s12 + $0x28] sm:$0xff]   ;;  %v10553_v52 = vld [vmem:[%s11015_s12 + $0x190] sm:$0xff]   ;;  %vm7573_vm10 = vcmask 1046532   ;;  %vm7612_vm12 = vcmask 519170   ;;  %vm7601_vm13 = vcmask 1041408  }
  0x1c   : > { %v10576_v47 = vld [vmem:[%s13980_s1 + $0x80] ss:$8 sps:$4 sm:$0xff]   ;;  %v10603_v49 = vld [vmem:[%s13980_s1 + $0x144] ss:$8 sps:$4 sm:$0xff]   ;;  %v10563_v53 = vld [vmem:[%s11015_s12 + $0x30] sm:$0xff]   ;;  %vm7602_vm14 = vcmask 1045508  }
  0x1d   : > { %v10601_v48 = vld [vmem:[%s13980_s1 + $0x140] ss:$8 sps:$4 sm:$0xff]   ;;  %v10564_v54 = vld [vmem:[%s11015_s12 + $0x198] sm:$0xff]   ;;  %v10580_v57 = vld [vmem:[%s11015_s12 + $0xc] sm:$0xf8]   ;;  %s9809_s26 = sshll.u32 %s14009_s14, 2 }
  0x1e   : > { %888 = vmatpush1.bf16.msra.mxu0 %v10523_v10  ;;  %10490 = vmatpush1.bf16.msra.mxu1 %v10523_v10  ;;  %v10616_v55 = vld [vmem:[%s13980_s1 + $0x130] ss:$8 sps:$4 sm:$0xff]   ;;  %v10618_v56 = vld [vmem:[%s13980_s1 + $0x134] ss:$8 sps:$4 sm:$0xff]   ;;  %v10572_v59 = vld [vmem:[%s11015_s12 + $0x1a0] sm:$0x1f]   ;;  %s357_s29 = scalar_lea.vmem %s13989_s10, %s9809_s26 }
  0x1f   : > { %889 = vmatprep.subr.bf16.mxu0 %v10524_v11  ;;  %10483 = vmatprep.subr.bf16.mxu1 %v10524_v11  ;;  %v10571_v58 = vld [vmem:[%s11015_s12 + $0x38] sm:$0xff]   ;;  %v2257_v61 = vrot.slane %v10580_v57, 3  ;;  %v10579_v0 = vld [vmem:[%s11015_s12 + $0x40] sm:$0xff]   ;;  %v10582_v5 = vld [vmem:[%s11015_s12 + $0x48] sm:$0xff]  }
  0x20   : > { %v10581_v60 = vld [vmem:[%s11015_s12 + $0x14] sm:$0xff]   ;;  %v10583_v62 = vld [vmem:[%s11015_s12 + $0x1c] sm:$0xff]   ;;  %v10585_v4 = vld [vmem:[%s11015_s12 + $0x24] sm:$0xff]  }
  0x21   : > { %v2258_v63 = vrot.slane %v10581_v60, 3  ;;  %v2260_v3 = vrot.slane %v10583_v62, 3  ;;  %v2262_v7 = vrot.slane %v10585_v4, 3  ;;  %v10587_v8 = vld [vmem:[%s11015_s12 + $0x2c] sm:$0xff]   ;;  %vm12667_vm11 = vmor %vm7572_vm9, %vm7573_vm10  ;;  %vm7615_vm9 = vcmask 516096  }
  0x22   : > { %890 = vmatpush1.bf16.msra.mxu0 %v10526_v12  ;;  %10491 = vmatpush1.bf16.msra.mxu1 %v10526_v12  ;;  %v10584_v9 = vld [vmem:[%s11015_s12 + $0x50] sm:$0xff]   ;;  %v2264_v11 = vrot.slane %v10587_v8, 3  ;;  %v10661_v8 = vld [vmem:[%s13980_s1 + $0x104] ss:$8 sps:$4 sm:$0xff]   ;;  %vm12801_vm15 = vmor %vm7601_vm13, %vm7602_vm14  ;;  %vm7640_vm10 = vcmask 519169   ;;  %vm7631_vm13 = vcmask 1040384  }
  0x23   : > { %891 = vmatprep.subr.bf16.mxu0 %v10527_v13  ;;  %10484 = vmatprep.subr.bf16.mxu1 %v10527_v13  ;;  %v2259_v1 = vsel %vm13990_vm0, %v2257_v61, %v2258_v63  ;;  %v2261_v6 = vsel %vm13990_vm0, %v2258_v63, %v2260_v3  ;;  %v2263_v10 = vsel %vm13990_vm0, %v2260_v3, %v2262_v7  ;;  %v10592_v12 = vld [vmem:[%s11015_s12 + $0x34] sm:$0xff]   ;;  %v10620_v62 = vld [vmem:[%s11015_s12 + $0x8c] sm:$0xff]   ;;  %vm7632_vm14 = vcmask 1044484  }
  0x24   : > { %v10586_v13 = vld [vmem:[%s11015_s12 + $0x58] sm:$0xff]   ;;  %v10614_v60 = vld [vmem:[%s11015_s12 + $0xb0] sm:$0xff]   ;;  %v2288_v63 = vrot.slane %v10620_v62, 3 }
  0x25   : > { %v10622_v3 = vld [vmem:[%s11015_s12 + $0x94] sm:$0xff]  }
  0x26   : > { %892 = vmatpush1.bf16.msra.mxu0 %v10529_v14  ;;  %10492 = vmatpush1.bf16.msra.mxu1 %v10529_v14  ;;  %v2265_v14 = vsel %vm13990_vm0, %v2262_v7, %v2264_v11  ;;  %v2290_v4 = vrot.slane %v10622_v3, 3  ;;  %v10624_v7 = vld [vmem:[%s11015_s12 + $0x9c] sm:$0xff]  }
  0x27   : > { %893 = vmatprep.subr.bf16.mxu0 %v10530_v15  ;;  %10485 = vmatprep.subr.bf16.mxu1 %v10530_v15  ;;  %v2266_v15 = vrot.slane %v10592_v12, 3  ;;  %v2292_v12 = vrot.slane %v10624_v7, 3 }
  0x2a   : > { %894 = vmatpush1.bf16.msra.mxu0 %v10532_v16  ;;  %10493 = vmatpush1.bf16.msra.mxu1 %v10532_v16  ;;  %v10594_v16 = vld [vmem:[%s11015_s12 + $0x3c] sm:$0xff]  }
  0x2b   : > { %4321 = vmatprep.subr.bf16.mxu0 %v10537_v17  ;;  %2495 = vmatprep.subr.bf16.mxu1 %v10548_v18  ;;  %v10591_v17 = vld [vmem:[%s11015_s12 + $0x60] sm:$0xff]   ;;  %v2267_v18 = vsel %vm13990_vm0, %v2264_v11, %v2266_v15 }
  0x2d   : > { %912 = vmatmul.mubr.bf16.vlgmr.msra.gmra.mxu0 %v10533_v19  ;;  %1362 = vmatmul.mubr.bf16.vlgmr.msra.gmra.mxu1 %v10534_v20  ;;  %v2268_v19 = vrot.slane %v10594_v16, 3  ;;  %v10596_v20 = vld [vmem:[%s11015_s12 + $0x44] sm:$0xff]  }
  0x2e   : > { %4322 = vmatpush1.bf16.msra.mxu0 %v10535_v21  ;;  %921 = vmatprep.mubr.bf16.mxu0 %v10917_v2  ;;  %v10631_v21 = vld [vmem:[%s13980_s1 + $0x120] ss:$8 sps:$4 sm:$0xff]  }
  0x2f   : > { %1371 = vmatprep.mubr.bf16.mxu1 %v10917_v2  ;;  %2496 = vmatpush1.bf16.msra.mxu1 %v10546_v22  ;;  %v10633_v22 = vld [vmem:[%s13980_s1 + $0x124] ss:$8 sps:$4 sm:$0xff]  }
  0x30   : > { %2497 = vmatprep.subr.bf16.mxu1 %v10551_v23  ;;  %4323 = vmatprep.subr.bf16.mxu0 %v10562_v24  ;;  %v10593_v23 = vld [vmem:[%s11015_s12 + $0x68] sm:$0xff]   ;;  %v2269_v24 = vsel %vm13990_vm0, %v2266_v15, %v2268_v19 }
  0x32   : > { %4324 = vmatpush1.bf16.msra.mxu0 %v10560_v25  ;;  %v2270_v25 = vrot.slane %v10596_v20, 3 }
  0x33   : > { %2498 = vmatpush1.bf16.msra.mxu1 %v10549_v26  ;;  %4325 = vmatprep.subr.bf16.mxu0 %v10590_v39  ;;  %v10598_v26 = vld [vmem:[%s11015_s12 + $0x4c] sm:$0xff]  }
  0x34   : > { %2499 = vmatprep.subr.bf16.mxu1 %v10556_v27  ;;  %v10595_v27 = vld [vmem:[%s11015_s12 + $0x70] sm:$0xff]   ;;  %v10604_v39 = vld [vmem:[%s11015_s12 + $0x88] sm:$0xff]  }
  0x35   : > { %922 = vmatmul.mubr.bf16.gmra.mxu0 %v10538_v28  ;;  %1372 = vmatmul.mubr.bf16.gmra.mxu1 %v10539_v29  ;;  %v2271_v28 = vsel %vm13990_vm0, %v2268_v19, %v2270_v25  ;;  %v2272_v29 = vrot.slane %v10598_v26, 3  ;;  %v10626_v19 = vld [vmem:[%s11015_s12 + $0xa4] sm:$0xff]  }
  0x36   : > { %931 = vmatprep.mubr.bf16.mxu0 %v10917_v2  ;;  %1381 = vmatprep.mubr.bf16.mxu1 %v10917_v2 }
  0x37   : > { %2500 = vmatpush1.bf16.msra.mxu1 %v10554_v30  ;;  %4326 = vmatpush1.bf16.msra.mxu0 %v10588_v38  ;;  %v10600_v30 = vld [vmem:[%s11015_s12 + $0x54] sm:$0xff]   ;;  %v10607_v38 = vld [vmem:[%s11015_s12 + $0x64] sm:$0xff]  }
  0x38   : > { %2501 = vmatprep.subr.bf16.mxu1 %v10559_v31  ;;  %4327 = vmatprep.subr.bf16.mxu0 %v10603_v49  ;;  %v10597_v31 = vld [vmem:[%s11015_s12 + $0x78] sm:$0xff]  }
  0x3b   : > { %2502 = vmatpush1.bf16.msra.mxu1 %v10557_v33  ;;  %4328 = vmatpush1.bf16.msra.mxu0 %v10601_v48  ;;  %v2274_v33 = vrot.slane %v10600_v30, 3  ;;  %v10608_v48 = vld [vmem:[%s11015_s12 + $0x98] sm:$0xff]  }
  0x3c   : > { %2503 = vmatprep.subr.bf16.mxu1 %v10567_v34  ;;  %4329 = vmatprep.subr.bf16.mxu0 %v10618_v56  ;;  %v10599_v34 = vld [vmem:[%s11015_s12 + $0x80] sm:$0xff]   ;;  %v10612_v56 = vld [vmem:[%s11015_s12 + $0xa8] sm:$0xff]  }
  0x3d   : > { %932 = vmatmul.mubr.bf16.gmra.mxu0 %v10540_v32  ;;  %1382 = vmatmul.mubr.bf16.gmra.mxu1 %v10541_v35  ;;  %v2273_v32 = vsel %vm13990_vm0, %v2270_v25, %v2272_v29  ;;  %v10605_v35 = vld [vmem:[%s11015_s12 + $0x5c] sm:$0xff]  }
  0x3e   : > { %941 = vmatprep.mubr.bf16.mxu0 %v10917_v2  ;;  %1391 = vmatprep.mubr.bf16.mxu1 %v10917_v2 }
  0x3f   : > { %2504 = vmatpush1.bf16.msra.mxu1 %v10565_v36  ;;  %4330 = vmatpush1.bf16.msra.mxu0 %v10616_v55  ;;  %v2275_v36 = vsel %vm13990_vm0, %v2272_v29, %v2274_v33  ;;  %v10625_v29 = vld [vmem:[%s11015_s12 + $0xd0] sm:$0xff]  }
  0x40   : > { %2505 = vmatprep.subr.bf16.mxu1 %v10570_v37  ;;  %4331 = vmatprep.subr.bf16.mxu0 %v10633_v22  ;;  %v2276_v37 = vrot.slane %v10605_v35, 3 }
  0x43   : > { %2506 = vmatpush1.bf16.msra.mxu1 %v10568_v41  ;;  %4332 = vmatpush1.bf16.msra.mxu0 %v10631_v21  ;;  %v2278_v41 = vrot.slane %v10607_v38, 3 }
  0x44   : > { %2507 = vmatprep.subr.bf16.mxu1 %v10575_v42  ;;  %v10606_v42 = vld [vmem:[%s11015_s12 + $0x90] sm:$0xff]  }
  0x45   : > { %942 = vmatmul.mubr.bf16.gmra.mxu0 %v10542_v40  ;;  %1392 = vmatmul.mubr.bf16.gmra.mxu1 %v10543_v43  ;;  %v2277_v40 = vsel %vm13990_vm0, %v2274_v33, %v2276_v37  ;;  %v2279_v43 = vsel %vm13990_vm0, %v2276_v37, %v2278_v41 }
  0x46   : > { %951 = vmatprep.mubr.bf16.mxu0 %v10917_v2  ;;  %1401 = vmatprep.mubr.bf16.mxu1 %v10917_v2 }
  0x47   : > { %2508 = vmatpush1.bf16.msra.mxu1 %v10573_v44  ;;  %v10609_v44 = vld [vmem:[%s11015_s12 + $0x6c] sm:$0xff]  }
  0x48   : > { %2509 = vmatprep.subr.bf16.mxu1 %v10578_v45  ;;  %v2280_v45 = vrot.slane %v10609_v44, 3 }
  0x4a   : > { %v2281_v49 = vsel %vm13990_vm0, %v2278_v41, %v2280_v45  ;;  %v10627_v41 = vld [vmem:[%s11015_s12 + $0xd8] sm:$0xff]  }
  0x4b   : > { %2510 = vmatpush1.bf16.msra.mxu1 %v10576_v47  ;;  %v10646_v47 = vld [vmem:[%s13980_s1 + $0x114] ss:$8 sps:$4 sm:$0xff]  }
  0x4c   : > { %4333 = vmatprep.subr.bf16.mxu0 %v10646_v47 }
  0x4d   : > { %952 = vmatmul.mubr.bf16.gmra.mxu0 %v10544_v46  ;;  %1402 = vmatmul.mubr.bf16.gmra.mxu1 %v10545_v50  ;;  %v10644_v46 = vld [vmem:[%s13980_s1 + $0x110] ss:$8 sps:$4 sm:$0xff]  }
  0x4e   : > { %961 = vmatprep.mubr.bf16.mxu0 %v10917_v2  ;;  %1411 = vmatprep.mubr.bf16.mxu1 %v10917_v2  ;;  %v10611_v50 = vld [vmem:[%s11015_s12 + $0x74] sm:$0xff]  }
  0x4f   : > { %4334 = vmatpush1.bf16.msra.mxu0 %v10644_v46 }
  0x50   : > { %4335 = vmatprep.subr.bf16.mxu0 %v10661_v8 }
  0x55   : > { %962 = vmatmul.mubr.bf16.gmra.mxu0 %v10552_v51  ;;  %1412 = vmatmul.mubr.bf16.gmra.mxu1 %v10553_v52  ;;  %v2282_v51 = vrot.slane %v10611_v50, 3  ;;  %v10610_v52 = vld [vmem:[%s11015_s12 + $0xa0] sm:$0xff]  }
  0x56   : > { %971 = vmatprep.mubr.bf16.mxu0 %v10917_v2  ;;  %1421 = vmatprep.mubr.bf16.mxu1 %v10917_v2 }
  0x5d   : > { %972 = vmatmul.mubr.bf16.gmra.mxu0 %v10563_v53  ;;  %1422 = vmatmul.mubr.bf16.gmra.mxu1 %v10564_v54  ;;  %v2283_v53 = vsel %vm13990_vm0, %v2280_v45, %v2282_v51  ;;  %v10613_v54 = vld [vmem:[%s11015_s12 + $0x7c] sm:$0xff]  }
  0x5e   : > { %981 = vmatprep.mubr.bf16.mxu0 %v10917_v2  ;;  %1431 = vmatprep.mubr.bf16.mxu1 %v10917_v2  ;;  %v2284_v55 = vrot.slane %v10613_v54, 3 }
  0x60   : > { %v2285_v57 = vsel %vm13990_vm0, %v2282_v51, %v2284_v55 }
  0x65   : > { %982 = vmatmul.mubr.bf16.gmra.mxu0 %v10571_v58  ;;  %1432 = vmatmul.mubr.bf16.gmra.mxu1 %v10572_v59  ;;  %v10615_v58 = vld [vmem:[%s11015_s12 + $0x84] sm:$0xff]  }
  0x66   : > { %991 = vmatprep.mubr.bf16.mxu0 %v10917_v2  ;;  %2527 = vmatprep.mubr.bf16.mxu1 %v10917_v2  ;;  %v2286_v59 = vrot.slane %v10615_v58, 3 }
  0x68   : > { %v2287_v61 = vsel %vm13990_vm0, %v2284_v55, %v2286_v59  ;;  %v10635_v55 = vld [vmem:[%s11015_s12 + $0xbc] sm:$0xff]  }
  0x6d   : > { %992 = vmatmul.mubr.bf16.gmra.mxu0 %v10579_v0  ;;  %2528 = vmatmul.mubr.bf16.vlgmr.msra.gmra.mxu1 %v2259_v1  ;;  %v10619_v0 = vld [vmem:[%s11015_s12 + $0xb8] sm:$0xff]   ;;  %v2289_v1 = vsel %vm13990_vm0, %v2286_v59, %v2288_v63 }
  0x6e   : > { %1001 = vmatprep.mubr.bf16.mxu0 %v10917_v2  ;;  %2537 = vmatprep.mubr.bf16.mxu1 %v10917_v2 }
  0x75   : > { %1002 = vmatmul.mubr.bf16.gmra.mxu0 %v10582_v5  ;;  %2538 = vmatmul.mubr.bf16.gmra.mxu1 %v2261_v6  ;;  %v10621_v5 = vld [vmem:[%s11015_s12 + $0xc0] sm:$0xff]   ;;  %v2291_v6 = vsel %vm13990_vm0, %v2288_v63, %v2290_v4 }
  0x76   : > { %1011 = vmatprep.mubr.bf16.mxu0 %v10917_v2  ;;  %2547 = vmatprep.mubr.bf16.mxu1 %v10917_v2 }
  0x7d   : > { %1012 = vmatmul.mubr.bf16.gmra.mxu0 %v10584_v9  ;;  %2548 = vmatmul.mubr.bf16.gmra.mxu1 %v2263_v10  ;;  %v10659_v9 = vld [vmem:[%s13980_s1 + $0x100] ss:$8 sps:$4 sm:$0xff]  }
  0x7e   : > { %1021 = vmatprep.mubr.bf16.mxu0 %v10917_v2  ;;  %2557 = vmatprep.mubr.bf16.mxu1 %v10917_v2 }
  0x7f   : > { %4336 = vmatpush1.bf16.msra.mxu0 %v10659_v9 }
  0x85   : > { %1022 = vmatmul.mubr.bf16.gmra.mxu0 %v10586_v13  ;;  %2558 = vmatmul.mubr.bf16.gmra.mxu1 %v2265_v14 }
  0x86   : > { %1031 = vmatprep.mubr.bf16.mxu0 %v10917_v2  ;;  %2567 = vmatprep.mubr.bf16.mxu1 %v10917_v2 }
  0x8d   : > { %1032 = vmatmul.mubr.bf16.gmra.mxu0 %v10591_v17  ;;  %2568 = vmatmul.mubr.bf16.gmra.mxu1 %v2267_v18  ;;  %v10623_v17 = vld [vmem:[%s11015_s12 + $0xc8] sm:$0xff]   ;;  %v2293_v18 = vsel %vm13990_vm0, %v2290_v4, %v2292_v12 }
  0x8e   : > { %1041 = vmatprep.mubr.bf16.mxu0 %v10917_v2  ;;  %2577 = vmatprep.mubr.bf16.mxu1 %v10917_v2  ;;  %v10637_v4 = vld [vmem:[%s11015_s12 + $0xc4] sm:$0xff]  }
  0x8f   : > { %v2302_v9 = vrot.slane %v10637_v4, 3 }
  0x95   : > { %1042 = vmatmul.mubr.bf16.gmra.mxu0 %v10593_v23  ;;  %2578 = vmatmul.mubr.bf16.gmra.mxu1 %v2269_v24  ;;  %v2294_v24 = vrot.slane %v10626_v19, 3 }
  0x96   : > { %1051 = vmatprep.mubr.bf16.mxu0 %v10917_v2  ;;  %2587 = vmatprep.mubr.bf16.mxu1 %v10917_v2 }
  0x97   : > { %v2295_v30 = vsel %vm13990_vm0, %v2292_v12, %v2294_v24 }
  0x9d   : > { %1052 = vmatmul.mubr.bf16.gmra.mxu0 %v10595_v27  ;;  %2588 = vmatmul.mubr.bf16.gmra.mxu1 %v2271_v28 }
  0x9e   : > { %1061 = vmatprep.mubr.bf16.mxu0 %v10917_v2  ;;  %2597 = vmatprep.mubr.bf16.mxu1 %v10917_v2 }
  0xa5   : > { %1062 = vmatmul.mubr.bf16.gmra.mxu0 %v10597_v31  ;;  %2598 = vmatmul.mubr.bf16.gmra.mxu1 %v2273_v32  ;;  %v10628_v31 = vld [vmem:[%s11015_s12 + $0xac] sm:$0xff]  }
  0xa6   : > { %1071 = vmatprep.mubr.bf16.mxu0 %v10917_v2  ;;  %2607 = vmatprep.mubr.bf16.mxu1 %v10917_v2 }
  0xad   : > { %1072 = vmatmul.mubr.bf16.gmra.mxu0 %v10599_v34  ;;  %2608 = vmatmul.mubr.bf16.gmra.mxu1 %v2275_v36  ;;  %v2296_v36 = vrot.slane %v10628_v31, 3 }
  0xae   : > { %1081 = vmatprep.mubr.bf16.mxu0 %v10917_v2  ;;  %2617 = vmatprep.mubr.bf16.mxu1 %v10917_v2 }
  0xb5   : > { %1082 = vmatmul.mubr.bf16.gmra.mxu0 %v10604_v39  ;;  %2618 = vmatmul.mubr.bf16.gmra.mxu1 %v2277_v40 }
  0xb6   : > { %1091 = vmatprep.mubr.bf16.mxu0 %v10917_v2  ;;  %2627 = vmatprep.mubr.bf16.mxu1 %v10917_v2 }
  0xbd   : > { %1092 = vmatmul.mubr.bf16.gmra.mxu0 %v10606_v42  ;;  %2628 = vmatmul.mubr.bf16.gmra.mxu1 %v2279_v43  ;;  %v2297_v42 = vsel %vm13990_vm0, %v2294_v24, %v2296_v36  ;;  %v10630_v43 = vld [vmem:[%s11015_s12 + $0xb4] sm:$0xff]  }
  0xbe   : > { %1101 = vmatprep.mubr.bf16.mxu0 %v10917_v2  ;;  %2637 = vmatprep.mubr.bf16.mxu1 %v10917_v2 }
  0xc5   : > { %1102 = vmatmul.mubr.bf16.gmra.mxu0 %v10608_v48  ;;  %2638 = vmatmul.mubr.bf16.gmra.mxu1 %v2281_v49  ;;  %v2298_v48 = vrot.slane %v10630_v43, 3 }
  0xc6   : > { %1111 = vmatprep.mubr.bf16.mxu0 %v10917_v2  ;;  %2647 = vmatprep.mubr.bf16.mxu1 %v10917_v2 }
  0xc7   : > { %v2299_v54 = vsel %vm13990_vm0, %v2296_v36, %v2298_v48 }
  0xcd   : > { %1112 = vmatmul.mubr.bf16.gmra.mxu0 %v10610_v52  ;;  %2648 = vmatmul.mubr.bf16.gmra.mxu1 %v2283_v53  ;;  %v10629_v53 = vld [vmem:[%s11015_s12 + $0xe0] sm:$0xff]  }
  0xce   : > { %1121 = vmatprep.mubr.bf16.mxu0 %v10917_v2  ;;  %2657 = vmatprep.mubr.bf16.mxu1 %v10917_v2 }
  0xd5   : > { %1122 = vmatmul.mubr.bf16.gmra.mxu0 %v10612_v56  ;;  %2658 = vmatmul.mubr.bf16.gmra.mxu1 %v2285_v57 }
  0xd6   : > { %1131 = vmatprep.mubr.bf16.mxu0 %v10917_v2  ;;  %2667 = vmatprep.mubr.bf16.mxu1 %v10917_v2 }
  0xdd   : > { %1132 = vmatmul.mubr.bf16.gmra.mxu0 %v10614_v60  ;;  %2668 = vmatmul.mubr.bf16.gmra.mxu1 %v2287_v61  ;;  %v2300_v60 = vrot.slane %v10635_v55, 3 }
  0xde   : > { %1141 = vmatprep.mubr.bf16.mxu0 %v10917_v2  ;;  %2677 = vmatprep.mubr.bf16.mxu1 %v10917_v2 }
  0xdf   : > { %v2301_v3 = vsel %vm13990_vm0, %v2298_v48, %v2300_v60 }
  0xe5   : > { %1142 = vmatmul.mubr.bf16.gmra.mxu0 %v10619_v0  ;;  %2678 = vmatmul.mubr.bf16.gmra.mxu1 %v2289_v1  ;;  %v10634_v1 = vld [vmem:[%s11015_s12 + $0xe8] sm:$0xff]  }
  0xe6   : > { %1151 = vmatprep.mubr.bf16.mxu0 %v10917_v2  ;;  %2687 = vmatprep.mubr.bf16.mxu1 %v10917_v2 }
  0xed   : > { %v11257_v10 = vpop.f32.mrf.mxu0  ;;  %1152 = vmatmul.mubr.bf16.gmra.mxu0 %v10621_v5  ;;  %v1363_v11 = vpop.f32.mrf.mxu1  ;;  %2688 = vmatmul.mubr.bf16.gmra.mxu1 %v2291_v6 }
  0xee   : > { %1623 = vst [vmem:[#allocation2 + $0x5a0] sm:$0xff] %v1363_v11  ;;  %1161 = vmatprep.mubr.bf16.mxu0 %v10917_v2  ;;  %2697 = vmatprep.mubr.bf16.mxu1 %v10917_v2 }
  0xef   : > { %v915_v13 = vpop.f32.mrf.mxu0  ;;  %v1365_v14 = vpop.f32.mrf.mxu1 }
  0xf0   : > { %1444 = vst.msk [vmem:[#allocation2 + $0x8] sm:$0xff] %vm1443_vm1, %v915_v13  ;;  %1624 = vst.msk [vmem:[#allocation2 + $0x5a8] sm:$0xff] %vm1443_vm1, %v1365_v14 }
  0xf1   : > { %v11263_v15 = vpop.f32.mrf.mxu0  ;;  %v1367_v16 = vpop.f32.mrf.mxu1 }
  0xf2   : > { %1625 = vst [vmem:[#allocation2 + $0x5b0] sm:$0xff] %v1367_v16  ;;  %v10636_v16 = vld [vmem:[%s11015_s12 + $0xf0] sm:$0xff]  }
  0xf3   : > { %v919_v20 = vpop.f32.mrf.mxu0  ;;  %v1369_v21 = vpop.f32.mrf.mxu1 }
  0xf4   : > { %1446 = vst.msk [vmem:[#allocation2 + $0x18] sm:$0xff] %vm1443_vm1, %v919_v20  ;;  %1626 = vst.msk [vmem:[#allocation2 + $0x5b8] sm:$0xff] %vm1443_vm1, %v1369_v21 }
  0xf5   : > { %v11270_v22 = vpop.f32.mrf.mxu0  ;;  %1162 = vmatmul.mubr.bf16.gmra.mxu0 %v10623_v17  ;;  %v1373_v23 = vpop.f32.mrf.mxu1  ;;  %2698 = vmatmul.mubr.bf16.gmra.mxu1 %v2293_v18  ;;  %v2303_v17 = vsel %vm13990_vm0, %v2300_v60, %v2302_v9  ;;  %v10639_v18 = vld [vmem:[%s11015_s12 + $0xcc] sm:$0xff]  }
  0xf6   : > { %1627 = vst [vmem:[#allocation2 + $0x5c0] sm:$0xff] %v1373_v23  ;;  %1171 = vmatprep.mubr.bf16.mxu0 %v10917_v2  ;;  %2707 = vmatprep.mubr.bf16.mxu1 %v10917_v2  ;;  %v2304_v24 = vrot.slane %v10639_v18, 3 }
  0xf7   : > { %v925_v25 = vpop.f32.mrf.mxu0  ;;  %v1375_v26 = vpop.f32.mrf.mxu1 }
  0xf8   : > { %1448 = vst.msk [vmem:[#allocation2 + $0x28] sm:$0xff] %vm1443_vm1, %v925_v25  ;;  %1628 = vst.msk [vmem:[#allocation2 + $0x5c8] sm:$0xff] %vm1443_vm1, %v1375_v26  ;;  %v2305_v31 = vsel %vm13990_vm0, %v2302_v9, %v2304_v24 }
  0xf9   : > { %v11276_v27 = vpop.f32.mrf.mxu0  ;;  %v1377_v28 = vpop.f32.mrf.mxu1 }
  0xfa   : > { %1629 = vst [vmem:[#allocation2 + $0x5d0] sm:$0xff] %v1377_v28 }
  0xfb   : > { %v929_v32 = vpop.f32.mrf.mxu0  ;;  %v1379_v33 = vpop.f32.mrf.mxu1  ;;  %v1659_v4 = vld [vmem:[#allocation2 + $0x18] sm:$0xff] }
  0xfc   : > { %1450 = vst.msk [vmem:[#allocation2 + $0x38] sm:$0xff] %vm1443_vm1, %v929_v32  ;;  %1630 = vst.msk [vmem:[#allocation2 + $0x5d8] sm:$0xff] %vm1443_vm1, %v1379_v33  ;;  %v10641_v32 = vld [vmem:[%s11015_s12 + $0xd4] sm:$0xff]  }
  0xfd   : > { %v11283_v34 = vpop.f32.mrf.mxu0  ;;  %1172 = vmatmul.mubr.bf16.gmra.mxu0 %v10625_v29  ;;  %v1383_v35 = vpop.f32.mrf.mxu1  ;;  %2708 = vmatmul.mubr.bf16.gmra.mxu1 %v2295_v30  ;;  %v10638_v30 = vld [vmem:[%s11015_s12 + $0xf8] sm:$0xff]  }
  0xfe   : > { %1631 = vst [vmem:[#allocation2 + $0x5e0] sm:$0xff] %v1383_v35  ;;  %1181 = vmatprep.mubr.bf16.mxu0 %v10917_v2  ;;  %2717 = vmatprep.mubr.bf16.mxu1 %v10917_v2 }
  0xff   : > { %v935_v37 = vpop.f32.mrf.mxu0  ;;  %v1385_v38 = vpop.f32.mrf.mxu1 }
 0x100   : > { %1452 = vst.msk [vmem:[#allocation2 + $0x48] sm:$0xff] %vm1443_vm1, %v935_v37  ;;  %1632 = vst.msk [vmem:[#allocation2 + $0x5e8] sm:$0xff] %vm1443_vm1, %v1385_v38  ;;  %v2306_v38 = vrot.slane %v10641_v32, 3 }
 0x101   : > { %v11289_v39 = vpop.f32.mrf.mxu0  ;;  %v1387_v40 = vpop.f32.mrf.mxu1 }
 0x102   : > { %1633 = vst [vmem:[#allocation2 + $0x5f0] sm:$0xff] %v1387_v40 }
 0x103   : > { %v939_v44 = vpop.f32.mrf.mxu0  ;;  %v1389_v45 = vpop.f32.mrf.mxu1 }
 0x104   : > { %1454 = vst.msk [vmem:[#allocation2 + $0x58] sm:$0xff] %vm1443_vm1, %v939_v44  ;;  %1634 = vst.msk [vmem:[#allocation2 + $0x5f8] sm:$0xff] %vm1443_vm1, %v1389_v45  ;;  %v10640_v44 = vld [vmem:[%s11015_s12 + $0x100] sm:$0xff]   ;;  %v2307_v45 = vsel %vm13990_vm0, %v2304_v24, %v2306_v38  ;;  %v10650_v24 = vld [vmem:[%s11015_s12 + $0xec] sm:$0xff]  }
 0x105   : > { %v11296_v46 = vpop.f32.mrf.mxu0  ;;  %1182 = vmatmul.mubr.bf16.gmra.mxu0 %v10627_v41  ;;  %v1393_v47 = vpop.f32.mrf.mxu1  ;;  %2718 = vmatmul.mubr.bf16.gmra.mxu1 %v2297_v42 }
 0x106   : > { %1635 = vst [vmem:[#allocation2 + $0x600] sm:$0xff] %v1393_v47  ;;  %1191 = vmatprep.mubr.bf16.mxu0 %v10917_v2  ;;  %2727 = vmatprep.mubr.bf16.mxu1 %v10917_v2  ;;  %v10643_v47 = vld [vmem:[%s11015_s12 + $0xdc] sm:$0xff]  }
 0x107   : > { %v945_v49 = vpop.f32.mrf.mxu0  ;;  %v1395_v50 = vpop.f32.mrf.mxu1 }
 0x108   : > { %1456 = vst.msk [vmem:[#allocation2 + $0x68] sm:$0xff] %vm1443_vm1, %v945_v49  ;;  %1636 = vst.msk [vmem:[#allocation2 + $0x608] sm:$0xff] %vm1443_vm1, %v1395_v50 }
 0x109   : > { %v11302_v51 = vpop.f32.mrf.mxu0  ;;  %v1397_v52 = vpop.f32.mrf.mxu1 }
 0x10a   : > { %1637 = vst [vmem:[#allocation2 + $0x610] sm:$0xff] %v1397_v52 }
 0x10b   : > { %v949_v56 = vpop.f32.mrf.mxu0  ;;  %v1399_v57 = vpop.f32.mrf.mxu1 }
 0x10c   : > { %1458 = vst.msk [vmem:[#allocation2 + $0x78] sm:$0xff] %vm1443_vm1, %v949_v56  ;;  %1638 = vst.msk [vmem:[#allocation2 + $0x618] sm:$0xff] %vm1443_vm1, %v1399_v57  ;;  %v1657_v56 = vld [vmem:[#allocation2 + $0x8] sm:$0xff] }
 0x10d   : > { %v11309_v58 = vpop.f32.mrf.mxu0  ;;  %1192 = vmatmul.mubr.bf16.gmra.mxu0 %v10629_v53  ;;  %v1403_v59 = vpop.f32.mrf.mxu1  ;;  %2728 = vmatmul.mubr.bf16.gmra.mxu1 %v2299_v54  ;;  %v2308_v54 = vrot.slane %v10643_v47, 3  ;;  %v10652_v47 = vld [vmem:[%s11015_s12 + $0xf4] sm:$0xff]  }
 0x10e   : > { %1639 = vst [vmem:[#allocation2 + $0x620] sm:$0xff] %v1403_v59  ;;  %1201 = vmatprep.mubr.bf16.mxu0 %v10917_v2  ;;  %2737 = vmatprep.mubr.bf16.mxu1 %v10917_v2 }
 0x10f   : > { %v955_v61 = vpop.f32.mrf.mxu0  ;;  %v1405_v62 = vpop.f32.mrf.mxu1 }
 0x110   : > { %1460 = vst.msk [vmem:[#allocation2 + $0x88] sm:$0xff] %vm1443_vm1, %v955_v61  ;;  %1640 = vst.msk [vmem:[#allocation2 + $0x628] sm:$0xff] %vm1443_vm1, %v1405_v62  ;;  %v10642_v62 = vld [vmem:[%s11015_s12 + $0x108] sm:$0xff]  }
 0x111   : > { %v11315_v63 = vpop.f32.mrf.mxu0  ;;  %v1407_v0 = vpop.f32.mrf.mxu1 }
 0x112   : > { %1641 = vst [vmem:[#allocation2 + $0x630] sm:$0xff] %v1407_v0  ;;  %v2309_v0 = vsel %vm13990_vm0, %v2306_v38, %v2308_v54 }
 0x113   : > { %v959_v5 = vpop.f32.mrf.mxu0  ;;  %v1409_v6 = vpop.f32.mrf.mxu1 }
 0x114   : > { %1462 = vst.msk [vmem:[#allocation2 + $0x98] sm:$0xff] %vm1443_vm1, %v959_v5  ;;  %1642 = vst.msk [vmem:[#allocation2 + $0x638] sm:$0xff] %vm1443_vm1, %v1409_v6 }
 0x115   : > { %v11322_v7 = vpop.f32.mrf.mxu0  ;;  %1202 = vmatmul.mubr.bf16.gmra.mxu0 %v10634_v1  ;;  %v1413_v8 = vpop.f32.mrf.mxu1  ;;  %2738 = vmatmul.mubr.bf16.gmra.mxu1 %v2301_v3  ;;  %v10648_v1 = vld [vmem:[%s11015_s12 + $0xe4] sm:$0xff]  }
 0x116   : > { %1643 = vst [vmem:[#allocation2 + $0x640] sm:$0xff] %v1413_v8  ;;  %1211 = vmatprep.mubr.bf16.mxu0 %v10917_v2  ;;  %2747 = vmatprep.mubr.bf16.mxu1 %v10917_v2 }
 0x117   : > { %v965_v11 = vpop.f32.mrf.mxu0  ;;  %v1415_v12 = vpop.f32.mrf.mxu1 }
 0x118   : > { %1464 = vst.msk [vmem:[#allocation2 + $0xa8] sm:$0xff] %vm1443_vm1, %v965_v11  ;;  %1644 = vst.msk [vmem:[#allocation2 + $0x648] sm:$0xff] %vm1443_vm1, %v1415_v12  ;;  %v2310_v11 = vrot.slane %v10648_v1, 3  ;;  %v10651_v1 = vld [vmem:[%s11015_s12 + $0x120] sm:$0xff]  }
 0x119   : > { %v11328_v13 = vpop.f32.mrf.mxu0  ;;  %v1417_v14 = vpop.f32.mrf.mxu1 }
 0x11a   : > { %1645 = vst [vmem:[#allocation2 + $0x650] sm:$0xff] %v1417_v14  ;;  %v1661_v14 = vld [vmem:[#allocation2 + $0x28] sm:$0xff] }
 0x11b   : > { %v969_v19 = vpop.f32.mrf.mxu0  ;;  %v1419_v20 = vpop.f32.mrf.mxu1 }
 0x11c   : > { %1466 = vst.msk [vmem:[#allocation2 + $0xb8] sm:$0xff] %vm1443_vm1, %v969_v19  ;;  %1646 = vst.msk [vmem:[#allocation2 + $0x658] sm:$0xff] %vm1443_vm1, %v1419_v20  ;;  %v10647_v20 = vld [vmem:[%s11015_s12 + $0x110] sm:$0xff]  }
 0x11d   : > { %v11335_v21 = vpop.f32.mrf.mxu0  ;;  %1212 = vmatmul.mubr.bf16.gmra.mxu0 %v10636_v16  ;;  %v1423_v23 = vpop.f32.mrf.mxu1  ;;  %2748 = vmatmul.mubr.bf16.gmra.mxu1 %v2303_v17 }
 0x11e   : > { %1647 = vst [vmem:[#allocation2 + $0x660] sm:$0xff] %v1423_v23  ;;  %1221 = vmatprep.mubr.bf16.mxu0 %v10917_v2  ;;  %2757 = vmatprep.mubr.bf16.mxu1 %v10917_v2  ;;  %v2311_v23 = vsel %vm13990_vm0, %v2308_v54, %v2310_v11 }
 0x11f   : > { %v975_v25 = vpop.f32.mrf.mxu0  ;;  %v1425_v26 = vpop.f32.mrf.mxu1 }
 0x120   : > { %1468 = vst.msk [vmem:[#allocation2 + $0xc8] sm:$0xff] %vm1443_vm1, %v975_v25  ;;  %1648 = vst.msk [vmem:[#allocation2 + $0x668] sm:$0xff] %vm1443_vm1, %v1425_v26  ;;  %v1663_v26 = vld [vmem:[#allocation2 + $0x38] sm:$0xff] }
 0x121   : > { %v11341_v28 = vpop.f32.mrf.mxu0  ;;  %v1427_v29 = vpop.f32.mrf.mxu1 }
 0x122   : > { %1649 = vst [vmem:[#allocation2 + $0x670] sm:$0xff] %v1427_v29 }
 0x123   : > { %v979_v33 = vpop.f32.mrf.mxu0  ;;  %v1429_v35 = vpop.f32.mrf.mxu1 }
 0x124   : > { %1470 = vst.msk [vmem:[#allocation2 + $0xd8] sm:$0xff] %vm1443_vm1, %v979_v33  ;;  %1650 = vst.msk [vmem:[#allocation2 + $0x678] sm:$0xff] %vm1443_vm1, %v1429_v35  ;;  %v2312_v33 = vrot.slane %v10650_v24, 3  ;;  %v10653_v24 = vld [vmem:[%s11015_s12 + $0x128] sm:$0xff]  }
 0x125   : > { %v11348_v36 = vpop.f32.mrf.mxu0  ;;  %1222 = vmatmul.mubr.bf16.gmra.mxu0 %v10638_v30  ;;  %v1433_v37 = vpop.f32.mrf.mxu1  ;;  %2758 = vmatmul.mubr.bf16.gmra.mxu1 %v2305_v31 }
 0x126   : > { %1651 = vst [vmem:[#allocation2 + $0x680] sm:$0xff] %v1433_v37  ;;  %1231 = vmatprep.mubr.bf16.mxu0 %v10917_v2  ;;  %2767 = vmatprep.mubr.bf16.mxu1 %v10917_v2  ;;  %v1665_v37 = vld [vmem:[#allocation2 + $0x48] sm:$0xff] }
 0x127   : > { %v985_v40 = vpop.f32.mrf.mxu0  ;;  %v1435_v41 = vpop.f32.mrf.mxu1 }
 0x128   : > { %1472 = vst.msk [vmem:[#allocation2 + $0xe8] sm:$0xff] %vm1443_vm1, %v985_v40  ;;  %1652 = vst.msk [vmem:[#allocation2 + $0x688] sm:$0xff] %vm1443_vm1, %v1435_v41 }
 0x129   : > { %v11354_v42 = vpop.f32.mrf.mxu0  ;;  %v1437_v43 = vpop.f32.mrf.mxu1 }
 0x12a   : > { %1653 = vst [vmem:[#allocation2 + $0x690] sm:$0x3] %v1437_v43 }
 0x12b   : > { %v989_v48 = vpop.f32.mrf.mxu0  ;;  %v1439_v49 = vpop.f32.mrf.mxu1 }
 0x12c   : > { %1474 = vst.msk [vmem:[#allocation2 + $0xf8] sm:$0xff] %vm1443_vm1, %v989_v48 }
 0x12d   : > { %1655 = vst.msk [vmem:[#allocation2 + $0x698] sm:$0x3] %vm1654_vm2, %v1439_v49  ;;  %v11361_v50 = vpop.f32.mrf.mxu0  ;;  %1232 = vmatmul.mubr.bf16.gmra.mxu0 %v10640_v44  ;;  %v2529_v52 = vpop.f32.mrf.mxu1  ;;  %2768 = vmatmul.mubr.bf16.gmra.mxu1 %v2307_v45  ;;  %v10649_v44 = vld [vmem:[%s11015_s12 + $0x118] sm:$0xff]   ;;  %v2313_v45 = vsel %vm13990_vm0, %v2310_v11, %v2312_v33 }
 0x12e   : > { %v3058_v53 = vadd.f32 %v2529_v52, %v11257_v10  ;;  %1241 = vmatprep.mubr.bf16.mxu0 %v10917_v2  ;;  %2777 = vmatprep.mubr.bf16.mxu1 %v10917_v2  ;;  %v1667_v49 = vld [vmem:[#allocation2 + $0x58] sm:$0xff] }
 0x12f   : > { %v995_v55 = vpop.f32.mrf.mxu0  ;;  %v2531_v57 = vpop.f32.mrf.mxu1 }
 0x130   : > { %3270 = vst [vmem:[#allocation2] sm:$0xff] %v3058_v53  ;;  %1476 = vst.msk [vmem:[#allocation2 + $0x108] sm:$0xff] %vm1443_vm1, %v995_v55  ;;  %v3059_v59 = vadd.f32 %v2531_v57, %v1657_v56  ;;  %v2314_v56 = vrot.slane %v10652_v47, 3  ;;  %v10655_v47 = vld [vmem:[%s11015_s12 + $0x130] sm:$0xff]  }
 0x131   : > { %v11367_v60 = vpop.f32.mrf.mxu0  ;;  %v2533_v61 = vpop.f32.mrf.mxu1 }
 0x132   : > { %3271 = vst.msk [vmem:[#allocation2 + $0x8] sm:$0xff] %vm1443_vm1, %v3059_v59  ;;  %v3060_v10 = vadd.f32 %v2533_v61, %v11263_v15  ;;  %v1669_v59 = vld [vmem:[#allocation2 + $0x68] sm:$0xff] }
 0x133   : > { %v999_v3 = vpop.f32.mrf.mxu0  ;;  %v2535_v5 = vpop.f32.mrf.mxu1 }
 0x134   : > { %3272 = vst [vmem:[#allocation2 + $0x10] sm:$0xff] %v3060_v10  ;;  %1478 = vst.msk [vmem:[#allocation2 + $0x118] sm:$0xff] %vm1443_vm1, %v999_v3  ;;  %v3061_v6 = vadd.f32 %v2535_v5, %v1659_v4  ;;  %v2315_v3 = vsel %vm13990_vm0, %v2312_v33, %v2314_v56  ;;  %v10654_v4 = vld [vmem:[%s11015_s12 + $0xfc] sm:$0xff]  }
 0x135   : > { %v11375_v8 = vpop.f32.mrf.mxu0  ;;  %1242 = vmatmul.mubr.bf16.gmra.mxu0 %v10642_v62  ;;  %v2539_v9 = vpop.f32.mrf.mxu1  ;;  %2778 = vmatmul.mubr.bf16.gmra.mxu1 %v2309_v0 }
 0x136   : > { %3273 = vst.msk [vmem:[#allocation2 + $0x18] sm:$0xff] %vm1443_vm1, %v3061_v6  ;;  %v3062_v15 = vadd.f32 %v2539_v9, %v11270_v22  ;;  %1251 = vmatprep.mubr.bf16.mxu0 %v10917_v2  ;;  %2787 = vmatprep.mubr.bf16.mxu1 %v10917_v2  ;;  %v1671_v6 = vld [vmem:[#allocation2 + $0x78] sm:$0xff] }
 0x137   : > { %v1005_v12 = vpop.f32.mrf.mxu0  ;;  %v2541_v16 = vpop.f32.mrf.mxu1 }
 0x138   : > { %3274 = vst [vmem:[#allocation2 + $0x20] sm:$0xff] %v3062_v15  ;;  %1480 = vst.msk [vmem:[#allocation2 + $0x128] sm:$0xff] %vm1443_vm1, %v1005_v12  ;;  %v3063_v17 = vadd.f32 %v2541_v16, %v1661_v14  ;;  %v2316_v14 = vrot.slane %v10654_v4, 3  ;;  %v10657_v4 = vld [vmem:[%s11015_s12 + $0x138] sm:$0xff]  }
 0x139   : > { %v11382_v18 = vpop.f32.mrf.mxu0  ;;  %v2543_v19 = vpop.f32.mrf.mxu1 }
 0x13a   : > { %3275 = vst.msk [vmem:[#allocation2 + $0x28] sm:$0xff] %vm1443_vm1, %v3063_v17  ;;  %v3064_v22 = vadd.f32 %v2543_v19, %v11276_v27  ;;  %v1673_v17 = vld [vmem:[#allocation2 + $0x88] sm:$0xff] }
 0x13b   : > { %v1009_v25 = vpop.f32.mrf.mxu0  ;;  %v2545_v29 = vpop.f32.mrf.mxu1 }
 0x13c   : > { %3276 = vst [vmem:[#allocation2 + $0x30] sm:$0xff] %v3064_v22  ;;  %1482 = vst.msk [vmem:[#allocation2 + $0x138] sm:$0xff] %vm1443_vm1, %v1009_v25  ;;  %v3065_v30 = vadd.f32 %v2545_v29, %v1663_v26  ;;  %v2317_v25 = vsel %vm13990_vm0, %v2314_v56, %v2316_v14  ;;  %v10656_v26 = vld [vmem:[%s11015_s12 + $0x104] sm:$0xff]  }
 0x13d   : > { %v11390_v31 = vpop.f32.mrf.mxu0  ;;  %1252 = vmatmul.mubr.bf16.gmra.mxu0 %v10647_v20  ;;  %v2549_v32 = vpop.f32.mrf.mxu1  ;;  %2788 = vmatmul.mubr.bf16.gmra.mxu1 %v2311_v23 }
 0x13e   : > { %3277 = vst.msk [vmem:[#allocation2 + $0x38] sm:$0xff] %vm1443_vm1, %v3065_v30  ;;  %v3066_v27 = vadd.f32 %v2549_v32, %v11283_v34  ;;  %1261 = vmatprep.mubr.bf16.mxu0 %v10917_v2  ;;  %2797 = vmatprep.mubr.bf16.mxu1 %v10917_v2  ;;  %v1675_v30 = vld [vmem:[#allocation2 + $0x98] sm:$0xff] }
 0x13f   : > { %v1015_v35 = vpop.f32.mrf.mxu0  ;;  %v2551_v38 = vpop.f32.mrf.mxu1 }
 0x140   : > { %3278 = vst [vmem:[#allocation2 + $0x40] sm:$0xff] %v3066_v27  ;;  %1484 = vst.msk [vmem:[#allocation2 + $0x148] sm:$0xff] %vm1443_vm1, %v1015_v35  ;;  %v3067_v40 = vadd.f32 %v2551_v38, %v1665_v37  ;;  %v2318_v37 = vrot.slane %v10656_v26, 3  ;;  %v10662_v26 = vld [vmem:[%s11015_s12 + $0x140] sm:$0xff]  }
 0x141   : > { %v11397_v41 = vpop.f32.mrf.mxu0  ;;  %v2553_v43 = vpop.f32.mrf.mxu1 }
 0x142   : > { %3279 = vst.msk [vmem:[#allocation2 + $0x48] sm:$0xff] %vm1443_vm1, %v3067_v40  ;;  %v3068_v34 = vadd.f32 %v2553_v43, %v11289_v39  ;;  %v1677_v40 = vld [vmem:[#allocation2 + $0xa8] sm:$0xff] }
 0x143   : > { %v1019_v48 = vpop.f32.mrf.mxu0  ;;  %v2555_v52 = vpop.f32.mrf.mxu1 }
 0x144   : > { %3280 = vst [vmem:[#allocation2 + $0x50] sm:$0xff] %v3068_v34  ;;  %1486 = vst.msk [vmem:[#allocation2 + $0x158] sm:$0xff] %vm1443_vm1, %v1019_v48  ;;  %v3069_v53 = vadd.f32 %v2555_v52, %v1667_v49  ;;  %v2319_v48 = vsel %vm13990_vm0, %v2316_v14, %v2318_v37  ;;  %v10658_v49 = vld [vmem:[%s11015_s12 + $0x10c] sm:$0xff]  }
 0x145   : > { %v11405_v54 = vpop.f32.mrf.mxu0  ;;  %1262 = vmatmul.mubr.bf16.gmra.mxu0 %v10649_v44  ;;  %v2559_v55 = vpop.f32.mrf.mxu1  ;;  %2798 = vmatmul.mubr.bf16.gmra.mxu1 %v2313_v45 }
 0x146   : > { %3281 = vst.msk [vmem:[#allocation2 + $0x58] sm:$0xff] %vm1443_vm1, %v3069_v53  ;;  %v3070_v39 = vadd.f32 %v2559_v55, %v11296_v46  ;;  %1271 = vmatprep.mubr.bf16.mxu0 %v10917_v2  ;;  %2807 = vmatprep.mubr.bf16.mxu1 %v10917_v2  ;;  %v1679_v53 = vld [vmem:[#allocation2 + $0xb8] sm:$0xff] }
 0x147   : > { %v1025_v57 = vpop.f32.mrf.mxu0  ;;  %v2561_v61 = vpop.f32.mrf.mxu1 }
 0x148   : > { %3282 = vst [vmem:[#allocation2 + $0x60] sm:$0xff] %v3070_v39  ;;  %1488 = vst.msk [vmem:[#allocation2 + $0x168] sm:$0xff] %vm1443_vm1, %v1025_v57  ;;  %v3071_v62 = vadd.f32 %v2561_v61, %v1669_v59  ;;  %v2320_v59 = vrot.slane %v10658_v49, 3  ;;  %v10664_v49 = vld [vmem:[%s11015_s12 + $0x148] sm:$0xff]  }
 0x149   : > { %v11412_v10 = vpop.f32.mrf.mxu0  ;;  %v2563_v0 = vpop.f32.mrf.mxu1 }
 0x14a   : > { %3283 = vst.msk [vmem:[#allocation2 + $0x68] sm:$0xff] %vm1443_vm1, %v3071_v62  ;;  %v3072_v46 = vadd.f32 %v2563_v0, %v11302_v51  ;;  %v1681_v62 = vld [vmem:[#allocation2 + $0xc8] sm:$0xff] }
 0x14b   : > { %v1029_v5 = vpop.f32.mrf.mxu0  ;;  %v2565_v9 = vpop.f32.mrf.mxu1 }
 0x14c   : > { %3284 = vst [vmem:[#allocation2 + $0x70] sm:$0xff] %v3072_v46  ;;  %1490 = vst.msk [vmem:[#allocation2 + $0x178] sm:$0xff] %vm1443_vm1, %v1029_v5  ;;  %v3073_v15 = vadd.f32 %v2565_v9, %v1671_v6  ;;  %v2321_v5 = vsel %vm13990_vm0, %v2318_v37, %v2320_v59  ;;  %v10663_v6 = vld [vmem:[%s11015_s12 + $0x114] sm:$0xff]  }
 0x14d   : > { %v11420_v11 = vpop.f32.mrf.mxu0  ;;  %1272 = vmatmul.mubr.bf16.gmra.mxu0 %v10651_v1  ;;  %v2569_v12 = vpop.f32.mrf.mxu1  ;;  %2808 = vmatmul.mubr.bf16.gmra.mxu1 %v2315_v3 }
 0x14e   : > { %3285 = vst.msk [vmem:[#allocation2 + $0x78] sm:$0xff] %vm1443_vm1, %v3073_v15  ;;  %v3074_v51 = vadd.f32 %v2569_v12, %v11309_v58  ;;  %1281 = vmatprep.mubr.bf16.mxu0 %v10917_v2  ;;  %2817 = vmatprep.mubr.bf16.mxu1 %v10917_v2  ;;  %v1683_v15 = vld [vmem:[#allocation2 + $0xd8] sm:$0xff] }
 0x14f   : > { %v1035_v16 = vpop.f32.mrf.mxu0  ;;  %v2571_v19 = vpop.f32.mrf.mxu1 }
 0x150   : > { %3286 = vst [vmem:[#allocation2 + $0x80] sm:$0xff] %v3074_v51  ;;  %1492 = vst.msk [vmem:[#allocation2 + $0x188] sm:$0xff] %vm1443_vm1, %v1035_v16  ;;  %v3075_v20 = vadd.f32 %v2571_v19, %v1673_v17  ;;  %v2322_v17 = vrot.slane %v10663_v6, 3  ;;  %v10666_v6 = vld [vmem:[%s11015_s12 + $0x150] sm:$0xff]  }
 0x151   : > { %v11427_v22 = vpop.f32.mrf.mxu0  ;;  %v2573_v23 = vpop.f32.mrf.mxu1 }
 0x152   : > { %3287 = vst.msk [vmem:[#allocation2 + $0x88] sm:$0xff] %vm1443_vm1, %v3075_v20  ;;  %v3076_v58 = vadd.f32 %v2573_v23, %v11315_v63  ;;  %v1685_v20 = vld [vmem:[#allocation2 + $0xe8] sm:$0xff] }
 0x153   : > { %v1039_v29 = vpop.f32.mrf.mxu0  ;;  %v2575_v32 = vpop.f32.mrf.mxu1 }
 0x154   : > { %3288 = vst [vmem:[#allocation2 + $0x90] sm:$0xff] %v3076_v58  ;;  %1494 = vst.msk [vmem:[#allocation2 + $0x198] sm:$0xff] %vm1443_vm1, %v1039_v29  ;;  %v3077_v27 = vadd.f32 %v2575_v32, %v1675_v30  ;;  %v2323_v29 = vsel %vm13990_vm0, %v2320_v59, %v2322_v17  ;;  %v10665_v30 = vld [vmem:[%s11015_s12 + $0x11c] sm:$0xff]  }
 0x155   : > { %v11435_v33 = vpop.f32.mrf.mxu0  ;;  %1282 = vmatmul.mubr.bf16.gmra.mxu0 %v10653_v24  ;;  %v2579_v35 = vpop.f32.mrf.mxu1  ;;  %2818 = vmatmul.mubr.bf16.gmra.mxu1 %v2317_v25 }
 0x156   : > { %3289 = vst.msk [vmem:[#allocation2 + $0x98] sm:$0xff] %vm1443_vm1, %v3077_v27  ;;  %v3078_v63 = vadd.f32 %v2579_v35, %v11322_v7  ;;  %1291 = vmatprep.mubr.bf16.mxu0 %v10917_v2  ;;  %2827 = vmatprep.mubr.bf16.mxu1 %v10917_v2  ;;  %v1687_v27 = vld [vmem:[#allocation2 + $0xf8] sm:$0xff] }
 0x157   : > { %v1045_v38 = vpop.f32.mrf.mxu0  ;;  %v2581_v43 = vpop.f32.mrf.mxu1 }
 0x158   : > { %3290 = vst [vmem:[#allocation2 + $0xa0] sm:$0xff] %v3078_v63  ;;  %1496 = vst.msk [vmem:[#allocation2 + $0x1a8] sm:$0xff] %vm1443_vm1, %v1045_v38  ;;  %v3079_v44 = vadd.f32 %v2581_v43, %v1677_v40  ;;  %v2324_v40 = vrot.slane %v10665_v30, 3  ;;  %v10668_v30 = vld [vmem:[%s11015_s12 + $0x158] sm:$0xff]  }
 0x159   : > { %v11442_v34 = vpop.f32.mrf.mxu0  ;;  %v2583_v45 = vpop.f32.mrf.mxu1 }
 0x15a   : > { %3291 = vst.msk [vmem:[#allocation2 + $0xa8] sm:$0xff] %vm1443_vm1, %v3079_v44  ;;  %v3080_v7 = vadd.f32 %v2583_v45, %v11328_v13  ;;  %v1689_v44 = vld [vmem:[#allocation2 + $0x108] sm:$0xff] }
 0x15b   : > { %v1049_v52 = vpop.f32.mrf.mxu0  ;;  %v2585_v55 = vpop.f32.mrf.mxu1 }
 0x15c   : > { %3292 = vst [vmem:[#allocation2 + $0xb0] sm:$0xff] %v3080_v7  ;;  %1498 = vst.msk [vmem:[#allocation2 + $0x1b8] sm:$0xff] %vm1443_vm1, %v1049_v52  ;;  %v3081_v39 = vadd.f32 %v2585_v55, %v1679_v53  ;;  %v2325_v52 = vsel %vm13990_vm0, %v2322_v17, %v2324_v40  ;;  %v10667_v53 = vld [vmem:[%s11015_s12 + $0x124] sm:$0xff]  }
 0x15d   : > { %v11450_v56 = vpop.f32.mrf.mxu0  ;;  %1292 = vmatmul.mubr.bf16.gmra.mxu0 %v10655_v47  ;;  %v2589_v57 = vpop.f32.mrf.mxu1  ;;  %2828 = vmatmul.mubr.bf16.gmra.mxu1 %v2319_v48 }
 0x15e   : > { %3293 = vst.msk [vmem:[#allocation2 + $0xb8] sm:$0xff] %vm1443_vm1, %v3081_v39  ;;  %v3082_v13 = vadd.f32 %v2589_v57, %v11335_v21  ;;  %1301 = vmatprep.mubr.bf16.mxu0 %v10917_v2  ;;  %2837 = vmatprep.mubr.bf16.mxu1 %v10917_v2  ;;  %v1691_v39 = vld [vmem:[#allocation2 + $0x118] sm:$0xff] }
 0x15f   : > { %v1055_v61 = vpop.f32.mrf.mxu0  ;;  %v2591_v0 = vpop.f32.mrf.mxu1 }
 0x160   : > { %3294 = vst [vmem:[#allocation2 + $0xc0] sm:$0xff] %v3082_v13  ;;  %1500 = vst.msk [vmem:[#allocation2 + $0x1c8] sm:$0xff] %vm1443_vm1, %v1055_v61  ;;  %v3083_v1 = vadd.f32 %v2591_v0, %v1681_v62  ;;  %v2326_v62 = vrot.slane %v10667_v53, 3  ;;  %v10670_v53 = vld [vmem:[%s11015_s12 + $0x160] sm:$0xff]  }
 0x161   : > { %v11457_v46 = vpop.f32.mrf.mxu0  ;;  %v2593_v3 = vpop.f32.mrf.mxu1 }
 0x162   : > { %3295 = vst.msk [vmem:[#allocation2 + $0xc8] sm:$0xff] %vm1443_vm1, %v3083_v1  ;;  %v3084_v21 = vadd.f32 %v2593_v3, %v11341_v28  ;;  %v1693_v1 = vld [vmem:[#allocation2 + $0x128] sm:$0xff] }
 0x163   : > { %v1059_v9 = vpop.f32.mrf.mxu0  ;;  %v2595_v12 = vpop.f32.mrf.mxu1 }
 0x164   : > { %3296 = vst [vmem:[#allocation2 + $0xd0] sm:$0xff] %v3084_v21  ;;  %1502 = vst.msk [vmem:[#allocation2 + $0x1d8] sm:$0xff] %vm1443_vm1, %v1059_v9  ;;  %v3085_v51 = vadd.f32 %v2595_v12, %v1683_v15  ;;  %v2327_v9 = vsel %vm13990_vm0, %v2324_v40, %v2326_v62  ;;  %v10669_v15 = vld [vmem:[%s11015_s12 + $0x12c] sm:$0xff]  }
 0x165   : > { %v11465_v14 = vpop.f32.mrf.mxu0  ;;  %1302 = vmatmul.mubr.bf16.gmra.mxu0 %v10657_v4  ;;  %v2599_v16 = vpop.f32.mrf.mxu1  ;;  %2838 = vmatmul.mubr.bf16.gmra.mxu1 %v2321_v5 }
 0x166   : > { %3297 = vst.msk [vmem:[#allocation2 + $0xd8] sm:$0xff] %vm1443_vm1, %v3085_v51  ;;  %v3086_v28 = vadd.f32 %v2599_v16, %v11348_v36  ;;  %1311 = vmatprep.mubr.bf16.mxu0 %v10917_v2  ;;  %2847 = vmatprep.mubr.bf16.mxu1 %v10917_v2  ;;  %v1695_v51 = vld [vmem:[#allocation2 + $0x138] sm:$0xff] }
 0x167   : > { %v1065_v19 = vpop.f32.mrf.mxu0  ;;  %v2601_v23 = vpop.f32.mrf.mxu1 }
 0x168   : > { %3298 = vst [vmem:[#allocation2 + $0xe0] sm:$0xff] %v3086_v28  ;;  %1504 = vst.msk [vmem:[#allocation2 + $0x1e8] sm:$0xff] %vm1443_vm1, %v1065_v19  ;;  %v3087_v24 = vadd.f32 %v2601_v23, %v1685_v20  ;;  %v2328_v20 = vrot.slane %v10669_v15, 3 }
 0x169   : > { %v11472_v58 = vpop.f32.mrf.mxu0  ;;  %v2603_v25 = vpop.f32.mrf.mxu1 }
 0x16a   : > { %3299 = vst.msk [vmem:[#allocation2 + $0xe8] sm:$0xff] %vm1443_vm1, %v3087_v24  ;;  %v3088_v36 = vadd.f32 %v2603_v25, %v11354_v42  ;;  %v1697_v24 = vld [vmem:[#allocation2 + $0x148] sm:$0xff] }
 0x16b   : > { %v1069_v32 = vpop.f32.mrf.mxu0  ;;  %v2605_v35 = vpop.f32.mrf.mxu1 }
 0x16c   : > { %3300 = vst [vmem:[#allocation2 + $0xf0] sm:$0xff] %v3088_v36  ;;  %1506 = vst.msk [vmem:[#allocation2 + $0x1f8] sm:$0xff] %vm1443_vm1, %v1069_v32  ;;  %v3089_v63 = vadd.f32 %v2605_v35, %v1687_v27  ;;  %v2329_v32 = vsel %vm13990_vm0, %v2326_v62, %v2328_v20  ;;  %v10671_v27 = vld [vmem:[%s11015_s12 + $0x134] sm:$0xff]  }
 0x16d   : > { %v11480_v37 = vpop.f32.mrf.mxu0  ;;  %1312 = vmatmul.mubr.bf16.gmra.mxu0 %v10662_v26  ;;  %v2609_v38 = vpop.f32.mrf.mxu1  ;;  %2848 = vmatmul.mubr.bf16.gmra.mxu1 %v2323_v29 }
 0x16e   : > { %3301 = vst.msk [vmem:[#allocation2 + $0xf8] sm:$0xff] %vm1443_vm1, %v3089_v63  ;;  %v3090_v42 = vadd.f32 %v2609_v38, %v11361_v50  ;;  %1321 = vmatprep.mubr.bf16.mxu0 %v10917_v2  ;;  %2857 = vmatprep.mubr.bf16.mxu1 %v10917_v2  ;;  %v1699_v63 = vld [vmem:[#allocation2 + $0x158] sm:$0xff] }
 0x16f   : > { %v1075_v43 = vpop.f32.mrf.mxu0  ;;  %v2611_v45 = vpop.f32.mrf.mxu1 }
 0x170   : > { %3302 = vst [vmem:[#allocation2 + $0x100] sm:$0xff] %v3090_v42  ;;  %1508 = vst.msk [vmem:[#allocation2 + $0x208] sm:$0xff] %vm1443_vm1, %v1075_v43  ;;  %v3091_v47 = vadd.f32 %v2611_v45, %v1689_v44  ;;  %v2330_v44 = vrot.slane %v10671_v27, 3 }
 0x171   : > { %v11487_v7 = vpop.f32.mrf.mxu0  ;;  %v2613_v48 = vpop.f32.mrf.mxu1 }
 0x172   : > { %3303 = vst.msk [vmem:[#allocation2 + $0x108] sm:$0xff] %vm1443_vm1, %v3091_v47  ;;  %v3092_v50 = vadd.f32 %v2613_v48, %v11367_v60  ;;  %v1701_v47 = vld [vmem:[#allocation2 + $0x168] sm:$0xff] }
 0x173   : > { %v1079_v55 = vpop.f32.mrf.mxu0  ;;  %v2615_v57 = vpop.f32.mrf.mxu1 }
 0x174   : > { %3304 = vst [vmem:[#allocation2 + $0x110] sm:$0xff] %v3092_v50  ;;  %1510 = vst.msk [vmem:[#allocation2 + $0x218] sm:$0xff] %vm1443_vm1, %v1079_v55  ;;  %v3093_v13 = vadd.f32 %v2615_v57, %v1691_v39  ;;  %v2331_v55 = vsel %vm13990_vm0, %v2328_v20, %v2330_v44  ;;  %v11539_v39 = vld [vmem:[%s11015_s12 + $0x13c] sm:$0xff]   ;;  %v10676_v20 = vld [vmem:[%s11015_s12 + $0x2c] sm:$0xff]  }
 0x175   : > { %v11495_v59 = vpop.f32.mrf.mxu0  ;;  %1322 = vmatmul.mubr.bf16.gmra.mxu0 %v10664_v49  ;;  %v2619_v61 = vpop.f32.mrf.mxu1  ;;  %2858 = vmatmul.mubr.bf16.gmra.mxu1 %v2325_v52  ;;  %v10673_v57 = vld [vmem:[%s11015_s12 + $0x1c] sm:$0xfc]  }
 0x176   : > { %3305 = vst.msk [vmem:[#allocation2 + $0x118] sm:$0xff] %vm1443_vm1, %v3093_v13  ;;  %v3094_v60 = vadd.f32 %v2619_v61, %v11375_v8  ;;  %1331 = vmatprep.mubr.bf16.mxu0 %v10917_v2  ;;  %2867 = vmatprep.mubr.bf16.mxu1 %v10917_v2  ;;  %v10674_v13 = vld [vmem:[%s11015_s12 + $0x24] sm:$0xff]  }
 0x177   : > { %v1085_v0 = vpop.f32.mrf.mxu0  ;;  %v2621_v3 = vpop.f32.mrf.mxu1 }
 0x178   : > { %3306 = vst [vmem:[#allocation2 + $0x120] sm:$0xff] %v3094_v60  ;;  %1512 = vst.msk [vmem:[#allocation2 + $0x228] sm:$0xff] %vm1443_vm1, %v1085_v0  ;;  %v3095_v4 = vadd.f32 %v2621_v3, %v1693_v1  ;;  %v1703_v60 = vld [vmem:[#allocation2 + $0x178] sm:$0xff] }
 0x179   : > { %v11502_v21 = vpop.f32.mrf.mxu0  ;;  %v2623_v5 = vpop.f32.mrf.mxu1 }
 0x17a   : > { %3307 = vst.msk [vmem:[#allocation2 + $0x128] sm:$0xff] %vm1443_vm1, %v3095_v4  ;;  %v3096_v8 = vadd.f32 %v2623_v5, %v11382_v18  ;;  %v2332_v4 = vrot.slane %v11539_v39, 3  ;;  %v4083_v5 = vrot.slane %v10673_v57, 2 }
 0x17b   : > { %v1089_v12 = vpop.f32.mrf.mxu0  ;;  %v2625_v16 = vpop.f32.mrf.mxu1 }
 0x17c   : > { %3308 = vst [vmem:[#allocation2 + $0x130] sm:$0xff] %v3096_v8  ;;  %1514 = vst.msk [vmem:[#allocation2 + $0x238] sm:$0xff] %vm1443_vm1, %v1089_v12  ;;  %v3097_v28 = vadd.f32 %v2625_v16, %v1695_v51 }
 0x17d   : > { %v11510_v17 = vpop.f32.mrf.mxu0  ;;  %1332 = vmatmul.mubr.bf16.gmra.mxu0 %v10666_v6  ;;  %v2629_v19 = vpop.f32.mrf.mxu1  ;;  %2868 = vmatmul.mubr.bf16.gmra.mxu1 %v2327_v9  ;;  %v4084_v6 = vrot.slane %v10674_v13, 2  ;;  %v1705_v9 = vld [vmem:[#allocation2 + $0x188] sm:$0xff] }
 0x17e   : > { %3309 = vst.msk [vmem:[#allocation2 + $0x138] sm:$0xff] %vm1443_vm1, %v3097_v28  ;;  %v3098_v18 = vadd.f32 %v2629_v19, %v11390_v31  ;;  %1341 = vmatprep.mubr.bf16.mxu0 %v10917_v2  ;;  %2877 = vmatprep.mubr.bf16.mxu1 %v10917_v2  ;;  %v2333_v28 = vsel %vm13990_vm0, %v2330_v44, %v2332_v4 }
 0x17f   : > { %v1095_v23 = vpop.f32.mrf.mxu0  ;;  %v2631_v25 = vpop.f32.mrf.mxu1  ;;  %v4085_v19 = vsel %vm4082_vm3, %v4083_v5, %v4084_v6  ;;  %v10679_v5 = vld [vmem:[%s11015_s12 + $0x154] sm:$0xff]  }
 0x180   : > { %3310 = vst [vmem:[#allocation2 + $0x140] sm:$0xff] %v3098_v18  ;;  %1516 = vst.msk [vmem:[#allocation2 + $0x248] sm:$0xff] %vm1443_vm1, %v1095_v23  ;;  %v3099_v26 = vadd.f32 %v2631_v25, %v1697_v24  ;;  %v10675_v18 = vld [vmem:[%s11015_s12 + $0x144] sm:$0xff]   ;;  %v1707_v24 = vld [vmem:[#allocation2 + $0x198] sm:$0xff] }
 0x181   : > { %v11517_v36 = vpop.f32.mrf.mxu0  ;;  %v2633_v29 = vpop.f32.mrf.mxu1 }
 0x182   : > { %3311 = vst.msk [vmem:[#allocation2 + $0x148] sm:$0xff] %vm1443_vm1, %v3099_v26  ;;  %v3100_v31 = vadd.f32 %v2633_v29, %v11397_v41 }
 0x183   : > { %v1099_v35 = vpop.f32.mrf.mxu0  ;;  %v2635_v38 = vpop.f32.mrf.mxu1 }
 0x184   : > { %3312 = vst [vmem:[#allocation2 + $0x150] sm:$0xff] %v3100_v31  ;;  %1518 = vst.msk [vmem:[#allocation2 + $0x258] sm:$0xff] %vm1443_vm1, %v1099_v35  ;;  %v3101_v42 = vadd.f32 %v2635_v38, %v1699_v63  ;;  %v2334_v31 = vrot.slane %v10675_v18, 3  ;;  %v1709_v35 = vld [vmem:[#allocation2 + $0x1a8] sm:$0xff] }
 0x185   : > { %v11525_v40 = vpop.f32.mrf.mxu0  ;;  %1342 = vmatmul.mubr.bf16.gmra.mxu0 %v10668_v30  ;;  %v2639_v43 = vpop.f32.mrf.mxu1  ;;  %2878 = vmatmul.mubr.bf16.gmra.mxu1 %v2329_v32  ;;  %v4086_v32 = vrot.slane %v10676_v20, 2  ;;  %v1717_v20 = vld [vmem:[#allocation2 + $0x1e8] sm:$0xff] }
 0x186   : > { %3313 = vst.msk [vmem:[#allocation2 + $0x158] sm:$0xff] %vm1443_vm1, %v3101_v42  ;;  %v3102_v41 = vadd.f32 %v2639_v43, %v11405_v54  ;;  %1351 = vmatprep.mubr.bf16.mxu0 %v10917_v2  ;;  %2887 = vmatprep.mubr.bf16.mxu1 %v10917_v2 }
 0x187   : > { %v1105_v45 = vpop.f32.mrf.mxu0  ;;  %v2641_v48 = vpop.f32.mrf.mxu1  ;;  %v4087_v44 = vsel %vm4082_vm3, %v4084_v6, %v4086_v32  ;;  %v10680_v6 = vld [vmem:[%s11015_s12 + $0x3c] sm:$0xff]  }
 0x188   : > { %3314 = vst [vmem:[#allocation2 + $0x160] sm:$0xff] %v3102_v41  ;;  %1520 = vst.msk [vmem:[#allocation2 + $0x268] sm:$0xff] %vm1443_vm1, %v1105_v45  ;;  %v3103_v49 = vadd.f32 %v2641_v48, %v1701_v47  ;;  %v2335_v41 = vsel %vm13990_vm0, %v2332_v4, %v2334_v31  ;;  %v10677_v45 = vld [vmem:[%s11015_s12 + $0x14c] sm:$0xff]   ;;  %v10678_v47 = vld [vmem:[%s11015_s12 + $0x34] sm:$0xff]  }
 0x189   : > { %v11532_v50 = vpop.f32.mrf.mxu0  ;;  %v2643_v52 = vpop.f32.mrf.mxu1  ;;  %v2336_v39 = vrot.slane %v10677_v45, 3  ;;  %v4088_v57 = vrot.slane %v10678_v47, 2  ;;  %v1721_v47 = vld [vmem:[#allocation2 + $0x208] sm:$0xff] }
 0x18a   : > { %3315 = vst.msk [vmem:[#allocation2 + $0x168] sm:$0xff] %vm1443_vm1, %v3103_v49  ;;  %v3104_v54 = vadd.f32 %v2643_v52, %v11412_v10  ;;  %v1711_v49 = vld [vmem:[#allocation2 + $0x1b8] sm:$0xff] }
 0x18b   : > { %v1109_v61 = vpop.f32.mrf.mxu0  ;;  %v2645_v62 = vpop.f32.mrf.mxu1  ;;  %v4089_v4 = vsel %vm4082_vm3, %v4086_v32, %v4088_v57  ;;  %v10682_v32 = vld [vmem:[%s11015_s12 + $0x44] sm:$0xff]  }
 0x18c   : > { %3316 = vst [vmem:[#allocation2 + $0x170] sm:$0xff] %v3104_v54  ;;  %1522 = vst.msk [vmem:[#allocation2 + $0x278] sm:$0xff] %vm1443_vm1, %v1109_v61  ;;  %v3105_v0 = vadd.f32 %v2645_v62, %v1703_v60  ;;  %v1713_v61 = vld [vmem:[#allocation2 + $0x1c8] sm:$0xff] }
 0x18d   : > { %v11544_v1 = vpop.f32.mrf.mxu0  ;;  %1352 = vmatmul.mubr.bf16.gmra.mxu0 %v10670_v53  ;;  %v2649_v3 = vpop.f32.mrf.mxu1  ;;  %2888 = vmatmul.mubr.bf16.gmra.mxu1 %v2331_v55 }
 0x18e   : > { %3317 = vst.msk [vmem:[#allocation2 + $0x178] sm:$0xff] %vm1443_vm1, %v3105_v0  ;;  %v3106_v10 = vadd.f32 %v2649_v3, %v11420_v11  ;;  %2897 = vmatprep.mubr.bf16.mxu1 %v10917_v2  ;;  %4353 = vmatprep.mubr.bf16.mxu0 %v10917_v2 }
 0x18f   : > { %v1115_v8 = vpop.f32.mrf.mxu0  ;;  %v2651_v15 = vpop.f32.mrf.mxu1 }
 0x190   : > { %3318 = vst [vmem:[#allocation2 + $0x180] sm:$0xff] %v3106_v10  ;;  %1524 = vst.msk [vmem:[#allocation2 + $0x288] sm:$0xff] %vm1443_vm1, %v1115_v8  ;;  %v3107_v12 = vadd.f32 %v2651_v15, %v1705_v9  ;;  %v2337_v10 = vsel %vm13990_vm0, %v2334_v31, %v2336_v39  ;;  %v1715_v9 = vld [vmem:[#allocation2 + $0x1d8] sm:$0xff] }
 0x191   : > { %v11552_v51 = vpop.f32.mrf.mxu0  ;;  %v2653_v11 = vpop.f32.mrf.mxu1  ;;  %v10681_v31 = vld [vmem:[%s11015_s12 + $0x15c] sm:$0xff]  }
 0x192   : > { %3319 = vst.msk [vmem:[#allocation2 + $0x188] sm:$0xff] %vm1443_vm1, %v3107_v12  ;;  %v3108_v16 = vadd.f32 %v2653_v11, %v11427_v22 }
 0x193   : > { %v1119_v23 = vpop.f32.mrf.mxu0  ;;  %v2655_v25 = vpop.f32.mrf.mxu1 }
 0x194   : > { %3320 = vst [vmem:[#allocation2 + $0x190] sm:$0xff] %v3108_v16  ;;  %1526 = vst.msk [vmem:[#allocation2 + $0x298] sm:$0xff] %vm1443_vm1, %v1119_v23  ;;  %v3109_v26 = vadd.f32 %v2655_v25, %v1707_v24 }
 0x195   : > { %v11561_v29 = vpop.f32.mrf.mxu0  ;;  %v2659_v30 = vpop.f32.mrf.mxu1  ;;  %2898 = vmatmul.mubr.bf16.gmra.mxu1 %v2333_v28  ;;  %4354 = vmatmul.mubr.bf16.vlgmr.msra.gmra.mxu0 %v4085_v19  ;;  %v2338_v28 = vrot.slane %v10679_v5, 3  ;;  %v4090_v19 = vrot.slane %v10680_v6, 2  ;;  %v1725_v6 = vld [vmem:[#allocation2 + $0x228] sm:$0xff] }
 0x196   : > { %3321 = vst.msk [vmem:[#allocation2 + $0x198] sm:$0xff] %vm1443_vm1, %v3109_v26  ;;  %v3110_v22 = vadd.f32 %v2659_v30, %v11435_v33  ;;  %2907 = vmatprep.mubr.bf16.mxu1 %v10917_v2  ;;  %4363 = vmatprep.mubr.bf16.mxu0 %v10917_v2 }
 0x197   : > { %v1125_v27 = vpop.f32.mrf.mxu0  ;;  %v2661_v63 = vpop.f32.mrf.mxu1  ;;  %v2339_v30 = vsel %vm13990_vm0, %v2336_v39, %v2338_v28  ;;  %v10683_v39 = vld [vmem:[%s11015_s12 + $0x164] sm:$0xff]  }
 0x198   : > { %3322 = vst [vmem:[#allocation2 + $0x1a0] sm:$0xff] %v3110_v22  ;;  %1528 = vst.msk [vmem:[#allocation2 + $0x2a8] sm:$0xff] %vm1443_vm1, %v1125_v27  ;;  %v3111_v38 = vadd.f32 %v2661_v63, %v1709_v35  ;;  %v4091_v22 = vsel %vm4082_vm3, %v4088_v57, %v4090_v19  ;;  %v1719_v35 = vld [vmem:[#allocation2 + $0x1f8] sm:$0xff]  ;;  %v10684_v57 = vld [vmem:[%s11015_s12 + $0x4c] sm:$0xff]  }
 0x199   : > { %v11568_v42 = vpop.f32.mrf.mxu0  ;;  %v2663_v43 = vpop.f32.mrf.mxu1 }
 0x19a   : > { %3323 = vst.msk [vmem:[#allocation2 + $0x1a8] sm:$0xff] %vm1443_vm1, %v3111_v38  ;;  %v3112_v33 = vadd.f32 %v2663_v43, %v11442_v34 }
 0x19b   : > { %v1129_v48 = vpop.f32.mrf.mxu0  ;;  %v2665_v52 = vpop.f32.mrf.mxu1 }
 0x19c   : > { %3324 = vst [vmem:[#allocation2 + $0x1b0] sm:$0xff] %v3112_v33  ;;  %1530 = vst.msk [vmem:[#allocation2 + $0x2b8] sm:$0xff] %vm1443_vm1, %v1129_v48  ;;  %v3113_v53 = vadd.f32 %v2665_v52, %v1711_v49 }
 0x19d   : > { %v11577_v54 = vpop.f32.mrf.mxu0  ;;  %v2669_v55 = vpop.f32.mrf.mxu1  ;;  %2908 = vmatmul.mubr.bf16.gmra.mxu1 %v2335_v41  ;;  %4364 = vmatmul.mubr.bf16.gmra.mxu0 %v4087_v44  ;;  %v2340_v41 = vrot.slane %v10681_v31, 3  ;;  %v4092_v44 = vrot.slane %v10682_v32, 2  ;;  %v1729_v32 = vld [vmem:[#allocation2 + $0x248] sm:$0xff] }
 0x19e   : > { %3325 = vst.msk [vmem:[#allocation2 + $0x1b8] sm:$0xff] %vm1443_vm1, %v3113_v53  ;;  %v3114_v34 = vadd.f32 %v2669_v55, %v11450_v56  ;;  %2917 = vmatprep.mubr.bf16.mxu1 %v10917_v2  ;;  %4373 = vmatprep.mubr.bf16.mxu0 %v10917_v2 }
 0x19f   : > { %v1135_v13 = vpop.f32.mrf.mxu0  ;;  %v2671_v60 = vpop.f32.mrf.mxu1  ;;  %v2341_v55 = vsel %vm13990_vm0, %v2338_v28, %v2340_v41  ;;  %v10685_v28 = vld [vmem:[%s11015_s12 + $0x16c] sm:$0xff]  }
 0x1a0   : > { %3326 = vst [vmem:[#allocation2 + $0x1c0] sm:$0xff] %v3114_v34  ;;  %1532 = vst.msk [vmem:[#allocation2 + $0x2c8] sm:$0xff] %vm1443_vm1, %v1135_v13  ;;  %v3115_v62 = vadd.f32 %v2671_v60, %v1713_v61  ;;  %v4093_v34 = vsel %vm4082_vm3, %v4090_v19, %v4092_v44  ;;  %v1723_v61 = vld [vmem:[#allocation2 + $0x218] sm:$0xff] }
 0x1a1   : > { %v11584_v0 = vpop.f32.mrf.mxu0  ;;  %v2673_v3 = vpop.f32.mrf.mxu1  ;;  %v10686_v19 = vld [vmem:[%s11015_s12 + $0x54] sm:$0xff]  }
 0x1a2   : > { %3327 = vst.msk [vmem:[#allocation2 + $0x1c8] sm:$0xff] %vm1443_vm1, %v3115_v62  ;;  %v3116_v56 = vadd.f32 %v2673_v3, %v11457_v46 }
 0x1a3   : > { %v1139_v8 = vpop.f32.mrf.mxu0  ;;  %v2675_v15 = vpop.f32.mrf.mxu1 }
 0x1a4   : > { %3328 = vst [vmem:[#allocation2 + $0x1d0] sm:$0xff] %v3116_v56  ;;  %1534 = vst.msk [vmem:[#allocation2 + $0x2d8] sm:$0xff] %vm1443_vm1, %v1139_v8  ;;  %v3117_v12 = vadd.f32 %v2675_v15, %v1715_v9 }
 0x1a5   : > { %v11593_v11 = vpop.f32.mrf.mxu0  ;;  %v2679_v16 = vpop.f32.mrf.mxu1  ;;  %2918 = vmatmul.mubr.bf16.gmra.mxu1 %v2337_v10  ;;  %4374 = vmatmul.mubr.bf16.gmra.mxu0 %v4089_v4  ;;  %v2342_v10 = vrot.slane %v10683_v39, 3  ;;  %v4094_v4 = vrot.slane %v10684_v57, 2  ;;  %v1733_v57 = vld [vmem:[#allocation2 + $0x268] sm:$0xff] }
 0x1a6   : > { %3329 = vst.msk [vmem:[#allocation2 + $0x1d8] sm:$0xff] %vm1443_vm1, %v3117_v12  ;;  %v3118_v46 = vadd.f32 %v2679_v16, %v11465_v14  ;;  %2927 = vmatprep.mubr.bf16.mxu1 %v10917_v2  ;;  %4383 = vmatprep.mubr.bf16.mxu0 %v10917_v2 }
 0x1a7   : > { %v1145_v18 = vpop.f32.mrf.mxu0  ;;  %v2681_v23 = vpop.f32.mrf.mxu1  ;;  %v2343_v16 = vsel %vm13990_vm0, %v2340_v41, %v2342_v10  ;;  %v10687_v41 = vld [vmem:[%s11015_s12 + $0x174] sm:$0xff]  }
 0x1a8   : > { %3330 = vst [vmem:[#allocation2 + $0x1e0] sm:$0xff] %v3118_v46  ;;  %1536 = vst.msk [vmem:[#allocation2 + $0x2e8] sm:$0xff] %vm1443_vm1, %v1145_v18  ;;  %v3119_v24 = vadd.f32 %v2681_v23, %v1717_v20  ;;  %v4095_v46 = vsel %vm4082_vm3, %v4092_v44, %v4094_v4  ;;  %v1727_v20 = vld [vmem:[#allocation2 + $0x238] sm:$0xff] }
 0x1a9   : > { %v11600_v25 = vpop.f32.mrf.mxu0  ;;  %v2683_v26 = vpop.f32.mrf.mxu1  ;;  %v10688_v44 = vld [vmem:[%s11015_s12 + $0x5c] sm:$0xff]  }
 0x1aa   : > { %3331 = vst.msk [vmem:[#allocation2 + $0x1e8] sm:$0xff] %vm1443_vm1, %v3119_v24  ;;  %v3120_v14 = vadd.f32 %v2683_v26, %v11472_v58 }
 0x1ab   : > { %v1149_v27 = vpop.f32.mrf.mxu0  ;;  %v2685_v63 = vpop.f32.mrf.mxu1 }
 0x1ac   : > { %3332 = vst [vmem:[#allocation2 + $0x1f0] sm:$0xff] %v3120_v14  ;;  %1538 = vst.msk [vmem:[#allocation2 + $0x2f8] sm:$0xff] %vm1443_vm1, %v1149_v27  ;;  %v3121_v38 = vadd.f32 %v2685_v63, %v1719_v35 }
 0x1ad   : > { %v11609_v43 = vpop.f32.mrf.mxu0  ;;  %v2689_v33 = vpop.f32.mrf.mxu1  ;;  %2928 = vmatmul.mubr.bf16.gmra.mxu1 %v2339_v30  ;;  %4384 = vmatmul.mubr.bf16.gmra.mxu0 %v4091_v22  ;;  %v2344_v30 = vrot.slane %v10685_v28, 3  ;;  %v4096_v22 = vrot.slane %v10686_v19, 2  ;;  %v1737_v19 = vld [vmem:[#allocation2 + $0x288] sm:$0xff] }
 0x1ae   : > { %3333 = vst.msk [vmem:[#allocation2 + $0x1f8] sm:$0xff] %vm1443_vm1, %v3121_v38  ;;  %v3122_v58 = vadd.f32 %v2689_v33, %v11480_v37  ;;  %2937 = vmatprep.mubr.bf16.mxu1 %v10917_v2  ;;  %4393 = vmatprep.mubr.bf16.mxu0 %v10917_v2 }
 0x1af   : > { %v1155_v45 = vpop.f32.mrf.mxu0  ;;  %v2691_v48 = vpop.f32.mrf.mxu1  ;;  %v2345_v33 = vsel %vm13990_vm0, %v2342_v10, %v2344_v30  ;;  %v10689_v10 = vld [vmem:[%s11015_s12 + $0x17c] sm:$0xff]  }
 0x1b0   : > { %3334 = vst [vmem:[#allocation2 + $0x200] sm:$0xff] %v3122_v58  ;;  %1540 = vst.msk [vmem:[#allocation2 + $0x308] sm:$0xff] %vm1443_vm1, %v1155_v45  ;;  %v3123_v49 = vadd.f32 %v2691_v48, %v1721_v47  ;;  %v4097_v58 = vsel %vm4082_vm3, %v4094_v4, %v4096_v22  ;;  %v1731_v47 = vld [vmem:[#allocation2 + $0x258] sm:$0xff]  ;;  %v10690_v4 = vld [vmem:[%s11015_s12 + $0x64] sm:$0xff]  }
 0x1b1   : > { %v11616_v52 = vpop.f32.mrf.mxu0  ;;  %v2693_v53 = vpop.f32.mrf.mxu1 }
 0x1b2   : > { %3335 = vst.msk [vmem:[#allocation2 + $0x208] sm:$0xff] %vm1443_vm1, %v3123_v49  ;;  %v3124_v37 = vadd.f32 %v2693_v53, %v11487_v7 }
 0x1b3   : > { %v1159_v13 = vpop.f32.mrf.mxu0  ;;  %v2695_v60 = vpop.f32.mrf.mxu1 }
 0x1b4   : > { %3336 = vst [vmem:[#allocation2 + $0x210] sm:$0xff] %v3124_v37  ;;  %1542 = vst.msk [vmem:[#allocation2 + $0x318] sm:$0xff] %vm1443_vm1, %v1159_v13  ;;  %v3125_v62 = vadd.f32 %v2695_v60, %v1723_v61 }
 0x1b5   : > { %v11625_v3 = vpop.f32.mrf.mxu0  ;;  %v2699_v56 = vpop.f32.mrf.mxu1  ;;  %2938 = vmatmul.mubr.bf16.gmra.mxu1 %v2341_v55  ;;  %4394 = vmatmul.mubr.bf16.gmra.mxu0 %v4093_v34  ;;  %v2346_v55 = vrot.slane %v10687_v41, 3  ;;  %v4098_v34 = vrot.slane %v10688_v44, 2  ;;  %v1741_v44 = vld [vmem:[#allocation2 + $0x2a8] sm:$0xff] }
 0x1b6   : > { %3337 = vst.msk [vmem:[#allocation2 + $0x218] sm:$0xff] %vm1443_vm1, %v3125_v62  ;;  %v3126_v7 = vadd.f32 %v2699_v56, %v11495_v59  ;;  %2947 = vmatprep.mubr.bf16.mxu1 %v10917_v2  ;;  %4403 = vmatprep.mubr.bf16.mxu0 %v10917_v2 }
 0x1b7   : > { %v1165_v5 = vpop.f32.mrf.mxu0  ;;  %v2701_v8 = vpop.f32.mrf.mxu1  ;;  %v2347_v56 = vsel %vm13990_vm0, %v2344_v30, %v2346_v55  ;;  %v10691_v30 = vld [vmem:[%s11015_s12 + $0x184] sm:$0xff]  }
 0x1b8   : > { %3338 = vst [vmem:[#allocation2 + $0x220] sm:$0xff] %v3126_v7  ;;  %1544 = vst.msk [vmem:[#allocation2 + $0x328] sm:$0xff] %vm1443_vm1, %v1165_v5  ;;  %v3127_v9 = vadd.f32 %v2701_v8, %v1725_v6  ;;  %v4099_v7 = vsel %vm4082_vm3, %v4096_v22, %v4098_v34  ;;  %v1735_v6 = vld [vmem:[#allocation2 + $0x278] sm:$0xff]  ;;  %v10692_v22 = vld [vmem:[%s11015_s12 + $0x6c] sm:$0xff]  }
 0x1b9   : > { %v11632_v15 = vpop.f32.mrf.mxu0  ;;  %v2703_v12 = vpop.f32.mrf.mxu1 }
 0x1ba   : > { %3339 = vst.msk [vmem:[#allocation2 + $0x228] sm:$0xff] %vm1443_vm1, %v3127_v9  ;;  %v3128_v59 = vadd.f32 %v2703_v12, %v11502_v21 }
 0x1bb   : > { %v1169_v18 = vpop.f32.mrf.mxu0  ;;  %v2705_v23 = vpop.f32.mrf.mxu1 }
 0x1bc   : > { %3340 = vst [vmem:[#allocation2 + $0x230] sm:$0xff] %v3128_v59  ;;  %1546 = vst.msk [vmem:[#allocation2 + $0x338] sm:$0xff] %vm1443_vm1, %v1169_v18  ;;  %v3129_v24 = vadd.f32 %v2705_v23, %v1727_v20 }
 0x1bd   : > { %v11641_v26 = vpop.f32.mrf.mxu0  ;;  %v2709_v14 = vpop.f32.mrf.mxu1  ;;  %2948 = vmatmul.mubr.bf16.gmra.mxu1 %v2343_v16  ;;  %4404 = vmatmul.mubr.bf16.gmra.mxu0 %v4095_v46  ;;  %v2348_v16 = vrot.slane %v10689_v10, 3  ;;  %v4100_v46 = vrot.slane %v10690_v4, 2  ;;  %v1745_v4 = vld [vmem:[#allocation2 + $0x2c8] sm:$0xff] }
 0x1be   : > { %3341 = vst.msk [vmem:[#allocation2 + $0x238] sm:$0xff] %vm1443_vm1, %v3129_v24  ;;  %v3130_v21 = vadd.f32 %v2709_v14, %v11510_v17  ;;  %2957 = vmatprep.mubr.bf16.mxu1 %v10917_v2  ;;  %4413 = vmatprep.mubr.bf16.mxu0 %v10917_v2 }
 0x1bf   : > { %v1175_v31 = vpop.f32.mrf.mxu0  ;;  %v2711_v27 = vpop.f32.mrf.mxu1  ;;  %v2349_v14 = vsel %vm13990_vm0, %v2346_v55, %v2348_v16  ;;  %v10693_v55 = vld [vmem:[%s11015_s12 + $0x18c] sm:$0xff]  }
 0x1c0   : > { %3342 = vst [vmem:[#allocation2 + $0x240] sm:$0xff] %v3130_v21  ;;  %1548 = vst.msk [vmem:[#allocation2 + $0x348] sm:$0xff] %vm1443_vm1, %v1175_v31  ;;  %v3131_v35 = vadd.f32 %v2711_v27, %v1729_v32  ;;  %v4101_v21 = vsel %vm4082_vm3, %v4098_v34, %v4100_v46  ;;  %v1739_v32 = vld [vmem:[#allocation2 + $0x298] sm:$0xff] }
 0x1c1   : > { %v11648_v63 = vpop.f32.mrf.mxu0  ;;  %v2713_v38 = vpop.f32.mrf.mxu1  ;;  %v10694_v34 = vld [vmem:[%s11015_s12 + $0x74] sm:$0xff]  }
 0x1c2   : > { %3343 = vst.msk [vmem:[#allocation2 + $0x248] sm:$0xff] %vm1443_vm1, %v3131_v35  ;;  %v3132_v17 = vadd.f32 %v2713_v38, %v11517_v36 }
 0x1c3   : > { %v1179_v45 = vpop.f32.mrf.mxu0  ;;  %v2715_v48 = vpop.f32.mrf.mxu1 }
 0x1c4   : > { %3344 = vst [vmem:[#allocation2 + $0x250] sm:$0xff] %v3132_v17  ;;  %1550 = vst.msk [vmem:[#allocation2 + $0x358] sm:$0xff] %vm1443_vm1, %v1179_v45  ;;  %v3133_v49 = vadd.f32 %v2715_v48, %v1731_v47 }
 0x1c5   : > { %v11657_v53 = vpop.f32.mrf.mxu0  ;;  %v2719_v37 = vpop.f32.mrf.mxu1  ;;  %2958 = vmatmul.mubr.bf16.gmra.mxu1 %v2345_v33  ;;  %4414 = vmatmul.mubr.bf16.gmra.mxu0 %v4097_v58  ;;  %v2350_v33 = vrot.slane %v10691_v30, 3  ;;  %v4102_v58 = vrot.slane %v10692_v22, 2  ;;  %v1749_v22 = vld [vmem:[#allocation2 + $0x2e8] sm:$0xff] }
 0x1c6   : > { %3345 = vst.msk [vmem:[#allocation2 + $0x258] sm:$0xff] %vm1443_vm1, %v3133_v49  ;;  %v3134_v36 = vadd.f32 %v2719_v37, %v11525_v40  ;;  %2967 = vmatprep.mubr.bf16.mxu1 %v10917_v2  ;;  %4423 = vmatprep.mubr.bf16.mxu0 %v10917_v2 }
 0x1c7   : > { %v1185_v39 = vpop.f32.mrf.mxu0  ;;  %v2721_v13 = vpop.f32.mrf.mxu1  ;;  %v2351_v37 = vsel %vm13990_vm0, %v2348_v16, %v2350_v33  ;;  %v10695_v16 = vld [vmem:[%s11015_s12 + $0x194] sm:$0xff]  }
 0x1c8   : > { %3346 = vst [vmem:[#allocation2 + $0x260] sm:$0xff] %v3134_v36  ;;  %1552 = vst.msk [vmem:[#allocation2 + $0x368] sm:$0xff] %vm1443_vm1, %v1185_v39  ;;  %v3135_v61 = vadd.f32 %v2721_v13, %v1733_v57  ;;  %v4103_v36 = vsel %vm4082_vm3, %v4100_v46, %v4102_v58  ;;  %v1743_v57 = vld [vmem:[#allocation2 + $0x2b8] sm:$0xff] }
 0x1c9   : > { %v11664_v60 = vpop.f32.mrf.mxu0  ;;  %v2723_v62 = vpop.f32.mrf.mxu1  ;;  %v10696_v46 = vld [vmem:[%s11015_s12 + $0x7c] sm:$0xff]  }
 0x1ca   : > { %3347 = vst.msk [vmem:[#allocation2 + $0x268] sm:$0xff] %vm1443_vm1, %v3135_v61  ;;  %v3136_v40 = vadd.f32 %v2723_v62, %v11532_v50 }
 0x1cb   : > { %v1189_v5 = vpop.f32.mrf.mxu0  ;;  %v2725_v8 = vpop.f32.mrf.mxu1 }
 0x1cc   : > { %3348 = vst [vmem:[#allocation2 + $0x270] sm:$0xff] %v3136_v40  ;;  %1554 = vst.msk [vmem:[#allocation2 + $0x378] sm:$0xff] %vm1443_vm1, %v1189_v5  ;;  %v3137_v9 = vadd.f32 %v2725_v8, %v1735_v6 }
 0x1cd   : > { %v11673_v12 = vpop.f32.mrf.mxu0  ;;  %v2729_v59 = vpop.f32.mrf.mxu1  ;;  %2968 = vmatmul.mubr.bf16.gmra.mxu1 %v2347_v56  ;;  %4424 = vmatmul.mubr.bf16.gmra.mxu0 %v4099_v7  ;;  %v2352_v56 = vrot.slane %v10693_v55, 3  ;;  %v4104_v7 = vrot.slane %v10694_v34, 2  ;;  %v1753_v34 = vld [vmem:[#allocation2 + $0x308] sm:$0xff] }
 0x1ce   : > { %3349 = vst.msk [vmem:[#allocation2 + $0x278] sm:$0xff] %vm1443_vm1, %v3137_v9  ;;  %v3138_v50 = vadd.f32 %v2729_v59, %v11544_v1  ;;  %2977 = vmatprep.mubr.bf16.mxu1 %v10917_v2  ;;  %4433 = vmatprep.mubr.bf16.mxu0 %v10917_v2 }
 0x1cf   : > { %v1195_v28 = vpop.f32.mrf.mxu0  ;;  %v2731_v18 = vpop.f32.mrf.mxu1  ;;  %v2353_v59 = vsel %vm13990_vm0, %v2350_v33, %v2352_v56  ;;  %v10697_v33 = vld [vmem:[%s11015_s12 + $0x19c] sm:$0xff]  }
 0x1d0   : > { %3350 = vst [vmem:[#allocation2 + $0x280] sm:$0xff] %v3138_v50  ;;  %1556 = vst.msk [vmem:[#allocation2 + $0x388] sm:$0xff] %vm1443_vm1, %v1195_v28  ;;  %v3139_v20 = vadd.f32 %v2731_v18, %v1737_v19  ;;  %v4105_v50 = vsel %vm4082_vm3, %v4102_v58, %v4104_v7  ;;  %v1747_v19 = vld [vmem:[#allocation2 + $0x2d8] sm:$0xff]  ;;  %v10698_v58 = vld [vmem:[%s11015_s12 + $0x84] sm:$0xff]  }
 0x1d1   : > { %v11680_v23 = vpop.f32.mrf.mxu0  ;;  %v2733_v24 = vpop.f32.mrf.mxu1 }
 0x1d2   : > { %3351 = vst.msk [vmem:[#allocation2 + $0x288] sm:$0xff] %vm1443_vm1, %v3139_v20  ;;  %v3140_v1 = vadd.f32 %v2733_v24, %v11552_v51 }
 0x1d3   : > { %v1199_v31 = vpop.f32.mrf.mxu0  ;;  %v2735_v27 = vpop.f32.mrf.mxu1 }
 0x1d4   : > { %3352 = vst [vmem:[#allocation2 + $0x290] sm:$0xff] %v3140_v1  ;;  %1558 = vst.msk [vmem:[#allocation2 + $0x398] sm:$0xff] %vm1443_vm1, %v1199_v31  ;;  %v3141_v35 = vadd.f32 %v2735_v27, %v1739_v32 }
 0x1d5   : > { %v11689_v38 = vpop.f32.mrf.mxu0  ;;  %v2739_v17 = vpop.f32.mrf.mxu1  ;;  %2978 = vmatmul.mubr.bf16.gmra.mxu1 %v2349_v14  ;;  %4434 = vmatmul.mubr.bf16.gmra.mxu0 %v4101_v21  ;;  %v2354_v14 = vrot.slane %v10695_v16, 3  ;;  %v4106_v21 = vrot.slane %v10696_v46, 2  ;;  %v1757_v46 = vld [vmem:[#allocation2 + $0x328] sm:$0xff] }
 0x1d6   : > { %3353 = vst.msk [vmem:[#allocation2 + $0x298] sm:$0xff] %vm1443_vm1, %v3141_v35  ;;  %v3142_v51 = vadd.f32 %v2739_v17, %v11561_v29  ;;  %2987 = vmatprep.mubr.bf16.mxu1 %v10917_v2  ;;  %4443 = vmatprep.mubr.bf16.mxu0 %v10917_v2 }
 0x1d7   : > { %v1205_v41 = vpop.f32.mrf.mxu0  ;;  %v2741_v45 = vpop.f32.mrf.mxu1  ;;  %v2355_v17 = vsel %vm13990_vm0, %v2352_v56, %v2354_v14  ;;  %v10699_v56 = vld [vmem:[%s11015_s12 + $0x1a4] sm:$0xff]  }
 0x1d8   : > { %3354 = vst [vmem:[#allocation2 + $0x2a0] sm:$0xff] %v3142_v51  ;;  %1560 = vst.msk [vmem:[#allocation2 + $0x3a8] sm:$0xff] %vm1443_vm1, %v1205_v41  ;;  %v3143_v47 = vadd.f32 %v2741_v45, %v1741_v44  ;;  %v4107_v51 = vsel %vm4082_vm3, %v4104_v7, %v4106_v21  ;;  %v1751_v44 = vld [vmem:[#allocation2 + $0x2f8] sm:$0xff]  ;;  %v10700_v7 = vld [vmem:[%s11015_s12 + $0x8c] sm:$0xff]  }
 0x1d9   : > { %v11696_v48 = vpop.f32.mrf.mxu0  ;;  %v2743_v49 = vpop.f32.mrf.mxu1 }
 0x1da   : > { %3355 = vst.msk [vmem:[#allocation2 + $0x2a8] sm:$0xff] %vm1443_vm1, %v3143_v47  ;;  %v3144_v29 = vadd.f32 %v2743_v49, %v11568_v42 }
 0x1db   : > { %v1209_v39 = vpop.f32.mrf.mxu0  ;;  %v2745_v13 = vpop.f32.mrf.mxu1 }
 0x1dc   : > { %3356 = vst [vmem:[#allocation2 + $0x2b0] sm:$0xff] %v3144_v29  ;;  %1562 = vst.msk [vmem:[#allocation2 + $0x3b8] sm:$0xff] %vm1443_vm1, %v1209_v39  ;;  %v3145_v61 = vadd.f32 %v2745_v13, %v1743_v57 }
 0x1dd   : > { %v11705_v62 = vpop.f32.mrf.mxu0  ;;  %v2749_v40 = vpop.f32.mrf.mxu1  ;;  %2988 = vmatmul.mubr.bf16.gmra.mxu1 %v2351_v37  ;;  %4444 = vmatmul.mubr.bf16.gmra.mxu0 %v4103_v36  ;;  %v2356_v37 = vrot.slane %v10697_v33, 3  ;;  %v4108_v36 = vrot.slane %v10698_v58, 2  ;;  %v1761_v58 = vld [vmem:[#allocation2 + $0x348] sm:$0xff] }
 0x1de   : > { %3357 = vst.msk [vmem:[#allocation2 + $0x2b8] sm:$0xff] %vm1443_vm1, %v3145_v61  ;;  %v3146_v42 = vadd.f32 %v2749_v40, %v11577_v54  ;;  %2997 = vmatprep.mubr.bf16.mxu1 %v10917_v2  ;;  %4453 = vmatprep.mubr.bf16.mxu0 %v10917_v2 }
 0x1df   : > { %v1215_v10 = vpop.f32.mrf.mxu0  ;;  %v2751_v5 = vpop.f32.mrf.mxu1  ;;  %v2357_v40 = vsel %vm13990_vm0, %v2354_v14, %v2356_v37  ;;  %v11767_v14 = vld [vmem:[%s11015_s12 + $0x1ac] sm:$0xff]  }
 0x1e0   : > { %3358 = vst [vmem:[#allocation2 + $0x2c0] sm:$0xff] %v3146_v42  ;;  %1564 = vst.msk [vmem:[#allocation2 + $0x3c8] sm:$0xff] %vm1443_vm1, %v1215_v10  ;;  %v3147_v6 = vadd.f32 %v2751_v5, %v1745_v4  ;;  %v4109_v42 = vsel %vm4082_vm3, %v4106_v21, %v4108_v36  ;;  %v1755_v4 = vld [vmem:[#allocation2 + $0x318] sm:$0xff] }
 0x1e1   : > { %v11712_v8 = vpop.f32.mrf.mxu0  ;;  %v2753_v9 = vpop.f32.mrf.mxu1  ;;  %v10702_v21 = vld [vmem:[%s11015_s12 + $0x94] sm:$0xff]  }
 0x1e2   : > { %3359 = vst.msk [vmem:[#allocation2 + $0x2c8] sm:$0xff] %vm1443_vm1, %v3147_v6  ;;  %v3148_v54 = vadd.f32 %v2753_v9, %v11584_v0 }
 0x1e3   : > { %v1219_v28 = vpop.f32.mrf.mxu0  ;;  %v2755_v18 = vpop.f32.mrf.mxu1 }
 0x1e4   : > { %3360 = vst [vmem:[#allocation2 + $0x2d0] sm:$0xff] %v3148_v54  ;;  %1566 = vst.msk [vmem:[#allocation2 + $0x3d8] sm:$0xff] %vm1443_vm1, %v1219_v28  ;;  %v3149_v20 = vadd.f32 %v2755_v18, %v1747_v19 }
 0x1e5   : > { %v11721_v24 = vpop.f32.mrf.mxu0  ;;  %v2759_v1 = vpop.f32.mrf.mxu1  ;;  %2998 = vmatmul.mubr.bf16.gmra.mxu1 %v2353_v59  ;;  %4454 = vmatmul.mubr.bf16.gmra.mxu0 %v4105_v50  ;;  %v2358_v59 = vrot.slane %v10699_v56, 3  ;;  %v4110_v50 = vrot.slane %v10700_v7, 2 }
 0x1e6   : > { %3361 = vst.msk [vmem:[#allocation2 + $0x2d8] sm:$0xff] %vm1443_vm1, %v3149_v20  ;;  %v3150_v0 = vadd.f32 %v2759_v1, %v11593_v11  ;;  %3007 = vmatprep.mubr.bf16.mxu1 %v10917_v2  ;;  %4463 = vmatprep.mubr.bf16.mxu0 %v10917_v2 }
 0x1e7   : > { %v1225_v30 = vpop.f32.mrf.mxu0  ;;  %v2761_v31 = vpop.f32.mrf.mxu1  ;;  %v2359_v1 = vsel %vm13990_vm0, %v2356_v37, %v2358_v59  ;;  %v10703_v37 = vld [vmem:[%s11015_s12 + $0x9c] sm:$0xff]  }
 0x1e8   : > { %3362 = vst [vmem:[#allocation2 + $0x2e0] sm:$0xff] %v3150_v0  ;;  %1568 = vst.msk [vmem:[#allocation2 + $0x3e8] sm:$0xff] %vm1443_vm1, %v1225_v30  ;;  %v3151_v32 = vadd.f32 %v2761_v31, %v1749_v22  ;;  %v4111_v0 = vsel %vm4082_vm3, %v4108_v36, %v4110_v50  ;;  %v1759_v22 = vld [vmem:[#allocation2 + $0x338] sm:$0xff] }
 0x1e9   : > { %v11728_v27 = vpop.f32.mrf.mxu0  ;;  %v2763_v35 = vpop.f32.mrf.mxu1 }
 0x1ea   : > { %3363 = vst.msk [vmem:[#allocation2 + $0x2e8] sm:$0xff] %vm1443_vm1, %v3151_v32  ;;  %v3152_v11 = vadd.f32 %v2763_v35, %v11600_v25 }
 0x1eb   : > { %v1229_v41 = vpop.f32.mrf.mxu0  ;;  %v2765_v45 = vpop.f32.mrf.mxu1 }
 0x1ec   : > { %3364 = vst [vmem:[#allocation2 + $0x2f0] sm:$0xff] %v3152_v11  ;;  %1570 = vst.msk [vmem:[#allocation2 + $0x3f8] sm:$0xff] %vm1443_vm1, %v1229_v41  ;;  %v3153_v47 = vadd.f32 %v2765_v45, %v1751_v44 }
 0x1ed   : > { %v11737_v49 = vpop.f32.mrf.mxu0  ;;  %v2769_v29 = vpop.f32.mrf.mxu1  ;;  %3008 = vmatmul.mubr.bf16.gmra.mxu1 %v2355_v17  ;;  %4464 = vmatmul.mubr.bf16.gmra.mxu0 %v4107_v51  ;;  %v2360_v17 = vrot.slane %v11767_v14, 3  ;;  %v4112_v51 = vrot.slane %v10702_v21, 2 }
 0x1ee   : > { %3365 = vst.msk [vmem:[#allocation2 + $0x2f8] sm:$0xff] %vm1443_vm1, %v3153_v47  ;;  %v3154_v25 = vadd.f32 %v2769_v29, %v11609_v43  ;;  %3017 = vmatprep.mubr.bf16.mxu1 %v10917_v2  ;;  %4473 = vmatprep.mubr.bf16.mxu0 %v10917_v2 }
 0x1ef   : > { %v1235_v55 = vpop.f32.mrf.mxu0  ;;  %v2771_v39 = vpop.f32.mrf.mxu1  ;;  %v2361_v29 = vsel %vm13990_vm0, %v2358_v59, %v2360_v17  ;;  %vm12886_vm0 = vmor %vm7631_vm13, %vm7632_vm14  ;;  %vm8131_vm13 = vcmask 785408   ;;  %vm8153_vm14 = vcmask 779264  }
 0x1f0   : > { %3366 = vst [vmem:[#allocation2 + $0x300] sm:$0xff] %v3154_v25  ;;  %1572 = vst.msk [vmem:[#allocation2 + $0x408] sm:$0xff] %vm1443_vm1, %v1235_v55  ;;  %v3155_v57 = vadd.f32 %v2771_v39, %v1753_v34  ;;  %v4113_v25 = vsel %vm4082_vm3, %v4110_v50, %v4112_v51  ;;  %v1763_v55 = vld [vmem:[#allocation2 + $0x358] sm:$0xff] }
 0x1f1   : > { %v11744_v13 = vpop.f32.mrf.mxu0  ;;  %v2773_v61 = vpop.f32.mrf.mxu1 }
 0x1f2   : > { %3367 = vst.msk [vmem:[#allocation2 + $0x308] sm:$0xff] %vm1443_vm1, %v3155_v57  ;;  %v3156_v43 = vadd.f32 %v2773_v61, %v11616_v52 }
 0x1f3   : > { %v1239_v10 = vpop.f32.mrf.mxu0  ;;  %v2775_v5 = vpop.f32.mrf.mxu1 }
 0x1f4   : > { %3368 = vst [vmem:[#allocation2 + $0x310] sm:$0xff] %v3156_v43  ;;  %1574 = vst.msk [vmem:[#allocation2 + $0x418] sm:$0xff] %vm1443_vm1, %v1239_v10  ;;  %v3157_v6 = vadd.f32 %v2775_v5, %v1755_v4  ;;  %v4114_v43 = vrot.slane %v10703_v37, 2 }
 0x1f5   : > { %v11753_v9 = vpop.f32.mrf.mxu0  ;;  %v2779_v54 = vpop.f32.mrf.mxu1  ;;  %3018 = vmatmul.mubr.bf16.gmra.mxu1 %v2357_v40  ;;  %4474 = vmatmul.mubr.bf16.gmra.mxu0 %v4109_v42  ;;  %v1765_v42 = vld [vmem:[#allocation2 + $0x368] sm:$0xff] }
 0x1f6   : > { %3369 = vst.msk [vmem:[#allocation2 + $0x318] sm:$0xff] %vm1443_vm1, %v3157_v6  ;;  %v3158_v52 = vadd.f32 %v2779_v54, %v11625_v3  ;;  %3027 = vmatprep.mubr.bf16.mxu1 %v10917_v2  ;;  %4483 = vmatprep.mubr.bf16.mxu0 %v10917_v2  ;;  %v10704_v6 = vld [vmem:[%s11015_s12 + $0xa4] sm:$0xff]  }
 0x1f7   : > { %v1245_v16 = vpop.f32.mrf.mxu0  ;;  %v2781_v28 = vpop.f32.mrf.mxu1 }
 0x1f8   : > { %3370 = vst [vmem:[#allocation2 + $0x320] sm:$0xff] %v3158_v52  ;;  %1576 = vst.msk [vmem:[#allocation2 + $0x428] sm:$0xff] %vm1443_vm1, %v1245_v16  ;;  %v3159_v19 = vadd.f32 %v2781_v28, %v1757_v46  ;;  %v1767_v52 = vld [vmem:[#allocation2 + $0x378] sm:$0xff] }
 0x1f9   : > { %v11760_v18 = vpop.f32.mrf.mxu0  ;;  %v2783_v20 = vpop.f32.mrf.mxu1 }
 0x1fa   : > { %3371 = vst.msk [vmem:[#allocation2 + $0x328] sm:$0xff] %vm1443_vm1, %v3159_v19  ;;  %v3160_v3 = vadd.f32 %v2783_v20, %v11632_v15  ;;  %v10918_v19 = vmov 0.0   ;;  %v10719_v20 = vld [vmem:[%s13981_s2 + $0x18] sm:$0xff]  }
 0x1fb   : > { %v1249_v30 = vpop.f32.mrf.mxu0  ;;  %v2785_v31 = vpop.f32.mrf.mxu1  ;;  %10298 = vmatprep.subr.bf16.mxu1 %v10918_v19 }
 0x1fc   : > { %3372 = vst [vmem:[#allocation2 + $0x330] sm:$0xff] %v3160_v3  ;;  %1578 = vst.msk [vmem:[#allocation2 + $0x438] sm:$0xff] %vm1443_vm1, %v1249_v30  ;;  %v3161_v32 = vadd.f32 %v2785_v31, %v1759_v22  ;;  %10299 = vmatpush3.bf16.msra.mxu1 %v10719_v20  ;;  %v10705_v31 = vld [vmem:[%s11015_s12 + $0xac] sm:$0xff]  }
 0x1fd   : > { %v11771_v35 = vpop.f32.mrf.mxu0  ;;  %v2789_v11 = vpop.f32.mrf.mxu1  ;;  %3028 = vmatmul.mubr.bf16.gmra.mxu1 %v2359_v1  ;;  %4484 = vmatmul.mubr.bf16.gmra.mxu0 %v4111_v0  ;;  %v1769_v1 = vld [vmem:[#allocation2 + $0x388] sm:$0xff] }
 0x1fe   : > { %3373 = vst.msk [vmem:[#allocation2 + $0x338] sm:$0xff] %vm1443_vm1, %v3161_v32  ;;  %v3162_v15 = vadd.f32 %v2789_v11, %v11641_v26  ;;  %3037 = vmatprep.mubr.bf16.mxu1 %v10917_v2  ;;  %4493 = vmatprep.mubr.bf16.mxu0 %v10917_v2  ;;  %v1771_v11 = vld [vmem:[#allocation2 + $0x398] sm:$0xff] }
 0x1ff   : > { %v1255_v33 = vpop.f32.mrf.mxu0  ;;  %v2791_v41 = vpop.f32.mrf.mxu1  ;;  %10300 = vmatprep.subr.bf16.mxu1 %v10918_v19 }
 0x200   : > { %3374 = vst [vmem:[#allocation2 + $0x340] sm:$0xff] %v3162_v15  ;;  %1580 = vst.msk [vmem:[#allocation2 + $0x448] sm:$0xff] %vm1443_vm1, %v1255_v33  ;;  %v3163_v44 = vadd.f32 %v2791_v41, %v1761_v58 }
 0x201   : > { %v11779_v45 = vpop.f32.mrf.mxu0  ;;  %v2793_v47 = vpop.f32.mrf.mxu1 }
 0x202   : > { %3375 = vst.msk [vmem:[#allocation2 + $0x348] sm:$0xff] %vm1443_vm1, %v3163_v44  ;;  %v3164_v26 = vadd.f32 %v2793_v47, %v11648_v63  ;;  %v1773_v44 = vld [vmem:[#allocation2 + $0x3a8] sm:$0xff] }
 0x203   : > { %v1259_v36 = vpop.f32.mrf.mxu0  ;;  %v2795_v34 = vpop.f32.mrf.mxu1 }
 0x204   : > { %3376 = vst [vmem:[#allocation2 + $0x350] sm:$0xff] %v3164_v26  ;;  %1582 = vst.msk [vmem:[#allocation2 + $0x458] sm:$0xff] %vm1443_vm1, %v1259_v36  ;;  %v3165_v39 = vadd.f32 %v2795_v34, %v1763_v55  ;;  %v1775_v34 = vld [vmem:[#allocation2 + $0x3b8] sm:$0xff] }
 0x205   : > { %v11787_v57 = vpop.f32.mrf.mxu0  ;;  %v2799_v61 = vpop.f32.mrf.mxu1  ;;  %3038 = vmatmul.mubr.bf16.gmra.mxu1 %v2361_v29  ;;  %4494 = vmatmul.mubr.bf16.gmra.mxu0 %v4113_v25 }
 0x206   : > { %3377 = vst.msk [vmem:[#allocation2 + $0x358] sm:$0xff] %vm1443_vm1, %v3165_v39  ;;  %v3166_v63 = vadd.f32 %v2799_v61, %v11657_v53  ;;  %3047 = vmatprep.mubr.bf16.mxu1 %v10917_v2  ;;  %4503 = vmatprep.mubr.bf16.mxu0 %v10917_v2  ;;  %v4115_v53 = vsel %vm4082_vm3, %v4112_v51, %v4114_v43 }
 0x207   : > { %v1265_v40 = vpop.f32.mrf.mxu0  ;;  %v2801_v56 = vpop.f32.mrf.mxu1 }
 0x208   : > { %3378 = vst [vmem:[#allocation2 + $0x360] sm:$0xff] %v3166_v63  ;;  %1584 = vst.msk [vmem:[#allocation2 + $0x468] sm:$0xff] %vm1443_vm1, %v1265_v40  ;;  %v3167_v7 = vadd.f32 %v2801_v56, %v1765_v42  ;;  %v1777_v56 = vld [vmem:[#allocation2 + $0x3c8] sm:$0xff] }
 0x209   : > { %v11794_v10 = vpop.f32.mrf.mxu0  ;;  %v2803_v4 = vpop.f32.mrf.mxu1 }
 0x20a   : > { %3379 = vst.msk [vmem:[#allocation2 + $0x368] sm:$0xff] %vm1443_vm1, %v3167_v7  ;;  %v3168_v5 = vadd.f32 %v2803_v4, %v11664_v60  ;;  %v4116_v60 = vrot.slane %v10704_v6, 2 }
 0x20b   : > { %v1269_v54 = vpop.f32.mrf.mxu0  ;;  %v2805_v59 = vpop.f32.mrf.mxu1 }
 0x20c   : > { %3380 = vst [vmem:[#allocation2 + $0x370] sm:$0xff] %v3168_v5  ;;  %1586 = vst.msk [vmem:[#allocation2 + $0x478] sm:$0xff] %vm1443_vm1, %v1269_v54  ;;  %v3169_v50 = vadd.f32 %v2805_v59, %v1767_v52  ;;  %v4117_v22 = vsel %vm4082_vm3, %v4114_v43, %v4116_v60  ;;  %v1779_v59 = vld [vmem:[#allocation2 + $0x3d8] sm:$0xff] }
 0x20d   : > { %v11801_v16 = vpop.f32.mrf.mxu0  ;;  %v2809_v46 = vpop.f32.mrf.mxu1  ;;  %3048 = vmatmul.mubr.bf16.gmra.mxu1 %v2360_v17  ;;  %4504 = vmatmul.mubr.bf16.gmra.mxu0 %v4115_v53 }
 0x20e   : > { %3381 = vst.msk [vmem:[#allocation2 + $0x378] sm:$0xff] %vm1443_vm1, %v3169_v50  ;;  %v3170_v28 = vadd.f32 %v2809_v46, %v11673_v12  ;;  %4513 = vmatprep.mubr.bf16.mxu0 %v10917_v2  ;;  %10306 = vmatprep.mubr.msk.bf16.mxu1 %vm10920_vm5, %v10918_v19 }
 0x20f   : > { %v1275_v3 = vpop.f32.mrf.mxu0  ;;  %v2811_v0 = vpop.f32.mrf.mxu1 }
 0x210   : > { %3382 = vst [vmem:[#allocation2 + $0x380] sm:$0xff] %v3170_v28  ;;  %1588 = vst.msk [vmem:[#allocation2 + $0x488] sm:$0xff] %vm1443_vm1, %v1275_v3  ;;  %v3171_v14 = vadd.f32 %v2811_v0, %v1769_v1  ;;  %v1781_v1 = vld [vmem:[#allocation2 + $0x3e8] sm:$0xff] }
 0x211   : > { %v11811_v12 = vpop.f32.mrf.mxu0  ;;  %v2813_v21 = vpop.f32.mrf.mxu1 }
 0x212   : > { %3383 = vst.msk [vmem:[#allocation2 + $0x388] sm:$0xff] %vm1443_vm1, %v3171_v14  ;;  %v3172_v30 = vadd.f32 %v2813_v21, %v11680_v23  ;;  %v4118_v23 = vrot.slane %v10705_v31, 2 }
 0x213   : > { %v1279_v32 = vpop.f32.mrf.mxu0  ;;  %v2815_v15 = vpop.f32.mrf.mxu1 }
 0x214   : > { %3384 = vst [vmem:[#allocation2 + $0x390] sm:$0xff] %v3172_v30  ;;  %1590 = vst.msk [vmem:[#allocation2 + $0x498] sm:$0xff] %vm1443_vm1, %v1279_v32  ;;  %v3173_v17 = vadd.f32 %v2815_v15, %v1771_v11  ;;  %v4119_v36 = vsel %vm4082_vm3, %v4116_v60, %v4118_v23  ;;  %v1783_v11 = vld [vmem:[#allocation2 + $0x3f8] sm:$0xff] }
 0x215   : > { %v11819_v51 = vpop.f32.mrf.mxu0  ;;  %v2819_v33 = vpop.f32.mrf.mxu1  ;;  %4514 = vmatmul.mubr.bf16.gmra.mxu0 %v4117_v22 }
 0x216   : > { %3385 = vst.msk [vmem:[#allocation2 + $0x398] sm:$0xff] %vm1443_vm1, %v3173_v17  ;;  %v3174_v58 = vadd.f32 %v2819_v33, %v11689_v38  ;;  %4523 = vmatprep.mubr.bf16.mxu0 %v10917_v2  ;;  %v10706_v38 = vld [vmem:[%s11015_s12 + $0xb4] sm:$0xff]  }
 0x217   : > { %v1285_v41 = vpop.f32.mrf.mxu0  ;;  %v2821_v47 = vpop.f32.mrf.mxu1 }
 0x218   : > { %3386 = vst [vmem:[#allocation2 + $0x3a0] sm:$0xff] %v3174_v58  ;;  %1592 = vst.msk [vmem:[#allocation2 + $0x4a8] sm:$0xff] %vm1443_vm1, %v1285_v41  ;;  %v3175_v26 = vadd.f32 %v2821_v47, %v1773_v44  ;;  %v1785_v44 = vld [vmem:[#allocation2 + $0x408] sm:$0xff] }
 0x219   : > { %v11825_v29 = vpop.f32.mrf.mxu0  ;;  %v2823_v25 = vpop.f32.mrf.mxu1 }
 0x21a   : > { %3387 = vst.msk [vmem:[#allocation2 + $0x3a8] sm:$0xff] %vm1443_vm1, %v3175_v26  ;;  %v3176_v37 = vadd.f32 %v2823_v25, %v11696_v48  ;;  %v4120_v48 = vrot.slane %v10706_v38, 2 }
 0x21b   : > { %v1289_v55 = vpop.f32.mrf.mxu0  ;;  %v2825_v39 = vpop.f32.mrf.mxu1 }
 0x21c   : > { %3388 = vst [vmem:[#allocation2 + $0x3b0] sm:$0xff] %v3176_v37  ;;  %1594 = vst.msk [vmem:[#allocation2 + $0x4b8] sm:$0xff] %vm1443_vm1, %v1289_v55  ;;  %v3177_v61 = vadd.f32 %v2825_v39, %v1775_v34  ;;  %v4121_v54 = vsel %vm4082_vm3, %v4118_v23, %v4120_v48  ;;  %v1787_v34 = vld [vmem:[#allocation2 + $0x418] sm:$0xff] }
 0x21d   : > { %v11832_v63 = vpop.f32.mrf.mxu0  ;;  %v2829_v43 = vpop.f32.mrf.mxu1  ;;  %4524 = vmatmul.mubr.bf16.gmra.mxu0 %v4119_v36 }
 0x21e   : > { %3389 = vst.msk [vmem:[#allocation2 + $0x3b8] sm:$0xff] %vm1443_vm1, %v3177_v61  ;;  %v3178_v40 = vadd.f32 %v2829_v43, %v11705_v62  ;;  %4533 = vmatprep.mubr.bf16.mxu0 %v10917_v2  ;;  %v10707_v62 = vld [vmem:[%s11015_s12 + $0xbc] sm:$0xff]  }
 0x21f   : > { %v1295_v42 = vpop.f32.mrf.mxu0  ;;  %v2831_v7 = vpop.f32.mrf.mxu1 }
 0x220   : > { %3390 = vst [vmem:[#allocation2 + $0x3c0] sm:$0xff] %v3178_v40  ;;  %1596 = vst.msk [vmem:[#allocation2 + $0x4c8] sm:$0xff] %vm1443_vm1, %v1295_v42  ;;  %v3179_v4 = vadd.f32 %v2831_v7, %v1777_v56  ;;  %v1789_v56 = vld [vmem:[#allocation2 + $0x428] sm:$0xff] }
 0x221   : > { %v11838_v5 = vpop.f32.mrf.mxu0  ;;  %v2833_v53 = vpop.f32.mrf.mxu1 }
 0x222   : > { %3391 = vst.msk [vmem:[#allocation2 + $0x3c8] sm:$0xff] %vm1443_vm1, %v3179_v4  ;;  %v3180_v6 = vadd.f32 %v2833_v53, %v11712_v8  ;;  %v4122_v8 = vrot.slane %v10707_v62, 2 }
 0x223   : > { %v1299_v52 = vpop.f32.mrf.mxu0  ;;  %v2835_v50 = vpop.f32.mrf.mxu1 }
 0x224   : > { %3392 = vst [vmem:[#allocation2 + $0x3d0] sm:$0xff] %v3180_v6  ;;  %1598 = vst.msk [vmem:[#allocation2 + $0x4d8] sm:$0xff] %vm1443_vm1, %v1299_v52  ;;  %v3181_v46 = vadd.f32 %v2835_v50, %v1779_v59  ;;  %v4123_v31 = vsel %vm4082_vm3, %v4120_v48, %v4122_v8  ;;  %v1791_v59 = vld [vmem:[#allocation2 + $0x438] sm:$0xff] }
 0x225   : > { %v11845_v28 = vpop.f32.mrf.mxu0  ;;  %v2839_v60 = vpop.f32.mrf.mxu1  ;;  %4534 = vmatmul.mubr.bf16.gmra.mxu0 %v4121_v54 }
 0x226   : > { %3393 = vst.msk [vmem:[#allocation2 + $0x3d8] sm:$0xff] %vm1443_vm1, %v3181_v46  ;;  %v3182_v20 = vadd.f32 %v2839_v60, %v11721_v24  ;;  %4543 = vmatprep.mubr.bf16.mxu0 %v10917_v2  ;;  %v10708_v24 = vld [vmem:[%s11015_s12 + $0xc4] sm:$0xff]  }
 0x227   : > { %v1305_v3 = vpop.f32.mrf.mxu0  ;;  %v2841_v0 = vpop.f32.mrf.mxu1 }
 0x228   : > { %3394 = vst [vmem:[#allocation2 + $0x3e0] sm:$0xff] %v3182_v20  ;;  %1600 = vst.msk [vmem:[#allocation2 + $0x4e8] sm:$0xff] %vm1443_vm1, %v1305_v3  ;;  %v3183_v14 = vadd.f32 %v2841_v0, %v1781_v1  ;;  %v1793_v1 = vld [vmem:[#allocation2 + $0x448] sm:$0xff] }
 0x229   : > { %v11851_v21 = vpop.f32.mrf.mxu0  ;;  %v2843_v30 = vpop.f32.mrf.mxu1 }
 0x22a   : > { %3395 = vst.msk [vmem:[#allocation2 + $0x3e8] sm:$0xff] %vm1443_vm1, %v3183_v14  ;;  %v3184_v22 = vadd.f32 %v2843_v30, %v11728_v27  ;;  %v4124_v27 = vrot.slane %v10708_v24, 2 }
 0x22b   : > { %v1309_v32 = vpop.f32.mrf.mxu0  ;;  %v2845_v15 = vpop.f32.mrf.mxu1 }
 0x22c   : > { %3396 = vst [vmem:[#allocation2 + $0x3f0] sm:$0xff] %v3184_v22  ;;  %1602 = vst.msk [vmem:[#allocation2 + $0x4f8] sm:$0xff] %vm1443_vm1, %v1309_v32  ;;  %v3185_v17 = vadd.f32 %v2845_v15, %v1783_v11  ;;  %v4125_v38 = vsel %vm4082_vm3, %v4122_v8, %v4124_v27  ;;  %v1795_v11 = vld [vmem:[#allocation2 + $0x458] sm:$0xff] }
 0x22d   : > { %v11858_v33 = vpop.f32.mrf.mxu0  ;;  %v2849_v58 = vpop.f32.mrf.mxu1  ;;  %4544 = vmatmul.mubr.bf16.gmra.mxu0 %v4123_v31 }
 0x22e   : > { %3397 = vst.msk [vmem:[#allocation2 + $0x3f8] sm:$0xff] %vm1443_vm1, %v3185_v17  ;;  %v3186_v23 = vadd.f32 %v2849_v58, %v11737_v49  ;;  %4553 = vmatprep.mubr.bf16.mxu0 %v10917_v2  ;;  %v10709_v49 = vld [vmem:[%s11015_s12 + $0xcc] sm:$0xff]  }
 0x22f   : > { %v1315_v41 = vpop.f32.mrf.mxu0  ;;  %v2851_v47 = vpop.f32.mrf.mxu1 }
 0x230   : > { %3398 = vst [vmem:[#allocation2 + $0x400] sm:$0xff] %v3186_v23  ;;  %1604 = vst.msk [vmem:[#allocation2 + $0x508] sm:$0xff] %vm1443_vm1, %v1315_v41  ;;  %v3187_v26 = vadd.f32 %v2851_v47, %v1785_v44  ;;  %v1797_v44 = vld [vmem:[#allocation2 + $0x468] sm:$0xff] }
 0x231   : > { %v11864_v25 = vpop.f32.mrf.mxu0  ;;  %v2853_v37 = vpop.f32.mrf.mxu1 }
 0x232   : > { %3399 = vst.msk [vmem:[#allocation2 + $0x408] sm:$0xff] %vm1443_vm1, %v3187_v26  ;;  %v3188_v36 = vadd.f32 %v2853_v37, %v11744_v13  ;;  %v4126_v13 = vrot.slane %v10709_v49, 2 }
 0x233   : > { %v1319_v55 = vpop.f32.mrf.mxu0  ;;  %v2855_v39 = vpop.f32.mrf.mxu1 }
 0x234   : > { %3400 = vst [vmem:[#allocation2 + $0x410] sm:$0xff] %v3188_v36  ;;  %1606 = vst.msk [vmem:[#allocation2 + $0x518] sm:$0xff] %vm1443_vm1, %v1319_v55  ;;  %v3189_v61 = vadd.f32 %v2855_v39, %v1787_v34  ;;  %v4127_v62 = vsel %vm4082_vm3, %v4124_v27, %v4126_v13  ;;  %v1799_v34 = vld [vmem:[#allocation2 + $0x478] sm:$0xff] }
 0x235   : > { %v11871_v43 = vpop.f32.mrf.mxu0  ;;  %v2859_v40 = vpop.f32.mrf.mxu1  ;;  %4554 = vmatmul.mubr.bf16.gmra.mxu0 %v4125_v38 }
 0x236   : > { %3401 = vst.msk [vmem:[#allocation2 + $0x418] sm:$0xff] %vm1443_vm1, %v3189_v61  ;;  %v3190_v48 = vadd.f32 %v2859_v40, %v11753_v9  ;;  %4563 = vmatprep.mubr.bf16.mxu0 %v10917_v2  ;;  %v10710_v9 = vld [vmem:[%s11015_s12 + $0xd4] sm:$0xff]  }
 0x237   : > { %v1325_v42 = vpop.f32.mrf.mxu0  ;;  %v2861_v7 = vpop.f32.mrf.mxu1 }
 0x238   : > { %3402 = vst [vmem:[#allocation2 + $0x420] sm:$0xff] %v3190_v48  ;;  %1608 = vst.msk [vmem:[#allocation2 + $0x528] sm:$0xff] %vm1443_vm1, %v1325_v42  ;;  %v3191_v4 = vadd.f32 %v2861_v7, %v1789_v56  ;;  %v1801_v56 = vld [vmem:[#allocation2 + $0x488] sm:$0xff] }
 0x239   : > { %v11877_v53 = vpop.f32.mrf.mxu0  ;;  %v2863_v6 = vpop.f32.mrf.mxu1 }
 0x23a   : > { %3403 = vst.msk [vmem:[#allocation2 + $0x428] sm:$0xff] %vm1443_vm1, %v3191_v4  ;;  %v3192_v54 = vadd.f32 %v2863_v6, %v11760_v18  ;;  %v4128_v18 = vrot.slane %v10710_v9, 2 }
 0x23b   : > { %v1329_v52 = vpop.f32.mrf.mxu0  ;;  %v2865_v50 = vpop.f32.mrf.mxu1 }
 0x23c   : > { %3404 = vst [vmem:[#allocation2 + $0x430] sm:$0xff] %v3192_v54  ;;  %1610 = vst.msk [vmem:[#allocation2 + $0x538] sm:$0xff] %vm1443_vm1, %v1329_v52  ;;  %v3193_v46 = vadd.f32 %v2865_v50, %v1791_v59  ;;  %v4129_v24 = vsel %vm4082_vm3, %v4126_v13, %v4128_v18  ;;  %v1803_v59 = vld [vmem:[#allocation2 + $0x498] sm:$0xff] }
 0x23d   : > { %v11884_v60 = vpop.f32.mrf.mxu0  ;;  %v2869_v20 = vpop.f32.mrf.mxu1  ;;  %4564 = vmatmul.mubr.bf16.gmra.mxu0 %v4127_v62 }
 0x23e   : > { %3405 = vst.msk [vmem:[#allocation2 + $0x438] sm:$0xff] %vm1443_vm1, %v3193_v46  ;;  %v3194_v8 = vadd.f32 %v2869_v20, %v11771_v35  ;;  %4573 = vmatprep.mubr.bf16.mxu0 %v10917_v2  ;;  %v10711_v35 = vld [vmem:[%s11015_s12 + $0xdc] sm:$0xff]  }
 0x23f   : > { %v1335_v3 = vpop.f32.mrf.mxu0  ;;  %v2871_v0 = vpop.f32.mrf.mxu1 }
 0x240   : > { %3406 = vst [vmem:[#allocation2 + $0x440] sm:$0xff] %v3194_v8  ;;  %1612 = vst.msk [vmem:[#allocation2 + $0x548] sm:$0xff] %vm1443_vm1, %v1335_v3  ;;  %v3195_v14 = vadd.f32 %v2871_v0, %v1793_v1  ;;  %v3482_v8 = vld [vmem:[#allocation2] sm:$0xff]  ;;  %v1805_v0 = vld [vmem:[#allocation2 + $0x4a8] sm:$0xff] }
 0x241   : > { %v11890_v30 = vpop.f32.mrf.mxu0  ;;  %v2873_v22 = vpop.f32.mrf.mxu1 }
 0x242   : > { %3407 = vst.msk [vmem:[#allocation2 + $0x448] sm:$0xff] %vm1443_vm1, %v3195_v14  ;;  %v3196_v31 = vadd.f32 %v2873_v22, %v11779_v45  ;;  %v4130_v45 = vrot.slane %v10711_v35, 2  ;;  %v3483_v22 = vld [vmem:[#allocation2 + $0x8] sm:$0xff] }
 0x243   : > { %v1339_v32 = vpop.f32.mrf.mxu0  ;;  %v2875_v15 = vpop.f32.mrf.mxu1 }
 0x244   : > { %3408 = vst [vmem:[#allocation2 + $0x450] sm:$0xff] %v3196_v31  ;;  %1614 = vst.msk [vmem:[#allocation2 + $0x558] sm:$0xff] %vm1443_vm1, %v1339_v32  ;;  %v3197_v17 = vadd.f32 %v2875_v15, %v1795_v11  ;;  %v4131_v49 = vsel %vm4082_vm3, %v4128_v18, %v4130_v45  ;;  %v3484_v11 = vld [vmem:[#allocation2 + $0x10] sm:$0xff] }
 0x245   : > { %v11897_v58 = vpop.f32.mrf.mxu0  ;;  %v2879_v23 = vpop.f32.mrf.mxu1  ;;  %4574 = vmatmul.mubr.bf16.gmra.mxu0 %v4129_v24 }
 0x246   : > { %3409 = vst.msk [vmem:[#allocation2 + $0x458] sm:$0xff] %vm1443_vm1, %v3197_v17  ;;  %v3198_v27 = vadd.f32 %v2879_v23, %v11787_v57  ;;  %4583 = vmatprep.mubr.bf16.mxu0 %v10917_v2  ;;  %v10712_v57 = vld [vmem:[%s11015_s12 + $0xe4] sm:$0xff]   ;;  %v11930_v17 = vld [vmem:[%s11015_s12 + $0xf4] sm:$0xff]  }
 0x247   : > { %v1345_v41 = vpop.f32.mrf.mxu0  ;;  %v2881_v47 = vpop.f32.mrf.mxu1 }
 0x248   : > { %3410 = vst [vmem:[#allocation2 + $0x460] sm:$0xff] %v3198_v27  ;;  %1616 = vst.msk [vmem:[#allocation2 + $0x568] sm:$0xff] %vm1443_vm1, %v1345_v41  ;;  %v3199_v26 = vadd.f32 %v2881_v47, %v1797_v44  ;;  %v3485_v44 = vld [vmem:[#allocation2 + $0x18] sm:$0xff] }
 0x249   : > { %v11903_v37 = vpop.f32.mrf.mxu0  ;;  %v2883_v36 = vpop.f32.mrf.mxu1 }
 0x24a   : > { %3411 = vst.msk [vmem:[#allocation2 + $0x468] sm:$0xff] %vm1443_vm1, %v3199_v26  ;;  %v3200_v38 = vadd.f32 %v2883_v36, %v11794_v10  ;;  %v4132_v10 = vrot.slane %v10712_v57, 2 }
 0x24b   : > { %v1349_v55 = vpop.f32.mrf.mxu0  ;;  %v2885_v39 = vpop.f32.mrf.mxu1 }
 0x24c   : > { %3412 = vst [vmem:[#allocation2 + $0x470] sm:$0xff] %v3200_v38  ;;  %1618 = vst.msk [vmem:[#allocation2 + $0x578] sm:$0xff] %vm1443_vm1, %v1349_v55  ;;  %v3201_v61 = vadd.f32 %v2885_v39, %v1799_v34  ;;  %v4133_v9 = vsel %vm4082_vm3, %v4130_v45, %v4132_v10  ;;  %v1807_v45 = vld [vmem:[#allocation2 + $0x4b8] sm:$0xff]  ;;  %v4136_v55 = vrot.slane %v11930_v17, 2  ;;  %v1809_v39 = vld [vmem:[#allocation2 + $0x4c8] sm:$0xff] }
 0x24d   : > { %v11910_v40 = vpop.f32.mrf.mxu0  ;;  %v2889_v48 = vpop.f32.mrf.mxu1  ;;  %4584 = vmatmul.mubr.bf16.gmra.mxu0 %v4131_v49  ;;  %v3486_v49 = vld [vmem:[#allocation2 + $0x20] sm:$0xff] }
 0x24e   : > { %3413 = vst.msk [vmem:[#allocation2 + $0x478] sm:$0xff] %vm1443_vm1, %v3201_v61  ;;  %v3202_v13 = vadd.f32 %v2889_v48, %v11801_v16  ;;  %4593 = vmatprep.mubr.bf16.mxu0 %v10917_v2  ;;  %v11922_v16 = vld [vmem:[%s11015_s12 + $0xec] sm:$0xff]  }
 0x24f   : > { %v1355_v42 = vpop.f32.mrf.mxu0  ;;  %v2891_v7 = vpop.f32.mrf.mxu1  ;;  %v4134_v1 = vrot.slane %v11922_v16, 2  ;;  %v3487_v48 = vld [vmem:[#allocation2 + $0x28] sm:$0xff] }
 0x250   : > { %3414 = vst [vmem:[#allocation2 + $0x480] sm:$0xff] %v3202_v13  ;;  %1620 = vst.msk [vmem:[#allocation2 + $0x588] sm:$0xff] %vm1443_vm1, %v1355_v42  ;;  %v3203_v4 = vadd.f32 %v2891_v7, %v1801_v56 }
 0x251   : > { %v11916_v6 = vpop.f32.mrf.mxu0  ;;  %v2893_v54 = vpop.f32.mrf.mxu1  ;;  %v4135_v27 = vsel %vm4082_vm3, %v4132_v10, %v4134_v1  ;;  %v4137_v16 = vsel %vm4082_vm3, %v4134_v1, %v4136_v55 }
 0x252   : > { %3415 = vst.msk [vmem:[#allocation2 + $0x488] sm:$0xff] %vm1443_vm1, %v3203_v4  ;;  %v3204_v62 = vadd.f32 %v2893_v54, %v11811_v12 }
 0x253   : > { %v1359_v52 = vpop.f32.mrf.mxu0  ;;  %v2895_v50 = vpop.f32.mrf.mxu1 }
 0x254   : > { %3416 = vst [vmem:[#allocation2 + $0x490] sm:$0xff] %v3204_v62  ;;  %1622 = vst.msk [vmem:[#allocation2 + $0x598] sm:$0xff] %vm1443_vm1, %v1359_v52  ;;  %v3205_v46 = vadd.f32 %v2895_v50, %v1803_v59 }
 0x255   : > { %v2899_v20 = vpop.f32.mrf.mxu1  ;;  %v4355_v18 = vpop.f32.mrf.mxu0  ;;  %4594 = vmatmul.mubr.bf16.gmra.mxu0 %v4133_v9  ;;  %v3488_v9 = vld [vmem:[#allocation2 + $0x30] sm:$0xff] }
 0x256   : > { %3417 = vst.msk [vmem:[#allocation2 + $0x498] sm:$0xff] %vm1443_vm1, %v3205_v46  ;;  %v3206_v12 = vadd.f32 %v2899_v20, %v11819_v51  ;;  %v4884_v3 = vadd.f32 %v4355_v18, %v3482_v8  ;;  %4603 = vmatprep.mubr.bf16.mxu0 %v10917_v2  ;;  %v11950_v20 = vld [vmem:[%s11015_s12 + $0xfc] sm:$0xff]  }
 0x257   : > { %v2901_v14 = vpop.f32.mrf.mxu1  ;;  %v4357_v31 = vpop.f32.mrf.mxu0  ;;  %v1811_v8 = vld [vmem:[#allocation2 + $0x4d8] sm:$0xff] }
 0x258   : > { %3418 = vst [vmem:[#allocation2 + $0x4a0] sm:$0xff] %v3206_v12  ;;  %5096 = vst [vmem:[#allocation2] sm:$0xff] %v4884_v3  ;;  %v3207_v24 = vadd.f32 %v2901_v14, %v1805_v0  ;;  %v4885_v35 = vadd.f32 %v4357_v31, %v3483_v22  ;;  %v3489_v12 = vld [vmem:[#allocation2 + $0x38] sm:$0xff]  ;;  %v3490_v22 = vld [vmem:[#allocation2 + $0x40] sm:$0xff] }
 0x259   : > { %v2903_v32 = vpop.f32.mrf.mxu1  ;;  %v4359_v15 = vpop.f32.mrf.mxu0 }
 0x25a   : > { %3419 = vst.msk [vmem:[#allocation2 + $0x4a8] sm:$0xff] %vm1443_vm1, %v3207_v24  ;;  %5097 = vst.msk [vmem:[#allocation2 + $0x8] sm:$0xff] %vm1443_vm1, %v4885_v35  ;;  %v3208_v51 = vadd.f32 %v2903_v32, %v11825_v29  ;;  %v4886_v23 = vadd.f32 %v4359_v15, %v3484_v11  ;;  %v4138_v32 = vrot.slane %v11950_v20, 2  ;;  %v1813_v15 = vld [vmem:[#allocation2 + $0x4e8] sm:$0xff] }
 0x25b   : > { %v2905_v41 = vpop.f32.mrf.mxu1  ;;  %v4361_v47 = vpop.f32.mrf.mxu0 }
 0x25c   : > { %3420 = vst [vmem:[#allocation2 + $0x4b0] sm:$0xff] %v3208_v51  ;;  %5098 = vst [vmem:[#allocation2 + $0x10] sm:$0xff] %v4886_v23  ;;  %v3209_v26 = vadd.f32 %v2905_v41, %v1807_v45  ;;  %v4887_v36 = vadd.f32 %v4361_v47, %v3485_v44  ;;  %v5523_v42 = vrot.slane %v4886_v23, 1  ;;  %v3491_v23 = vld [vmem:[#allocation2 + $0x48] sm:$0xff]  ;;  %v3492_v47 = vld [vmem:[#allocation2 + $0x50] sm:$0xff] }
 0x25d   : > { %v2909_v38 = vpop.f32.mrf.mxu1  ;;  %v4365_v57 = vpop.f32.mrf.mxu0  ;;  %4604 = vmatmul.mubr.bf16.gmra.mxu0 %v4135_v27 }
 0x25e   : > { %3421 = vst.msk [vmem:[#allocation2 + $0x4b8] sm:$0xff] %vm1443_vm1, %v3209_v26  ;;  %5099 = vst.msk [vmem:[#allocation2 + $0x18] sm:$0xff] %vm1443_vm1, %v4887_v36  ;;  %v3210_v29 = vadd.f32 %v2909_v38, %v11832_v63  ;;  %v4888_v34 = vadd.f32 %v4365_v57, %v3486_v49  ;;  %4613 = vmatprep.mubr.bf16.mxu0 %v10917_v2  ;;  %v4139_v49 = vsel %vm4082_vm3, %v4136_v55, %v4138_v32 }
 0x25f   : > { %v2911_v61 = vpop.f32.mrf.mxu1  ;;  %v4367_v13 = vpop.f32.mrf.mxu0  ;;  %v5413_v10 = vld [vmem:[#allocation2] sm:$0xfe] }
 0x260   : > { %3422 = vst [vmem:[#allocation2 + $0x4c0] sm:$0xff] %v3210_v29  ;;  %5100 = vst [vmem:[#allocation2 + $0x20] sm:$0xff] %v4888_v34  ;;  %v3211_v56 = vadd.f32 %v2911_v61, %v1809_v39  ;;  %v4889_v7 = vadd.f32 %v4367_v13, %v3487_v48  ;;  %v5522_v4 = vrot.slane %v5413_v10, 1  ;;  %v5525_v54 = vrot.slane %v4888_v34, 1  ;;  %v11969_v29 = vld [vmem:[%s11015_s12 + $0x104] sm:$0xff]   ;;  %v1815_v34 = vld [vmem:[#allocation2 + $0x4f8] sm:$0xff] }
 0x261   : > { %v2913_v62 = vpop.f32.mrf.mxu1  ;;  %v4369_v63 = vpop.f32.mrf.mxu0  ;;  %v3493_v61 = vld [vmem:[#allocation2 + $0x58] sm:$0xff] }
 0x262   : > { %3423 = vst.msk [vmem:[#allocation2 + $0x4c8] sm:$0xff] %vm1443_vm1, %v3211_v56  ;;  %5101 = vst.msk [vmem:[#allocation2 + $0x28] sm:$0xff] %vm1443_vm1, %v4889_v7  ;;  %v3212_v52 = vadd.f32 %v2913_v62, %v11838_v5  ;;  %v4890_v59 = vadd.f32 %v4369_v63, %v3488_v9  ;;  %v5524_v50 = vsel %vm5521_vm4, %v5522_v4, %v5523_v42  ;;  %v3494_v56 = vld [vmem:[#allocation2 + $0x60] sm:$0xff]  ;;  %v4140_v4 = vrot.slane %v11969_v29, 2  ;;  %v1817_v62 = vld [vmem:[#allocation2 + $0x508] sm:$0xff] }
 0x263   : > { %v5526_v46 = vsel %vm5521_vm4, %v5523_v42, %v5525_v54  ;;  %v2915_v18 = vpop.f32.mrf.mxu1  ;;  %v4371_v3 = vpop.f32.mrf.mxu0  ;;  %5733 = vrot.lane.b32.xlu0 %v5524_v50, %s10919_s11  ;;  %v3495_v63 = vld [vmem:[#allocation2 + $0x68] sm:$0xff] }
 0x264   : > { %5735 = vrot.lane.b32.xlu1 %v5526_v46, %s10919_s11  ;;  %3424 = vst [vmem:[#allocation2 + $0x4d0] sm:$0xff] %v3212_v52  ;;  %5102 = vst [vmem:[#allocation2 + $0x30] sm:$0xff] %v4890_v59  ;;  %v3213_v1 = vadd.f32 %v2915_v18, %v1811_v8  ;;  %v4891_v5 = vadd.f32 %v4371_v3, %v3489_v12  ;;  %v5527_v0 = vrot.slane %v4890_v59, 1  ;;  %v3496_v46 = vld [vmem:[#allocation2 + $0x70] sm:$0xff] }
 0x265   : > { %v2919_v14 = vpop.f32.mrf.mxu1  ;;  %v4375_v31 = vpop.f32.mrf.mxu0  ;;  %4614 = vmatmul.mubr.bf16.gmra.mxu0 %v4137_v16  ;;  %v4141_v12 = vsel %vm4082_vm3, %v4138_v32, %v4140_v4 }
 0x266   : > { %3425 = vst.msk [vmem:[#allocation2 + $0x4d8] sm:$0xff] %vm1443_vm1, %v3213_v1  ;;  %5103 = vst.msk [vmem:[#allocation2 + $0x38] sm:$0xff] %vm1443_vm1, %v4891_v5  ;;  %v3214_v24 = vadd.f32 %v2919_v14, %v11845_v28  ;;  %v4892_v35 = vadd.f32 %v4375_v31, %v3490_v22  ;;  %4623 = vmatprep.mubr.bf16.mxu0 %v10917_v2  ;;  %v5528_v11 = vsel %vm5521_vm4, %v5525_v54, %v5527_v0  ;;  %v11985_v1 = vld [vmem:[%s11015_s12 + $0x10c] sm:$0xff]   ;;  %v1819_v5 = vld [vmem:[#allocation2 + $0x518] sm:$0xff] }
 0x267   : > { %v2921_v51 = vpop.f32.mrf.mxu1  ;;  %v4377_v27 = vpop.f32.mrf.mxu0  ;;  %5737 = vrot.lane.b32.xlu0 %v5528_v11, %s10919_s11  ;;  %v3497_v14 = vld [vmem:[#allocation2 + $0x78] sm:$0xff] }
 0x268   : > { %3426 = vst [vmem:[#allocation2 + $0x4e0] sm:$0xff] %v3214_v24  ;;  %5104 = vst [vmem:[#allocation2 + $0x40] sm:$0xff] %v4892_v35  ;;  %v3215_v45 = vadd.f32 %v2921_v51, %v1813_v15  ;;  %v4893_v41 = vadd.f32 %v4377_v27, %v3491_v23  ;;  %v5529_v44 = vrot.slane %v4892_v35, 1  ;;  %v4142_v23 = vrot.slane %v11985_v1, 2 }
 0x269   : > { %v2923_v28 = vpop.f32.mrf.mxu1  ;;  %v4379_v26 = vpop.f32.mrf.mxu0 }
 0x26a   : > { %3427 = vst.msk [vmem:[#allocation2 + $0x4e8] sm:$0xff] %vm1443_vm1, %v3215_v45  ;;  %5105 = vst.msk [vmem:[#allocation2 + $0x48] sm:$0xff] %vm1443_vm1, %v4893_v41  ;;  %v3216_v36 = vadd.f32 %v2923_v28, %v11851_v21  ;;  %v4894_v38 = vadd.f32 %v4379_v26, %v3492_v47  ;;  %v5530_v57 = vsel %vm5521_vm4, %v5527_v0, %v5529_v44  ;;  %v1821_v45 = vld [vmem:[#allocation2 + $0x528] sm:$0xff] }
 0x26b   : > { %v2925_v39 = vpop.f32.mrf.mxu1  ;;  %v4381_v48 = vpop.f32.mrf.mxu0  ;;  %5739 = vrot.lane.b32.xlu1 %v5530_v57, %s10919_s11 }
 0x26c   : > { %3428 = vst [vmem:[#allocation2 + $0x4f0] sm:$0xff] %v3216_v36  ;;  %5106 = vst [vmem:[#allocation2 + $0x50] sm:$0xff] %v4894_v38  ;;  %v3217_v13 = vadd.f32 %v2925_v39, %v1815_v34  ;;  %v4895_v10 = vadd.f32 %v4381_v48, %v3493_v61  ;;  %v5531_v21 = vrot.slane %v4894_v38, 1  ;;  %v3500_v38 = vld [vmem:[#allocation2 + $0x90] sm:$0xff]  ;;  %v4143_v34 = vsel %vm4082_vm3, %v4140_v4, %v4142_v23 }
 0x26d   : > { %v2929_v42 = vpop.f32.mrf.mxu1  ;;  %v4385_v17 = vpop.f32.mrf.mxu0  ;;  %4624 = vmatmul.mubr.bf16.gmra.mxu0 %v4139_v49  ;;  %v12003_v61 = vld [vmem:[%s11015_s12 + $0x114] sm:$0xff]  }
 0x26e   : > { %3429 = vst.msk [vmem:[#allocation2 + $0x4f8] sm:$0xff] %vm1443_vm1, %v3217_v13  ;;  %5107 = vst.msk [vmem:[#allocation2 + $0x58] sm:$0xff] %vm1443_vm1, %v4895_v10  ;;  %v3218_v55 = vadd.f32 %v2929_v42, %v11858_v33  ;;  %v4896_v7 = vadd.f32 %v4385_v17, %v3494_v56  ;;  %4633 = vmatprep.mubr.bf16.mxu0 %v10917_v2  ;;  %v5532_v54 = vsel %vm5521_vm4, %v5529_v44, %v5531_v21  ;;  %v3499_v44 = vld [vmem:[#allocation2 + $0x88] sm:$0xff]  ;;  %v10733_v48 = vld [vmem:[%s13981_s2 + $0x10] sm:$0xff]  }
 0x26f   : > { %v2931_v9 = vpop.f32.mrf.mxu1  ;;  %v4387_v16 = vpop.f32.mrf.mxu0  ;;  %5741 = vrot.lane.b32.xlu0 %v5532_v54, %s10919_s11  ;;  %v1823_v13 = vld [vmem:[#allocation2 + $0x538] sm:$0xff]  ;;  %10301 = vmatpush3.bf16.msra.mxu1 %v10733_v48 }
 0x270   : > { %3430 = vst [vmem:[#allocation2 + $0x500] sm:$0xff] %v3218_v55  ;;  %5108 = vst [vmem:[#allocation2 + $0x60] sm:$0xff] %v4896_v7  ;;  %v3219_v52 = vadd.f32 %v2931_v9, %v1817_v62  ;;  %v4897_v59 = vadd.f32 %v4387_v16, %v3495_v63  ;;  %v5533_v50 = vrot.slane %v4896_v7, 1  ;;  %v3502_v7 = vld [vmem:[#allocation2 + $0xa0] sm:$0xff]  ;;  %10302 = vmatprep.subr.bf16.mxu1 %v10918_v19  ;;  %v4144_v9 = vrot.slane %v12003_v61, 2  ;;  %v1825_v16 = vld [vmem:[#allocation2 + $0x548] sm:$0xff] }
 0x271   : > { %v2933_v33 = vpop.f32.mrf.mxu1  ;;  %v4389_v20 = vpop.f32.mrf.mxu0  ;;  %v12041_v61 = vld [vmem:[%s11015_s12 + $0x124] sm:$0xff]   ;;  %v1831_v48 = vld [vmem:[#allocation2 + $0x578] sm:$0xff] }
 0x272   : > { %3431 = vst.msk [vmem:[#allocation2 + $0x508] sm:$0xff] %vm1443_vm1, %v3219_v52  ;;  %5109 = vst.msk [vmem:[#allocation2 + $0x68] sm:$0xff] %vm1443_vm1, %v4897_v59  ;;  %v3220_v8 = vadd.f32 %v2933_v33, %v11864_v25  ;;  %v4898_v18 = vadd.f32 %v4389_v20, %v3496_v46  ;;  %v5534_v3 = vsel %vm5521_vm4, %v5531_v21, %v5533_v50  ;;  %v3498_v25 = vld [vmem:[#allocation2 + $0x80] sm:$0xff]  ;;  %v3501_v21 = vld [vmem:[#allocation2 + $0x98] sm:$0xff] }
 0x273   : > { %v2935_v0 = vpop.f32.mrf.mxu1  ;;  %v4391_v22 = vpop.f32.mrf.mxu0  ;;  %5743 = vrot.lane.b32.xlu1 %v5534_v3, %s10919_s11  ;;  %v3503_v59 = vld [vmem:[#allocation2 + $0xa8] sm:$0xff] }
 0x274   : > { %3432 = vst [vmem:[#allocation2 + $0x510] sm:$0xff] %v3220_v8  ;;  %5110 = vst [vmem:[#allocation2 + $0x70] sm:$0xff] %v4898_v18  ;;  %v3221_v31 = vadd.f32 %v2935_v0, %v1819_v5  ;;  %v4899_v24 = vadd.f32 %v4391_v22, %v3497_v14  ;;  %v5535_v35 = vrot.slane %v4898_v18, 1  ;;  %v3504_v8 = vld [vmem:[#allocation2 + $0xb0] sm:$0xff]  ;;  %v4145_v5 = vsel %vm4082_vm3, %v4142_v23, %v4144_v9  ;;  %v12025_v14 = vld [vmem:[%s11015_s12 + $0x11c] sm:$0xff]  }
 0x275   : > { %v2939_v11 = vpop.f32.mrf.mxu1  ;;  %v4395_v15 = vpop.f32.mrf.mxu0  ;;  %4634 = vmatmul.mubr.bf16.gmra.mxu0 %v4141_v12  ;;  %v1827_v22 = vld [vmem:[#allocation2 + $0x558] sm:$0xff] }
 0x276   : > { %3433 = vst.msk [vmem:[#allocation2 + $0x518] sm:$0xff] %vm1443_vm1, %v3221_v31  ;;  %5111 = vst.msk [vmem:[#allocation2 + $0x78] sm:$0xff] %vm1443_vm1, %v4899_v24  ;;  %v3222_v32 = vadd.f32 %v2939_v11, %v11871_v43  ;;  %v4900_v51 = vadd.f32 %v4395_v15, %v3498_v25  ;;  %4643 = vmatprep.mubr.bf16.mxu0 %v10917_v2  ;;  %v5536_v27 = vsel %vm5521_vm4, %v5533_v50, %v5535_v35  ;;  %v3505_v24 = vld [vmem:[#allocation2 + $0xb8] sm:$0xff] }
 0x277   : > { %v2941_v41 = vpop.f32.mrf.mxu1  ;;  %v4397_v28 = vpop.f32.mrf.mxu0  ;;  %5745 = vrot.lane.b32.xlu0 %v5536_v27, %s10919_s11  ;;  %v4146_v27 = vrot.slane %v12025_v14, 2  ;;  %v3513_v14 = vld [vmem:[#allocation2 + $0xf8] sm:$0xff] }
 0x278   : > { %3434 = vst [vmem:[#allocation2 + $0x520] sm:$0xff] %v3222_v32  ;;  %5112 = vst [vmem:[#allocation2 + $0x80] sm:$0xff] %v4900_v51  ;;  %v3223_v47 = vadd.f32 %v2941_v41, %v1821_v45  ;;  %v4901_v26 = vadd.f32 %v4397_v28, %v3499_v44  ;;  %v5537_v36 = vrot.slane %v4900_v51, 1  ;;  %v3506_v32 = vld [vmem:[#allocation2 + $0xc0] sm:$0xff]  ;;  %v1829_v41 = vld [vmem:[#allocation2 + $0x568] sm:$0xff] }
 0x279   : > { %v2943_v43 = vpop.f32.mrf.mxu1  ;;  %v4399_v49 = vpop.f32.mrf.mxu0  ;;  %v3507_v28 = vld [vmem:[#allocation2 + $0xc8] sm:$0xff] }
 0x27a   : > { %3435 = vst.msk [vmem:[#allocation2 + $0x528] sm:$0xff] %vm1443_vm1, %v3223_v47  ;;  %5113 = vst.msk [vmem:[#allocation2 + $0x88] sm:$0xff] %vm1443_vm1, %v4901_v26  ;;  %v3224_v57 = vadd.f32 %v2943_v43, %v11877_v53  ;;  %v4902_v29 = vadd.f32 %v4399_v49, %v3500_v38  ;;  %v5538_v39 = vsel %vm5521_vm4, %v5535_v35, %v5537_v36  ;;  %v3508_v38 = vld [vmem:[#allocation2 + $0xd0] sm:$0xff] }
 0x27b   : > { %v2945_v10 = vpop.f32.mrf.mxu1  ;;  %v4401_v42 = vpop.f32.mrf.mxu0  ;;  %5747 = vrot.lane.b32.xlu0 %v5538_v39, %s10919_s11 }
 0x27c   : > { %3436 = vst [vmem:[#allocation2 + $0x530] sm:$0xff] %v3224_v57  ;;  %5114 = vst [vmem:[#allocation2 + $0x90] sm:$0xff] %v4902_v29  ;;  %v3225_v53 = vadd.f32 %v2945_v10, %v1823_v13  ;;  %v4903_v56 = vadd.f32 %v4401_v42, %v3501_v21  ;;  %v5539_v17 = vrot.slane %v4902_v29, 1  ;;  %v3509_v10 = vld [vmem:[#allocation2 + $0xd8] sm:$0xff] }
 0x27d   : > { %v2949_v55 = vpop.f32.mrf.mxu1  ;;  %v4405_v4 = vpop.f32.mrf.mxu0  ;;  %4644 = vmatmul.mubr.bf16.gmra.mxu0 %v4143_v34  ;;  %v4147_v34 = vsel %vm4082_vm3, %v4144_v9, %v4146_v27  ;;  %v1833_v9 = vld [vmem:[#allocation2 + $0x588] sm:$0xff] }
 0x27e   : > { %3437 = vst.msk [vmem:[#allocation2 + $0x538] sm:$0xff] %vm1443_vm1, %v3225_v53  ;;  %5115 = vst.msk [vmem:[#allocation2 + $0x98] sm:$0xff] %vm1443_vm1, %v4903_v56  ;;  %v3226_v54 = vadd.f32 %v2949_v55, %v11884_v60  ;;  %v4904_v62 = vadd.f32 %v4405_v4, %v3502_v7  ;;  %4653 = vmatprep.mubr.bf16.mxu0 %v10917_v2  ;;  %v5540_v63 = vsel %vm5521_vm4, %v5537_v36, %v5539_v17 }
 0x27f   : > { %v2951_v52 = vpop.f32.mrf.mxu1  ;;  %v4407_v50 = vpop.f32.mrf.mxu0  ;;  %5749 = vrot.lane.b32.xlu1 %v5540_v63, %s10919_s11 }
 0x280   : > { %3438 = vst [vmem:[#allocation2 + $0x540] sm:$0xff] %v3226_v54  ;;  %5116 = vst [vmem:[#allocation2 + $0xa0] sm:$0xff] %v4904_v62  ;;  %v3227_v33 = vadd.f32 %v2951_v52, %v1825_v16  ;;  %v4905_v46 = vadd.f32 %v4407_v50, %v3503_v59  ;;  %v5541_v20 = vrot.slane %v4904_v62, 1  ;;  %v4148_v54 = vrot.slane %v12041_v61, 2  ;;  %v3511_v16 = vld [vmem:[#allocation2 + $0xe8] sm:$0xff]  ;;  %v3518_v61 = vld [vmem:[#allocation2 + $0x120] sm:$0xff] }
 0x281   : > { %v2953_v60 = vpop.f32.mrf.mxu1  ;;  %v4409_v18 = vpop.f32.mrf.mxu0 }
 0x282   : > { %3439 = vst.msk [vmem:[#allocation2 + $0x548] sm:$0xff] %vm1443_vm1, %v3227_v33  ;;  %5117 = vst.msk [vmem:[#allocation2 + $0xa8] sm:$0xff] %vm1443_vm1, %v4905_v46  ;;  %v3228_v12 = vadd.f32 %v2953_v60, %v11890_v30  ;;  %v4906_v3 = vadd.f32 %v4409_v18, %v3504_v8  ;;  %v5542_v0 = vsel %vm5521_vm4, %v5539_v17, %v5541_v20  ;;  %v3512_v46 = vld [vmem:[#allocation2 + $0xf0] sm:$0xff] }
 0x283   : > { %v2955_v31 = vpop.f32.mrf.mxu1  ;;  %v4411_v35 = vpop.f32.mrf.mxu0  ;;  %5751 = vrot.lane.b32.xlu1 %v5542_v0, %s10919_s11  ;;  %v4149_v18 = vsel %vm4082_vm3, %v4146_v27, %v4148_v54 }
 0x284   : > { %3440 = vst [vmem:[#allocation2 + $0x550] sm:$0xff] %v3228_v12  ;;  %5118 = vst [vmem:[#allocation2 + $0xb0] sm:$0xff] %v4906_v3  ;;  %v3229_v11 = vadd.f32 %v2955_v31, %v1827_v22  ;;  %v4907_v25 = vadd.f32 %v4411_v35, %v3505_v24  ;;  %v5543_v30 = vrot.slane %v4906_v3, 1  ;;  %v12059_v3 = vld [vmem:[%s11015_s12 + $0x12c] sm:$0xff]   ;;  %v1836_v35 = vld [vmem:[#allocation2 + $0x5a0] sm:$0xff] }
 0x285   : > { %v2959_v15 = vpop.f32.mrf.mxu1  ;;  %v4415_v1 = vpop.f32.mrf.mxu0  ;;  %4654 = vmatmul.mubr.bf16.gmra.mxu0 %v4145_v5  ;;  %v1835_v5 = vld [vmem:[#allocation2 + $0x598] sm:$0xff] }
 0x286   : > { %3441 = vst.msk [vmem:[#allocation2 + $0x558] sm:$0xff] %vm1443_vm1, %v3229_v11  ;;  %5119 = vst.msk [vmem:[#allocation2 + $0xb8] sm:$0xff] %vm1443_vm1, %v4907_v25  ;;  %v3230_v51 = vadd.f32 %v2959_v15, %v11897_v58  ;;  %v4908_v23 = vadd.f32 %v4415_v1, %v3506_v32  ;;  %4663 = vmatprep.mubr.bf16.mxu0 %v10917_v2  ;;  %v5544_v45 = vsel %vm5521_vm4, %v5541_v20, %v5543_v30  ;;  %v3514_v25 = vld [vmem:[#allocation2 + $0x100] sm:$0xff] }
 0x287   : > { %v2961_v44 = vpop.f32.mrf.mxu1  ;;  %v4417_v47 = vpop.f32.mrf.mxu0  ;;  %5753 = vrot.lane.b32.xlu0 %v5544_v45, %s10919_s11  ;;  %v4150_v1 = vrot.slane %v12059_v3, 2  ;;  %v3515_v45 = vld [vmem:[#allocation2 + $0x108] sm:$0xff]  ;;  %v3522_v3 = vld [vmem:[#allocation2 + $0x140] sm:$0xff] }
 0x288   : > { %3442 = vst [vmem:[#allocation2 + $0x560] sm:$0xff] %v3230_v51  ;;  %5120 = vst [vmem:[#allocation2 + $0xc0] sm:$0xff] %v4908_v23  ;;  %v3231_v26 = vadd.f32 %v2961_v44, %v1829_v41  ;;  %v4909_v36 = vadd.f32 %v4417_v47, %v3507_v28  ;;  %v5545_v43 = vrot.slane %v4908_v23, 1  ;;  %v1837_v23 = vld [vmem:[#allocation2 + $0x5a8] sm:$0xff] }
 0x289   : > { %v2963_v58 = vpop.f32.mrf.mxu1  ;;  %v4419_v49 = vpop.f32.mrf.mxu0 }
 0x28a   : > { %3443 = vst.msk [vmem:[#allocation2 + $0x568] sm:$0xff] %vm1443_vm1, %v3231_v26  ;;  %5121 = vst.msk [vmem:[#allocation2 + $0xc8] sm:$0xff] %vm1443_vm1, %v4909_v36  ;;  %v3232_v57 = vadd.f32 %v2963_v58, %v11903_v37  ;;  %v4910_v29 = vadd.f32 %v4419_v49, %v3508_v38  ;;  %v5546_v39 = vsel %vm5521_vm4, %v5543_v30, %v5545_v43  ;;  %v3510_v37 = vld [vmem:[#allocation2 + $0xe0] sm:$0xff]  ;;  %v1838_v26 = vld [vmem:[#allocation2 + $0x5b0] sm:$0xff] }
 0x28b   : > { %v2965_v13 = vpop.f32.mrf.mxu1  ;;  %v4421_v21 = vpop.f32.mrf.mxu0  ;;  %5755 = vrot.lane.b32.xlu1 %v5546_v39, %s10919_s11  ;;  %v1839_v39 = vld [vmem:[#allocation2 + $0x5b8] sm:$0xff] }
 0x28c   : > { %3444 = vst [vmem:[#allocation2 + $0x570] sm:$0xff] %v3232_v57  ;;  %5122 = vst [vmem:[#allocation2 + $0xd0] sm:$0xff] %v4910_v29  ;;  %v3233_v42 = vadd.f32 %v2965_v13, %v1831_v48  ;;  %v4911_v53 = vadd.f32 %v4421_v21, %v3509_v10  ;;  %v5547_v56 = vrot.slane %v4910_v29, 1  ;;  %v4151_v57 = vsel %vm4082_vm3, %v4148_v54, %v4150_v1  ;;  %v3517_v13 = vld [vmem:[#allocation2 + $0x118] sm:$0xff] }
 0x28d   : > { %v2969_v17 = vpop.f32.mrf.mxu1  ;;  %v4425_v55 = vpop.f32.mrf.mxu0  ;;  %4664 = vmatmul.mubr.bf16.gmra.mxu0 %v4147_v34  ;;  %v12077_v34 = vld [vmem:[%s11015_s12 + $0x134] sm:$0xff]  }
 0x28e   : > { %3445 = vst.msk [vmem:[#allocation2 + $0x578] sm:$0xff] %vm1443_vm1, %v3233_v42  ;;  %5123 = vst.msk [vmem:[#allocation2 + $0xd8] sm:$0xff] %vm1443_vm1, %v4911_v53  ;;  %v3234_v7 = vadd.f32 %v2969_v17, %v11910_v40  ;;  %v4912_v4 = vadd.f32 %v4425_v55, %v3510_v37  ;;  %4673 = vmatprep.mubr.bf16.mxu0 %v10917_v2  ;;  %v5548_v62 = vsel %vm5521_vm4, %v5545_v43, %v5547_v56  ;;  %v3516_v43 = vld [vmem:[#allocation2 + $0x110] sm:$0xff] }
 0x28f   : > { %v2971_v63 = vpop.f32.mrf.mxu1  ;;  %v4427_v52 = vpop.f32.mrf.mxu0  ;;  %5757 = vrot.lane.b32.xlu0 %v5548_v62, %s10919_s11  ;;  %v1841_v62 = vld [vmem:[#allocation2 + $0x5c8] sm:$0xff] }
 0x290   : > { %3446 = vst [vmem:[#allocation2 + $0x580] sm:$0xff] %v3234_v7  ;;  %5124 = vst [vmem:[#allocation2 + $0xe0] sm:$0xff] %v4912_v4  ;;  %v3235_v59 = vadd.f32 %v2971_v63, %v1833_v9  ;;  %v4913_v50 = vadd.f32 %v4427_v52, %v3511_v16  ;;  %v5549_v33 = vrot.slane %v4912_v4, 1  ;;  %v4152_v4 = vrot.slane %v12077_v34, 2  ;;  %v3519_v63 = vld [vmem:[#allocation2 + $0x128] sm:$0xff] }
 0x291   : > { %v2973_v40 = vpop.f32.mrf.mxu1  ;;  %v4429_v20 = vpop.f32.mrf.mxu0 }
 0x292   : > { %3447 = vst.msk [vmem:[#allocation2 + $0x588] sm:$0xff] %vm1443_vm1, %v3235_v59  ;;  %5125 = vst.msk [vmem:[#allocation2 + $0xe8] sm:$0xff] %vm1443_vm1, %v4913_v50  ;;  %v3236_v60 = vadd.f32 %v2973_v40, %v11916_v6  ;;  %v4914_v8 = vadd.f32 %v4429_v20, %v3512_v46  ;;  %v5550_v12 = vsel %vm5521_vm4, %v5547_v56, %v5549_v33  ;;  %v1840_v56 = vld [vmem:[#allocation2 + $0x5c0] sm:$0xff]  ;;  %v3520_v46 = vld [vmem:[#allocation2 + $0x130] sm:$0xff] }
 0x293   : > { %v2975_v0 = vpop.f32.mrf.mxu1  ;;  %v4431_v22 = vpop.f32.mrf.mxu0  ;;  %5759 = vrot.lane.b32.xlu1 %v5550_v12, %s10919_s11 }
 0x294   : > { %3448 = vst [vmem:[#allocation2 + $0x590] sm:$0xff] %v3236_v60  ;;  %5126 = vst [vmem:[#allocation2 + $0xf0] sm:$0xff] %v4914_v8  ;;  %v3237_v31 = vadd.f32 %v2975_v0, %v1835_v5  ;;  %v4915_v24 = vadd.f32 %v4431_v22, %v3513_v14  ;;  %v5551_v6 = vrot.slane %v4914_v8, 1  ;;  %v12095_v5 = vld [vmem:[%s11015_s12 + $0x13c] sm:$0xff]  }
 0x295   : > { %v2979_v11 = vpop.f32.mrf.mxu1  ;;  %v4435_v30 = vpop.f32.mrf.mxu0  ;;  %4674 = vmatmul.mubr.bf16.gmra.mxu0 %v4149_v18  ;;  %v4153_v18 = vsel %vm4082_vm3, %v4150_v1, %v4152_v4  ;;  %v1843_v0 = vld [vmem:[#allocation2 + $0x5d8] sm:$0xff]  ;;  %v4154_v1 = vrot.slane %v12095_v5, 2  ;;  %v1852_v5 = vld [vmem:[#allocation2 + $0x620] sm:$0xff] }
 0x296   : > { %3449 = vst.msk [vmem:[#allocation2 + $0x598] sm:$0xff] %vm1443_vm1, %v3237_v31  ;;  %5127 = vst.msk [vmem:[#allocation2 + $0xf8] sm:$0xff] %vm1443_vm1, %v4915_v24  ;;  %v3238_v15 = vadd.f32 %v2979_v11, %v1836_v35  ;;  %v4916_v32 = vadd.f32 %v4435_v30, %v3514_v25  ;;  %4683 = vmatprep.mubr.bf16.mxu0 %v10917_v2  ;;  %v5552_v51 = vsel %vm5521_vm4, %v5549_v33, %v5551_v6  ;;  %v1842_v33 = vld [vmem:[#allocation2 + $0x5d0] sm:$0xff]  ;;  %v3521_v22 = vld [vmem:[#allocation2 + $0x138] sm:$0xff] }
 0x297   : > { %v2981_v27 = vpop.f32.mrf.mxu1  ;;  %v4437_v41 = vpop.f32.mrf.mxu0  ;;  %5761 = vrot.lane.b32.xlu0 %v5552_v51, %s10919_s11  ;;  %v1844_v11 = vld [vmem:[#allocation2 + $0x5e0] sm:$0xff] }
 0x298   : > { %3450 = vst [vmem:[#allocation2 + $0x5a0] sm:$0xff] %v3238_v15  ;;  %5128 = vst [vmem:[#allocation2 + $0x100] sm:$0xff] %v4916_v32  ;;  %v3239_v44 = vadd.f32 %v2981_v27, %v1837_v23  ;;  %v4917_v28 = vadd.f32 %v4437_v41, %v3515_v45  ;;  %v5553_v47 = vrot.slane %v4916_v32, 1  ;;  %v1845_v23 = vld [vmem:[#allocation2 + $0x5e8] sm:$0xff] }
 0x299   : > { %v2983_v36 = vpop.f32.mrf.mxu1  ;;  %v4439_v58 = vpop.f32.mrf.mxu0  ;;  %v3523_v45 = vld [vmem:[#allocation2 + $0x148] sm:$0xff] }
 0x29a   : > { %3451 = vst.msk [vmem:[#allocation2 + $0x5a8] sm:$0xff] %vm1443_vm1, %v3239_v44  ;;  %5129 = vst.msk [vmem:[#allocation2 + $0x108] sm:$0xff] %vm1443_vm1, %v4917_v28  ;;  %v3240_v38 = vadd.f32 %v2983_v36, %v1838_v26  ;;  %v4918_v49 = vadd.f32 %v4439_v58, %v3516_v43  ;;  %v5554_v29 = vsel %vm5521_vm4, %v5551_v6, %v5553_v47  ;;  %v1846_v26 = vld [vmem:[#allocation2 + $0x5f0] sm:$0xff] }
 0x29b   : > { %v2985_v48 = vpop.f32.mrf.mxu1  ;;  %v4441_v10 = vpop.f32.mrf.mxu0  ;;  %5763 = vrot.lane.b32.xlu1 %v5554_v29, %s10919_s11  ;;  %v3524_v43 = vld [vmem:[#allocation2 + $0x150] sm:$0xff] }
 0x29c   : > { %3452 = vst [vmem:[#allocation2 + $0x5b0] sm:$0xff] %v3240_v38  ;;  %5130 = vst [vmem:[#allocation2 + $0x110] sm:$0xff] %v4918_v49  ;;  %v3241_v21 = vadd.f32 %v2985_v48, %v1839_v39  ;;  %v4919_v42 = vadd.f32 %v4441_v10, %v3517_v13  ;;  %v5555_v53 = vrot.slane %v4918_v49, 1  ;;  %v12113_v39 = vld [vmem:[%s11015_s12 + $0x144] sm:$0xff]   ;;  %v1847_v48 = vld [vmem:[#allocation2 + $0x5f8] sm:$0xff] }
 0x29d   : > { %v2989_v17 = vpop.f32.mrf.mxu1  ;;  %v4445_v37 = vpop.f32.mrf.mxu0  ;;  %4684 = vmatmul.mubr.bf16.gmra.mxu0 %v4151_v57  ;;  %v4155_v57 = vsel %vm4082_vm3, %v4152_v4, %v4154_v1  ;;  %v3525_v10 = vld [vmem:[#allocation2 + $0x158] sm:$0xff] }
 0x29e   : > { %3453 = vst.msk [vmem:[#allocation2 + $0x5b8] sm:$0xff] %vm1443_vm1, %v3241_v21  ;;  %5131 = vst.msk [vmem:[#allocation2 + $0x118] sm:$0xff] %vm1443_vm1, %v4919_v42  ;;  %v3242_v55 = vadd.f32 %v2989_v17, %v1840_v56  ;;  %v4920_v7 = vadd.f32 %v4445_v37, %v3518_v61  ;;  %4693 = vmatprep.mubr.bf16.mxu0 %v10917_v2  ;;  %v5556_v54 = vsel %vm5521_vm4, %v5553_v47, %v5555_v53  ;;  %v10742_v42 = vld [vmem:[%s13981_s2 + $0x8] sm:$0xff]   ;;  %v1848_v17 = vld [vmem:[#allocation2 + $0x600] sm:$0xff] }
 0x29f   : > { %v2991_v9 = vpop.f32.mrf.mxu1  ;;  %v4447_v16 = vpop.f32.mrf.mxu0  ;;  %5765 = vrot.lane.b32.xlu0 %v5556_v54, %s10919_s11  ;;  %v3526_v37 = vld [vmem:[#allocation2 + $0x160] sm:$0xff]  ;;  %10303 = vmatpush3.bf16.msra.mxu1 %v10742_v42  ;;  %v4156_v54 = vrot.slane %v12113_v39, 2 }
 0x2a0   : > { %3454 = vst [vmem:[#allocation2 + $0x5c0] sm:$0xff] %v3242_v55  ;;  %5132 = vst [vmem:[#allocation2 + $0x120] sm:$0xff] %v4920_v7  ;;  %v3243_v52 = vadd.f32 %v2991_v9, %v1841_v62  ;;  %v4921_v59 = vadd.f32 %v4447_v16, %v3519_v63  ;;  %v5557_v50 = vrot.slane %v4920_v7, 1  ;;  %10304 = vmatprep.subr.bf16.mxu1 %v10918_v19  ;;  %v1849_v9 = vld [vmem:[#allocation2 + $0x608] sm:$0xff]  ;;  %v3534_v39 = vld [vmem:[#allocation2 + $0x1a0] sm:$0xff] }
 0x2a1   : > { %v2993_v40 = vpop.f32.mrf.mxu1  ;;  %v4449_v20 = vpop.f32.mrf.mxu0  ;;  %v3527_v16 = vld [vmem:[#allocation2 + $0x168] sm:$0xff] }
 0x2a2   : > { %3455 = vst.msk [vmem:[#allocation2 + $0x5c8] sm:$0xff] %vm1443_vm1, %v3243_v52  ;;  %5133 = vst.msk [vmem:[#allocation2 + $0x128] sm:$0xff] %vm1443_vm1, %v4921_v59  ;;  %v3244_v60 = vadd.f32 %v2993_v40, %v1842_v33  ;;  %v4922_v8 = vadd.f32 %v4449_v20, %v3520_v46  ;;  %v5558_v12 = vsel %vm5521_vm4, %v5555_v53, %v5557_v50  ;;  %v10743_v59 = vld [vmem:[%s13981_s2] sm:$0xff]   ;;  %v1850_v46 = vld [vmem:[#allocation2 + $0x610] sm:$0xff] }
 0x2a3   : > { %v2995_v14 = vpop.f32.mrf.mxu1  ;;  %v4451_v31 = vpop.f32.mrf.mxu0  ;;  %5767 = vrot.lane.b32.xlu1 %v5558_v12, %s10919_s11  ;;  %10305 = vmatpush3.bf16.msra.mxu1 %v10743_v59 }
 0x2a4   : > { %3456 = vst [vmem:[#allocation2 + $0x5d0] sm:$0xff] %v3244_v60  ;;  %5134 = vst [vmem:[#allocation2 + $0x130] sm:$0xff] %v4922_v8  ;;  %v3245_v24 = vadd.f32 %v2995_v14, %v1843_v0  ;;  %v4923_v6 = vadd.f32 %v4451_v31, %v3521_v22  ;;  %v5559_v35 = vrot.slane %v4922_v8, 1  ;;  %v3528_v60 = vld [vmem:[#allocation2 + $0x170] sm:$0xff]  ;;  %v4157_v0 = vsel %vm4082_vm3, %v4154_v1, %v4156_v54  ;;  %v1851_v31 = vld [vmem:[#allocation2 + $0x618] sm:$0xff] }
 0x2a5   : > { %v2999_v25 = vpop.f32.mrf.mxu1  ;;  %v4455_v30 = vpop.f32.mrf.mxu0  ;;  %4694 = vmatmul.mubr.bf16.gmra.mxu0 %v4153_v18  ;;  %v12138_v22 = vld [vmem:[%s11015_s12 + $0x14c] sm:$0xff]   ;;  %10350 = vmatprep.subr.bf16.mxu1 %v10918_v19 }
 0x2a6   : > { %3457 = vst.msk [vmem:[#allocation2 + $0x5d8] sm:$0xff] %vm1443_vm1, %v3245_v24  ;;  %5135 = vst.msk [vmem:[#allocation2 + $0x138] sm:$0xff] %vm1443_vm1, %v4923_v6  ;;  %v3246_v15 = vadd.f32 %v2999_v25, %v1844_v11  ;;  %v4924_v32 = vadd.f32 %v4455_v30, %v3522_v3  ;;  %4703 = vmatprep.mubr.bf16.mxu0 %v10917_v2  ;;  %v5560_v51 = vsel %vm5521_vm4, %v5557_v50, %v5559_v35  ;;  %v3529_v6 = vld [vmem:[#allocation2 + $0x178] sm:$0xff] }
 0x2a7   : > { %v3001_v27 = vpop.f32.mrf.mxu1  ;;  %v4457_v41 = vpop.f32.mrf.mxu0  ;;  %5769 = vrot.lane.b32.xlu0 %v5560_v51, %s10919_s11 }
 0x2a8   : > { %3458 = vst [vmem:[#allocation2 + $0x5e0] sm:$0xff] %v3246_v15  ;;  %5136 = vst [vmem:[#allocation2 + $0x140] sm:$0xff] %v4924_v32  ;;  %v3247_v44 = vadd.f32 %v3001_v27, %v1845_v23  ;;  %v4925_v28 = vadd.f32 %v4457_v41, %v3523_v45  ;;  %v5561_v47 = vrot.slane %v4924_v32, 1  ;;  %v3530_v15 = vld [vmem:[#allocation2 + $0x180] sm:$0xff]  ;;  %v4158_v23 = vrot.slane %v12138_v22, 2  ;;  %v1853_v45 = vld [vmem:[#allocation2 + $0x628] sm:$0xff] }
 0x2a9   : > { %v3003_v36 = vpop.f32.mrf.mxu1  ;;  %v4459_v58 = vpop.f32.mrf.mxu0  ;;  %v3538_v22 = vld [vmem:[#allocation2 + $0x1c0] sm:$0xff] }
 0x2aa   : > { %3459 = vst.msk [vmem:[#allocation2 + $0x5e8] sm:$0xff] %vm1443_vm1, %v3247_v44  ;;  %5137 = vst.msk [vmem:[#allocation2 + $0x148] sm:$0xff] %vm1443_vm1, %v4925_v28  ;;  %v3248_v38 = vadd.f32 %v3003_v36, %v1846_v26  ;;  %v4926_v49 = vadd.f32 %v4459_v58, %v3524_v43  ;;  %v5562_v29 = vsel %vm5521_vm4, %v5559_v35, %v5561_v47  ;;  %v3531_v44 = vld [vmem:[#allocation2 + $0x188] sm:$0xff]  ;;  %v1854_v43 = vld [vmem:[#allocation2 + $0x630] sm:$0xff] }
 0x2ab   : > { %v3005_v13 = vpop.f32.mrf.mxu1  ;;  %v4461_v21 = vpop.f32.mrf.mxu0  ;;  %5771 = vrot.lane.b32.xlu1 %v5562_v29, %s10919_s11 }
 0x2ac   : > { %3460 = vst [vmem:[#allocation2 + $0x5f0] sm:$0xff] %v3248_v38  ;;  %5138 = vst [vmem:[#allocation2 + $0x150] sm:$0xff] %v4926_v49  ;;  %v3249_v53 = vadd.f32 %v3005_v13, %v1847_v48  ;;  %v4927_v34 = vadd.f32 %v4461_v21, %v3525_v10  ;;  %v5563_v56 = vrot.slane %v4926_v49, 1  ;;  %v3532_v38 = vld [vmem:[#allocation2 + $0x190] sm:$0xff]  ;;  %v4159_v48 = vsel %vm4082_vm3, %v4156_v54, %v4158_v23  ;;  %v1855_v21 = vld [vmem:[#allocation2 + $0x638] sm:$0xff] }
 0x2ad   : > { %v3009_v61 = vpop.f32.mrf.mxu1  ;;  %v4465_v55 = vpop.f32.mrf.mxu0  ;;  %4704 = vmatmul.mubr.bf16.gmra.mxu0 %v4155_v57  ;;  %v12159_v10 = vld [vmem:[%s11015_s12 + $0x154] sm:$0xff]  }
 0x2ae   : > { %3461 = vst.msk [vmem:[#allocation2 + $0x5f8] sm:$0xff] %vm1443_vm1, %v3249_v53  ;;  %5139 = vst.msk [vmem:[#allocation2 + $0x158] sm:$0xff] %vm1443_vm1, %v4927_v34  ;;  %v3250_v7 = vadd.f32 %v3009_v61, %v1848_v17  ;;  %v4928_v4 = vadd.f32 %v4465_v55, %v3526_v37  ;;  %4713 = vmatprep.mubr.bf16.mxu0 %v10917_v2  ;;  %v5564_v62 = vsel %vm5521_vm4, %v5561_v47, %v5563_v56  ;;  %v3533_v53 = vld [vmem:[#allocation2 + $0x198] sm:$0xff]  ;;  %v1856_v37 = vld [vmem:[#allocation2 + $0x640] sm:$0xff] }
 0x2af   : > { %v3011_v63 = vpop.f32.mrf.mxu1  ;;  %v4467_v52 = vpop.f32.mrf.mxu0  ;;  %5773 = vrot.lane.b32.xlu0 %v5564_v62, %s10919_s11  ;;  %v4160_v62 = vrot.slane %v12159_v10, 2  ;;  %v3542_v10 = vld [vmem:[#allocation2 + $0x1e0] sm:$0xff] }
 0x2b0   : > { %3462 = vst [vmem:[#allocation2 + $0x600] sm:$0xff] %v3250_v7  ;;  %5140 = vst [vmem:[#allocation2 + $0x160] sm:$0xff] %v4928_v4  ;;  %v3251_v50 = vadd.f32 %v3011_v63, %v1849_v9  ;;  %v4929_v33 = vadd.f32 %v4467_v52, %v3527_v16  ;;  %v5565_v40 = vrot.slane %v4928_v4, 1  ;;  %v1857_v63 = vld [vmem:[#allocation2 + $0x648] sm:$0xff] }
 0x2b1   : > { %v3013_v20 = vpop.f32.mrf.mxu1  ;;  %v4469_v8 = vpop.f32.mrf.mxu0  ;;  %v3535_v52 = vld [vmem:[#allocation2 + $0x1a8] sm:$0xff] }
 0x2b2   : > { %3463 = vst.msk [vmem:[#allocation2 + $0x608] sm:$0xff] %vm1443_vm1, %v3251_v50  ;;  %5141 = vst.msk [vmem:[#allocation2 + $0x168] sm:$0xff] %vm1443_vm1, %v4929_v33  ;;  %v3252_v18 = vadd.f32 %v3013_v20, %v1850_v46  ;;  %v4930_v12 = vadd.f32 %v4469_v8, %v3528_v60  ;;  %v5566_v14 = vsel %vm5521_vm4, %v5563_v56, %v5565_v40  ;;  %v1858_v46 = vld [vmem:[#allocation2 + $0x650] sm:$0xff] }
 0x2b3   : > { %v3015_v24 = vpop.f32.mrf.mxu1  ;;  %v4471_v35 = vpop.f32.mrf.mxu0  ;;  %5775 = vrot.lane.b32.xlu1 %v5566_v14, %s10919_s11  ;;  %v3536_v60 = vld [vmem:[#allocation2 + $0x1b0] sm:$0xff] }
 0x2b4   : > { %3464 = vst [vmem:[#allocation2 + $0x610] sm:$0xff] %v3252_v18  ;;  %5142 = vst [vmem:[#allocation2 + $0x170] sm:$0xff] %v4930_v12  ;;  %v3253_v11 = vadd.f32 %v3015_v24, %v1851_v31  ;;  %v4931_v25 = vadd.f32 %v4471_v35, %v3529_v6  ;;  %v5567_v3 = vrot.slane %v4930_v12, 1  ;;  %v12177_v31 = vld [vmem:[%s11015_s12 + $0x15c] sm:$0xff]  }
 0x2b5   : > { %v3019_v30 = vpop.f32.mrf.mxu1  ;;  %v4475_v32 = vpop.f32.mrf.mxu0  ;;  %4714 = vmatmul.mubr.bf16.gmra.mxu0 %v4157_v0  ;;  %v4161_v0 = vsel %vm4082_vm3, %v4158_v23, %v4160_v62  ;;  %v1859_v24 = vld [vmem:[#allocation2 + $0x658] sm:$0xff]  ;;  %v4162_v23 = vrot.slane %v12177_v31, 2 }
 0x2b6   : > { %3465 = vst.msk [vmem:[#allocation2 + $0x618] sm:$0xff] %vm1443_vm1, %v3253_v11  ;;  %5143 = vst.msk [vmem:[#allocation2 + $0x178] sm:$0xff] %vm1443_vm1, %v4931_v25  ;;  %v3254_v1 = vadd.f32 %v3019_v30, %v1852_v5  ;;  %v4932_v51 = vadd.f32 %v4475_v32, %v3530_v15  ;;  %4723 = vmatprep.mubr.bf16.mxu0 %v10917_v2  ;;  %v5568_v27 = vsel %vm5521_vm4, %v5565_v40, %v5567_v3  ;;  %v3537_v35 = vld [vmem:[#allocation2 + $0x1b8] sm:$0xff]  ;;  %v1860_v30 = vld [vmem:[#allocation2 + $0x660] sm:$0xff] }
 0x2b7   : > { %v3021_v41 = vpop.f32.mrf.mxu1  ;;  %v4477_v28 = vpop.f32.mrf.mxu0  ;;  %5777 = vrot.lane.b32.xlu0 %v5568_v27, %s10919_s11  ;;  %v12219_v31 = vld [vmem:[#allocation2 + $0x38] sm:$0xff] }
 0x2b8   : > { %3466 = vst [vmem:[#allocation2 + $0x620] sm:$0xff] %v3254_v1  ;;  %5144 = vst [vmem:[#allocation2 + $0x180] sm:$0xff] %v4932_v51  ;;  %v3255_v47 = vadd.f32 %v3021_v41, %v1853_v45  ;;  %v4933_v26 = vadd.f32 %v4477_v28, %v3531_v44  ;;  %v5569_v36 = vrot.slane %v4932_v51, 1  ;;  %v1861_v45 = vld [vmem:[#allocation2 + $0x668] sm:$0xff] }
 0x2b9   : > { %v3023_v58 = vpop.f32.mrf.mxu1  ;;  %v4479_v49 = vpop.f32.mrf.mxu0  ;;  %v3539_v44 = vld [vmem:[#allocation2 + $0x1c8] sm:$0xff] }
 0x2ba   : > { %3467 = vst.msk [vmem:[#allocation2 + $0x628] sm:$0xff] %vm1443_vm1, %v3255_v47  ;;  %5145 = vst.msk [vmem:[#allocation2 + $0x188] sm:$0xff] %vm1443_vm1, %v4933_v26  ;;  %v3256_v57 = vadd.f32 %v3023_v58, %v1854_v43  ;;  %v4934_v29 = vadd.f32 %v4479_v49, %v3532_v38  ;;  %v5570_v13 = vsel %vm5521_vm4, %v5567_v3, %v5569_v36  ;;  %v1862_v43 = vld [vmem:[#allocation2 + $0x670] sm:$0xff] }
 0x2bb   : > { %v3025_v42 = vpop.f32.mrf.mxu1  ;;  %v4481_v34 = vpop.f32.mrf.mxu0  ;;  %5779 = vrot.lane.b32.xlu1 %v5570_v13, %s10919_s11  ;;  %v3540_v38 = vld [vmem:[#allocation2 + $0x1d0] sm:$0xff] }
 0x2bc   : > { %3468 = vst [vmem:[#allocation2 + $0x630] sm:$0xff] %v3256_v57  ;;  %5146 = vst [vmem:[#allocation2 + $0x190] sm:$0xff] %v4934_v29  ;;  %v3257_v56 = vadd.f32 %v3025_v42, %v1855_v21  ;;  %v4935_v17 = vadd.f32 %v4481_v34, %v3533_v53  ;;  %v5571_v61 = vrot.slane %v4934_v29, 1  ;;  %v12195_v21 = vld [vmem:[%s11015_s12 + $0x164] sm:$0xff]   ;;  %v1863_v42 = vld [vmem:[#allocation2 + $0x678] sm:$0xff] }
 0x2bd   : > { %v3029_v55 = vpop.f32.mrf.mxu1  ;;  %v4485_v7 = vpop.f32.mrf.mxu0  ;;  %4724 = vmatmul.mubr.bf16.gmra.mxu0 %v4159_v48  ;;  %v4163_v48 = vsel %vm4082_vm3, %v4160_v62, %v4162_v23  ;;  %v3541_v34 = vld [vmem:[#allocation2 + $0x1d8] sm:$0xff]  ;;  %v4164_v62 = vrot.slane %v12195_v21, 2 }
 0x2be   : > { %3469 = vst.msk [vmem:[#allocation2 + $0x638] sm:$0xff] %vm1443_vm1, %v3257_v56  ;;  %5147 = vst.msk [vmem:[#allocation2 + $0x198] sm:$0xff] %vm1443_vm1, %v4935_v17  ;;  %v3258_v4 = vadd.f32 %v3029_v55, %v1856_v37  ;;  %v4936_v54 = vadd.f32 %v4485_v7, %v3534_v39  ;;  %4733 = vmatprep.mubr.bf16.mxu0 %v10917_v2  ;;  %v5572_v9 = vsel %vm5521_vm4, %v5569_v36, %v5571_v61  ;;  %v1864_v55 = vld [vmem:[#allocation2 + $0x680] sm:$0xff] }
 0x2bf   : > { %v3031_v16 = vpop.f32.mrf.mxu1  ;;  %v4487_v59 = vpop.f32.mrf.mxu0  ;;  %5781 = vrot.lane.b32.xlu0 %v5572_v9, %s10919_s11 }
 0x2c0   : > { %3470 = vst [vmem:[#allocation2 + $0x640] sm:$0xff] %v3258_v4  ;;  %5148 = vst [vmem:[#allocation2 + $0x1a0] sm:$0xff] %v4936_v54  ;;  %v3259_v50 = vadd.f32 %v3031_v16, %v1857_v63  ;;  %v4937_v33 = vadd.f32 %v4487_v59, %v3535_v52  ;;  %v5573_v40 = vrot.slane %v4936_v54, 1  ;;  %v1865_v63 = vld [vmem:[#allocation2 + $0x688] sm:$0xff] }
 0x2c1   : > { %v3033_v20 = vpop.f32.mrf.mxu1  ;;  %v4489_v8 = vpop.f32.mrf.mxu0  ;;  %v3543_v52 = vld [vmem:[#allocation2 + $0x1e8] sm:$0xff] }
 0x2c2   : > { %3471 = vst.msk [vmem:[#allocation2 + $0x648] sm:$0xff] %vm1443_vm1, %v3259_v50  ;;  %5149 = vst.msk [vmem:[#allocation2 + $0x1a8] sm:$0xff] %vm1443_vm1, %v4937_v33  ;;  %v3260_v18 = vadd.f32 %v3033_v20, %v1858_v46  ;;  %v4938_v12 = vadd.f32 %v4489_v8, %v3536_v60  ;;  %v5574_v14 = vsel %vm5521_vm4, %v5571_v61, %v5573_v40  ;;  %v6154_v46 = vld [vmem:[#allocation2 + $0x18] sm:$0xff]  ;;  %v1866_v60 = vld [vmem:[#allocation2 + $0x690] sm:$0x3] }
 0x2c3   : > { %v3035_v6 = vpop.f32.mrf.mxu1  ;;  %v4491_v11 = vpop.f32.mrf.mxu0  ;;  %5783 = vrot.lane.b32.xlu1 %v5574_v14, %s10919_s11 }
 0x2c4   : > { %3472 = vst [vmem:[#allocation2 + $0x650] sm:$0xff] %v3260_v18  ;;  %5150 = vst [vmem:[#allocation2 + $0x1b0] sm:$0xff] %v4938_v12  ;;  %v3261_v25 = vadd.f32 %v3035_v6, %v1859_v24  ;;  %v4939_v3 = vadd.f32 %v4491_v11, %v3537_v35  ;;  %v5575_v5 = vrot.slane %v4938_v12, 1  ;;  %v12204_v12 = vld [vmem:[#allocation2 + $0x28] sm:$0xff]  ;;  %v4165_v6 = vsel %vm4082_vm3, %v4162_v23, %v4164_v62  ;;  %v3546_v23 = vld [vmem:[#allocation2 + $0x200] sm:$0xff] }
 0x2c5   : > { %v3039_v15 = vpop.f32.mrf.mxu1  ;;  %v4495_v32 = vpop.f32.mrf.mxu0  ;;  %4734 = vmatmul.mubr.bf16.gmra.mxu0 %v4161_v0  ;;  %v12207_v0 = vld [vmem:[%s11015_s12 + $0x16c] sm:$0xff]  }
 0x2c6   : > { %3473 = vst.msk [vmem:[#allocation2 + $0x658] sm:$0xff] %vm1443_vm1, %v3261_v25  ;;  %5151 = vst.msk [vmem:[#allocation2 + $0x1b8] sm:$0xff] %vm1443_vm1, %v4939_v3  ;;  %v3262_v1 = vadd.f32 %v3039_v15, %v1860_v30  ;;  %v4940_v51 = vadd.f32 %v4495_v32, %v3538_v22  ;;  %4743 = vmatprep.mubr.bf16.mxu0 %v10917_v2  ;;  %v5576_v27 = vsel %vm5521_vm4, %v5573_v40, %v5575_v5  ;;  %v3544_v40 = vld [vmem:[#allocation2 + $0x1f0] sm:$0xff]  ;;  %v6153_v35 = vld [vmem:[#allocation2 + $0x8] sm:$0xfc] }
 0x2c7   : > { %v3041_v41 = vpop.f32.mrf.mxu1  ;;  %v4497_v28 = vpop.f32.mrf.mxu0  ;;  %5785 = vrot.lane.b32.xlu0 %v5576_v27, %s10919_s11  ;;  %v1867_v25 = vld [vmem:[#allocation2 + $0x698] sm:$0x3]  ;;  %v6367_v15 = vrot.slane %v6154_v46, 2 }
 0x2c8   : > { %3474 = vst [vmem:[#allocation2 + $0x660] sm:$0xff] %v3262_v1  ;;  %5152 = vst [vmem:[#allocation2 + $0x1c0] sm:$0xff] %v4940_v51  ;;  %v3263_v47 = vadd.f32 %v3041_v41, %v1861_v45  ;;  %v4941_v26 = vadd.f32 %v4497_v28, %v3539_v44  ;;  %v5577_v36 = vrot.slane %v4940_v51, 1  ;;  %v6369_v1 = vrot.slane %v12204_v12, 2  ;;  %v5308_v45 = vld [vmem:[#allocation2] sm:$0xff] }
 0x2c9   : > { %v3043_v58 = vpop.f32.mrf.mxu1  ;;  %v4499_v49 = vpop.f32.mrf.mxu0  ;;  %v6366_v41 = vrot.slane %v6153_v35, 2  ;;  %v4166_v28 = vrot.slane %v12207_v0, 2  ;;  %v3550_v12 = vld [vmem:[#allocation2 + $0x220] sm:$0xff] }
 0x2ca   : > { %3475 = vst.msk [vmem:[#allocation2 + $0x668] sm:$0xff] %vm1443_vm1, %v3263_v47  ;;  %5153 = vst.msk [vmem:[#allocation2 + $0x1c8] sm:$0xff] %vm1443_vm1, %v4941_v26  ;;  %v3264_v57 = vadd.f32 %v3043_v58, %v1862_v43  ;;  %v4942_v29 = vadd.f32 %v4499_v49, %v3540_v38  ;;  %v5578_v13 = vsel %vm5521_vm4, %v5575_v5, %v5577_v36  ;;  %v3545_v5 = vld [vmem:[#allocation2 + $0x1f8] sm:$0xff]  ;;  %v3547_v58 = vld [vmem:[#allocation2 + $0x208] sm:$0xff] }
 0x2cb   : > { %v3045_v53 = vpop.f32.mrf.mxu1  ;;  %v4501_v56 = vpop.f32.mrf.mxu0  ;;  %5787 = vrot.lane.b32.xlu1 %v5578_v13, %s10919_s11  ;;  %v6368_v49 = vsel %vm4082_vm3, %v6366_v41, %v6367_v15  ;;  %v12274_v41 = vld [vmem:[#allocation2 + $0x68] sm:$0xff] }
 0x2cc   : > { %3476 = vst [vmem:[#allocation2 + $0x670] sm:$0xff] %v3264_v57  ;;  %5154 = vst [vmem:[#allocation2 + $0x1d0] sm:$0xff] %v4942_v29  ;;  %v3265_v17 = vadd.f32 %v3045_v53, %v1863_v42  ;;  %v4943_v61 = vadd.f32 %v4501_v56, %v3541_v34  ;;  %v5579_v37 = vrot.slane %v4942_v29, 1  ;;  %v10797_v57 = vld [vmem:[#allocation2 + $0x10] sm:$0xff]  ;;  %v6370_v53 = vsel %vm4082_vm3, %v6367_v15, %v6369_v1  ;;  %v12234_v56 = vld [vmem:[#allocation2 + $0x48] sm:$0xff] }
 0x2cd   : > { %v3049_v39 = vpop.f32.mrf.mxu1  ;;  %v4505_v7 = vpop.f32.mrf.mxu0  ;;  %4744 = vmatmul.mubr.bf16.gmra.mxu0 %v4163_v48  ;;  %v6371_v48 = vrot.slane %v12219_v31, 2  ;;  %v3551_v15 = vld [vmem:[#allocation2 + $0x228] sm:$0xff]  ;;  %v6377_v0 = vrot.slane %v12274_v41, 2 }
 0x2ce   : > { %3477 = vst.msk [vmem:[#allocation2 + $0x678] sm:$0xff] %vm1443_vm1, %v3265_v17  ;;  %5155 = vst.msk [vmem:[#allocation2 + $0x1d8] sm:$0xff] %vm1443_vm1, %v4943_v61  ;;  %v3266_v4 = vadd.f32 %v3049_v39, %v1864_v55  ;;  %v4944_v54 = vadd.f32 %v4505_v7, %v3542_v10  ;;  %4753 = vmatprep.mubr.bf16.mxu0 %v10917_v2  ;;  %v5580_v9 = vsel %vm5521_vm4, %v5577_v36, %v5579_v37  ;;  %v12239_v17 = vld [vmem:[%s13983_s4] ss:$0 sm:$0xff]  ;;  %v3548_v61 = vld [vmem:[#allocation2 + $0x210] sm:$0xff] }
 0x2cf   : > { %v3051_v16 = vpop.f32.mrf.mxu1  ;;  %v4507_v59 = vpop.f32.mrf.mxu0  ;;  %5789 = vrot.lane.b32.xlu0 %v5580_v9, %s10919_s11  ;;  %v4167_v39 = vsel %vm4082_vm3, %v4164_v62, %v4166_v28  ;;  %v12247_v7 = vld [vmem:[%s11015_s12 + $0x174] sm:$0xff]   ;;  %v10798_v9 = vld [vmem:[#allocation2 + $0x20] sm:$0xff]  ;;  %v6372_v62 = vsel %vm4082_vm3, %v6369_v1, %v6371_v48 }
 0x2d0   : > { %3478 = vst [vmem:[#allocation2 + $0x680] sm:$0xff] %v3266_v4  ;;  %5156 = vst [vmem:[#allocation2 + $0x1e0] sm:$0xff] %v4944_v54  ;;  %v3267_v50 = vadd.f32 %v3051_v16, %v1865_v63  ;;  %v4945_v33 = vadd.f32 %v4507_v59, %v3543_v52  ;;  %v5581_v20 = vrot.slane %v4944_v54, 1  ;;  %v12254_v52 = vld [vmem:[%s13984_s5] ss:$0 sm:$0xff]  ;;  %v3549_v59 = vld [vmem:[#allocation2 + $0x218] sm:$0xff] }
 0x2d1   : > { %v3053_v8 = vpop.f32.mrf.mxu1  ;;  %v4509_v18 = vpop.f32.mrf.mxu0 }
 0x2d2   : > { %3479 = vst.msk [vmem:[#allocation2 + $0x688] sm:$0xff] %vm1443_vm1, %v3267_v50  ;;  %5157 = vst.msk [vmem:[#allocation2 + $0x1e8] sm:$0xff] %vm1443_vm1, %v4945_v33  ;;  %v3268_v14 = vadd.f32 %v3053_v8, %v1866_v60  ;;  %v4946_v24 = vadd.f32 %v4509_v18, %v3544_v40  ;;  %v5582_v11 = vsel %vm5521_vm4, %v5579_v37, %v5581_v20  ;;  %v6373_v33 = vrot.slane %v12234_v56, 2  ;;  %v12260_v8 = vld [vmem:[#allocation2 + $0x58] sm:$0xff] }
 0x2d3   : > { %v3055_v3 = vpop.f32.mrf.mxu1  ;;  %v4511_v30 = vpop.f32.mrf.mxu0  ;;  %5791 = vrot.lane.b32.xlu1 %v5582_v11, %s10919_s11 }
 0x2d4   : > { %3480 = vst [vmem:[#allocation2 + $0x690] sm:$0x3] %v3268_v14  ;;  %5158 = vst [vmem:[#allocation2 + $0x1f0] sm:$0xff] %v4946_v24  ;;  %v3269_v22 = vadd.f32 %v3055_v3, %v1867_v25  ;;  %v4947_v32 = vadd.f32 %v4511_v30, %v3545_v5  ;;  %v5583_v51 = vrot.slane %v4946_v24, 1  ;;  %v10799_v3 = vld [vmem:[#allocation2 + $0x30] sm:$0xff] }
 0x2d5   : > { %v4515_v27 = vpop.f32.mrf.mxu0  ;;  %4754 = vmatmul.mubr.bf16.gmra.mxu0 %v4165_v6  ;;  %v5734_v44 = vpop.permute.xlu0 %5733  ;;  %v4168_v6 = vrot.slane %v12247_v7, 2 }
 0x2d6   : > { %3481 = vst.msk [vmem:[#allocation2 + $0x698] sm:$0x3] %vm1654_vm2, %v3269_v22  ;;  %v12224_v47 = vadd.f32 %v4515_v27, %v3546_v23  ;;  %v6048_v26 = vadd.f32 %v5734_v44, %v5308_v45  ;;  %4763 = vmatprep.mubr.bf16.mxu0 %v10917_v2  ;;  %v5736_v36 = vpop.permute.xlu1 %5735  ;;  %v5584_v43 = vsel %vm5521_vm4, %v5581_v20, %v5583_v51  ;;  %v3552_v44 = vld [vmem:[#allocation2 + $0x230] sm:$0xff] }
 0x2d7   : > { %5159 = vst.msk [vmem:[#allocation2 + $0x1f8] sm:$0xff] %vm1443_vm1, %v4947_v32  ;;  %v4517_v38 = vpop.f32.mrf.mxu0  ;;  %v6049_v29 = vadd.f32 %v10797_v57, %v5736_v36  ;;  %5793 = vrot.lane.b32.xlu0 %v5584_v43, %s10919_s11  ;;  %v6374_v32 = vsel %vm4082_vm3, %v6371_v48, %v6373_v33  ;;  %v12283_v43 = vld [vmem:[%s11015_s12 + $0x17c] sm:$0xff]  }
 0x2d8   : > { %5160 = vst [vmem:[#allocation2 + $0x200] sm:$0xff] %v12224_v47  ;;  %v4949_v13 = vadd.f32 %v4517_v38, %v3547_v58  ;;  %v6682_v42 = vadd.f32 %v6368_v49, %v6048_v26  ;;  %v5585_v34 = vrot.slane %v12224_v47, 1  ;;  %v4169_v26 = vsel %vm4082_vm3, %v4166_v28, %v4168_v6  ;;  %v10800_v57 = vld [vmem:[#allocation2 + $0x40] sm:$0xff]  ;;  %v3553_v48 = vld [vmem:[#allocation2 + $0x238] sm:$0xff] }
 0x2d9   : > { %v4519_v37 = vpop.f32.mrf.mxu0  ;;  %v6683_v55 = vadd.f32 %v6370_v53, %v6049_v29  ;;  %v5738_v10 = vpop.permute.xlu0 %5737 }
 0x2da   : > { %5161 = vst.msk [vmem:[#allocation2 + $0x208] sm:$0xff] %vm1443_vm1, %v4949_v13  ;;  %v6787_v4 = vmax.f32 %v6682_v42, 0.0  ;;  %v4950_v54 = vadd.f32 %v4519_v37, %v3548_v61  ;;  %v6050_v63 = vadd.f32 %v10798_v9, %v5738_v10  ;;  %v5586_v16 = vsel %vm5521_vm4, %v5583_v51, %v5585_v34  ;;  %v12293_v37 = vld [vmem:[#allocation2 + $0x78] sm:$0xff] }
 0x2db   : > { %v4521_v21 = vpop.f32.mrf.mxu0  ;;  %v6788_v50 = vmax.f32 %v6683_v55, 0.0  ;;  %5795 = vrot.lane.b32.xlu1 %v5586_v16, %s10919_s11  ;;  %v6375_v51 = vrot.slane %v12260_v8, 2  ;;  %v3554_v55 = vld [vmem:[#allocation2 + $0x240] sm:$0xff]  ;;  %v10801_v16 = vld [vmem:[#allocation2 + $0x50] sm:$0xff] }
 0x2dc   : > { %v6899_v40 = vmul.f32 %v12239_v17, %v6787_v4  ;;  %5162 = vst [vmem:[#allocation2 + $0x210] sm:$0xff] %v4950_v54  ;;  %v4951_v46 = vadd.f32 %v4521_v21, %v3549_v59  ;;  %v6684_v20 = vadd.f32 %v6372_v62, %v6050_v63  ;;  %v5587_v60 = vrot.slane %v4950_v54, 1  ;;  %v3555_v21 = vld [vmem:[#allocation2 + $0x248] sm:$0xff] }
 0x2dd   : > { %v6900_v18 = vmul.f32 %v12239_v17, %v6788_v50  ;;  %v4525_v14 = vpop.f32.mrf.mxu0  ;;  %4764 = vmatmul.mubr.bf16.gmra.mxu0 %v4167_v39  ;;  %v5740_v24 = vpop.permute.xlu1 %5739  ;;  %v6376_v42 = vsel %vm4082_vm3, %v6373_v33, %v6375_v51  ;;  %v4170_v4 = vrot.slane %v12283_v43, 2  ;;  %v6378_v62 = vsel %vm4082_vm3, %v6375_v51, %v6377_v0  ;;  %v3557_v51 = vld [vmem:[#allocation2 + $0x258] sm:$0xff] }
 0x2de   : > { %v7011_v35 = vadd.f32 %v12254_v52, %v6899_v40  ;;  %5163 = vst.msk [vmem:[#allocation2 + $0x218] sm:$0xff] %vm1443_vm1, %v4951_v46  ;;  %v4952_v11 = vadd.f32 %v4525_v14, %v3550_v12  ;;  %v6789_v25 = vmax.f32 %v6684_v20, 0.0  ;;  %4773 = vmatprep.mubr.bf16.mxu0 %v10917_v2  ;;  %v6051_v5 = vadd.f32 %v10799_v3, %v5740_v24  ;;  %v12309_v14 = vld [vmem:[#allocation2 + $0x88] sm:$0xff] }
 0x2df   : > { %v7012_v30 = vadd.f32 %v12254_v52, %v6900_v18  ;;  %v4527_v22 = vpop.f32.mrf.mxu0  ;;  %v5588_v1 = vsel %vm5521_vm4, %v5585_v34, %v5587_v60  ;;  %v6379_v40 = vrot.slane %v12293_v37, 2 }
 0x2e0   : > { %7116 = vst.msk [vmem:[#allocation3] sm:$0xff] %vm1443_vm1, %v7011_v35  ;;  %5164 = vst [vmem:[#allocation2 + $0x220] sm:$0xff] %v4952_v11  ;;  %v4953_v31 = vadd.f32 %v4527_v22, %v3551_v15  ;;  %v6901_v23 = vmul.f32 %v12239_v17, %v6789_v25  ;;  %v6685_v27 = vadd.f32 %v6374_v32, %v6051_v5  ;;  %5797 = vrot.lane.b32.xlu0 %v5588_v1, %s10919_s11  ;;  %v3556_v35 = vld [vmem:[#allocation2 + $0x250] sm:$0xff]  ;;  %v12317_v5 = vld [vmem:[%s11015_s12 + $0x184] sm:$0xff]  }
 0x2e1   : > { %v5589_v45 = vrot.slane %v4952_v11, 1  ;;  %7117 = vst.msk [vmem:[#allocation3 + $0x8] sm:$0xff] %vm1443_vm1, %v7012_v30  ;;  %v4529_v47 = vpop.f32.mrf.mxu0  ;;  %v5742_v36 = vpop.permute.xlu0 %5741  ;;  %v4171_v25 = vsel %vm4082_vm3, %v4168_v6, %v4170_v4  ;;  %v10802_v32 = vld [vmem:[#allocation2 + $0x60] sm:$0xff]  ;;  %v6380_v7 = vsel %vm4082_vm3, %v6377_v0, %v6379_v40  ;;  %v3559_v0 = vld [vmem:[#allocation2 + $0x268] sm:$0xff] }
 0x2e2   : > { %5165 = vst.msk [vmem:[#allocation2 + $0x228] sm:$0xff] %vm1443_vm1, %v4953_v31  ;;  %v7013_v58 = vadd.f32 %v12254_v52, %v6901_v23  ;;  %v4954_v38 = vadd.f32 %v4529_v47, %v3552_v44  ;;  %v6790_v49 = vmax.f32 %v6685_v27, 0.0  ;;  %v6052_v29 = vadd.f32 %v10800_v57, %v5742_v36  ;;  %v12332_v47 = vld [vmem:[#allocation2 + $0x98] sm:$0xff] }
 0x2e3   : > { %v4531_v13 = vpop.f32.mrf.mxu0  ;;  %v5590_v53 = vsel %vm5521_vm4, %v5587_v60, %v5589_v45  ;;  %v6381_v23 = vrot.slane %v12309_v14, 2 }
 0x2e4   : > { %7118 = vst.msk [vmem:[#allocation3 + $0x10] sm:$0xff] %vm1443_vm1, %v7013_v58  ;;  %5166 = vst [vmem:[#allocation2 + $0x230] sm:$0xff] %v4954_v38  ;;  %v4955_v28 = vadd.f32 %v4531_v13, %v3553_v48  ;;  %v6902_v34 = vmul.f32 %v12239_v17, %v6790_v49  ;;  %v6686_v56 = vadd.f32 %v6376_v42, %v6052_v29  ;;  %5799 = vrot.lane.b32.xlu1 %v5590_v53, %s10919_s11  ;;  %v10803_v48 = vld [vmem:[#allocation2 + $0x70] sm:$0xff] }
 0x2e5   : > { %v5591_v61 = vrot.slane %v4954_v38, 1  ;;  %v4535_v39 = vpop.f32.mrf.mxu0  ;;  %4774 = vmatmul.mubr.bf16.gmra.mxu0 %v4169_v26  ;;  %v5744_v10 = vpop.permute.xlu1 %5743  ;;  %v3558_v26 = vld [vmem:[#allocation2 + $0x260] sm:$0xff]  ;;  %v4172_v38 = vrot.slane %v12317_v5, 2 }
 0x2e6   : > { %5167 = vst.msk [vmem:[#allocation2 + $0x238] sm:$0xff] %vm1443_vm1, %v4955_v28  ;;  %v7014_v54 = vadd.f32 %v12254_v52, %v6902_v34  ;;  %v12298_v9 = vadd.f32 %v4535_v39, %v3554_v55  ;;  %v6791_v63 = vmax.f32 %v6686_v56, 0.0  ;;  %4783 = vmatprep.mubr.bf16.mxu0 %v10917_v2  ;;  %v6053_v59 = vadd.f32 %v10801_v16, %v5744_v10 }
 0x2e7   : > { %v4537_v50 = vpop.f32.mrf.mxu0  ;;  %v5592_v33 = vsel %vm5521_vm4, %v5589_v45, %v5591_v61  ;;  %v6382_v34 = vsel %vm4082_vm3, %v6379_v40, %v6381_v23  ;;  %v4173_v16 = vsel %vm4082_vm3, %v4170_v4, %v4172_v38 }
 0x2e8   : > { %v7221_v46 = vld [vmem:[#allocation3] ss:$2 sm:$0xff]  ;;  %v7327_v20 = vld [vmem:[#allocation3 + $0x1] ss:$2 sm:$0xff]  ;;  %7119 = vst.msk [vmem:[#allocation3 + $0x18] sm:$0xff] %vm1443_vm1, %v7014_v54  ;;  %5168 = vst [vmem:[#allocation2 + $0x240] sm:$0xff] %v12298_v9  ;;  %v4957_v60 = vadd.f32 %v4537_v50, %v3555_v21  ;;  %v6903_v8 = vmul.f32 %v12239_v17, %v6791_v63  ;;  %v6687_v18 = vadd.f32 %v6378_v62, %v6053_v59  ;;  %5801 = vrot.lane.b32.xlu0 %v5592_v33, %s10919_s11 }
 0x2e9   : > { %v5593_v12 = vrot.slane %v12298_v9, 1  ;;  %v7432_v24 = vadd.f32 %v7327_v20, %v7221_v46  ;;  %v4539_v11 = vpop.f32.mrf.mxu0  ;;  %v5746_v3 = vpop.permute.xlu0 %5745  ;;  %v12347_v54 = vld [vmem:[#allocation2 + $0xa8] sm:$0xff]  ;;  %v3560_v9 = vld [vmem:[#allocation2 + $0x270] sm:$0xff]  ;;  %v10804_v46 = vld [vmem:[#allocation2 + $0x80] sm:$0xff] }
 0x2ea   : > { %5169 = vst.msk [vmem:[#allocation2 + $0x248] sm:$0xff] %vm1443_vm1, %v4957_v60  ;;  %v7015_v30 = vadd.f32 %v12254_v52, %v6903_v8  ;;  %v12321_v15 = vadd.f32 %v4539_v11, %v3556_v35  ;;  %v6792_v22 = vmax.f32 %v6687_v18, 0.0  ;;  %v6054_v1 = vadd.f32 %v10802_v32, %v5746_v3  ;;  %v12356_v50 = vld [vmem:[%s11015_s12 + $0x18c] sm:$0xff]   ;;  %v3561_v60 = vld [vmem:[#allocation2 + $0x278] sm:$0xff] }
 0x2eb   : > { %7485 = vst.msk [vmem:[#allocation4] sm:$0xff] %vm1443_vm1, %v7432_v24  ;;  %v4541_v31 = vpop.f32.mrf.mxu0  ;;  %v5594_v6 = vsel %vm5521_vm4, %v5591_v61, %v5593_v12  ;;  %v6383_v61 = vrot.slane %v12332_v47, 2  ;;  %v6385_v18 = vrot.slane %v12347_v54, 2  ;;  %v12367_v11 = vld [vmem:[#allocation2 + $0xb8] sm:$0xff] }
 0x2ec   : > { %7120 = vst.msk [vmem:[#allocation3 + $0x20] sm:$0xff] %vm1443_vm1, %v7015_v30  ;;  %5170 = vst [vmem:[#allocation2 + $0x250] sm:$0xff] %v12321_v15  ;;  %v4959_v27 = vadd.f32 %v4541_v31, %v3557_v51  ;;  %v6904_v45 = vmul.f32 %v12239_v17, %v6792_v22  ;;  %v6688_v41 = vadd.f32 %v6380_v7, %v6054_v1  ;;  %5803 = vrot.lane.b32.xlu1 %v5594_v6, %s10919_s11  ;;  %v10805_v51 = vld [vmem:[#allocation2 + $0x90] sm:$0xff] }
 0x2ed   : > { %v5595_v44 = vrot.slane %v12321_v15, 1  ;;  %v4545_v36 = vpop.f32.mrf.mxu0  ;;  %4784 = vmatmul.mubr.bf16.gmra.mxu0 %v4171_v25  ;;  %v5748_v58 = vpop.permute.xlu0 %5747  ;;  %v6384_v43 = vsel %vm4082_vm3, %v6381_v23, %v6383_v61  ;;  %v3562_v25 = vld [vmem:[#allocation2 + $0x280] sm:$0xff]  ;;  %v4174_v15 = vrot.slane %v12356_v50, 2  ;;  %v3563_v23 = vld [vmem:[#allocation2 + $0x288] sm:$0xff] }
 0x2ee   : > { %5171 = vst.msk [vmem:[#allocation2 + $0x258] sm:$0xff] %vm1443_vm1, %v4959_v27  ;;  %v7016_v49 = vadd.f32 %v12254_v52, %v6904_v45  ;;  %v12337_v57 = vadd.f32 %v4545_v36, %v3558_v26  ;;  %v6793_v29 = vmax.f32 %v6688_v41, 0.0  ;;  %4793 = vmatprep.mubr.bf16.mxu0 %v10917_v2  ;;  %v6055_v13 = vadd.f32 %v10803_v48, %v5748_v58 }
 0x2ef   : > { %v7223_v42 = vld [vmem:[#allocation3 + $0x10] ss:$2 sm:$0xff]  ;;  %v7329_v53 = vld [vmem:[#allocation3 + $0x11] ss:$2 sm:$0xff]  ;;  %v4547_v28 = vpop.f32.mrf.mxu0  ;;  %v5596_v56 = vsel %vm5521_vm4, %v5593_v12, %v5595_v44  ;;  %v6386_v45 = vsel %vm4082_vm3, %v6383_v61, %v6385_v18  ;;  %v4175_v48 = vsel %vm4082_vm3, %v4172_v38, %v4174_v15 }
 0x2f0   : > { %v7433_v37 = vadd.f32 %v7329_v53, %v7223_v42  ;;  %7121 = vst.msk [vmem:[#allocation3 + $0x28] sm:$0xff] %vm1443_vm1, %v7016_v49  ;;  %5172 = vst [vmem:[#allocation2 + $0x260] sm:$0xff] %v12337_v57  ;;  %v4961_v55 = vadd.f32 %v4547_v28, %v3559_v0  ;;  %v6905_v39 = vmul.f32 %v12239_v17, %v6793_v29  ;;  %5805 = vrot.lane.b32.xlu0 %v5596_v56, %s10919_s11  ;;  %v12382_v49 = vld [vmem:[#allocation2 + $0xc8] sm:$0xff]  ;;  %v12391_v53 = vld [vmem:[%s11015_s12 + $0x194] sm:$0xff]  }
 0x2f1   : > { %v6689_v10 = vadd.f32 %v6382_v34, %v6055_v13  ;;  %v4549_v63 = vpop.f32.mrf.mxu0  ;;  %v5750_v59 = vpop.permute.xlu1 %5749  ;;  %v5597_v21 = vrot.slane %v12337_v57, 1  ;;  %v3564_v57 = vld [vmem:[#allocation2 + $0x290] sm:$0xff]  ;;  %v10806_v56 = vld [vmem:[#allocation2 + $0xa0] sm:$0xff] }
 0x2f2   : > { %7486 = vst.msk [vmem:[#allocation4 + $0x8] sm:$0xff] %vm1443_vm1, %v7433_v37  ;;  %5173 = vst.msk [vmem:[#allocation2 + $0x268] sm:$0xff] %vm1443_vm1, %v4961_v55  ;;  %v7017_v62 = vadd.f32 %v12254_v52, %v6905_v39  ;;  %v4962_v33 = vadd.f32 %v4549_v63, %v3560_v9  ;;  %v6056_v20 = vadd.f32 %v10804_v46, %v5750_v59  ;;  %v3565_v37 = vld [vmem:[#allocation2 + $0x298] sm:$0xff]  ;;  %v6389_v39 = vrot.slane %v12382_v49, 2  ;;  %v3566_v59 = vld [vmem:[#allocation2 + $0x2a0] sm:$0xff] }
 0x2f3   : > { %v6794_v40 = vmax.f32 %v6689_v10, 0.0  ;;  %v4551_v8 = vpop.f32.mrf.mxu0  ;;  %v5598_v4 = vsel %vm5521_vm4, %v5595_v44, %v5597_v21  ;;  %v6387_v44 = vrot.slane %v12367_v11, 2  ;;  %v7539_v50 = vld [vmem:[#allocation4] sm:$0xff] }
 0x2f4   : > { %7122 = vst.msk [vmem:[#allocation3 + $0x30] sm:$0xff] %vm1443_vm1, %v7017_v62  ;;  %5174 = vst [vmem:[#allocation2 + $0x270] sm:$0xff] %v4962_v33  ;;  %v4963_v12 = vadd.f32 %v4551_v8, %v3561_v60  ;;  %v6690_v24 = vadd.f32 %v6384_v43, %v6056_v20  ;;  %5807 = vrot.lane.b32.xlu1 %v5598_v4, %s10919_s11  ;;  %v5599_v35 = vrot.slane %v4962_v33, 1  ;;  %v4176_v33 = vrot.slane %v12391_v53, 2  ;;  %v10807_v60 = vld [vmem:[#allocation2 + $0xb0] sm:$0xff]  ;;  %v10810_v53 = vld [vmem:[#allocation2 + $0xe0] sm:$0xff] }
 0x2f5   : > { %v6906_v14 = vmul.f32 %v12239_v17, %v6794_v40  ;;  %v4555_v3 = vpop.f32.mrf.mxu0  ;;  %4794 = vmatmul.mubr.bf16.gmra.mxu0 %v4173_v16  ;;  %v5752_v30 = vpop.permute.xlu1 %5751  ;;  %v6388_v38 = vsel %vm4082_vm3, %v6385_v18, %v6387_v44  ;;  %v12406_v16 = vld [vmem:[#allocation2 + $0xd8] sm:$0xff]  ;;  %v3567_v18 = vld [vmem:[#allocation2 + $0x2a8] sm:$0xff] }
 0x2f6   : > { %5175 = vst.msk [vmem:[#allocation2 + $0x278] sm:$0xff] %vm1443_vm1, %v4963_v12  ;;  %v12372_v32 = vadd.f32 %v4555_v3, %v3562_v25  ;;  %v6795_v1 = vmax.f32 %v6690_v24, 0.0  ;;  %4803 = vmatprep.mubr.bf16.mxu0 %v10917_v2  ;;  %v6057_v31 = vadd.f32 %v10805_v51, %v5752_v30  ;;  %v5600_v41 = vsel %vm5521_vm4, %v5597_v21, %v5599_v35 }
 0x2f7   : > { %v7018_v22 = vadd.f32 %v12254_v52, %v6906_v14  ;;  %v7225_v7 = vld [vmem:[#allocation3 + $0x20] ss:$2 sm:$0xff]  ;;  %v7331_v6 = vld [vmem:[#allocation3 + $0x21] ss:$2 sm:$0xff]  ;;  %v4557_v27 = vpop.f32.mrf.mxu0  ;;  %5809 = vrot.lane.b32.xlu0 %v5600_v41, %s10919_s11  ;;  %v6390_v14 = vsel %vm4082_vm3, %v6387_v44, %v6389_v39  ;;  %v4177_v51 = vsel %vm4082_vm3, %v4174_v15, %v4176_v33 }
 0x2f8   : > { %v7434_v47 = vadd.f32 %v7331_v6, %v7225_v7  ;;  %5176 = vst [vmem:[#allocation2 + $0x280] sm:$0xff] %v12372_v32  ;;  %v4965_v26 = vadd.f32 %v4557_v27, %v3563_v23  ;;  %v6907_v36 = vmul.f32 %v12239_v17, %v6795_v1  ;;  %v6691_v58 = vadd.f32 %v6386_v45, %v6057_v31  ;;  %v12430_v6 = vld [vmem:[%s11015_s12 + $0x19c] sm:$0xff]  }
 0x2f9   : > { %7123 = vst.msk [vmem:[#allocation3 + $0x38] sm:$0xff] %vm1443_vm1, %v7018_v22  ;;  %v4559_v29 = vpop.f32.mrf.mxu0  ;;  %v5754_v13 = vpop.permute.xlu0 %5753  ;;  %v5601_v42 = vrot.slane %v12372_v32, 1  ;;  %v12421_v22 = vld [vmem:[#allocation2 + $0xe8] sm:$0xff]  ;;  %v3568_v32 = vld [vmem:[#allocation2 + $0x2b0] sm:$0xff]  ;;  %v10808_v44 = vld [vmem:[#allocation2 + $0xc0] sm:$0xff] }
 0x2fa   : > { %7487 = vst.msk [vmem:[#allocation4 + $0x10] sm:$0xff] %vm1443_vm1, %v7434_v47  ;;  %5177 = vst.msk [vmem:[#allocation2 + $0x288] sm:$0xff] %vm1443_vm1, %v4965_v26  ;;  %v7019_v0 = vadd.f32 %v12254_v52, %v6907_v36  ;;  %v12396_v28 = vadd.f32 %v4559_v29, %v3564_v57  ;;  %v6796_v34 = vmax.f32 %v6691_v58, 0.0  ;;  %v6058_v61 = vadd.f32 %v10806_v56, %v5754_v13  ;;  %v3569_v26 = vld [vmem:[#allocation2 + $0x2b8] sm:$0xff] }
 0x2fb   : > { %v4561_v5 = vpop.f32.mrf.mxu0  ;;  %v5602_v55 = vsel %vm5521_vm4, %v5599_v35, %v5601_v42  ;;  %v6391_v35 = vrot.slane %v12406_v16, 2  ;;  %v6393_v49 = vrot.slane %v12421_v22, 2 }
 0x2fc   : > { %7124 = vst.msk [vmem:[#allocation3 + $0x40] sm:$0xff] %vm1443_vm1, %v7019_v0  ;;  %5178 = vst [vmem:[#allocation2 + $0x290] sm:$0xff] %v12396_v28  ;;  %v4967_v10 = vadd.f32 %v4561_v5, %v3565_v37  ;;  %v6908_v54 = vmul.f32 %v12239_v17, %v6796_v34  ;;  %v6692_v9 = vadd.f32 %v6388_v38, %v6058_v61  ;;  %5811 = vrot.lane.b32.xlu1 %v5602_v55, %s10919_s11  ;;  %v12445_v0 = vld [vmem:[#allocation2 + $0xf8] sm:$0xff] }
 0x2fd   : > { %v5603_v63 = vrot.slane %v12396_v28, 1  ;;  %v4565_v21 = vpop.f32.mrf.mxu0  ;;  %4804 = vmatmul.mubr.bf16.gmra.mxu0 %v4175_v48  ;;  %v5756_v62 = vpop.permute.xlu1 %5755  ;;  %v6392_v36 = vsel %vm4082_vm3, %v6389_v39, %v6391_v35  ;;  %v3570_v28 = vld [vmem:[#allocation2 + $0x2c0] sm:$0xff]  ;;  %v4178_v61 = vrot.slane %v12430_v6, 2  ;;  %v10809_v39 = vld [vmem:[#allocation2 + $0xd0] sm:$0xff]  ;;  %v3577_v6 = vld [vmem:[#allocation2 + $0x2f8] sm:$0xff] }
 0x2fe   : > { %5179 = vst.msk [vmem:[#allocation2 + $0x298] sm:$0xff] %vm1443_vm1, %v4967_v10  ;;  %v7020_v40 = vadd.f32 %v12254_v52, %v6908_v54  ;;  %v12411_v46 = vadd.f32 %v4565_v21, %v3566_v59  ;;  %v6797_v20 = vmax.f32 %v6692_v9, 0.0  ;;  %4813 = vmatprep.mubr.bf16.mxu0 %v10917_v2  ;;  %v6059_v8 = vadd.f32 %v10807_v60, %v5756_v62 }
 0x2ff   : > { %v4567_v12 = vpop.f32.mrf.mxu0  ;;  %v5604_v24 = vsel %vm5521_vm4, %v5601_v42, %v5603_v63  ;;  %v6394_v59 = vsel %vm4082_vm3, %v6391_v35, %v6393_v49  ;;  %v6395_v62 = vrot.slane %v12445_v0, 2  ;;  %v12469_v35 = vld [vmem:[%s11015_s12 + $0x1a4] sm:$0xff]  }
 0x300   : > { %v7227_v43 = vld [vmem:[#allocation3 + $0x30] ss:$2 sm:$0xff]  ;;  %v7333_v4 = vld [vmem:[#allocation3 + $0x31] ss:$2 sm:$0xff]  ;;  %7125 = vst.msk [vmem:[#allocation3 + $0x48] sm:$0xff] %vm1443_vm1, %v7020_v40  ;;  %5180 = vst [vmem:[#allocation2 + $0x2a0] sm:$0xff] %v12411_v46  ;;  %v4969_v25 = vadd.f32 %v4567_v12, %v3567_v18  ;;  %v6909_v3 = vmul.f32 %v12239_v17, %v6797_v20  ;;  %v6693_v30 = vadd.f32 %v6390_v14, %v6059_v8  ;;  %5813 = vrot.lane.b32.xlu0 %v5604_v24, %s10919_s11 }
 0x301   : > { %v7435_v11 = vadd.f32 %v7333_v4, %v7227_v43  ;;  %v4569_v1 = vpop.f32.mrf.mxu0  ;;  %v5758_v31 = vpop.permute.xlu0 %5757  ;;  %v5605_v7 = vrot.slane %v12411_v46, 1  ;;  %v7541_v23 = vld [vmem:[#allocation4 + $0xf] sm:$0xff]  ;;  %v12460_v43 = vld [vmem:[#allocation2 + $0x108] sm:$0xff]  ;;  %v4179_v12 = vsel %vm4082_vm3, %v4176_v33, %v4178_v61  ;;  %v7540_v33 = vld [vmem:[#allocation4 + $0x8] sm:$0x3f] }
 0x302   : > { %5181 = vst.msk [vmem:[#allocation2 + $0x2a8] sm:$0xff] %vm1443_vm1, %v4969_v25  ;;  %v7021_v27 = vadd.f32 %v12254_v52, %v6909_v3  ;;  %v12435_v45 = vadd.f32 %v4569_v1, %v3568_v32  ;;  %v6798_v41 = vmax.f32 %v6693_v30, 0.0  ;;  %v6060_v47 = vadd.f32 %v10808_v44, %v5758_v31  ;;  %v3572_v4 = vld [vmem:[#allocation2 + $0x2d0] sm:$0xff]  ;;  %v3573_v32 = vld [vmem:[#allocation2 + $0x2d8] sm:$0xff] }
 0x303   : > { %7488 = vst.msk [vmem:[#allocation4 + $0x18] sm:$0xff] %vm1443_vm1, %v7435_v11  ;;  %v4571_v15 = vpop.f32.mrf.mxu0  ;;  %v5606_v58 = vsel %vm5521_vm4, %v5603_v63, %v5605_v7  ;;  %v7543_v57 = vadd.f32 %v7541_v23, %v7539_v50  ;;  %v3571_v63 = vld [vmem:[#allocation2 + $0x2c8] sm:$0xff]  ;;  %v3574_v50 = vld [vmem:[#allocation2 + $0x2e0] sm:$0xff] }
 0x304   : > { %7126 = vst.msk [vmem:[#allocation3 + $0x50] sm:$0xff] %vm1443_vm1, %v7021_v27  ;;  %5182 = vst [vmem:[#allocation2 + $0x2b0] sm:$0xff] %v12435_v45  ;;  %v4971_v29 = vadd.f32 %v4571_v15, %v3569_v26  ;;  %v6910_v48 = vmul.f32 %v12239_v17, %v6798_v41  ;;  %v6694_v13 = vadd.f32 %v6392_v36, %v6060_v47  ;;  %5815 = vrot.lane.b32.xlu1 %v5606_v58, %s10919_s11  ;;  %v12485_v47 = vld [vmem:[#allocation2 + $0x118] sm:$0xff] }
 0x305   : > { %v5607_v42 = vrot.slane %v12435_v45, 1  ;;  %v4575_v34 = vpop.f32.mrf.mxu0  ;;  %4814 = vmatmul.mubr.bf16.gmra.mxu0 %v4177_v51  ;;  %v5760_v56 = vpop.permute.xlu1 %5759  ;;  %v7545_v37 = vmul.f32 0.25, %v7543_v57  ;;  %v6396_v51 = vsel %vm4082_vm3, %v6393_v49, %v6395_v62  ;;  %v4180_v36 = vrot.slane %v12469_v35, 2 }
 0x306   : > { %5183 = vst.msk [vmem:[#allocation2 + $0x2b8] sm:$0xff] %vm1443_vm1, %v4971_v29  ;;  %v7022_v5 = vadd.f32 %v12254_v52, %v6910_v48  ;;  %v12450_v38 = vadd.f32 %v4575_v34, %v3570_v28  ;;  %v6799_v55 = vmax.f32 %v6694_v13, 0.0  ;;  %4823 = vmatprep.mubr.bf16.mxu0 %v10917_v2  ;;  %v6061_v10 = vadd.f32 %v10809_v39, %v5760_v56  ;;  %v10811_v48 = vld [vmem:[#allocation2 + $0xf0] sm:$0xff]  ;;  %v3575_v28 = vld [vmem:[#allocation2 + $0x2e8] sm:$0xff] }
 0x307   : > { %v7229_v54 = vld [vmem:[#allocation3 + $0x40] ss:$2 sm:$0xff]  ;;  %v7335_v9 = vld [vmem:[#allocation3 + $0x41] ss:$2 sm:$0xff]  ;;  %v4577_v16 = vpop.f32.mrf.mxu0  ;;  %v5608_v21 = vsel %vm5521_vm4, %v5605_v7, %v5607_v42  ;;  %v10209_v40 = vpack.c.bf16 %v7545_v37, %v7545_v37  ;;  %v6397_v7 = vrot.slane %v12460_v43, 2 }
 0x308   : > { %v7436_v46 = vadd.f32 %v7335_v9, %v7229_v54  ;;  %7127 = vst.msk [vmem:[#allocation3 + $0x58] sm:$0xff] %vm1443_vm1, %v7022_v5  ;;  %5184 = vst [vmem:[#allocation2 + $0x2c0] sm:$0xff] %v12450_v38  ;;  %v4973_v20 = vadd.f32 %v4577_v16, %v3571_v63  ;;  %v6911_v60 = vmul.f32 %v12239_v17, %v6799_v55  ;;  %5817 = vrot.lane.b32.xlu0 %v5608_v21, %s10919_s11  ;;  %v12500_v9 = vld [vmem:[#allocation2 + $0x128] sm:$0xff]  ;;  %v3576_v63 = vld [vmem:[#allocation2 + $0x2f0] sm:$0xff] }
 0x309   : > { %v6695_v8 = vadd.f32 %v6394_v59, %v6061_v10  ;;  %v4579_v18 = vpop.f32.mrf.mxu0  ;;  %v5762_v14 = vpop.permute.xlu0 %5761  ;;  %v5609_v24 = vrot.slane %v12450_v38, 1  ;;  %7555 = vst.msk [vmem:[#allocation5] sm:$0xf] %vm7537_vm6, %v10209_v40  ;;  %v6398_v56 = vsel %vm4082_vm3, %v6395_v62, %v6397_v7  ;;  %v6399_v5 = vrot.slane %v12485_v47, 2  ;;  %v12509_v40 = vld [vmem:[%s11015_s12 + $0x1ac] sm:$0xff]  }
 0x30a   : > { %v7542_v11 = vld [vmem:[#allocation4 + $0x17] sm:$0x3f]  ;;  %7489 = vst.msk [vmem:[#allocation4 + $0x20] sm:$0xff] %vm1443_vm1, %v7436_v46  ;;  %5185 = vst.msk [vmem:[#allocation2 + $0x2c8] sm:$0xff] %vm1443_vm1, %v4973_v20  ;;  %v7023_v25 = vadd.f32 %v12254_v52, %v6911_v60  ;;  %v12475_v3 = vadd.f32 %v4579_v18, %v3572_v4  ;;  %v6062_v22 = vadd.f32 %v10810_v53, %v5762_v14 }
 0x30b   : > { %v6800_v30 = vmax.f32 %v6695_v8, 0.0  ;;  %v4581_v1 = vpop.f32.mrf.mxu0  ;;  %v5610_v31 = vsel %vm5521_vm4, %v5607_v42, %v5609_v24  ;;  %v7544_v23 = vadd.f32 %v7542_v11, %v7540_v33  ;;  %v4181_v59 = vsel %vm4082_vm3, %v4178_v61, %v4180_v36  ;;  %v10812_v8 = vld [vmem:[#allocation2 + $0x100] sm:$0xff] }
 0x30c   : > { %7128 = vst.msk [vmem:[#allocation3 + $0x60] sm:$0xff] %vm1443_vm1, %v7023_v25  ;;  %5186 = vst [vmem:[#allocation2 + $0x2d0] sm:$0xff] %v12475_v3  ;;  %v4975_v27 = vadd.f32 %v4581_v1, %v3573_v32  ;;  %v6696_v41 = vadd.f32 %v6396_v51, %v6062_v22  ;;  %5819 = vrot.lane.b32.xlu1 %v5610_v31, %s10919_s11  ;;  %v5611_v44 = vrot.slane %v12475_v3, 1  ;;  %v12521_v3 = vld [vmem:[#allocation2 + $0x138] sm:$0xff]  ;;  %v4182_v33 = vrot.slane %v12509_v40, 2  ;;  %v10813_v31 = vld [vmem:[#allocation2 + $0x110] sm:$0xff] }
 0x30d   : > { %v6912_v45 = vmul.f32 %v12239_v17, %v6800_v30  ;;  %v4585_v26 = vpop.f32.mrf.mxu0  ;;  %4824 = vmatmul.mubr.bf16.gmra.mxu0 %v4179_v12  ;;  %v5764_v15 = vpop.permute.xlu1 %5763  ;;  %v7546_v58 = vmul.f32 0.25, %v7544_v23  ;;  %v6400_v61 = vsel %vm4082_vm3, %v6397_v7, %v6399_v5  ;;  %v6401_v12 = vrot.slane %v12500_v9, 2  ;;  %v3578_v30 = vld [vmem:[#allocation2 + $0x300] sm:$0xff] }
 0x30e   : > { %5187 = vst.msk [vmem:[#allocation2 + $0x2d8] sm:$0xff] %vm1443_vm1, %v4975_v27  ;;  %v12490_v57 = vadd.f32 %v4585_v26, %v3574_v50  ;;  %v6801_v29 = vmax.f32 %v6696_v41, 0.0  ;;  %4833 = vmatprep.mubr.bf16.mxu0 %v10917_v2  ;;  %v6063_v13 = vadd.f32 %v10811_v48, %v5764_v15  ;;  %v5612_v37 = vsel %vm5521_vm4, %v5609_v24, %v5611_v44 }
 0x30f   : > { %v7024_v49 = vadd.f32 %v12254_v52, %v6912_v45  ;;  %v7231_v42 = vld [vmem:[#allocation3 + $0x50] ss:$2 sm:$0xff]  ;;  %v7337_v0 = vld [vmem:[#allocation3 + $0x51] ss:$2 sm:$0xff]  ;;  %v4587_v34 = vpop.f32.mrf.mxu0  ;;  %v10210_v38 = vpack.c.bf16 %v7546_v58, %v7546_v58  ;;  %5821 = vrot.lane.b32.xlu0 %v5612_v37, %s10919_s11  ;;  %v3579_v45 = vld [vmem:[#allocation2 + $0x308] sm:$0xff]  ;;  %v6403_v50 = vrot.slane %v12521_v3, 2 }
 0x310   : > { %v7437_v55 = vadd.f32 %v7337_v0, %v7231_v42  ;;  %5188 = vst [vmem:[#allocation2 + $0x2e0] sm:$0xff] %v12490_v57  ;;  %v4977_v39 = vadd.f32 %v4587_v34, %v3575_v28  ;;  %v6913_v10 = vmul.f32 %v12239_v17, %v6801_v29  ;;  %v6697_v54 = vadd.f32 %v6398_v56, %v6063_v13  ;;  %v3580_v29 = vld [vmem:[#allocation2 + $0x310] sm:$0xff] }
 0x311   : > { %7129 = vst.msk [vmem:[#allocation3 + $0x68] sm:$0xff] %vm1443_vm1, %v7024_v49  ;;  %v4589_v16 = vpop.f32.mrf.mxu0  ;;  %v5766_v21 = vpop.permute.xlu0 %5765  ;;  %v5613_v62 = vrot.slane %v12490_v57, 1  ;;  %v12536_v57 = vld [vmem:[#allocation2 + $0x148] sm:$0xff]  ;;  %v4183_v13 = vsel %vm4082_vm3, %v4180_v36, %v4182_v33  ;;  %v12545_v28 = vld [vmem:[%s11015_s12 + $0x1b4] sm:$0xff]   ;;  %v6404_v36 = vsel %vm4082_vm3, %v6401_v12, %v6403_v50 }
 0x312   : > { %7557 = vst.msk [vmem:[#allocation5 + $0x4] sm:$0x7] %vm7556_vm7, %v10210_v38  ;;  %v7025_v46 = vadd.f32 %v12254_v52, %v6913_v10  ;;  %v4978_v20 = vadd.f32 %v4589_v16, %v3576_v63  ;;  %v6802_v60 = vmax.f32 %v6697_v54, 0.0  ;;  %v6064_v43 = vadd.f32 %v10812_v8, %v5766_v21  ;;  %v3582_v21 = vld [vmem:[#allocation2 + $0x320] sm:$0xff] }
 0x313   : > { %7490 = vst.msk [vmem:[#allocation4 + $0x28] sm:$0xff] %vm1443_vm1, %v7437_v55  ;;  %5189 = vst.msk [vmem:[#allocation2 + $0x2e8] sm:$0xff] %vm1443_vm1, %v4977_v39  ;;  %v4591_v4 = vpop.f32.mrf.mxu0  ;;  %v5614_v18 = vsel %vm5521_vm4, %v5611_v44, %v5613_v62  ;;  %v6402_v44 = vsel %vm4082_vm3, %v6399_v5, %v6401_v12  ;;  %v10814_v5 = vld [vmem:[#allocation2 + $0x120] sm:$0xff]  ;;  %v3581_v55 = vld [vmem:[#allocation2 + $0x318] sm:$0xff]  ;;  %v6405_v10 = vrot.slane %v12536_v57, 2 }
 0x314   : > { %7130 = vst.msk [vmem:[#allocation3 + $0x70] sm:$0xff] %vm1443_vm1, %v7025_v46  ;;  %5190 = vst [vmem:[#allocation2 + $0x2f0] sm:$0xff] %v4978_v20  ;;  %v4979_v14 = vadd.f32 %v4591_v4, %v3577_v6  ;;  %v6914_v24 = vmul.f32 %v12239_v17, %v6802_v60  ;;  %v6698_v11 = vadd.f32 %v6400_v61, %v6064_v43  ;;  %5823 = vrot.lane.b32.xlu1 %v5614_v18, %s10919_s11  ;;  %v10815_v6 = vld [vmem:[#allocation2 + $0x130] sm:$0xff]  ;;  %v3583_v12 = vld [vmem:[#allocation2 + $0x328] sm:$0xff] }
 0x315   : > { %v5615_v25 = vrot.slane %v4978_v20, 1  ;;  %v4595_v53 = vpop.f32.mrf.mxu0  ;;  %4834 = vmatmul.mubr.bf16.gmra.mxu0 %v4181_v59  ;;  %v5768_v22 = vpop.permute.xlu1 %5767  ;;  %v12560_v59 = vld [vmem:[#allocation2 + $0x158] sm:$0xff]  ;;  %v4184_v20 = vrot.slane %v12545_v28, 2  ;;  %v7558_v40 = vld [vmem:[#allocation4 + $0x1e] sm:$0xff] }
 0x316   : > { %5191 = vst.msk [vmem:[#allocation2 + $0x2f8] sm:$0xff] %vm1443_vm1, %v4979_v14  ;;  %v7026_v32 = vadd.f32 %v12254_v52, %v6914_v24  ;;  %v12526_v1 = vadd.f32 %v4595_v53, %v3578_v30  ;;  %v6803_v51 = vmax.f32 %v6698_v11, 0.0  ;;  %4843 = vmatprep.mubr.bf16.mxu0 %v10917_v2  ;;  %v6065_v7 = vadd.f32 %v10813_v31, %v5768_v22 }
 0x317   : > { %v4597_v41 = vpop.f32.mrf.mxu0  ;;  %v5616_v47 = vsel %vm5521_vm4, %v5613_v62, %v5615_v25  ;;  %v6406_v24 = vsel %vm4082_vm3, %v6403_v50, %v6405_v10  ;;  %v4185_v31 = vsel %vm4082_vm3, %v4182_v33, %v4184_v20  ;;  %v10816_v50 = vld [vmem:[#allocation2 + $0x140] sm:$0xff] }
 0x318   : > { %v7233_v23 = vld [vmem:[#allocation3 + $0x60] ss:$2 sm:$0xff]  ;;  %v7339_v27 = vld [vmem:[#allocation3 + $0x61] ss:$2 sm:$0xff]  ;;  %7131 = vst.msk [vmem:[#allocation3 + $0x78] sm:$0xff] %vm1443_vm1, %v7026_v32  ;;  %5192 = vst [vmem:[#allocation2 + $0x300] sm:$0xff] %v12526_v1  ;;  %v4981_v15 = vadd.f32 %v4597_v41, %v3579_v45  ;;  %v6915_v58 = vmul.f32 %v12239_v17, %v6803_v51  ;;  %v6699_v49 = vadd.f32 %v6402_v44, %v6065_v7  ;;  %5825 = vrot.lane.b32.xlu0 %v5616_v47, %s10919_s11 }
 0x319   : > { %v7438_v26 = vadd.f32 %v7339_v27, %v7233_v23  ;;  %v4599_v48 = vpop.f32.mrf.mxu0  ;;  %v5770_v42 = vpop.permute.xlu0 %5769  ;;  %v5617_v0 = vrot.slane %v12526_v1, 1  ;;  %v12575_v32 = vld [vmem:[#allocation2 + $0x168] sm:$0xff]  ;;  %v3584_v1 = vld [vmem:[#allocation2 + $0x330] sm:$0xff]  ;;  %v12584_v27 = vld [vmem:[%s11015_s12 + $0x1bc] sm:$0x7f]  }
 0x31a   : > { %5193 = vst.msk [vmem:[#allocation2 + $0x308] sm:$0xff] %vm1443_vm1, %v4981_v15  ;;  %v7027_v34 = vadd.f32 %v12254_v52, %v6915_v58  ;;  %v12550_v56 = vadd.f32 %v4599_v48, %v3580_v29  ;;  %v6804_v37 = vmax.f32 %v6699_v49, 0.0  ;;  %v6066_v38 = vadd.f32 %v10814_v5, %v5770_v42  ;;  %v3585_v15 = vld [vmem:[#allocation2 + $0x338] sm:$0xff] }
 0x31b   : > { %7491 = vst.msk [vmem:[#allocation4 + $0x30] sm:$0xff] %vm1443_vm1, %v7438_v26  ;;  %v4601_v35 = vpop.f32.mrf.mxu0  ;;  %v5618_v39 = vsel %vm5521_vm4, %v5615_v25, %v5617_v0  ;;  %v6407_v25 = vrot.slane %v12560_v59, 2  ;;  %v6409_v57 = vrot.slane %v12575_v32, 2  ;;  %v12639_v32 = vld [vmem:[#allocation2 + $0x198] sm:$0xff] }
 0x31c   : > { %7132 = vst.msk [vmem:[#allocation3 + $0x80] sm:$0xff] %vm1443_vm1, %v7027_v34  ;;  %5194 = vst [vmem:[#allocation2 + $0x310] sm:$0xff] %v12550_v56  ;;  %v4983_v54 = vadd.f32 %v4601_v35, %v3581_v55  ;;  %v6916_v9 = vmul.f32 %v12239_v17, %v6804_v37  ;;  %v6700_v63 = vadd.f32 %v6404_v36, %v6066_v38  ;;  %5827 = vrot.lane.b32.xlu1 %v5618_v39, %s10919_s11  ;;  %v12599_v34 = vld [vmem:[#allocation2 + $0x178] sm:$0xff]  ;;  %v10817_v39 = vld [vmem:[#allocation2 + $0x150] sm:$0xff] }
 0x31d   : > { %v5619_v16 = vrot.slane %v12550_v56, 1  ;;  %v4605_v62 = vpop.f32.mrf.mxu0  ;;  %4844 = vmatmul.mubr.bf16.gmra.mxu0 %v4183_v13  ;;  %v5772_v46 = vpop.permute.xlu1 %5771  ;;  %v6408_v58 = vsel %vm4082_vm3, %v6405_v10, %v6407_v25  ;;  %v3586_v56 = vld [vmem:[#allocation2 + $0x340] sm:$0xff]  ;;  %v4186_v38 = vrot.slane %v12584_v27, 2  ;;  %v6410_v59 = vsel %vm4082_vm3, %v6407_v25, %v6409_v57 }
 0x31e   : > { %5195 = vst.msk [vmem:[#allocation2 + $0x318] sm:$0xff] %vm1443_vm1, %v4983_v54  ;;  %v7028_v60 = vadd.f32 %v12254_v52, %v6916_v9  ;;  %v12565_v8 = vadd.f32 %v4605_v62, %v3582_v21  ;;  %v6805_v43 = vmax.f32 %v6700_v63, 0.0  ;;  %4853 = vmatprep.mubr.bf16.mxu0 %v10917_v2  ;;  %v6067_v4 = vadd.f32 %v10815_v6, %v5772_v46  ;;  %v3587_v63 = vld [vmem:[#allocation2 + $0x348] sm:$0xff] }
 0x31f   : > { %v7235_v61 = vld [vmem:[#allocation3 + $0x70] ss:$2 sm:$0xff]  ;;  %v7341_v18 = vld [vmem:[#allocation3 + $0x71] ss:$2 sm:$0xff]  ;;  %v4607_v14 = vpop.f32.mrf.mxu0  ;;  %v5620_v11 = vsel %vm5521_vm4, %v5617_v0, %v5619_v16  ;;  %v6411_v62 = vrot.slane %v12599_v34, 2 }
 0x320   : > { %v7439_v3 = vadd.f32 %v7341_v18, %v7235_v61  ;;  %7133 = vst.msk [vmem:[#allocation3 + $0x88] sm:$0xff] %vm1443_vm1, %v7028_v60  ;;  %5196 = vst [vmem:[#allocation2 + $0x320] sm:$0xff] %v12565_v8  ;;  %v4985_v30 = vadd.f32 %v4607_v14, %v3583_v12  ;;  %v6917_v53 = vmul.f32 %v12239_v17, %v6805_v43  ;;  %5829 = vrot.lane.b32.xlu0 %v5620_v11, %s10919_s11  ;;  %v3588_v61 = vld [vmem:[#allocation2 + $0x350] sm:$0xff] }
 0x321   : > { %v6701_v22 = vadd.f32 %v6406_v24, %v6067_v4  ;;  %v4609_v51 = vpop.f32.mrf.mxu0  ;;  %v5774_v7 = vpop.permute.xlu0 %5773  ;;  %v5621_v23 = vrot.slane %v12565_v8, 1  ;;  %v12615_v8 = vld [vmem:[%s13983_s4] ss:$0 sm:$0xff]  ;;  %v12619_v4 = vld [vmem:[#allocation2 + $0x188] sm:$0xff]  ;;  %v4187_v12 = vsel %vm4082_vm3, %v4184_v20, %v4186_v38 }
 0x322   : > { %v7560_v45 = vld [vmem:[#allocation4 + $0x2d] sm:$0xff]  ;;  %7492 = vst.msk [vmem:[#allocation4 + $0x38] sm:$0xff] %vm1443_vm1, %v7439_v3  ;;  %5197 = vst.msk [vmem:[#allocation2 + $0x328] sm:$0xff] %vm1443_vm1, %v4985_v30  ;;  %v7029_v41 = vadd.f32 %v12254_v52, %v6917_v53  ;;  %v12589_v44 = vadd.f32 %v4609_v51, %v3584_v1  ;;  %v6068_v26 = vadd.f32 %v10816_v50, %v5774_v7  ;;  %v12634_v3 = vld [vmem:[%s13984_s5] ss:$0 sm:$0xff] }
 0x323   : > { %v6806_v47 = vmax.f32 %v6701_v22, 0.0  ;;  %v4611_v33 = vpop.f32.mrf.mxu0  ;;  %v5622_v49 = vsel %vm5521_vm4, %v5619_v16, %v5621_v23  ;;  %v7562_v29 = vadd.f32 %v7560_v45, %v7558_v40  ;;  %v10820_v53 = vld [vmem:[#allocation2 + $0x160] sm:$0xff]  ;;  %v7559_v1 = vld [vmem:[#allocation4 + $0x26] sm:$0x3f]  ;;  %v3589_v51 = vld [vmem:[#allocation2 + $0x358] sm:$0xff]  ;;  %v6412_v7 = vsel %vm4082_vm3, %v6409_v57, %v6411_v62 }
 0x324   : > { %7134 = vst.msk [vmem:[#allocation3 + $0x90] sm:$0xff] %vm1443_vm1, %v7029_v41  ;;  %5198 = vst [vmem:[#allocation2 + $0x330] sm:$0xff] %v12589_v44  ;;  %v4987_v48 = vadd.f32 %v4611_v33, %v3585_v15  ;;  %v6702_v42 = vadd.f32 %v6408_v58, %v6068_v26  ;;  %5831 = vrot.lane.b32.xlu1 %v5622_v49, %s10919_s11  ;;  %v5623_v0 = vrot.slane %v12589_v44, 1  ;;  %v6413_v45 = vrot.slane %v12619_v4, 2  ;;  %v3590_v40 = vld [vmem:[#allocation2 + $0x360] sm:$0xff] }
 0x325   : > { %v6918_v13 = vmul.f32 %v12239_v17, %v6806_v47  ;;  %v4615_v37 = vpop.f32.mrf.mxu0  ;;  %4854 = vmatmul.mubr.bf16.gmra.mxu0 %v4185_v31  ;;  %v5776_v5 = vpop.permute.xlu1 %5775  ;;  %v7564_v55 = vmul.f32 0.25, %v7562_v29  ;;  %v6415_v58 = vrot.slane %v12639_v32, 2  ;;  %v10822_v4 = vld [vmem:[#allocation2 + $0x180] sm:$0xff] }
 0x326   : > { %5199 = vst.msk [vmem:[#allocation2 + $0x338] sm:$0xff] %vm1443_vm1, %v4987_v48  ;;  %v12604_v17 = vadd.f32 %v4615_v37, %v3586_v56  ;;  %v6807_v36 = vmax.f32 %v6702_v42, 0.0  ;;  %4863 = vmatprep.mubr.bf16.mxu0 %v10917_v2  ;;  %v6069_v10 = vadd.f32 %v10817_v39, %v5776_v5  ;;  %v5624_v21 = vsel %vm5521_vm4, %v5621_v23, %v5623_v0  ;;  %v3591_v56 = vld [vmem:[#allocation2 + $0x368] sm:$0xff] }
 0x327   : > { %v7030_v35 = vadd.f32 %v12254_v52, %v6918_v13  ;;  %v7237_v54 = vld [vmem:[#allocation3 + $0x80] ss:$2 sm:$0xff]  ;;  %v7343_v9 = vld [vmem:[#allocation3 + $0x81] ss:$2 sm:$0xff]  ;;  %v4617_v16 = vpop.f32.mrf.mxu0  ;;  %v10211_v46 = vpack.c.bf16 %v7564_v55, %v7564_v55  ;;  %5833 = vrot.lane.b32.xlu0 %v5624_v21, %s10919_s11  ;;  %v10821_v13 = vld [vmem:[#allocation2 + $0x170] sm:$0xff]  ;;  %v6414_v5 = vsel %vm4082_vm3, %v6411_v62, %v6413_v45  ;;  %v6416_v21 = vsel %vm4082_vm3, %v6413_v45, %v6415_v58 }
 0x328   : > { %v7440_v60 = vadd.f32 %v7343_v9, %v7237_v54  ;;  %5200 = vst [vmem:[#allocation2 + $0x340] sm:$0xff] %v12604_v17  ;;  %v4989_v52 = vadd.f32 %v4617_v16, %v3587_v63  ;;  %v6919_v43 = vmul.f32 %v12615_v8, %v6807_v36  ;;  %v6703_v6 = vadd.f32 %v6410_v59, %v6069_v10  ;;  %v12663_v54 = vld [vmem:[#allocation2 + $0x1a8] sm:$0xff]  ;;  %v3592_v63 = vld [vmem:[#allocation2 + $0x370] sm:$0xff] }
 0x329   : > { %7135 = vst.msk [vmem:[#allocation3 + $0x98] sm:$0xff] %vm1443_vm1, %v7030_v35  ;;  %v4619_v18 = vpop.f32.mrf.mxu0  ;;  %v5778_v14 = vpop.permute.xlu0 %5777  ;;  %v5625_v24 = vrot.slane %v12604_v17, 1  ;;  %v12627_v11 = vrot.slane %v10211_v46, 5  ;;  %v7561_v25 = vld [vmem:[#allocation4 + $0x35] sm:$0x3f] }
 0x32a   : > { %7493 = vst.msk [vmem:[#allocation4 + $0x40] sm:$0xff] %vm1443_vm1, %v7440_v60  ;;  %5201 = vst.msk [vmem:[#allocation2 + $0x348] sm:$0xff] %vm1443_vm1, %v4989_v52  ;;  %v7031_v30 = vadd.f32 %v12634_v3, %v6919_v43  ;;  %v12637_v28 = vadd.f32 %v4619_v18, %v3588_v61  ;;  %v6808_v20 = vmax.f32 %v6703_v6, 0.0  ;;  %v6070_v22 = vadd.f32 %v10820_v53, %v5778_v14 }
 0x32b   : > { %v4621_v31 = vpop.f32.mrf.mxu0  ;;  %v5626_v23 = vsel %vm5521_vm4, %v5623_v0, %v5625_v24  ;;  %7584 = vst.msk [vmem:[#allocation5 + $0x4] sm:$0x8] %vm7583_vm8, %v12627_v11  ;;  %v7563_v41 = vadd.f32 %v7561_v25, %v7559_v1  ;;  %v7576_v46 = vrot.slane %v12627_v11, 4  ;;  %v6417_v25 = vrot.slane %v12663_v54, 2  ;;  %v12691_v1 = vld [vmem:[#allocation2 + $0x1b8] sm:$0xff] }
 0x32c   : > { %7136 = vst.msk [vmem:[#allocation3 + $0xa0] sm:$0xff] %vm1443_vm1, %v7031_v30  ;;  %5202 = vst [vmem:[#allocation2 + $0x350] sm:$0xff] %v12637_v28  ;;  %v4991_v44 = vadd.f32 %v4621_v31, %v3589_v51  ;;  %v6920_v47 = vmul.f32 %v12615_v8, %v6808_v20  ;;  %v6704_v50 = vadd.f32 %v6412_v7, %v6070_v22  ;;  %5835 = vrot.lane.b32.xlu1 %v5626_v23, %s10919_s11  ;;  %v3594_v51 = vld [vmem:[#allocation2 + $0x380] sm:$0xff] }
 0x32d   : > { %v5627_v26 = vrot.slane %v12637_v28, 1  ;;  %v4625_v15 = vpop.f32.mrf.mxu0  ;;  %4864 = vmatmul.mubr.bf16.gmra.mxu0 %v4187_v12  ;;  %v5780_v33 = vpop.permute.xlu1 %5779  ;;  %v7565_v49 = vmul.f32 0.25, %v7563_v41  ;;  %v3593_v12 = vld [vmem:[#allocation2 + $0x378] sm:$0xff]  ;;  %v6418_v27 = vsel %vm4082_vm3, %v6415_v58, %v6417_v25 }
 0x32e   : > { %5203 = vst.msk [vmem:[#allocation2 + $0x358] sm:$0xff] %vm1443_vm1, %v4991_v44  ;;  %v7032_v57 = vadd.f32 %v12634_v3, %v6920_v47  ;;  %v12654_v29 = vadd.f32 %v4625_v15, %v3590_v40  ;;  %v6809_v48 = vmax.f32 %v6704_v50, 0.0  ;;  %4873 = vmatprep.mubr.bf16.mxu0 %v10917_v2  ;;  %v6071_v42 = vadd.f32 %v10821_v13, %v5780_v33  ;;  %v10823_v44 = vld [vmem:[#allocation2 + $0x190] sm:$0xff]  ;;  %v3595_v40 = vld [vmem:[#allocation2 + $0x388] sm:$0xff] }
 0x32f   : > { %v4627_v37 = vpop.f32.mrf.mxu0  ;;  %v5628_v55 = vsel %vm5521_vm4, %v5625_v24, %v5627_v26  ;;  %v10212_v35 = vpack.c.bf16 %v7565_v49, %v7565_v49  ;;  %v6419_v33 = vrot.slane %v12691_v1, 2  ;;  %v12709_v13 = vld [vmem:[#allocation2 + $0x1c8] sm:$0xff] }
 0x330   : > { %v7239_v0 = vld [vmem:[#allocation3 + $0x90] ss:$2 sm:$0xff]  ;;  %v7345_v34 = vld [vmem:[#allocation3 + $0x91] ss:$2 sm:$0xff]  ;;  %7137 = vst.msk [vmem:[#allocation3 + $0xa8] sm:$0xff] %vm1443_vm1, %v7032_v57  ;;  %5204 = vst [vmem:[#allocation2 + $0x360] sm:$0xff] %v12654_v29  ;;  %v4993_v36 = vadd.f32 %v4627_v37, %v3591_v56  ;;  %v6921_v39 = vmul.f32 %v12615_v8, %v6809_v48  ;;  %v6705_v10 = vadd.f32 %v6414_v5, %v6071_v42  ;;  %5837 = vrot.lane.b32.xlu0 %v5628_v55, %s10919_s11 }
 0x331   : > { %v7441_v17 = vadd.f32 %v7345_v34, %v7239_v0  ;;  %v4629_v16 = vpop.f32.mrf.mxu0  ;;  %v5782_v59 = vpop.permute.xlu0 %5781  ;;  %v5629_v62 = vrot.slane %v12654_v29, 1  ;;  %v7577_v60 = vrot.slane %v10212_v35, 5  ;;  %v3596_v42 = vld [vmem:[#allocation2 + $0x390] sm:$0xff]  ;;  %v10824_v5 = vld [vmem:[#allocation2 + $0x1a0] sm:$0xff]  ;;  %v3597_v35 = vld [vmem:[#allocation2 + $0x398] sm:$0xff] }
 0x332   : > { %5205 = vst.msk [vmem:[#allocation2 + $0x368] sm:$0xff] %vm1443_vm1, %v4993_v36  ;;  %v7033_v52 = vadd.f32 %v12634_v3, %v6921_v39  ;;  %v12679_v43 = vadd.f32 %v4629_v16, %v3592_v63  ;;  %v6810_v6 = vmax.f32 %v6705_v10, 0.0  ;;  %v6072_v61 = vadd.f32 %v10822_v4, %v5782_v59  ;;  %v10744_v18 = vld [vmem:[#allocation5] sm:$0xff]   ;;  %v12733_v1 = vld [vmem:[#allocation2 + $0x1e8] sm:$0xff] }
 0x333   : > { %7494 = vst.msk [vmem:[#allocation4 + $0x48] sm:$0xff] %vm1443_vm1, %v7441_v17  ;;  %v4631_v14 = vpop.f32.mrf.mxu0  ;;  %v5630_v24 = vsel %vm5521_vm4, %v5627_v26, %v5629_v62  ;;  %v7578_v11 = vsel %vm12667_vm11, %v7576_v46, %v7577_v60  ;;  %v7579_v30 = vrot.slane %v7577_v60, 4  ;;  %10307 = vmatmul.mubr.msk.bf16.vlgmr.msra.gmra.mxu1 %vm1443_vm1, %v10744_v18  ;;  %v6420_v36 = vsel %vm4082_vm3, %v6417_v25, %v6419_v33  ;;  %v10825_v4 = vld [vmem:[#allocation2 + $0x1b0] sm:$0xff] }
 0x334   : > { %7138 = vst.msk [vmem:[#allocation3 + $0xb0] sm:$0xff] %vm1443_vm1, %v7033_v52  ;;  %5206 = vst [vmem:[#allocation2 + $0x370] sm:$0xff] %v12679_v43  ;;  %v4995_v28 = vadd.f32 %v4631_v14, %v3593_v12  ;;  %v6922_v20 = vmul.f32 %v12615_v8, %v6810_v6  ;;  %v6706_v53 = vadd.f32 %v6416_v21, %v6072_v61  ;;  %5839 = vrot.lane.b32.xlu1 %v5630_v24, %s10919_s11  ;;  %v12720_v21 = vld [vmem:[#allocation2 + $0x1d8] sm:$0xff]  ;;  %v3599_v14 = vld [vmem:[#allocation2 + $0x3a8] sm:$0xff] }
 0x335   : > { %v5631_v22 = vrot.slane %v12679_v43, 1  ;;  %7585 = vst.msk [vmem:[#allocation5 + $0x8] sm:$0xf] %vm7537_vm6, %v7578_v11  ;;  %v4635_v31 = vpop.f32.mrf.mxu0  ;;  %4874 = vmatmul.mubr.bf16.gmra.mxu0 %v4186_v38  ;;  %v5784_v7 = vpop.permute.xlu1 %5783  ;;  %10310 = vmatprep.mubr.msk.bf16.mxu1 %vm10920_vm5, %v10918_v19  ;;  %v6421_v10 = vrot.slane %v12709_v13, 2 }
 0x336   : > { %7586 = vst.msk [vmem:[#allocation5 + $0xc] sm:$0x3] %vm1654_vm2, %v7579_v30  ;;  %v7034_v23 = vadd.f32 %v12634_v3, %v6922_v20  ;;  %v4996_v45 = vadd.f32 %v4635_v31, %v3594_v51  ;;  %v6811_v41 = vmax.f32 %v6706_v53, 0.0  ;;  %v6073_v47 = vadd.f32 %v10823_v44, %v5784_v7  ;;  %v3600_v51 = vld [vmem:[#allocation2 + $0x3b0] sm:$0xff] }
 0x337   : > { %5207 = vst.msk [vmem:[#allocation2 + $0x378] sm:$0xff] %vm1443_vm1, %v4995_v28  ;;  %v7241_v50 = vld [vmem:[#allocation3 + $0xa0] ss:$2 sm:$0xff]  ;;  %v7347_v26 = vld [vmem:[#allocation3 + $0xa1] ss:$2 sm:$0xff]  ;;  %v4637_v15 = vpop.f32.mrf.mxu0  ;;  %v5632_v38 = vsel %vm5521_vm4, %v5629_v62, %v5631_v22  ;;  %v6422_v25 = vsel %vm4082_vm3, %v6419_v33, %v6421_v10  ;;  %v6423_v30 = vrot.slane %v12720_v21, 2 }
 0x338   : > { %v7442_v49 = vadd.f32 %v7347_v26, %v7241_v50  ;;  %7139 = vst.msk [vmem:[#allocation3 + $0xb8] sm:$0xff] %vm1443_vm1, %v7034_v23  ;;  %5208 = vst [vmem:[#allocation2 + $0x380] sm:$0xff] %v4996_v45  ;;  %v4997_v57 = vadd.f32 %v4637_v15, %v3595_v40  ;;  %v6923_v29 = vmul.f32 %v12615_v8, %v6811_v41  ;;  %5841 = vrot.lane.b32.xlu0 %v5632_v38, %s10919_s11  ;;  %v3598_v62 = vld [vmem:[#allocation2 + $0x3a0] sm:$0xff]  ;;  %v3601_v15 = vld [vmem:[#allocation2 + $0x3b8] sm:$0xff] }
 0x339   : > { %v6707_v48 = vadd.f32 %v6418_v27, %v6073_v47  ;;  %v4639_v32 = vpop.f32.mrf.mxu0  ;;  %v5786_v0 = vpop.permute.xlu0 %5785  ;;  %v5633_v58 = vrot.slane %v4996_v45, 1  ;;  %v10826_v50 = vld [vmem:[#allocation2 + $0x1c0] sm:$0xff]  ;;  %v6424_v38 = vsel %vm4082_vm3, %v6421_v10, %v6423_v30  ;;  %v3603_v10 = vld [vmem:[#allocation2 + $0x3c8] sm:$0xff] }
 0x33a   : > { %7495 = vst.msk [vmem:[#allocation4 + $0x50] sm:$0xff] %vm1443_vm1, %v7442_v49  ;;  %5209 = vst.msk [vmem:[#allocation2 + $0x388] sm:$0xff] %vm1443_vm1, %v4997_v57  ;;  %v7035_v34 = vadd.f32 %v12634_v3, %v6923_v29  ;;  %v4998_v56 = vadd.f32 %v4639_v32, %v3596_v42  ;;  %v6074_v55 = vadd.f32 %v10824_v5, %v5786_v0  ;;  %v7587_v40 = vld [vmem:[#allocation4 + $0x3c] sm:$0xff]  ;;  %v6425_v49 = vrot.slane %v12733_v1, 2  ;;  %v12749_v32 = vld [vmem:[#allocation2 + $0x1f8] sm:$0xff] }
 0x33b   : > { %v6812_v37 = vmax.f32 %v6707_v48, 0.0  ;;  %v4641_v17 = vpop.f32.mrf.mxu0  ;;  %v5634_v39 = vsel %vm5521_vm4, %v5631_v22, %v5633_v58  ;;  %v3602_v0 = vld [vmem:[#allocation2 + $0x3c0] sm:$0xff] }
 0x33c   : > { %7140 = vst.msk [vmem:[#allocation3 + $0xc0] sm:$0xff] %vm1443_vm1, %v7035_v34  ;;  %5210 = vst [vmem:[#allocation2 + $0x390] sm:$0xff] %v4998_v56  ;;  %v4999_v54 = vadd.f32 %v4641_v17, %v3597_v35  ;;  %v6708_v16 = vadd.f32 %v6420_v36, %v6074_v55  ;;  %5843 = vrot.lane.b32.xlu1 %v5634_v39, %s10919_s11  ;;  %v5635_v59 = vrot.slane %v4998_v56, 1  ;;  %v10827_v35 = vld [vmem:[#allocation2 + $0x1d0] sm:$0xff] }
 0x33d   : > { %v6924_v63 = vmul.f32 %v12615_v8, %v6812_v37  ;;  %v4645_v46 = vpop.f32.mrf.mxu0  ;;  %v5788_v60 = vpop.permute.xlu1 %5787 }
 0x33e   : > { %5211 = vst.msk [vmem:[#allocation2 + $0x398] sm:$0xff] %vm1443_vm1, %v4999_v54  ;;  %v12724_v43 = vadd.f32 %v4645_v46, %v3598_v62  ;;  %v6813_v6 = vmax.f32 %v6708_v16, 0.0  ;;  %v6075_v61 = vadd.f32 %v10825_v4, %v5788_v60  ;;  %v5636_v11 = vsel %vm5521_vm4, %v5633_v58, %v5635_v59 }
 0x33f   : > { %v7036_v52 = vadd.f32 %v12634_v3, %v6924_v63  ;;  %v7243_v18 = vld [vmem:[#allocation3 + $0xb0] ss:$2 sm:$0xff]  ;;  %v7349_v12 = vld [vmem:[#allocation3 + $0xb1] ss:$2 sm:$0xff]  ;;  %v4647_v24 = vpop.f32.mrf.mxu0  ;;  %5845 = vrot.lane.b32.xlu0 %v5636_v11, %s10919_s11  ;;  %v6426_v63 = vsel %vm4082_vm3, %v6423_v30, %v6425_v49  ;;  %v10828_v30 = vld [vmem:[#allocation2 + $0x1e0] sm:$0xff] }
 0x340   : > { %v7443_v28 = vadd.f32 %v7349_v12, %v7243_v18  ;;  %5212 = vst [vmem:[#allocation2 + $0x3a0] sm:$0xff] %v12724_v43  ;;  %v5001_v20 = vadd.f32 %v4647_v24, %v3599_v14  ;;  %v6925_v53 = vmul.f32 %v12615_v8, %v6813_v6  ;;  %v6709_v22 = vadd.f32 %v6422_v25, %v6075_v61  ;;  %v3604_v6 = vld [vmem:[#allocation2 + $0x3d0] sm:$0xff] }
 0x341   : > { %7141 = vst.msk [vmem:[#allocation3 + $0xc8] sm:$0xff] %vm1443_vm1, %v7036_v52  ;;  %v4649_v31 = vpop.f32.mrf.mxu0  ;;  %v5790_v7 = vpop.permute.xlu0 %5789  ;;  %v5637_v23 = vrot.slane %v12724_v43, 1  ;;  %v7589_v45 = vld [vmem:[#allocation4 + $0x4b] sm:$0xff]  ;;  %v12762_v43 = vld [vmem:[#allocation2 + $0x208] sm:$0xff] }
 0x342   : > { %7496 = vst.msk [vmem:[#allocation4 + $0x58] sm:$0xff] %vm1443_vm1, %v7443_v28  ;;  %5213 = vst.msk [vmem:[#allocation2 + $0x3a8] sm:$0xff] %vm1443_vm1, %v5001_v20  ;;  %v7037_v41 = vadd.f32 %v12634_v3, %v6925_v53  ;;  %v12739_v44 = vadd.f32 %v4649_v31, %v3600_v51  ;;  %v6814_v47 = vmax.f32 %v6709_v22, 0.0  ;;  %v6076_v26 = vadd.f32 %v10826_v50, %v5790_v7  ;;  %v7588_v20 = vld [vmem:[#allocation4 + $0x44] sm:$0x3f]  ;;  %v3605_v53 = vld [vmem:[#allocation2 + $0x3d8] sm:$0xff] }
 0x343   : > { %v4651_v27 = vpop.f32.mrf.mxu0  ;;  %v5638_v33 = vsel %vm5521_vm4, %v5635_v59, %v5637_v23  ;;  %v7591_v57 = vadd.f32 %v7589_v45, %v7587_v40  ;;  %v6427_v59 = vrot.slane %v12749_v32, 2  ;;  %v6429_v31 = vrot.slane %v12762_v43, 2  ;;  %v3606_v50 = vld [vmem:[#allocation2 + $0x3e0] sm:$0xff] }
 0x344   : > { %7142 = vst.msk [vmem:[#allocation3 + $0xd0] sm:$0xff] %vm1443_vm1, %v7037_v41  ;;  %5214 = vst [vmem:[#allocation2 + $0x3b0] sm:$0xff] %v12739_v44  ;;  %v5003_v29 = vadd.f32 %v4651_v27, %v3601_v15  ;;  %v6926_v48 = vmul.f32 %v12615_v8, %v6814_v47  ;;  %v6710_v13 = vadd.f32 %v6424_v38, %v6076_v26  ;;  %5847 = vrot.lane.b32.xlu1 %v5638_v33, %s10919_s11  ;;  %v12782_v47 = vld [vmem:[#allocation2 + $0x218] sm:$0xff]  ;;  %v3607_v33 = vld [vmem:[#allocation2 + $0x3e8] sm:$0xff] }
 0x345   : > { %v5639_v42 = vrot.slane %v12739_v44, 1  ;;  %v4655_v58 = vpop.f32.mrf.mxu0  ;;  %v5792_v34 = vpop.permute.xlu1 %5791  ;;  %v7593_v56 = vmul.f32 0.25, %v7591_v57  ;;  %v6428_v1 = vsel %vm4082_vm3, %v6425_v49, %v6427_v59  ;;  %v10829_v57 = vld [vmem:[#allocation2 + $0x1f0] sm:$0xff]  ;;  %v6430_v32 = vsel %vm4082_vm3, %v6427_v59, %v6429_v31 }
 0x346   : > { %5215 = vst.msk [vmem:[#allocation2 + $0x3b8] sm:$0xff] %vm1443_vm1, %v5003_v29  ;;  %v7038_v37 = vadd.f32 %v12634_v3, %v6926_v48  ;;  %v12753_v5 = vadd.f32 %v4655_v58, %v3602_v0  ;;  %v6815_v55 = vmax.f32 %v6710_v13, 0.0  ;;  %v6077_v17 = vadd.f32 %v10827_v35, %v5792_v34  ;;  %v12793_v34 = vld [vmem:[#allocation2 + $0x228] sm:$0xff] }
 0x347   : > { %v4657_v54 = vpop.f32.mrf.mxu0  ;;  %v5640_v16 = vsel %vm5521_vm4, %v5637_v23, %v5639_v42  ;;  %v10213_v21 = vpack.c.bf16 %v7593_v56, %v7593_v56  ;;  %v6431_v58 = vrot.slane %v12782_v47, 2  ;;  %v10831_v47 = vld [vmem:[#allocation2 + $0x210] sm:$0xff] }
 0x348   : > { %v7245_v36 = vld [vmem:[#allocation3 + $0xc0] ss:$2 sm:$0xff]  ;;  %v7351_v39 = vld [vmem:[#allocation3 + $0xc1] ss:$2 sm:$0xff]  ;;  %7143 = vst.msk [vmem:[#allocation3 + $0xd8] sm:$0xff] %vm1443_vm1, %v7038_v37  ;;  %5216 = vst [vmem:[#allocation2 + $0x3c0] sm:$0xff] %v12753_v5  ;;  %v5005_v46 = vadd.f32 %v4657_v54, %v3603_v10  ;;  %v6927_v60 = vmul.f32 %v12615_v8, %v6815_v55  ;;  %v6711_v52 = vadd.f32 %v6426_v63, %v6077_v17  ;;  %5849 = vrot.lane.b32.xlu0 %v5640_v16, %s10919_s11 }
 0x349   : > { %v7444_v62 = vadd.f32 %v7351_v39, %v7245_v36  ;;  %v4659_v4 = vpop.f32.mrf.mxu0  ;;  %v5794_v61 = vpop.permute.xlu0 %5793  ;;  %v5641_v18 = vrot.slane %v12753_v5, 1  ;;  %v12765_v12 = vrot.slane %v10213_v21, 6  ;;  %v7590_v14 = vld [vmem:[#allocation4 + $0x53] sm:$0x3f]  ;;  %v3608_v36 = vld [vmem:[#allocation2 + $0x3f0] sm:$0xff] }
 0x34a   : > { %5217 = vst.msk [vmem:[#allocation2 + $0x3c8] sm:$0xff] %vm1443_vm1, %v5005_v46  ;;  %v7039_v24 = vadd.f32 %v12634_v3, %v6927_v60  ;;  %v12770_v25 = vadd.f32 %v4659_v4, %v3604_v6  ;;  %v6816_v11 = vmax.f32 %v6711_v52, 0.0  ;;  %v6078_v28 = vadd.f32 %v10828_v30, %v5794_v61  ;;  %v3609_v52 = vld [vmem:[#allocation2 + $0x3f8] sm:$0xff]  ;;  %v10830_v4 = vld [vmem:[#allocation2 + $0x200] sm:$0xff] }
 0x34b   : > { %7497 = vst.msk [vmem:[#allocation4 + $0x60] sm:$0xff] %vm1443_vm1, %v7444_v62  ;;  %v4661_v22 = vpop.f32.mrf.mxu0  ;;  %v5642_v51 = vsel %vm5521_vm4, %v5639_v42, %v5641_v18  ;;  %v7592_v7 = vadd.f32 %v7590_v14, %v7588_v20  ;;  %v7605_v54 = vrot.slane %v12765_v12, 4  ;;  %v6433_v60 = vrot.slane %v12793_v34, 2 }
 0x34c   : > { %7613 = vst.msk [vmem:[#allocation5 + $0xc] sm:$0xc] %vm7612_vm12, %v12765_v12  ;;  %5218 = vst [vmem:[#allocation2 + $0x3d0] sm:$0xff] %v12770_v25  ;;  %v5007_v23 = vadd.f32 %v4661_v22, %v3605_v53  ;;  %v6928_v45 = vmul.f32 %v12615_v8, %v6816_v11  ;;  %v6712_v41 = vadd.f32 %v6428_v1, %v6078_v28  ;;  %5851 = vrot.lane.b32.xlu1 %v5642_v51, %s10919_s11  ;;  %v3610_v28 = vld [vmem:[#allocation2 + $0x400] sm:$0xff]  ;;  %v12822_v22 = vld [vmem:[#allocation2 + $0x238] sm:$0xff] }
 0x34d   : > { %7144 = vst.msk [vmem:[#allocation3 + $0xe0] sm:$0xff] %vm1443_vm1, %v7039_v24  ;;  %v5643_v44 = vrot.slane %v12770_v25, 1  ;;  %v4665_v26 = vpop.f32.mrf.mxu0  ;;  %v5796_v40 = vpop.permute.xlu1 %5795  ;;  %v7594_v15 = vmul.f32 0.25, %v7592_v7  ;;  %v6432_v11 = vsel %vm4082_vm3, %v6429_v31, %v6431_v58 }
 0x34e   : > { %5219 = vst.msk [vmem:[#allocation2 + $0x3d8] sm:$0xff] %vm1443_vm1, %v5007_v23  ;;  %v7040_v27 = vadd.f32 %v12634_v3, %v6928_v45  ;;  %v12786_v38 = vadd.f32 %v4665_v26, %v3606_v50  ;;  %v6817_v49 = vmax.f32 %v6712_v41, 0.0  ;;  %v6079_v29 = vadd.f32 %v10829_v57, %v5796_v40  ;;  %v3611_v45 = vld [vmem:[#allocation2 + $0x408] sm:$0xff] }
 0x34f   : > { %v7247_v48 = vld [vmem:[#allocation3 + $0xd0] ss:$2 sm:$0xff]  ;;  %v7353_v13 = vld [vmem:[#allocation3 + $0xd1] ss:$2 sm:$0xff]  ;;  %v4667_v42 = vpop.f32.mrf.mxu0  ;;  %v5644_v0 = vsel %vm5521_vm4, %v5641_v18, %v5643_v44  ;;  %v10214_v56 = vpack.c.bf16 %v7594_v15, %v7594_v15  ;;  %v6434_v26 = vsel %vm4082_vm3, %v6431_v58, %v6433_v60 }
 0x350   : > { %v7445_v37 = vadd.f32 %v7353_v13, %v7247_v48  ;;  %7145 = vst.msk [vmem:[#allocation3 + $0xe8] sm:$0xff] %vm1443_vm1, %v7040_v27  ;;  %5220 = vst [vmem:[#allocation2 + $0x3e0] sm:$0xff] %v12786_v38  ;;  %v5009_v5 = vadd.f32 %v4667_v42, %v3607_v33  ;;  %v6929_v55 = vmul.f32 %v12615_v8, %v6817_v49  ;;  %5853 = vrot.lane.b32.xlu0 %v5644_v0, %s10919_s11  ;;  %v3612_v49 = vld [vmem:[#allocation2 + $0x410] sm:$0xff]  ;;  %v6189_v48 = vld [vmem:[#allocation2 + $0x248] sm:$0xff] }
 0x351   : > { %v6713_v35 = vadd.f32 %v6430_v32, %v6079_v29  ;;  %v4669_v39 = vpop.f32.mrf.mxu0  ;;  %v5645_v10 = vrot.slane %v12786_v38, 1  ;;  %v7606_v63 = vrot.slane %v10214_v56, 6  ;;  %v6435_v27 = vrot.slane %v12822_v22, 2  ;;  %v12840_v0 = vld [vmem:[#allocation2 + $0x258] sm:$0xff] }
 0x352   : > { %7498 = vst.msk [vmem:[#allocation4 + $0x68] sm:$0xff] %vm1443_vm1, %v7445_v37  ;;  %5221 = vst.msk [vmem:[#allocation2 + $0x3e8] sm:$0xff] %vm1443_vm1, %v5009_v5  ;;  %v7041_v16 = vadd.f32 %v12634_v3, %v6929_v55  ;;  %v5010_v59 = vadd.f32 %v4669_v39, %v3608_v36  ;;  %v5798_v62 = vpop.permute.xlu0 %5797  ;;  %v3613_v56 = vld [vmem:[#allocation2 + $0x418] sm:$0xff]  ;;  %v10832_v55 = vld [vmem:[#allocation2 + $0x220] sm:$0xff] }
 0x353   : > { %v6818_v21 = vmax.f32 %v6713_v35, 0.0  ;;  %v10745_v46 = vld [vmem:[#allocation5 + $0x8] sm:$0xff]   ;;  %v4671_v6 = vpop.f32.mrf.mxu0  ;;  %v6080_v61 = vadd.f32 %v10830_v4, %v5798_v62  ;;  %v5646_v18 = vsel %vm5521_vm4, %v5643_v44, %v5645_v10  ;;  %v7607_v12 = vsel %vm12801_vm15, %v7605_v54, %v7606_v63  ;;  %v7617_v22 = vld [vmem:[#allocation4 + $0x5a] sm:$0xff] }
 0x354   : > { %v7608_v14 = vrot.slane %v7606_v63, 4  ;;  %7146 = vst.msk [vmem:[#allocation3 + $0xf0] sm:$0xff] %vm1443_vm1, %v7041_v16  ;;  %5222 = vst [vmem:[#allocation2 + $0x3f0] sm:$0xff] %v5010_v59  ;;  %v5011_v24 = vadd.f32 %v4671_v6, %v3609_v52  ;;  %5855 = vrot.lane.b32.xlu1 %v5646_v18, %s10919_s11  ;;  %10311 = vmatmul.mubr.msk.bf16.gmra.mxu1 %vm1443_vm1, %v10745_v46  ;;  %v5647_v30 = vrot.slane %v5010_v59, 1  ;;  %v3614_v16 = vld [vmem:[#allocation2 + $0x420] sm:$0xff]  ;;  %v6439_v62 = vrot.slane %v12840_v0, 2 }
 0x355   : > { %v6930_v25 = vmul.f32 %v12615_v8, %v6818_v21  ;;  %7614 = vst.msk [vmem:[#allocation5 + $0x10] sm:$0xf] %vm7537_vm6, %v7607_v12  ;;  %v4675_v20 = vpop.f32.mrf.mxu0  ;;  %v6714_v53 = vadd.f32 %v6432_v11, %v6080_v61  ;;  %10314 = vmatprep.mubr.msk.bf16.mxu1 %vm10920_vm5, %v10918_v19  ;;  %v6436_v39 = vsel %vm4082_vm3, %v6433_v60, %v6435_v27  ;;  %v3615_v61 = vld [vmem:[#allocation2 + $0x428] sm:$0xff] }
 0x356   : > { %7616 = vst.msk [vmem:[#allocation5 + $0x14] sm:$0x1] %vm7615_vm9, %v7608_v14  ;;  %v5012_v1 = vadd.f32 %v4675_v20, %v3610_v28  ;;  %v5800_v51 = vpop.permute.xlu1 %5799  ;;  %v5648_v31 = vsel %vm5521_vm4, %v5645_v10, %v5647_v30  ;;  %v6437_v10 = vrot.slane %v6189_v48, 2  ;;  %v10833_v14 = vld [vmem:[#allocation2 + $0x230] sm:$0xff] }
 0x357   : > { %5223 = vst.msk [vmem:[#allocation2 + $0x3f8] sm:$0xff] %vm1443_vm1, %v5011_v24  ;;  %v7042_v43 = vadd.f32 %v12634_v3, %v6930_v25  ;;  %v7249_v7 = vld [vmem:[#allocation3 + $0xe0] ss:$2 sm:$0xff]  ;;  %v7355_v23 = vld [vmem:[#allocation3 + $0xe1] ss:$2 sm:$0xff]  ;;  %v4677_v41 = vpop.f32.mrf.mxu0  ;;  %v6819_v44 = vmax.f32 %v6714_v53, 0.0  ;;  %v6081_v50 = vadd.f32 %v10831_v47, %v5800_v51  ;;  %5857 = vrot.lane.b32.xlu0 %v5648_v31, %s10919_s11 }
 0x358   : > { %v7446_v40 = vadd.f32 %v7355_v23, %v7249_v7  ;;  %5224 = vst [vmem:[#allocation2 + $0x400] sm:$0xff] %v5012_v1  ;;  %v5013_v15 = vadd.f32 %v4677_v41, %v3611_v45  ;;  %v5649_v38 = vrot.slane %v5012_v1, 1  ;;  %v6438_v28 = vsel %vm4082_vm3, %v6435_v27, %v6437_v10  ;;  %v12855_v53 = vld [vmem:[#allocation2 + $0x268] sm:$0xff] }
 0x359   : > { %7147 = vst.msk [vmem:[#allocation3 + $0xf8] sm:$0xff] %vm1443_vm1, %v7042_v43  ;;  %v6931_v33 = vmul.f32 %v12615_v8, %v6819_v44  ;;  %v4679_v57 = vpop.f32.mrf.mxu0  ;;  %v6715_v29 = vadd.f32 %v6434_v26, %v6081_v50  ;;  %v6440_v31 = vsel %vm4082_vm3, %v6437_v10, %v6439_v62  ;;  %v7618_v23 = vld [vmem:[#allocation4 + $0x62] sm:$0x3f] }
 0x35a   : > { %7499 = vst.msk [vmem:[#allocation4 + $0x70] sm:$0xff] %vm1443_vm1, %v7446_v40  ;;  %5225 = vst.msk [vmem:[#allocation2 + $0x408] sm:$0xff] %vm1443_vm1, %v5013_v15  ;;  %v5014_v13 = vadd.f32 %v4679_v57, %v3612_v49  ;;  %v5802_v42 = vpop.permute.xlu0 %5801  ;;  %v5650_v32 = vsel %vm5521_vm4, %v5647_v30, %v5649_v38  ;;  %v3616_v30 = vld [vmem:[#allocation2 + $0x430] sm:$0xff]  ;;  %v3617_v15 = vld [vmem:[#allocation2 + $0x438] sm:$0xff]  ;;  %v6441_v57 = vrot.slane %v12855_v53, 2 }
 0x35b   : > { %v7043_v58 = vadd.f32 %v12634_v3, %v6931_v33  ;;  %v4681_v37 = vpop.f32.mrf.mxu0  ;;  %v6820_v5 = vmax.f32 %v6715_v29, 0.0  ;;  %v6082_v35 = vadd.f32 %v10832_v55, %v5802_v42  ;;  %5859 = vrot.lane.b32.xlu1 %v5650_v32, %s10919_s11  ;;  %v10834_v33 = vld [vmem:[#allocation2 + $0x240] sm:$0xff] }
 0x35c   : > { %5226 = vst [vmem:[#allocation2 + $0x410] sm:$0xff] %v5014_v13  ;;  %v5015_v36 = vadd.f32 %v4681_v37, %v3613_v56  ;;  %v5651_v54 = vrot.slane %v5014_v13, 1  ;;  %v12868_v13 = vld [vmem:[#allocation2 + $0x278] sm:$0xff]  ;;  %v3618_v56 = vld [vmem:[#allocation2 + $0x440] sm:$0xff] }
 0x35d   : > { %7148 = vst.msk [vmem:[#allocation3 + $0x100] sm:$0xff] %vm1443_vm1, %v7043_v58  ;;  %v6932_v63 = vmul.f32 %v12615_v8, %v6820_v5  ;;  %v4685_v59 = vpop.f32.mrf.mxu0  ;;  %v6716_v21 = vadd.f32 %v6436_v39, %v6082_v35 }
 0x35e   : > { %5227 = vst.msk [vmem:[#allocation2 + $0x418] sm:$0xff] %vm1443_vm1, %v5015_v36  ;;  %v5016_v46 = vadd.f32 %v4685_v59, %v3614_v16  ;;  %v5804_v52 = vpop.permute.xlu1 %5803  ;;  %v5652_v6 = vsel %vm5521_vm4, %v5649_v38, %v5651_v54 }
 0x35f   : > { %v7044_v60 = vadd.f32 %v12634_v3, %v6932_v63  ;;  %v4687_v18 = vpop.f32.mrf.mxu0  ;;  %v6821_v12 = vmax.f32 %v6716_v21, 0.0  ;;  %v6083_v24 = vadd.f32 %v10833_v14, %v5804_v52  ;;  %5861 = vrot.lane.b32.xlu0 %v5652_v6, %s10919_s11  ;;  %v3619_v63 = vld [vmem:[#allocation2 + $0x448] sm:$0xff]  ;;  %v10835_v21 = vld [vmem:[#allocation2 + $0x250] sm:$0xff]  ;;  %v6443_v52 = vrot.slane %v12868_v13, 2 }
 0x360   : > { %v7251_v34 = vld [vmem:[#allocation3 + $0xf0] ss:$2 sm:$0xff]  ;;  %v7357_v4 = vld [vmem:[#allocation3 + $0xf1] ss:$2 sm:$0xff]  ;;  %5228 = vst [vmem:[#allocation2 + $0x420] sm:$0xff] %v5016_v46  ;;  %v5017_v11 = vadd.f32 %v4687_v18, %v3615_v61  ;;  %v5653_v20 = vrot.slane %v5016_v46, 1 }
 0x361   : > { %v7447_v25 = vadd.f32 %v7357_v4, %v7251_v34  ;;  %7149 = vst.msk [vmem:[#allocation3 + $0x108] sm:$0xff] %vm1443_vm1, %v7044_v60  ;;  %v6933_v43 = vmul.f32 %v12615_v8, %v6821_v12  ;;  %v4689_v1 = vpop.f32.mrf.mxu0  ;;  %v6717_v51 = vadd.f32 %v6438_v28, %v6083_v24  ;;  %v7619_v7 = vld [vmem:[#allocation4 + $0x69] sm:$0xff]  ;;  %v7620_v45 = vld [vmem:[#allocation4 + $0x71] sm:$0x3f]  ;;  %v6442_v60 = vsel %vm4082_vm3, %v6439_v62, %v6441_v57 }
 0x362   : > { %5229 = vst.msk [vmem:[#allocation2 + $0x428] sm:$0xff] %vm1443_vm1, %v5017_v11  ;;  %v5018_v41 = vadd.f32 %v4689_v1, %v3616_v30  ;;  %v5806_v44 = vpop.permute.xlu0 %5805  ;;  %v5654_v47 = vsel %vm5521_vm4, %v5651_v54, %v5653_v20  ;;  %v7621_v50 = vadd.f32 %v7619_v7, %v7617_v22  ;;  %v7622_v26 = vadd.f32 %v7620_v45, %v7618_v23  ;;  %v3620_v24 = vld [vmem:[#allocation2 + $0x450] sm:$0xff]  ;;  %v12882_v30 = vld [vmem:[#allocation2 + $0x288] sm:$0xff]  ;;  %v3621_v1 = vld [vmem:[#allocation2 + $0x458] sm:$0xff] }
 0x363   : > { %7500 = vst.msk [vmem:[#allocation4 + $0x78] sm:$0xff] %vm1443_vm1, %v7447_v25  ;;  %v7045_v40 = vadd.f32 %v12634_v3, %v6933_v43  ;;  %v4691_v27 = vpop.f32.mrf.mxu0  ;;  %v6822_v38 = vmax.f32 %v6717_v51, 0.0  ;;  %v6084_v49 = vadd.f32 %v10834_v33, %v5806_v44  ;;  %5863 = vrot.lane.b32.xlu1 %v5654_v47, %s10919_s11  ;;  %v10836_v7 = vld [vmem:[#allocation2 + $0x260] sm:$0xff]  ;;  %v6444_v45 = vsel %vm4082_vm3, %v6441_v57, %v6443_v52 }
 0x364   : > { %5230 = vst [vmem:[#allocation2 + $0x430] sm:$0xff] %v5018_v41  ;;  %v5019_v29 = vadd.f32 %v4691_v27, %v3617_v15  ;;  %v5655_v48 = vrot.slane %v5018_v41, 1  ;;  %v7623_v42 = vmul.f32 0.25, %v7621_v50  ;;  %v7624_v32 = vmul.f32 0.25, %v7622_v26 }
 0x365   : > { %7150 = vst.msk [vmem:[#allocation3 + $0x110] sm:$0xff] %vm1443_vm1, %v7045_v40  ;;  %v6934_v58 = vmul.f32 %v12615_v8, %v6822_v38  ;;  %v4695_v37 = vpop.f32.mrf.mxu0  ;;  %v6718_v5 = vadd.f32 %v6440_v31, %v6084_v49  ;;  %v6445_v44 = vrot.slane %v12882_v30, 2  ;;  %v3622_v40 = vld [vmem:[#allocation2 + $0x460] sm:$0xff]  ;;  %v12902_v38 = vld [vmem:[#allocation2 + $0x298] sm:$0xff] }
 0x366   : > { %5231 = vst.msk [vmem:[#allocation2 + $0x438] sm:$0xff] %vm1443_vm1, %v5019_v29  ;;  %v5020_v55 = vadd.f32 %v4695_v37, %v3618_v56  ;;  %v5808_v35 = vpop.permute.xlu1 %5807  ;;  %v5656_v36 = vsel %vm5521_vm4, %v5653_v20, %v5655_v48  ;;  %v10215_v39 = vpack.c.bf16 %v7623_v42, %v7623_v42  ;;  %v10216_v10 = vpack.c.bf16 %v7624_v32, %v7624_v32  ;;  %v3624_v32 = vld [vmem:[#allocation2 + $0x470] sm:$0xff]  ;;  %v3626_v30 = vld [vmem:[#allocation2 + $0x480] sm:$0xff] }
 0x367   : > { %v7046_v54 = vadd.f32 %v12634_v3, %v6934_v58  ;;  %v4697_v16 = vpop.f32.mrf.mxu0  ;;  %v6823_v59 = vmax.f32 %v6718_v5, 0.0  ;;  %v6085_v46 = vadd.f32 %v10835_v21, %v5808_v35  ;;  %5865 = vrot.lane.b32.xlu0 %v5656_v36, %s10919_s11  ;;  %v10837_v58 = vld [vmem:[#allocation2 + $0x270] sm:$0xff]  ;;  %v6446_v35 = vsel %vm4082_vm3, %v6443_v52, %v6445_v44  ;;  %v12913_v21 = vld [vmem:[#allocation2 + $0x2a8] sm:$0xff] }
 0x368   : > { %v7253_v6 = vld [vmem:[#allocation3 + $0x100] ss:$2 sm:$0xff]  ;;  %v7359_v34 = vld [vmem:[#allocation3 + $0x101] ss:$2 sm:$0xff]  ;;  %5232 = vst [vmem:[#allocation2 + $0x440] sm:$0xff] %v5020_v55  ;;  %v5021_v4 = vadd.f32 %v4697_v16, %v3619_v63  ;;  %v5657_v61 = vrot.slane %v5020_v55, 1 }
 0x369   : > { %v7634_v18 = vrot.slane %v10215_v39, 7  ;;  %v7448_v12 = vadd.f32 %v7359_v34, %v7253_v6  ;;  %7151 = vst.msk [vmem:[#allocation3 + $0x118] sm:$0xff] %vm1443_vm1, %v7046_v54  ;;  %v6935_v14 = vmul.f32 %v12615_v8, %v6823_v59  ;;  %v4699_v25 = vpop.f32.mrf.mxu0  ;;  %v6719_v11 = vadd.f32 %v6442_v60, %v6085_v46  ;;  %v5810_v62 = vpop.permute.xlu0 %5809 }
 0x36a   : > { %5233 = vst.msk [vmem:[#allocation2 + $0x448] sm:$0xff] %vm1443_vm1, %v5021_v4  ;;  %v5022_v0 = vadd.f32 %v4699_v25, %v3620_v24  ;;  %v5658_v20 = vsel %vm5521_vm4, %v5655_v48, %v5657_v61  ;;  %v7636_v22 = vrot.slane %v10216_v10, 7  ;;  %v6086_v23 = vadd.f32 %v10836_v7, %v5810_v62  ;;  %v3623_v48 = vld [vmem:[#allocation2 + $0x468] sm:$0xff]  ;;  %v3625_v4 = vld [vmem:[#allocation2 + $0x478] sm:$0xff] }
 0x36b   : > { %v7635_v53 = vrot.slane %v7634_v18, 4  ;;  %7641 = vst.msk [vmem:[#allocation5 + $0x14] sm:$0xe] %vm7640_vm10, %v7634_v18  ;;  %v7047_v43 = vadd.f32 %v12634_v3, %v6935_v14  ;;  %v4701_v51 = vpop.f32.mrf.mxu0  ;;  %v6824_v31 = vmax.f32 %v6719_v11, 0.0  ;;  %5867 = vrot.lane.b32.xlu1 %v5658_v20, %s10919_s11  ;;  %v6447_v36 = vrot.slane %v12902_v38, 2  ;;  %v10838_v18 = vld [vmem:[#allocation2 + $0x280] sm:$0xff] }
 0x36c   : > { %7501 = vst.msk [vmem:[#allocation4 + $0x80] sm:$0xff] %vm1443_vm1, %v7448_v12  ;;  %5234 = vst [vmem:[#allocation2 + $0x450] sm:$0xff] %v5022_v0  ;;  %v5023_v41 = vadd.f32 %v4701_v51, %v3621_v1  ;;  %v5659_v47 = vrot.slane %v5022_v0, 1  ;;  %v6720_v27 = vadd.f32 %v6444_v45, %v6086_v23  ;;  %v6449_v24 = vrot.slane %v12913_v21, 2  ;;  %v12932_v20 = vld [vmem:[#allocation2 + $0x2b8] sm:$0xff]  ;;  %v10841_v45 = vld [vmem:[#allocation2 + $0x290] sm:$0xff] }
 0x36d   : > { %v7637_v50 = vsel %vm12886_vm0, %v7635_v53, %v7636_v22  ;;  %7152 = vst.msk [vmem:[#allocation3 + $0x120] sm:$0xff] %vm1443_vm1, %v7047_v43  ;;  %v6936_v26 = vmul.f32 %v12615_v8, %v6824_v31  ;;  %v4705_v15 = vpop.f32.mrf.mxu0  ;;  %v6448_v14 = vsel %vm4082_vm3, %v6445_v44, %v6447_v36  ;;  %v12939_v1 = vld [vmem:[%s13984_s5] ss:$0 sm:$0xff]  ;;  %v3627_v31 = vld [vmem:[#allocation2 + $0x488] sm:$0xff] }
 0x36e   : > { %7642 = vst.msk [vmem:[#allocation5 + $0x18] sm:$0xf] %vm7537_vm6, %v7637_v50  ;;  %v5024_v33 = vadd.f32 %v4705_v15, %v3622_v40  ;;  %v5812_v49 = vpop.permute.xlu1 %5811  ;;  %v5660_v57 = vsel %vm5521_vm4, %v5657_v61, %v5659_v47  ;;  %v6825_v42 = vmax.f32 %v6720_v27, 0.0  ;;  %v6451_v40 = vrot.slane %v12932_v20, 2  ;;  %v3630_v21 = vld [vmem:[#allocation2 + $0x4a0] sm:$0xff] }
 0x36f   : > { %5235 = vst.msk [vmem:[#allocation2 + $0x458] sm:$0xff] %vm1443_vm1, %v5023_v41  ;;  %v7048_v29 = vadd.f32 %v12634_v3, %v6936_v26  ;;  %v4707_v13 = vpop.f32.mrf.mxu0  ;;  %v6087_v56 = vadd.f32 %v10837_v58, %v5812_v49  ;;  %5869 = vrot.lane.b32.xlu0 %v5660_v57, %s10919_s11  ;;  %v6450_v26 = vsel %vm4082_vm3, %v6447_v36, %v6449_v24 }
 0x370   : > { %v7255_v37 = vld [vmem:[#allocation3 + $0x110] ss:$2 sm:$0xff]  ;;  %v7361_v5 = vld [vmem:[#allocation3 + $0x111] ss:$2 sm:$0xff]  ;;  %5236 = vst [vmem:[#allocation2 + $0x460] sm:$0xff] %v5024_v33  ;;  %v5025_v55 = vadd.f32 %v4707_v13, %v3623_v48  ;;  %v5661_v39 = vrot.slane %v5024_v33, 1  ;;  %v6937_v54 = vmul.f32 %v12615_v8, %v6825_v42 }
 0x371   : > { %v7449_v10 = vadd.f32 %v7361_v5, %v7255_v37  ;;  %7153 = vst.msk [vmem:[#allocation3 + $0x128] sm:$0xff] %vm1443_vm1, %v7048_v29  ;;  %v4709_v63 = vpop.f32.mrf.mxu0  ;;  %v6721_v16 = vadd.f32 %v6446_v35, %v6087_v56  ;;  %v3628_v33 = vld [vmem:[#allocation2 + $0x490] sm:$0xff]  ;;  %v12947_v29 = vld [vmem:[#allocation2 + $0x2c8] sm:$0xff]  ;;  %v3629_v37 = vld [vmem:[#allocation2 + $0x498] sm:$0xff] }
 0x372   : > { %v10746_v59 = vld [vmem:[#allocation5 + $0x10] sm:$0xff]   ;;  %5237 = vst.msk [vmem:[#allocation2 + $0x468] sm:$0xff] %vm1443_vm1, %v5025_v55  ;;  %v5026_v46 = vadd.f32 %v4709_v63, %v3624_v32  ;;  %v5814_v6 = vpop.permute.xlu0 %5813  ;;  %v5662_v34 = vsel %vm5521_vm4, %v5659_v47, %v5661_v39  ;;  %v7049_v52 = vadd.f32 %v12634_v3, %v6937_v54  ;;  %v6452_v54 = vsel %vm4082_vm3, %v6449_v24, %v6451_v40  ;;  %v10843_v24 = vld [vmem:[#allocation2 + $0x2b0] sm:$0xff] }
 0x373   : > { %7502 = vst.msk [vmem:[#allocation4 + $0x88] sm:$0xff] %vm1443_vm1, %v7449_v10  ;;  %v4711_v60 = vpop.f32.mrf.mxu0  ;;  %v6826_v61 = vmax.f32 %v6721_v16, 0.0  ;;  %v6088_v8 = vadd.f32 %v10838_v18, %v5814_v6  ;;  %5871 = vrot.lane.b32.xlu1 %v5662_v34, %s10919_s11  ;;  %10315 = vmatmul.mubr.msk.bf16.gmra.mxu1 %vm1443_vm1, %v10746_v59  ;;  %v12929_v3 = vld [vmem:[%s13983_s4] ss:$0 sm:$0xff]  ;;  %v6453_v63 = vrot.slane %v12947_v29, 2  ;;  %v12958_v34 = vld [vmem:[#allocation2 + $0x2d8] sm:$0xff] }
 0x374   : > { %5238 = vst [vmem:[#allocation2 + $0x470] sm:$0xff] %v5026_v46  ;;  %v5027_v12 = vadd.f32 %v4711_v60, %v3625_v4  ;;  %v5663_v25 = vrot.slane %v5026_v46, 1  ;;  %10318 = vmatprep.mubr.msk.bf16.mxu1 %vm10920_vm5, %v10918_v19  ;;  %7154 = vst.msk [vmem:[#allocation3 + $0x130] sm:$0xff] %vm1443_vm1, %v7049_v52  ;;  %v7643_v32 = vld [vmem:[#allocation4 + $0x78] sm:$0xff] }
 0x375   : > { %v6938_v11 = vmul.f32 %v12929_v3, %v6826_v61  ;;  %v4715_v0 = vpop.f32.mrf.mxu0  ;;  %v6722_v62 = vadd.f32 %v6448_v14, %v6088_v8  ;;  %v10842_v35 = vld [vmem:[#allocation2 + $0x2a0] sm:$0xff]  ;;  %v3631_v8 = vld [vmem:[#allocation2 + $0x4a8] sm:$0xff]  ;;  %v6454_v20 = vsel %vm4082_vm3, %v6451_v40, %v6453_v63 }
 0x376   : > { %5239 = vst.msk [vmem:[#allocation2 + $0x478] sm:$0xff] %vm1443_vm1, %v5027_v12  ;;  %v5028_v53 = vadd.f32 %v4715_v0, %v3626_v30  ;;  %v5816_v22 = vpop.permute.xlu1 %5815  ;;  %v5664_v43 = vsel %vm5521_vm4, %v5661_v39, %v5663_v25 }
 0x377   : > { %v7050_v51 = vadd.f32 %v12939_v1, %v6938_v11  ;;  %v4717_v7 = vpop.f32.mrf.mxu0  ;;  %v6827_v23 = vmax.f32 %v6722_v62, 0.0  ;;  %v6089_v41 = vadd.f32 %v10841_v45, %v5816_v22  ;;  %5873 = vrot.lane.b32.xlu0 %v5664_v43, %s10919_s11  ;;  %v12968_v45 = vld [vmem:[#allocation2 + $0x2e8] sm:$0xff] }
 0x378   : > { %v7257_v44 = vld [vmem:[#allocation3 + $0x120] ss:$2 sm:$0xff]  ;;  %v7363_v47 = vld [vmem:[#allocation3 + $0x121] ss:$2 sm:$0xff]  ;;  %5240 = vst [vmem:[#allocation2 + $0x480] sm:$0xff] %v5028_v53  ;;  %v5029_v50 = vadd.f32 %v4717_v7, %v3627_v31  ;;  %v5665_v15 = vrot.slane %v5028_v53, 1 }
 0x379   : > { %v7450_v27 = vadd.f32 %v7363_v47, %v7257_v44  ;;  %7155 = vst.msk [vmem:[#allocation3 + $0x138] sm:$0xff] %vm1443_vm1, %v7050_v51  ;;  %v6939_v38 = vmul.f32 %v12929_v3, %v6827_v23  ;;  %v4719_v49 = vpop.f32.mrf.mxu0  ;;  %v6723_v57 = vadd.f32 %v6450_v26, %v6089_v41  ;;  %v6455_v53 = vrot.slane %v12958_v34, 2  ;;  %v3632_v31 = vld [vmem:[#allocation2 + $0x4b0] sm:$0xff] }
 0x37a   : > { %5241 = vst.msk [vmem:[#allocation2 + $0x488] sm:$0xff] %vm1443_vm1, %v5029_v50  ;;  %v5030_v48 = vadd.f32 %v4719_v49, %v3628_v33  ;;  %v5818_v13 = vpop.permute.xlu0 %5817  ;;  %v5666_v42 = vsel %vm5521_vm4, %v5663_v25, %v5665_v15  ;;  %v7645_v58 = vld [vmem:[#allocation4 + $0x87] sm:$0xff]  ;;  %v7644_v50 = vld [vmem:[#allocation4 + $0x80] sm:$0x3f]  ;;  %v10844_v33 = vld [vmem:[#allocation2 + $0x2c0] sm:$0xff] }
 0x37b   : > { %7503 = vst.msk [vmem:[#allocation4 + $0x90] sm:$0xff] %vm1443_vm1, %v7450_v27  ;;  %v7051_v56 = vadd.f32 %v12939_v1, %v6939_v38  ;;  %v4721_v5 = vpop.f32.mrf.mxu0  ;;  %v6828_v55 = vmax.f32 %v6723_v57, 0.0  ;;  %v6090_v36 = vadd.f32 %v10842_v35, %v5818_v13  ;;  %5875 = vrot.lane.b32.xlu1 %v5666_v42, %s10919_s11  ;;  %v7647_v39 = vadd.f32 %v7645_v58, %v7643_v32  ;;  %v12978_v57 = vld [vmem:[#allocation2 + $0x2f8] sm:$0xff] }
 0x37c   : > { %5242 = vst [vmem:[#allocation2 + $0x490] sm:$0xff] %v5030_v48  ;;  %v5031_v10 = vadd.f32 %v4721_v5, %v3629_v37  ;;  %v5667_v16 = vrot.slane %v5030_v48, 1  ;;  %v6456_v13 = vsel %vm4082_vm3, %v6453_v63, %v6455_v53  ;;  %v6457_v42 = vrot.slane %v12968_v45, 2  ;;  %v3635_v63 = vld [vmem:[#allocation2 + $0x4c8] sm:$0xff] }
 0x37d   : > { %7156 = vst.msk [vmem:[#allocation3 + $0x140] sm:$0xff] %vm1443_vm1, %v7051_v56  ;;  %v6940_v59 = vmul.f32 %v12929_v3, %v6828_v55  ;;  %v4725_v46 = vpop.f32.mrf.mxu0  ;;  %v6724_v6 = vadd.f32 %v6452_v54, %v6090_v36  ;;  %v7649_v52 = vmul.f32 0.25, %v7647_v39  ;;  %v3634_v56 = vld [vmem:[#allocation2 + $0x4c0] sm:$0xff] }
 0x37e   : > { %5243 = vst.msk [vmem:[#allocation2 + $0x498] sm:$0xff] %vm1443_vm1, %v5031_v10  ;;  %v5032_v4 = vadd.f32 %v4725_v46, %v3630_v21  ;;  %v5820_v60 = vpop.permute.xlu1 %5819  ;;  %v5668_v61 = vsel %vm5521_vm4, %v5665_v15, %v5667_v16  ;;  %v3633_v15 = vld [vmem:[#allocation2 + $0x4b8] sm:$0xff]  ;;  %v6459_v10 = vrot.slane %v12978_v57, 2  ;;  %v3636_v21 = vld [vmem:[#allocation2 + $0x4d0] sm:$0xff] }
 0x37f   : > { %v7052_v18 = vadd.f32 %v12939_v1, %v6940_v59  ;;  %v4727_v12 = vpop.f32.mrf.mxu0  ;;  %v6829_v14 = vmax.f32 %v6724_v6, 0.0  ;;  %v6091_v25 = vadd.f32 %v10843_v24, %v5820_v60  ;;  %5877 = vrot.lane.b32.xlu0 %v5668_v61, %s10919_s11  ;;  %v10217_v11 = vpack.c.bf16 %v7649_v52, %v7649_v52  ;;  %v10845_v46 = vld [vmem:[#allocation2 + $0x2d0] sm:$0xff] }
 0x380   : > { %v7259_v30 = vld [vmem:[#allocation3 + $0x130] ss:$2 sm:$0xff]  ;;  %v7365_v0 = vld [vmem:[#allocation3 + $0x131] ss:$2 sm:$0xff]  ;;  %5244 = vst [vmem:[#allocation2 + $0x4a0] sm:$0xff] %v5032_v4  ;;  %v5033_v62 = vadd.f32 %v4727_v12, %v3631_v8  ;;  %v5669_v22 = vrot.slane %v5032_v4, 1  ;;  %v6458_v61 = vsel %vm4082_vm3, %v6455_v53, %v6457_v42 }
 0x381   : > { %v7451_v43 = vadd.f32 %v7365_v0, %v7259_v30  ;;  %7157 = vst.msk [vmem:[#allocation3 + $0x148] sm:$0xff] %vm1443_vm1, %v7052_v18  ;;  %v6941_v51 = vmul.f32 %v12929_v3, %v6829_v14  ;;  %v4729_v7 = vpop.f32.mrf.mxu0  ;;  %v6725_v23 = vadd.f32 %v6454_v20, %v6091_v25  ;;  %v5822_v44 = vpop.permute.xlu0 %5821  ;;  %v3637_v20 = vld [vmem:[#allocation2 + $0x4d8] sm:$0xff] }
 0x382   : > { %7659 = vst.msk [vmem:[#allocation5 + $0x1c] sm:$0xf] %vm7537_vm6, %v10217_v11  ;;  %v12972_v41 = vadd.f32 %v4729_v7, %v3632_v31  ;;  %v5670_v47 = vsel %vm5521_vm4, %v5667_v16, %v5669_v22  ;;  %v7646_v26 = vld [vmem:[#allocation4 + $0x8f] sm:$0x3f]  ;;  %v6092_v49 = vadd.f32 %v10844_v33, %v5822_v44  ;;  %v12994_v11 = vld [vmem:[#allocation2 + $0x308] sm:$0xff] }
 0x383   : > { %5245 = vst.msk [vmem:[#allocation2 + $0x4a8] sm:$0xff] %vm1443_vm1, %v5033_v62  ;;  %7504 = vst.msk [vmem:[#allocation4 + $0x98] sm:$0xff] %vm1443_vm1, %v7451_v43  ;;  %v7053_v40 = vadd.f32 %v12939_v1, %v6941_v51  ;;  %v4731_v27 = vpop.f32.mrf.mxu0  ;;  %v6830_v38 = vmax.f32 %v6725_v23, 0.0  ;;  %5879 = vrot.lane.b32.xlu1 %v5670_v47, %s10919_s11  ;;  %v7648_v29 = vadd.f32 %v7646_v26, %v7644_v50  ;;  %v10846_v43 = vld [vmem:[#allocation2 + $0x2e0] sm:$0xff]  ;;  %v6461_v45 = vrot.slane %v12994_v11, 2  ;;  %v13034_v11 = vld [vmem:[#allocation2 + $0x338] sm:$0xff] }
 0x384   : > { %5246 = vst [vmem:[#allocation2 + $0x4b0] sm:$0xff] %v12972_v41  ;;  %v5035_v48 = vadd.f32 %v4731_v27, %v3633_v15  ;;  %v5671_v32 = vrot.slane %v12972_v41, 1  ;;  %v6726_v5 = vadd.f32 %v6456_v13, %v6092_v49  ;;  %v6460_v23 = vsel %vm4082_vm3, %v6457_v42, %v6459_v10  ;;  %v3638_v47 = vld [vmem:[#allocation2 + $0x4e0] sm:$0xff]  ;;  %v3639_v49 = vld [vmem:[#allocation2 + $0x4e8] sm:$0xff]  ;;  %v10847_v13 = vld [vmem:[#allocation2 + $0x2f0] sm:$0xff] }
 0x385   : > { %7158 = vst.msk [vmem:[#allocation3 + $0x150] sm:$0xff] %vm1443_vm1, %v7053_v40  ;;  %v6942_v58 = vmul.f32 %v12929_v3, %v6830_v38  ;;  %v4735_v37 = vpop.f32.mrf.mxu0  ;;  %v7650_v55 = vmul.f32 0.25, %v7648_v29  ;;  %v13011_v40 = vld [vmem:[#allocation2 + $0x318] sm:$0xff] }
 0x386   : > { %5247 = vst.msk [vmem:[#allocation2 + $0x4b8] sm:$0xff] %vm1443_vm1, %v5035_v48  ;;  %v5036_v35 = vadd.f32 %v4735_v37, %v3634_v56  ;;  %v5824_v36 = vpop.permute.xlu1 %5823  ;;  %v5672_v39 = vsel %vm5521_vm4, %v5669_v22, %v5671_v32  ;;  %v6831_v59 = vmax.f32 %v6726_v5, 0.0  ;;  %v6462_v37 = vsel %vm4082_vm3, %v6459_v10, %v6461_v45 }
 0x387   : > { %v7054_v54 = vadd.f32 %v12939_v1, %v6942_v58  ;;  %v4737_v16 = vpop.f32.mrf.mxu0  ;;  %v6093_v6 = vadd.f32 %v10845_v46, %v5824_v36  ;;  %5881 = vrot.lane.b32.xlu0 %v5672_v39, %s10919_s11  ;;  %v10218_v34 = vpack.c.bf16 %v7650_v55, %v7650_v55  ;;  %v6463_v5 = vrot.slane %v13011_v40, 2  ;;  %v3640_v39 = vld [vmem:[#allocation2 + $0x4f0] sm:$0xff]  ;;  %v3641_v46 = vld [vmem:[#allocation2 + $0x4f8] sm:$0xff] }
 0x388   : > { %v7261_v52 = vld [vmem:[#allocation3 + $0x140] ss:$2 sm:$0xff]  ;;  %v7367_v4 = vld [vmem:[#allocation3 + $0x141] ss:$2 sm:$0xff]  ;;  %5248 = vst [vmem:[#allocation2 + $0x4c0] sm:$0xff] %v5036_v35  ;;  %v5037_v60 = vadd.f32 %v4737_v16, %v3635_v63  ;;  %v6943_v8 = vmul.f32 %v12929_v3, %v6831_v59  ;;  %v5673_v25 = vrot.slane %v5036_v35, 1 }
 0x389   : > { %v7452_v18 = vadd.f32 %v7367_v4, %v7261_v52  ;;  %7159 = vst.msk [vmem:[#allocation3 + $0x158] sm:$0xff] %vm1443_vm1, %v7054_v54  ;;  %v4739_v12 = vpop.f32.mrf.mxu0  ;;  %v6727_v14 = vadd.f32 %v6458_v61, %v6093_v6  ;;  %v10747_v24 = vld [vmem:[#allocation5 + $0x18] sm:$0xff]   ;;  %v10848_v52 = vld [vmem:[#allocation2 + $0x300] sm:$0xff]  ;;  %v6464_v61 = vsel %vm4082_vm3, %v6461_v45, %v6463_v5  ;;  %v3644_v40 = vld [vmem:[#allocation2 + $0x510] sm:$0xff] }
 0x38a   : > { %7660 = vst.msk [vmem:[#allocation5 + $0x20] sm:$0x7] %vm7556_vm7, %v10218_v34  ;;  %v5038_v30 = vadd.f32 %v4739_v12, %v3636_v21  ;;  %v5826_v0 = vpop.permute.xlu0 %5825  ;;  %v7055_v62 = vadd.f32 %v12939_v1, %v6943_v8  ;;  %10319 = vmatmul.mubr.msk.bf16.gmra.mxu1 %vm1443_vm1, %v10747_v24  ;;  %v5674_v31 = vsel %vm5521_vm4, %v5671_v32, %v5673_v25  ;;  %v13023_v16 = vld [vmem:[#allocation2 + $0x328] sm:$0xff] }
 0x38b   : > { %5249 = vst.msk [vmem:[#allocation2 + $0x4c8] sm:$0xff] %vm1443_vm1, %v5037_v60  ;;  %7505 = vst.msk [vmem:[#allocation4 + $0xa0] sm:$0xff] %vm1443_vm1, %v7452_v18  ;;  %v4741_v53 = vpop.f32.mrf.mxu0  ;;  %v6832_v22 = vmax.f32 %v6727_v14, 0.0  ;;  %v6094_v51 = vadd.f32 %v10846_v43, %v5826_v0  ;;  %5883 = vrot.lane.b32.xlu1 %v5674_v31, %s10919_s11  ;;  %10322 = vmatprep.mubr.msk.bf16.mxu1 %vm10920_vm5, %v10918_v19  ;;  %v6465_v18 = vrot.slane %v13023_v16, 2  ;;  %v3642_v14 = vld [vmem:[#allocation2 + $0x500] sm:$0xff] }
 0x38c   : > { %5250 = vst [vmem:[#allocation2 + $0x4d0] sm:$0xff] %v5038_v30  ;;  %v5039_v7 = vadd.f32 %v4741_v53, %v3637_v20  ;;  %v5675_v41 = vrot.slane %v5038_v30, 1  ;;  %7160 = vst.msk [vmem:[#allocation3 + $0x160] sm:$0xff] %vm1443_vm1, %v7055_v62  ;;  %v3643_v53 = vld [vmem:[#allocation2 + $0x508] sm:$0xff]  ;;  %v3646_v16 = vld [vmem:[#allocation2 + $0x520] sm:$0xff] }
 0x38d   : > { %v6944_v44 = vmul.f32 %v12929_v3, %v6832_v22  ;;  %v4745_v50 = vpop.f32.mrf.mxu0  ;;  %v6728_v26 = vadd.f32 %v6460_v23, %v6094_v51  ;;  %v10849_v51 = vld [vmem:[#allocation2 + $0x310] sm:$0xff] }
 0x38e   : > { %5251 = vst.msk [vmem:[#allocation2 + $0x4d8] sm:$0xff] %vm1443_vm1, %v5039_v7  ;;  %v5040_v15 = vadd.f32 %v4745_v50, %v3638_v47  ;;  %v5828_v27 = vpop.permute.xlu1 %5827  ;;  %v5676_v38 = vsel %vm5521_vm4, %v5673_v25, %v5675_v41 }
 0x38f   : > { %v7056_v33 = vadd.f32 %v12939_v1, %v6944_v44  ;;  %v4747_v29 = vpop.f32.mrf.mxu0  ;;  %v6833_v48 = vmax.f32 %v6728_v26, 0.0  ;;  %v6095_v42 = vadd.f32 %v10847_v13, %v5828_v27  ;;  %5885 = vrot.lane.b32.xlu0 %v5676_v38, %s10919_s11  ;;  %v6467_v44 = vrot.slane %v13034_v11, 2  ;;  %v13044_v38 = vld [vmem:[#allocation2 + $0x348] sm:$0xff] }
 0x390   : > { %v7263_v32 = vld [vmem:[#allocation3 + $0x150] ss:$2 sm:$0xff]  ;;  %v7369_v58 = vld [vmem:[#allocation3 + $0x151] ss:$2 sm:$0xff]  ;;  %5252 = vst [vmem:[#allocation2 + $0x4e0] sm:$0xff] %v5040_v15  ;;  %v5041_v56 = vadd.f32 %v4747_v29, %v3639_v49  ;;  %v5677_v55 = vrot.slane %v5040_v15, 1 }
 0x391   : > { %v7453_v35 = vadd.f32 %v7369_v58, %v7263_v32  ;;  %7161 = vst.msk [vmem:[#allocation3 + $0x168] sm:$0xff] %vm1443_vm1, %v7056_v33  ;;  %v6945_v36 = vmul.f32 %v12929_v3, %v6833_v48  ;;  %v4749_v54 = vpop.f32.mrf.mxu0  ;;  %v6729_v63 = vadd.f32 %v6462_v37, %v6095_v42  ;;  %v7661_v48 = vld [vmem:[#allocation4 + $0x96] sm:$0xff] }
 0x392   : > { %5253 = vst.msk [vmem:[#allocation2 + $0x4e8] sm:$0xff] %vm1443_vm1, %v5041_v56  ;;  %v5042_v59 = vadd.f32 %v4749_v54, %v3640_v39  ;;  %v5830_v21 = vpop.permute.xlu0 %5829  ;;  %v5678_v57 = vsel %vm5521_vm4, %v5675_v41, %v5677_v55  ;;  %v6466_v41 = vsel %vm4082_vm3, %v6463_v5, %v6465_v18  ;;  %v3645_v32 = vld [vmem:[#allocation2 + $0x518] sm:$0xff]  ;;  %v10850_v37 = vld [vmem:[#allocation2 + $0x320] sm:$0xff]  ;;  %v6469_v39 = vrot.slane %v13044_v38, 2 }
 0x393   : > { %7506 = vst.msk [vmem:[#allocation4 + $0xa8] sm:$0xff] %vm1443_vm1, %v7453_v35  ;;  %v7057_v10 = vadd.f32 %v12939_v1, %v6945_v36  ;;  %v4751_v6 = vpop.f32.mrf.mxu0  ;;  %v6834_v34 = vmax.f32 %v6729_v63, 0.0  ;;  %v6096_v4 = vadd.f32 %v10848_v52, %v5830_v21  ;;  %5887 = vrot.lane.b32.xlu1 %v5678_v57, %s10919_s11  ;;  %v6468_v36 = vsel %vm4082_vm3, %v6465_v18, %v6467_v44  ;;  %v13055_v57 = vld [vmem:[#allocation2 + $0x358] sm:$0xff]  ;;  %v10851_v18 = vld [vmem:[#allocation2 + $0x330] sm:$0xff] }
 0x394   : > { %5254 = vst [vmem:[#allocation2 + $0x4f0] sm:$0xff] %v5042_v59  ;;  %v5043_v60 = vadd.f32 %v4751_v6, %v3641_v46  ;;  %v5679_v8 = vrot.slane %v5042_v59, 1  ;;  %v6470_v11 = vsel %vm4082_vm3, %v6467_v44, %v6469_v39  ;;  %v13074_v38 = vld [vmem:[#allocation2 + $0x378] sm:$0xff] }
 0x395   : > { %7162 = vst.msk [vmem:[#allocation3 + $0x170] sm:$0xff] %vm1443_vm1, %v7057_v10  ;;  %v6946_v12 = vmul.f32 %v12929_v3, %v6834_v34  ;;  %v4755_v24 = vpop.f32.mrf.mxu0  ;;  %v6730_v25 = vadd.f32 %v6464_v61, %v6096_v4  ;;  %v3647_v4 = vld [vmem:[#allocation2 + $0x528] sm:$0xff] }
 0x396   : > { %5255 = vst.msk [vmem:[#allocation2 + $0x4f8] sm:$0xff] %vm1443_vm1, %v5043_v60  ;;  %v5044_v30 = vadd.f32 %v4755_v24, %v3642_v14  ;;  %v5832_v0 = vpop.permute.xlu1 %5831  ;;  %v5680_v62 = vsel %vm5521_vm4, %v5677_v55, %v5679_v8 }
 0x397   : > { %v7058_v20 = vadd.f32 %v12939_v1, %v6946_v12  ;;  %v4757_v22 = vpop.f32.mrf.mxu0  ;;  %v6835_v43 = vmax.f32 %v6730_v25, 0.0  ;;  %v6097_v31 = vadd.f32 %v10849_v51, %v5832_v0  ;;  %5889 = vrot.lane.b32.xlu0 %v5680_v62, %s10919_s11  ;;  %v13065_v51 = vld [vmem:[#allocation2 + $0x368] sm:$0xff] }
 0x398   : > { %v7265_v7 = vld [vmem:[#allocation3 + $0x160] ss:$2 sm:$0xff]  ;;  %v7371_v23 = vld [vmem:[#allocation3 + $0x161] ss:$2 sm:$0xff]  ;;  %5256 = vst [vmem:[#allocation2 + $0x500] sm:$0xff] %v5044_v30  ;;  %v5045_v45 = vadd.f32 %v4757_v22, %v3643_v53  ;;  %v5681_v47 = vrot.slane %v5044_v30, 1 }
 0x399   : > { %v7454_v50 = vadd.f32 %v7371_v23, %v7265_v7  ;;  %7163 = vst.msk [vmem:[#allocation3 + $0x178] sm:$0xff] %vm1443_vm1, %v7058_v20  ;;  %v6947_v26 = vmul.f32 %v12929_v3, %v6835_v43  ;;  %v4759_v15 = vpop.f32.mrf.mxu0  ;;  %v6731_v27 = vadd.f32 %v6466_v41, %v6097_v31  ;;  %v5834_v49 = vpop.permute.xlu0 %5833  ;;  %v6471_v30 = vrot.slane %v13055_v57, 2  ;;  %v3648_v53 = vld [vmem:[#allocation2 + $0x530] sm:$0xff]  ;;  %v7662_v41 = vld [vmem:[#allocation4 + $0x9e] sm:$0x3f] }
 0x39a   : > { %5257 = vst.msk [vmem:[#allocation2 + $0x508] sm:$0xff] %vm1443_vm1, %v5045_v45  ;;  %v5046_v33 = vadd.f32 %v4759_v15, %v3644_v40  ;;  %v5682_v29 = vsel %vm5521_vm4, %v5679_v8, %v5681_v47  ;;  %v7663_v13 = vld [vmem:[#allocation4 + $0xa5] sm:$0xff]  ;;  %v6098_v5 = vadd.f32 %v10850_v37, %v5834_v49  ;;  %v10852_v15 = vld [vmem:[#allocation2 + $0x340] sm:$0xff] }
 0x39b   : > { %7507 = vst.msk [vmem:[#allocation4 + $0xb0] sm:$0xff] %vm1443_vm1, %v7454_v50  ;;  %v7059_v42 = vadd.f32 %v12939_v1, %v6947_v26  ;;  %v4761_v58 = vpop.f32.mrf.mxu0  ;;  %v6836_v56 = vmax.f32 %v6731_v27, 0.0  ;;  %5891 = vrot.lane.b32.xlu1 %v5682_v29, %s10919_s11  ;;  %v7665_v55 = vadd.f32 %v7663_v13, %v7661_v48  ;;  %v3649_v50 = vld [vmem:[#allocation2 + $0x538] sm:$0xff]  ;;  %v6472_v29 = vsel %vm4082_vm3, %v6469_v39, %v6471_v30 }
 0x39c   : > { %5258 = vst [vmem:[#allocation2 + $0x510] sm:$0xff] %v5046_v33  ;;  %v5047_v35 = vadd.f32 %v4761_v58, %v3645_v32  ;;  %v5683_v54 = vrot.slane %v5046_v33, 1  ;;  %v6732_v21 = vadd.f32 %v6468_v36, %v6098_v5  ;;  %v6473_v48 = vrot.slane %v13065_v51, 2  ;;  %v3650_v32 = vld [vmem:[#allocation2 + $0x540] sm:$0xff] }
 0x39d   : > { %7164 = vst.msk [vmem:[#allocation3 + $0x180] sm:$0xff] %vm1443_vm1, %v7059_v42  ;;  %v6948_v63 = vmul.f32 %v12929_v3, %v6836_v56  ;;  %v4765_v59 = vpop.f32.mrf.mxu0  ;;  %v7667_v10 = vmul.f32 0.25, %v7665_v55  ;;  %v6475_v36 = vrot.slane %v13074_v38, 2 }
 0x39e   : > { %5259 = vst.msk [vmem:[#allocation2 + $0x518] sm:$0xff] %vm1443_vm1, %v5047_v35  ;;  %v5048_v46 = vadd.f32 %v4765_v59, %v3646_v16  ;;  %v5836_v6 = vpop.permute.xlu1 %5835  ;;  %v5684_v34 = vsel %vm5521_vm4, %v5681_v47, %v5683_v54  ;;  %v6837_v61 = vmax.f32 %v6732_v21, 0.0  ;;  %v10853_v59 = vld [vmem:[#allocation2 + $0x350] sm:$0xff] }
 0x39f   : > { %v7060_v52 = vadd.f32 %v12939_v1, %v6948_v63  ;;  %v4767_v60 = vpop.f32.mrf.mxu0  ;;  %v6099_v8 = vadd.f32 %v10851_v18, %v5836_v6  ;;  %5893 = vrot.lane.b32.xlu0 %v5684_v34, %s10919_s11  ;;  %v10219_v12 = vpack.c.bf16 %v7667_v10, %v7667_v10  ;;  %v6474_v34 = vsel %vm4082_vm3, %v6471_v30, %v6473_v48  ;;  %v3652_v18 = vld [vmem:[#allocation2 + $0x550] sm:$0xff] }
 0x3a0   : > { %v7267_v14 = vld [vmem:[#allocation3 + $0x170] ss:$2 sm:$0xff]  ;;  %v7373_v24 = vld [vmem:[#allocation3 + $0x171] ss:$2 sm:$0xff]  ;;  %5260 = vst [vmem:[#allocation2 + $0x520] sm:$0xff] %v5048_v46  ;;  %v5049_v25 = vadd.f32 %v4767_v60, %v3647_v4  ;;  %v5685_v0 = vrot.slane %v5048_v46, 1  ;;  %v6949_v20 = vmul.f32 %v12929_v3, %v6837_v61  ;;  %v6476_v30 = vsel %vm4082_vm3, %v6473_v48, %v6475_v36 }
 0x3a1   : > { %v7455_v62 = vadd.f32 %v7373_v24, %v7267_v14  ;;  %7165 = vst.msk [vmem:[#allocation3 + $0x188] sm:$0xff] %vm1443_vm1, %v7060_v52  ;;  %v4769_v22 = vpop.f32.mrf.mxu0  ;;  %v6733_v43 = vadd.f32 %v6470_v11, %v6099_v8  ;;  %v13067_v31 = vrot.slane %v10219_v12, 5  ;;  %v13091_v14 = vld [vmem:[#allocation2 + $0x388] sm:$0xff] }
 0x3a2   : > { %5261 = vst.msk [vmem:[#allocation2 + $0x528] sm:$0xff] %vm1443_vm1, %v5049_v25  ;;  %v5050_v7 = vadd.f32 %v4769_v22, %v3648_v53  ;;  %v5838_v23 = vpop.permute.xlu0 %5837  ;;  %v5686_v45 = vsel %vm5521_vm4, %v5683_v54, %v5685_v0  ;;  %v7664_v44 = vld [vmem:[#allocation4 + $0xad] sm:$0x3f]  ;;  %v7061_v47 = vadd.f32 %v12939_v1, %v6949_v20  ;;  %v3651_v54 = vld [vmem:[#allocation2 + $0x548] sm:$0xff] }
 0x3a3   : > { %7508 = vst.msk [vmem:[#allocation4 + $0xb8] sm:$0xff] %vm1443_vm1, %v7455_v62  ;;  %v4771_v26 = vpop.f32.mrf.mxu0  ;;  %v6838_v40 = vmax.f32 %v6733_v43, 0.0  ;;  %v6100_v27 = vadd.f32 %v10852_v15, %v5838_v23  ;;  %5895 = vrot.lane.b32.xlu1 %v5686_v45, %s10919_s11  ;;  %v7666_v33 = vadd.f32 %v7664_v44, %v7662_v41  ;;  %v7676_v4 = vrot.slane %v13067_v31, 4  ;;  %v3653_v20 = vld [vmem:[#allocation2 + $0x558] sm:$0xff]  ;;  %v10854_v43 = vld [vmem:[#allocation2 + $0x360] sm:$0xff] }
 0x3a4   : > { %7683 = vst.msk [vmem:[#allocation5 + $0x20] sm:$0x8] %vm7583_vm8, %v13067_v31  ;;  %5262 = vst [vmem:[#allocation2 + $0x530] sm:$0xff] %v5050_v7  ;;  %v5051_v49 = vadd.f32 %v4771_v26, %v3649_v50  ;;  %v5687_v13 = vrot.slane %v5050_v7, 1  ;;  %v6477_v23 = vrot.slane %v13091_v14, 2 }
 0x3a5   : > { %7166 = vst.msk [vmem:[#allocation3 + $0x190] sm:$0xff] %vm1443_vm1, %v7061_v47  ;;  %v6950_v42 = vmul.f32 %v12929_v3, %v6838_v40  ;;  %v4775_v58 = vpop.f32.mrf.mxu0  ;;  %v6734_v56 = vadd.f32 %v6472_v29, %v6100_v27  ;;  %v7668_v37 = vmul.f32 0.25, %v7666_v33  ;;  %v3654_v47 = vld [vmem:[#allocation2 + $0x560] sm:$0xff]  ;;  %v13107_v40 = vld [vmem:[#allocation2 + $0x398] sm:$0xff]  ;;  %v3655_v29 = vld [vmem:[#allocation2 + $0x568] sm:$0xff] }
 0x3a6   : > { %5263 = vst.msk [vmem:[#allocation2 + $0x538] sm:$0xff] %vm1443_vm1, %v5051_v49  ;;  %v5052_v5 = vadd.f32 %v4775_v58, %v3650_v32  ;;  %v5840_v55 = vpop.permute.xlu1 %5839  ;;  %v5688_v35 = vsel %vm5521_vm4, %v5685_v0, %v5687_v13 }
 0x3a7   : > { %v7062_v39 = vadd.f32 %v12939_v1, %v6950_v42  ;;  %v4777_v63 = vpop.f32.mrf.mxu0  ;;  %v6839_v16 = vmax.f32 %v6734_v56, 0.0  ;;  %v6101_v21 = vadd.f32 %v10853_v59, %v5840_v55  ;;  %5897 = vrot.lane.b32.xlu0 %v5688_v35, %s10919_s11  ;;  %v10220_v57 = vpack.c.bf16 %v7668_v37, %v7668_v37  ;;  %v10855_v42 = vld [vmem:[#allocation2 + $0x370] sm:$0xff] }
 0x3a8   : > { %v7269_v10 = vld [vmem:[#allocation3 + $0x180] ss:$2 sm:$0xff]  ;;  %v7375_v46 = vld [vmem:[#allocation3 + $0x181] ss:$2 sm:$0xff]  ;;  %5264 = vst [vmem:[#allocation2 + $0x540] sm:$0xff] %v5052_v5  ;;  %v5053_v6 = vadd.f32 %v4777_v63, %v3651_v54  ;;  %v5689_v52 = vrot.slane %v5052_v5, 1  ;;  %v6478_v5 = vsel %vm4082_vm3, %v6475_v36, %v6477_v23 }
 0x3a9   : > { %v7456_v60 = vadd.f32 %v7375_v46, %v7269_v10  ;;  %7167 = vst.msk [vmem:[#allocation3 + $0x198] sm:$0xff] %vm1443_vm1, %v7062_v39  ;;  %v6951_v61 = vmul.f32 %v12929_v3, %v6839_v16  ;;  %v4779_v8 = vpop.f32.mrf.mxu0  ;;  %v6735_v12 = vadd.f32 %v6474_v34, %v6101_v21  ;;  %v7677_v24 = vrot.slane %v10220_v57, 5  ;;  %v3656_v63 = vld [vmem:[#allocation2 + $0x570] sm:$0xff]  ;;  %v13120_v21 = vld [vmem:[#allocation2 + $0x3a8] sm:$0xff]  ;;  %v3657_v10 = vld [vmem:[#allocation2 + $0x578] sm:$0xff] }
 0x3aa   : > { %5265 = vst.msk [vmem:[#allocation2 + $0x548] sm:$0xff] %vm1443_vm1, %v5053_v6  ;;  %v5054_v25 = vadd.f32 %v4779_v8, %v3652_v18  ;;  %v5842_v11 = vpop.permute.xlu0 %5841  ;;  %v5690_v0 = vsel %vm5521_vm4, %v5687_v13, %v5689_v52  ;;  %v6479_v55 = vrot.slane %v13107_v40, 2  ;;  %v6481_v8 = vrot.slane %v13120_v21, 2 }
 0x3ab   : > { %7509 = vst.msk [vmem:[#allocation4 + $0xc0] sm:$0xff] %vm1443_vm1, %v7456_v60  ;;  %v7063_v62 = vadd.f32 %v12939_v1, %v6951_v61  ;;  %v4781_v53 = vpop.f32.mrf.mxu0  ;;  %v6840_v22 = vmax.f32 %v6735_v12, 0.0  ;;  %v6102_v51 = vadd.f32 %v10854_v43, %v5842_v11  ;;  %5899 = vrot.lane.b32.xlu1 %v5690_v0, %s10919_s11  ;;  %v7678_v31 = vsel %vm12667_vm11, %v7676_v4, %v7677_v24 }
 0x3ac   : > { %5266 = vst [vmem:[#allocation2 + $0x550] sm:$0xff] %v5054_v25  ;;  %v5055_v7 = vadd.f32 %v4781_v53, %v3653_v20  ;;  %v5691_v45 = vrot.slane %v5054_v25, 1  ;;  %7684 = vst.msk [vmem:[#allocation5 + $0x24] sm:$0xf] %vm7537_vm6, %v7678_v31  ;;  %v7679_v41 = vrot.slane %v7677_v24, 4  ;;  %v6480_v18 = vsel %vm4082_vm3, %v6477_v23, %v6479_v55  ;;  %v3658_v24 = vld [vmem:[#allocation2 + $0x580] sm:$0xff] }
 0x3ad   : > { %7168 = vst.msk [vmem:[#allocation3 + $0x1a0] sm:$0xff] %vm1443_vm1, %v7063_v62  ;;  %v6952_v44 = vmul.f32 %v12929_v3, %v6840_v22  ;;  %v4785_v50 = vpop.f32.mrf.mxu0  ;;  %v6736_v26 = vadd.f32 %v6476_v30, %v6102_v51  ;;  %v13132_v30 = vld [vmem:[#allocation2 + $0x3b8] sm:$0xff]  ;;  %v3659_v22 = vld [vmem:[#allocation2 + $0x588] sm:$0xff]  ;;  %v10857_v31 = vld [vmem:[#allocation2 + $0x390] sm:$0xff] }
 0x3ae   : > { %5267 = vst.msk [vmem:[#allocation2 + $0x558] sm:$0xff] %vm1443_vm1, %v5055_v7  ;;  %v5056_v15 = vadd.f32 %v4785_v50, %v3654_v47  ;;  %v5844_v27 = vpop.permute.xlu1 %5843  ;;  %v5692_v33 = vsel %vm5521_vm4, %v5689_v52, %v5691_v45  ;;  %v10856_v52 = vld [vmem:[#allocation2 + $0x380] sm:$0xff]  ;;  %v6483_v47 = vrot.slane %v13132_v30, 2 }
 0x3af   : > { %7685 = vst.msk [vmem:[#allocation5 + $0x28] sm:$0x3] %vm1654_vm2, %v7679_v41  ;;  %v7064_v49 = vadd.f32 %v12939_v1, %v6952_v44  ;;  %v4787_v48 = vpop.f32.mrf.mxu0  ;;  %v6841_v13 = vmax.f32 %v6736_v26, 0.0  ;;  %v6103_v32 = vadd.f32 %v10855_v42, %v5844_v27  ;;  %5901 = vrot.lane.b32.xlu0 %v5692_v33, %s10919_s11  ;;  %v6482_v44 = vsel %vm4082_vm3, %v6479_v55, %v6481_v8  ;;  %v7686_v42 = vld [vmem:[#allocation4 + $0xb4] sm:$0xff] }
 0x3b0   : > { %v7271_v58 = vld [vmem:[#allocation3 + $0x190] ss:$2 sm:$0xff]  ;;  %v7377_v56 = vld [vmem:[#allocation3 + $0x191] ss:$2 sm:$0xff]  ;;  %5268 = vst [vmem:[#allocation2 + $0x560] sm:$0xff] %v5056_v15  ;;  %v5057_v37 = vadd.f32 %v4787_v48, %v3655_v29  ;;  %v5693_v35 = vrot.slane %v5056_v15, 1 }
 0x3b1   : > { %v7457_v39 = vadd.f32 %v7377_v56, %v7271_v58  ;;  %7169 = vst.msk [vmem:[#allocation3 + $0x1a8] sm:$0xff] %vm1443_vm1, %v7064_v49  ;;  %v6953_v54 = vmul.f32 %v12929_v3, %v6841_v13  ;;  %v4789_v16 = vpop.f32.mrf.mxu0  ;;  %v6737_v59 = vadd.f32 %v6478_v5, %v6103_v32  ;;  %v5846_v38 = vpop.permute.xlu0 %5845  ;;  %v3660_v15 = vld [vmem:[#allocation2 + $0x590] sm:$0xff]  ;;  %v13144_v49 = vld [vmem:[#allocation2 + $0x3c8] sm:$0xff]  ;;  %v10752_v58 = vld [vmem:[%s13981_s2 + $0x38] sm:$0xff]  }
 0x3b2   : > { %5269 = vst.msk [vmem:[#allocation2 + $0x568] sm:$0xff] %vm1443_vm1, %v5057_v37  ;;  %v5058_v57 = vadd.f32 %v4789_v16, %v3656_v63  ;;  %v5694_v36 = vsel %vm5521_vm4, %v5691_v45, %v5693_v35  ;;  %v6104_v4 = vadd.f32 %v10856_v52, %v5846_v38  ;;  %v3661_v37 = vld [vmem:[#allocation2 + $0x598] sm:$0xff]  ;;  %v6484_v16 = vsel %vm4082_vm3, %v6481_v8, %v6483_v47 }
 0x3b3   : > { %7510 = vst.msk [vmem:[#allocation4 + $0xc8] sm:$0xff] %vm1443_vm1, %v7457_v39  ;;  %v7065_v46 = vadd.f32 %v12939_v1, %v6953_v54  ;;  %v4791_v6 = vpop.f32.mrf.mxu0  ;;  %v6842_v34 = vmax.f32 %v6737_v59, 0.0  ;;  %5903 = vrot.lane.b32.xlu1 %v5694_v36, %s10919_s11  ;;  %v10748_v60 = vld [vmem:[#allocation5 + $0x20] sm:$0xff]   ;;  %v6485_v59 = vrot.slane %v13144_v49, 2  ;;  %10351 = vmatpush3.bf16.msra.mxu1 %v10752_v58  ;;  %v10860_v49 = vld [vmem:[#allocation2 + $0x3c0] sm:$0xff] }
 0x3b4   : > { %5270 = vst [vmem:[#allocation2 + $0x570] sm:$0xff] %v5058_v57  ;;  %v5059_v61 = vadd.f32 %v4791_v6, %v3657_v10  ;;  %v5695_v12 = vrot.slane %v5058_v57, 1  ;;  %v6738_v11 = vadd.f32 %v6480_v18, %v6104_v4  ;;  %10323 = vmatmul.mubr.msk.bf16.gmra.mxu1 %vm1443_vm1, %v10748_v60  ;;  %v3662_v10 = vld [vmem:[#allocation2 + $0x5a0] sm:$0xff]  ;;  %10352 = vmatprep.subr.bf16.mxu1 %v10918_v19 }
 0x3b5   : > { %7170 = vst.msk [vmem:[#allocation3 + $0x1b0] sm:$0xff] %vm1443_vm1, %v7065_v46  ;;  %v6954_v14 = vmul.f32 %v12929_v3, %v6842_v34  ;;  %v4795_v25 = vpop.f32.mrf.mxu0  ;;  %10326 = vmatprep.mubr.msk.bf16.mxu1 %vm10920_vm5, %v10918_v19  ;;  %v13158_v46 = vld [vmem:[#allocation2 + $0x3d8] sm:$0xff]  ;;  %v13193_v58 = vld [vmem:[%s13983_s4] ss:$0 sm:$0xff] }
 0x3b6   : > { %5271 = vst.msk [vmem:[#allocation2 + $0x578] sm:$0xff] %vm1443_vm1, %v5059_v61  ;;  %v5060_v0 = vadd.f32 %v4795_v25, %v3658_v24  ;;  %v5848_v62 = vpop.permute.xlu1 %5847  ;;  %v5696_v20 = vsel %vm5521_vm4, %v5693_v35, %v5695_v12  ;;  %v6843_v51 = vmax.f32 %v6738_v11, 0.0  ;;  %v10858_v35 = vld [vmem:[#allocation2 + $0x3a0] sm:$0xff]  ;;  %v3663_v61 = vld [vmem:[#allocation2 + $0x5a8] sm:$0xff] }
 0x3b7   : > { %v7066_v53 = vadd.f32 %v12939_v1, %v6954_v14  ;;  %v4797_v43 = vpop.f32.mrf.mxu0  ;;  %v6105_v7 = vadd.f32 %v10857_v31, %v5848_v62  ;;  %5905 = vrot.lane.b32.xlu0 %v5696_v20, %s10919_s11  ;;  %v13165_v24 = vld [vmem:[#allocation2 + $0x3e8] sm:$0xff]  ;;  %v6486_v62 = vsel %vm4082_vm3, %v6483_v47, %v6485_v59  ;;  %v6487_v20 = vrot.slane %v13158_v46, 2 }
 0x3b8   : > { %v7273_v23 = vld [vmem:[#allocation3 + $0x1a0] ss:$2 sm:$0xff]  ;;  %v7379_v45 = vld [vmem:[#allocation3 + $0x1a1] ss:$2 sm:$0xff]  ;;  %5272 = vst [vmem:[#allocation2 + $0x580] sm:$0xff] %v5060_v0  ;;  %v5061_v41 = vadd.f32 %v4797_v43, %v3659_v22  ;;  %v5697_v50 = vrot.slane %v5060_v0, 1  ;;  %v6955_v40 = vmul.f32 %v12929_v3, %v6843_v51 }
 0x3b9   : > { %v7458_v26 = vadd.f32 %v7379_v45, %v7273_v23  ;;  %7171 = vst.msk [vmem:[#allocation3 + $0x1b8] sm:$0xff] %vm1443_vm1, %v7066_v53  ;;  %v4799_v27 = vpop.f32.mrf.mxu0  ;;  %v6739_v33 = vadd.f32 %v6482_v44, %v6105_v7  ;;  %v3664_v51 = vld [vmem:[#allocation2 + $0x5b0] sm:$0xff]  ;;  %v13171_v23 = vld [vmem:[#allocation2 + $0x3f8] sm:$0xff] }
 0x3ba   : > { %5273 = vst.msk [vmem:[#allocation2 + $0x588] sm:$0xff] %vm1443_vm1, %v5061_v41  ;;  %v5062_v29 = vadd.f32 %v4799_v27, %v3660_v15  ;;  %v5850_v48 = vpop.permute.xlu0 %5849  ;;  %v5698_v13 = vsel %vm5521_vm4, %v5695_v12, %v5697_v50  ;;  %v7688_v32 = vld [vmem:[#allocation4 + $0xc3] sm:$0xff]  ;;  %v7067_v56 = vadd.f32 %v12939_v1, %v6955_v40  ;;  %v3665_v15 = vld [vmem:[#allocation2 + $0x5b8] sm:$0xff] }
 0x3bb   : > { %7511 = vst.msk [vmem:[#allocation4 + $0xd0] sm:$0xff] %vm1443_vm1, %v7458_v26  ;;  %v4801_v5 = vpop.f32.mrf.mxu0  ;;  %v6844_v55 = vmax.f32 %v6739_v33, 0.0  ;;  %v6106_v39 = vadd.f32 %v10858_v35, %v5850_v48  ;;  %5907 = vrot.lane.b32.xlu1 %v5698_v13, %s10919_s11  ;;  %v7690_v54 = vadd.f32 %v7688_v32, %v7686_v42  ;;  %v10859_v12 = vld [vmem:[#allocation2 + $0x3b0] sm:$0xff]  ;;  %v7687_v26 = vld [vmem:[#allocation4 + $0xbc] sm:$0x3f]  ;;  %v6488_v42 = vsel %vm4082_vm3, %v6485_v59, %v6487_v20 }
 0x3bc   : > { %5274 = vst [vmem:[#allocation2 + $0x590] sm:$0xff] %v5062_v29  ;;  %v5063_v63 = vadd.f32 %v4801_v5, %v3661_v37  ;;  %v5699_v21 = vrot.slane %v5062_v29, 1  ;;  %7172 = vst.msk [vmem:[#allocation3 + $0x1c0] sm:$0xff] %vm1443_vm1, %v7067_v56  ;;  %v3666_v37 = vld [vmem:[#allocation2 + $0x5c0] sm:$0xff] }
 0x3bd   : > { %v6956_v57 = vmul.f32 %v12929_v3, %v6844_v55  ;;  %v4805_v38 = vpop.f32.mrf.mxu0  ;;  %v6740_v36 = vadd.f32 %v6484_v16, %v6106_v39  ;;  %v7692_v6 = vmul.f32 0.25, %v7690_v54  ;;  %v13202_v59 = vld [vmem:[%s13984_s5] ss:$0 sm:$0xff] }
 0x3be   : > { %5275 = vst.msk [vmem:[#allocation2 + $0x598] sm:$0xff] %vm1443_vm1, %v5063_v63  ;;  %v5064_v34 = vadd.f32 %v4805_v38, %v3662_v10  ;;  %v5852_v52 = vpop.permute.xlu1 %5851  ;;  %v5700_v4 = vsel %vm5521_vm4, %v5697_v50, %v5699_v21  ;;  %v6489_v50 = vrot.slane %v13165_v24, 2  ;;  %v3668_v24 = vld [vmem:[#allocation2 + $0x5d0] sm:$0xff] }
 0x3bf   : > { %v7068_v60 = vadd.f32 %v12939_v1, %v6956_v57  ;;  %v4807_v18 = vpop.f32.mrf.mxu0  ;;  %v6845_v8 = vmax.f32 %v6740_v36, 0.0  ;;  %v6107_v14 = vadd.f32 %v10859_v12, %v5852_v52  ;;  %5909 = vrot.lane.b32.xlu0 %v5700_v4, %s10919_s11  ;;  %v10221_v25 = vpack.c.bf16 %v7692_v6, %v7692_v6  ;;  %v3667_v57 = vld [vmem:[#allocation2 + $0x5c8] sm:$0xff]  ;;  %v10863_v36 = vld [vmem:[#allocation2 + $0x3d0] sm:$0xff] }
 0x3c0   : > { %v7275_v11 = vld [vmem:[#allocation3 + $0x1b0] ss:$2 sm:$0xff]  ;;  %v7381_v30 = vld [vmem:[#allocation3 + $0x1b1] ss:$2 sm:$0xff]  ;;  %5276 = vst [vmem:[#allocation2 + $0x5a0] sm:$0xff] %v5064_v34  ;;  %v5065_v0 = vadd.f32 %v4807_v18, %v3663_v61  ;;  %v5701_v53 = vrot.slane %v5064_v34, 1  ;;  %v6490_v63 = vsel %vm4082_vm3, %v6487_v20, %v6489_v50 }
 0x3c1   : > { %v7459_v22 = vadd.f32 %v7381_v30, %v7275_v11  ;;  %7173 = vst.msk [vmem:[#allocation3 + $0x1c8] sm:$0xff] %vm1443_vm1, %v7068_v60  ;;  %v6957_v43 = vmul.f32 %v12929_v3, %v6845_v8  ;;  %v4809_v31 = vpop.f32.mrf.mxu0  ;;  %v6741_v7 = vadd.f32 %v6486_v62, %v6107_v14  ;;  %v13173_v45 = vrot.slane %v10221_v25, 6  ;;  %v13206_v6 = vld [vmem:[#allocation2 + $0x408] sm:$0xff]  ;;  %v10864_v20 = vld [vmem:[#allocation2 + $0x3e0] sm:$0xff] }
 0x3c2   : > { %5277 = vst.msk [vmem:[#allocation2 + $0x5a8] sm:$0xff] %vm1443_vm1, %v5065_v0  ;;  %v13176_v41 = vadd.f32 %v4809_v31, %v3664_v51  ;;  %v5854_v44 = vpop.permute.xlu0 %5853  ;;  %v5702_v47 = vsel %vm5521_vm4, %v5699_v21, %v5701_v53  ;;  %v7689_v40 = vld [vmem:[#allocation4 + $0xcb] sm:$0x3f] }
 0x3c3   : > { %7512 = vst.msk [vmem:[#allocation4 + $0xd8] sm:$0xff] %vm1443_vm1, %v7459_v22  ;;  %v7069_v3 = vadd.f32 %v12939_v1, %v6957_v43  ;;  %v4811_v27 = vpop.f32.mrf.mxu0  ;;  %v6846_v33 = vmax.f32 %v6741_v7, 0.0  ;;  %v6108_v29 = vadd.f32 %v10860_v49, %v5854_v44  ;;  %5911 = vrot.lane.b32.xlu1 %v5702_v47, %s10919_s11  ;;  %v7691_v48 = vadd.f32 %v7689_v40, %v7687_v26  ;;  %v3669_v31 = vld [vmem:[#allocation2 + $0x5d8] sm:$0xff] }
 0x3c4   : > { %7708 = vst.msk [vmem:[#allocation5 + $0x28] sm:$0xc] %vm7612_vm12, %v13173_v45  ;;  %5278 = vst [vmem:[#allocation2 + $0x5b0] sm:$0xff] %v13176_v41  ;;  %v5067_v13 = vadd.f32 %v4811_v27, %v3665_v15  ;;  %v5703_v32 = vrot.slane %v13176_v41, 1  ;;  %v6491_v1 = vrot.slane %v13171_v23, 2  ;;  %v7701_v8 = vrot.slane %v13173_v45, 4 }
 0x3c5   : > { %7174 = vst.msk [vmem:[#allocation3 + $0x1d0] sm:$0xff] %vm1443_vm1, %v7069_v3  ;;  %v6958_v56 = vmul.f32 %v13193_v58, %v6846_v33  ;;  %v4815_v5 = vpop.f32.mrf.mxu0  ;;  %v6742_v55 = vadd.f32 %v6488_v42, %v6108_v29  ;;  %v7693_v35 = vmul.f32 0.25, %v7691_v48  ;;  %v6493_v43 = vrot.slane %v13206_v6, 2  ;;  %v13226_v40 = vld [vmem:[#allocation2 + $0x418] sm:$0xff]  ;;  %v3670_v15 = vld [vmem:[#allocation2 + $0x5e0] sm:$0xff]  ;;  %v10865_v48 = vld [vmem:[#allocation2 + $0x3f0] sm:$0xff] }
 0x3c6   : > { %5279 = vst.msk [vmem:[#allocation2 + $0x5b8] sm:$0xff] %vm1443_vm1, %v5067_v13  ;;  %v5068_v39 = vadd.f32 %v4815_v5, %v3666_v37  ;;  %v5856_v54 = vpop.permute.xlu1 %5855  ;;  %v5704_v16 = vsel %vm5521_vm4, %v5701_v53, %v5703_v32  ;;  %v6492_v61 = vsel %vm4082_vm3, %v6489_v50, %v6491_v1  ;;  %v3672_v23 = vld [vmem:[#allocation2 + $0x5f0] sm:$0xff]  ;;  %v3673_v6 = vld [vmem:[#allocation2 + $0x5f8] sm:$0xff] }
 0x3c7   : > { %v7070_v21 = vadd.f32 %v13202_v59, %v6958_v56  ;;  %v4817_v10 = vpop.f32.mrf.mxu0  ;;  %v6847_v38 = vmax.f32 %v6742_v55, 0.0  ;;  %v6109_v46 = vadd.f32 %v10863_v36, %v5856_v54  ;;  %5913 = vrot.lane.b32.xlu0 %v5704_v16, %s10919_s11  ;;  %v10222_v34 = vpack.c.bf16 %v7693_v35, %v7693_v35  ;;  %v3671_v56 = vld [vmem:[#allocation2 + $0x5e8] sm:$0xff] }
 0x3c8   : > { %v7277_v52 = vld [vmem:[#allocation3 + $0x1c0] ss:$2 sm:$0xff]  ;;  %v7383_v4 = vld [vmem:[#allocation3 + $0x1c1] ss:$2 sm:$0xff]  ;;  %5280 = vst [vmem:[#allocation2 + $0x5c0] sm:$0xff] %v5068_v39  ;;  %v5069_v60 = vadd.f32 %v4817_v10, %v3667_v57  ;;  %v5705_v18 = vrot.slane %v5068_v39, 1  ;;  %v6494_v5 = vsel %vm4082_vm3, %v6491_v1, %v6493_v43 }
 0x3c9   : > { %v7460_v12 = vadd.f32 %v7383_v4, %v7277_v52  ;;  %7175 = vst.msk [vmem:[#allocation3 + $0x1d8] sm:$0xff] %vm1443_vm1, %v7070_v21  ;;  %v6959_v14 = vmul.f32 %v13193_v58, %v6847_v38  ;;  %v4819_v25 = vpop.f32.mrf.mxu0  ;;  %v6743_v11 = vadd.f32 %v6490_v63, %v6109_v46  ;;  %v5858_v30 = vpop.permute.xlu0 %5857  ;;  %v7702_v0 = vrot.slane %v10222_v34, 6  ;;  %v6219_v57 = vld [vmem:[#allocation2 + $0x428] sm:$0xff]  ;;  %v10866_v52 = vld [vmem:[#allocation2 + $0x400] sm:$0xff] }
 0x3ca   : > { %5281 = vst.msk [vmem:[#allocation2 + $0x5c8] sm:$0xff] %vm1443_vm1, %v5069_v60  ;;  %v13215_v62 = vadd.f32 %v4819_v25, %v3668_v24  ;;  %v6110_v53 = vadd.f32 %v10864_v20, %v5858_v30  ;;  %v5706_v22 = vsel %vm5521_vm4, %v5703_v32, %v5705_v18  ;;  %v6495_v55 = vrot.slane %v13226_v40, 2  ;;  %v13250_v60 = vld [vmem:[#allocation2 + $0x438] sm:$0xff] }
 0x3cb   : > { %7513 = vst.msk [vmem:[#allocation4 + $0xe0] sm:$0xff] %vm1443_vm1, %v7460_v12  ;;  %v7071_v51 = vadd.f32 %v13202_v59, %v6959_v14  ;;  %v4821_v7 = vpop.f32.mrf.mxu0  ;;  %v6848_v45 = vmax.f32 %v6743_v11, 0.0  ;;  %5915 = vrot.lane.b32.xlu1 %v5706_v22, %s10919_s11  ;;  %v7703_v41 = vsel %vm12801_vm15, %v7701_v8, %v7702_v0  ;;  %v7704_v44 = vrot.slane %v7702_v0, 4 }
 0x3cc   : > { %5282 = vst [vmem:[#allocation2 + $0x5d0] sm:$0xff] %v13215_v62  ;;  %v5071_v47 = vadd.f32 %v4821_v7, %v3669_v31  ;;  %v6744_v50 = vadd.f32 %v6492_v61, %v6110_v53  ;;  %v5707_v26 = vrot.slane %v13215_v62, 1  ;;  %7709 = vst.msk [vmem:[#allocation5 + $0x2c] sm:$0xf] %vm7537_vm6, %v7703_v41  ;;  %v10753_v61 = vld [vmem:[%s13981_s2 + $0x30] sm:$0xff]   ;;  %v6496_v8 = vsel %vm4082_vm3, %v6493_v43, %v6495_v55  ;;  %v3674_v62 = vld [vmem:[#allocation2 + $0x600] sm:$0xff] }
 0x3cd   : > { %7176 = vst.msk [vmem:[#allocation3 + $0x1e0] sm:$0xff] %vm1443_vm1, %v7071_v51  ;;  %v6960_v3 = vmul.f32 %v13193_v58, %v6848_v45  ;;  %v4825_v27 = vpop.f32.mrf.mxu0  ;;  %v5860_v33 = vpop.permute.xlu1 %5859  ;;  %v6497_v24 = vrot.slane %v6219_v57, 2  ;;  %10353 = vmatpush3.bf16.msra.mxu1 %v10753_v61  ;;  %v6499_v22 = vrot.slane %v13250_v60, 2  ;;  %v10867_v7 = vld [vmem:[#allocation2 + $0x410] sm:$0xff]  ;;  %v3675_v41 = vld [vmem:[#allocation2 + $0x608] sm:$0xff]  ;;  %v3677_v57 = vld [vmem:[#allocation2 + $0x618] sm:$0xff] }
 0x3ce   : > { %7710 = vst.msk [vmem:[#allocation5 + $0x30] sm:$0x1] %vm7615_vm9, %v7704_v44  ;;  %v13233_v49 = vadd.f32 %v4825_v27, %v3670_v15  ;;  %v6849_v29 = vmax.f32 %v6744_v50, 0.0  ;;  %v6111_v13 = vadd.f32 %v10865_v48, %v5860_v33  ;;  %v5708_v42 = vsel %vm5521_vm4, %v5705_v18, %v5707_v26  ;;  %10354 = vmatprep.subr.bf16.mxu1 %v10918_v19  ;;  %v3676_v48 = vld [vmem:[#allocation2 + $0x610] sm:$0xff] }
 0x3cf   : > { %5283 = vst.msk [vmem:[#allocation2 + $0x5d8] sm:$0xff] %vm1443_vm1, %v5071_v47  ;;  %v7072_v32 = vadd.f32 %v13202_v59, %v6960_v3  ;;  %v4827_v37 = vpop.f32.mrf.mxu0  ;;  %5917 = vrot.lane.b32.xlu0 %v5708_v42, %s10919_s11  ;;  %v6498_v47 = vsel %vm4082_vm3, %v6495_v55, %v6497_v24  ;;  %v3680_v60 = vld [vmem:[#allocation2 + $0x630] sm:$0xff] }
 0x3d0   : > { %v7279_v35 = vld [vmem:[#allocation3 + $0x1d0] ss:$2 sm:$0xff]  ;;  %v7385_v39 = vld [vmem:[#allocation3 + $0x1d1] ss:$2 sm:$0xff]  ;;  %5284 = vst [vmem:[#allocation2 + $0x5e0] sm:$0xff] %v13233_v49  ;;  %v5073_v54 = vadd.f32 %v4827_v37, %v3671_v56  ;;  %v6961_v63 = vmul.f32 %v13193_v58, %v6849_v29  ;;  %v6745_v16 = vadd.f32 %v6494_v5, %v6111_v13  ;;  %v5709_v21 = vrot.slane %v13233_v49, 1 }
 0x3d1   : > { %v7461_v10 = vadd.f32 %v7385_v39, %v7279_v35  ;;  %7177 = vst.msk [vmem:[#allocation3 + $0x1e8] sm:$0xff] %vm1443_vm1, %v7072_v32  ;;  %v4829_v1 = vpop.f32.mrf.mxu0  ;;  %v5862_v38 = vpop.permute.xlu0 %5861  ;;  %v13279_v49 = vld [vmem:[#allocation2 + $0x448] sm:$0xff]  ;;  %v6500_v32 = vsel %vm4082_vm3, %v6497_v24, %v6499_v22  ;;  %v13284_v56 = vld [vmem:[#allocation2 + $0x458] sm:$0xff]  ;;  %v10868_v39 = vld [vmem:[#allocation2 + $0x420] sm:$0xff] }
 0x3d2   : > { %5285 = vst.msk [vmem:[#allocation2 + $0x5e8] sm:$0xff] %vm1443_vm1, %v5073_v54  ;;  %v7073_v36 = vadd.f32 %v13202_v59, %v6961_v63  ;;  %v13248_v46 = vadd.f32 %v4829_v1, %v3672_v23  ;;  %v6850_v34 = vmax.f32 %v6745_v16, 0.0  ;;  %v6112_v4 = vadd.f32 %v10866_v52, %v5862_v38  ;;  %v7711_v37 = vld [vmem:[#allocation4 + $0xd2] sm:$0xff]  ;;  %v7712_v63 = vld [vmem:[#allocation4 + $0xda] sm:$0x3f] }
 0x3d3   : > { %7514 = vst.msk [vmem:[#allocation4 + $0xe8] sm:$0xff] %vm1443_vm1, %v7461_v10  ;;  %v4831_v18 = vpop.f32.mrf.mxu0  ;;  %v5710_v12 = vsel %vm5521_vm4, %v5707_v26, %v5709_v21  ;;  %v10749_v14 = vld [vmem:[#allocation5 + $0x28] sm:$0xff]   ;;  %v6501_v1 = vrot.slane %v13279_v49, 2 }
 0x3d4   : > { %7178 = vst.msk [vmem:[#allocation3 + $0x1f0] sm:$0xff] %vm1443_vm1, %v7073_v36  ;;  %5286 = vst [vmem:[#allocation2 + $0x5f0] sm:$0xff] %v13248_v46  ;;  %v5075_v25 = vadd.f32 %v4831_v18, %v3673_v6  ;;  %v6962_v11 = vmul.f32 %v13193_v58, %v6850_v34  ;;  %v6746_v30 = vadd.f32 %v6496_v8, %v6112_v4  ;;  %5919 = vrot.lane.b32.xlu1 %v5710_v12, %s10919_s11  ;;  %v3678_v4 = vld [vmem:[#allocation2 + $0x620] sm:$0xff] }
 0x3d5   : > { %v5711_v0 = vrot.slane %v13248_v46, 1  ;;  %v4835_v20 = vpop.f32.mrf.mxu0  ;;  %10327 = vmatmul.mubr.msk.bf16.gmra.mxu1 %vm1443_vm1, %v10749_v14  ;;  %v5864_v53 = vpop.permute.xlu1 %5863  ;;  %v6503_v8 = vrot.slane %v13284_v56, 2  ;;  %v3684_v56 = vld [vmem:[#allocation2 + $0x650] sm:$0xff] }
 0x3d6   : > { %5287 = vst.msk [vmem:[#allocation2 + $0x5f8] sm:$0xff] %vm1443_vm1, %v5075_v25  ;;  %v7074_v43 = vadd.f32 %v13202_v59, %v6962_v11  ;;  %v13268_v51 = vadd.f32 %v4835_v20, %v3674_v62  ;;  %v6851_v31 = vmax.f32 %v6746_v30, 0.0  ;;  %v6113_v45 = vadd.f32 %v10867_v7, %v5864_v53  ;;  %10330 = vmatprep.mubr.msk.bf16.mxu1 %vm10920_vm5, %v10918_v19  ;;  %v10869_v30 = vld [vmem:[#allocation2 + $0x430] sm:$0xff]  ;;  %v3679_v53 = vld [vmem:[#allocation2 + $0x628] sm:$0xff] }
 0x3d7   : > { %v4837_v44 = vpop.f32.mrf.mxu0  ;;  %v5712_v50 = vsel %vm5521_vm4, %v5709_v21, %v5711_v0 }
 0x3d8   : > { %v7281_v26 = vld [vmem:[#allocation3 + $0x1e0] ss:$2 sm:$0xff]  ;;  %v7387_v40 = vld [vmem:[#allocation3 + $0x1e1] ss:$2 sm:$0xff]  ;;  %7179 = vst.msk [vmem:[#allocation3 + $0x1f8] sm:$0xff] %vm1443_vm1, %v7074_v43  ;;  %5288 = vst [vmem:[#allocation2 + $0x600] sm:$0xff] %v13268_v51  ;;  %v5077_v3 = vadd.f32 %v4837_v44, %v3675_v41  ;;  %v6963_v15 = vmul.f32 %v13193_v58, %v6851_v31  ;;  %v6747_v27 = vadd.f32 %v6498_v47, %v6113_v45  ;;  %5921 = vrot.lane.b32.xlu0 %v5712_v50, %s10919_s11 }
 0x3d9   : > { %v5713_v33 = vrot.slane %v13268_v51, 1  ;;  %v7462_v29 = vadd.f32 %v7387_v40, %v7281_v26  ;;  %v4839_v13 = vpop.f32.mrf.mxu0  ;;  %v5866_v42 = vpop.permute.xlu0 %5865  ;;  %v6502_v51 = vsel %vm4082_vm3, %v6499_v22, %v6501_v1  ;;  %v13311_v26 = vld [vmem:[#allocation2 + $0x468] sm:$0xff] }
 0x3da   : > { %5289 = vst.msk [vmem:[#allocation2 + $0x608] sm:$0xff] %vm1443_vm1, %v5077_v3  ;;  %v7075_v5 = vadd.f32 %v13202_v59, %v6963_v15  ;;  %v13288_v55 = vadd.f32 %v4839_v13, %v3676_v48  ;;  %v6852_v35 = vmax.f32 %v6747_v27, 0.0  ;;  %v6114_v54 = vadd.f32 %v10868_v39, %v5866_v42  ;;  %v7713_v16 = vld [vmem:[#allocation4 + $0xe1] sm:$0xff]  ;;  %v7714_v21 = vld [vmem:[#allocation4 + $0xe9] sm:$0x3f]  ;;  %v10870_v48 = vld [vmem:[#allocation2 + $0x440] sm:$0xff] }
 0x3db   : > { %7515 = vst.msk [vmem:[#allocation4 + $0xf0] sm:$0xff] %vm1443_vm1, %v7462_v29  ;;  %v4841_v10 = vpop.f32.mrf.mxu0  ;;  %v5714_v23 = vsel %vm5521_vm4, %v5711_v0, %v5713_v33  ;;  %v7715_v38 = vadd.f32 %v7713_v16, %v7711_v37  ;;  %v7716_v36 = vadd.f32 %v7714_v21, %v7712_v63  ;;  %v6504_v3 = vsel %vm4082_vm3, %v6501_v1, %v6503_v8  ;;  %v3681_v42 = vld [vmem:[#allocation2 + $0x638] sm:$0xff] }
 0x3dc   : > { %7180 = vst.msk [vmem:[#allocation3 + $0x200] sm:$0xff] %vm1443_vm1, %v7075_v5  ;;  %5290 = vst [vmem:[#allocation2 + $0x610] sm:$0xff] %v13288_v55  ;;  %v5079_v46 = vadd.f32 %v4841_v10, %v3677_v57  ;;  %v6964_v6 = vmul.f32 %v13193_v58, %v6852_v35  ;;  %v6748_v34 = vadd.f32 %v6500_v32, %v6114_v54  ;;  %5923 = vrot.lane.b32.xlu1 %v5714_v23, %s10919_s11  ;;  %v13326_v21 = vld [vmem:[#allocation2 + $0x478] sm:$0xff]  ;;  %v3682_v57 = vld [vmem:[#allocation2 + $0x640] sm:$0xff] }
 0x3dd   : > { %v5715_v52 = vrot.slane %v13288_v55, 1  ;;  %v4845_v61 = vpop.f32.mrf.mxu0  ;;  %v5868_v18 = vpop.permute.xlu1 %5867  ;;  %v7717_v12 = vmul.f32 0.25, %v7715_v38  ;;  %v7718_v14 = vmul.f32 0.25, %v7716_v36  ;;  %v6505_v5 = vrot.slane %v13311_v26, 2 }
 0x3de   : > { %5291 = vst.msk [vmem:[#allocation2 + $0x618] sm:$0xff] %vm1443_vm1, %v5079_v46  ;;  %v7076_v24 = vadd.f32 %v13202_v59, %v6964_v6  ;;  %v13301_v25 = vadd.f32 %v4845_v61, %v3678_v4  ;;  %v6853_v11 = vmax.f32 %v6748_v34, 0.0  ;;  %v6115_v0 = vadd.f32 %v10869_v30, %v5868_v18  ;;  %v10871_v6 = vld [vmem:[#allocation2 + $0x450] sm:$0xff]  ;;  %v3683_v61 = vld [vmem:[#allocation2 + $0x648] sm:$0xff] }
 0x3df   : > { %v7283_v62 = vld [vmem:[#allocation3 + $0x1f0] ss:$2 sm:$0xff]  ;;  %v7389_v20 = vld [vmem:[#allocation3 + $0x1f1] ss:$2 sm:$0xff]  ;;  %v4847_v43 = vpop.f32.mrf.mxu0  ;;  %v5716_v31 = vsel %vm5521_vm4, %v5713_v33, %v5715_v52  ;;  %v10223_v7 = vpack.c.bf16 %v7717_v12, %v7717_v12  ;;  %v10224_v45 = vpack.c.bf16 %v7718_v14, %v7718_v14  ;;  %v6506_v12 = vsel %vm4082_vm3, %v6503_v8, %v6505_v5 }
 0x3e0   : > { %v7463_v41 = vadd.f32 %v7389_v20, %v7283_v62  ;;  %7181 = vst.msk [vmem:[#allocation3 + $0x208] sm:$0xff] %vm1443_vm1, %v7076_v24  ;;  %5292 = vst [vmem:[#allocation2 + $0x620] sm:$0xff] %v13301_v25  ;;  %v5081_v44 = vadd.f32 %v4847_v43, %v3679_v53  ;;  %v6965_v47 = vmul.f32 %v13193_v58, %v6853_v11  ;;  %5925 = vrot.lane.b32.xlu0 %v5716_v31, %s10919_s11  ;;  %v13344_v62 = vld [vmem:[#allocation2 + $0x488] sm:$0xff] }
 0x3e1   : > { %v6749_v50 = vadd.f32 %v6502_v51, %v6115_v0  ;;  %v4849_v40 = vpop.f32.mrf.mxu0  ;;  %v5870_v22 = vpop.permute.xlu0 %5869  ;;  %v5717_v15 = vrot.slane %v13301_v25, 1  ;;  %v7725_v27 = vrot.slane %v10223_v7, 7  ;;  %v7727_v35 = vrot.slane %v10224_v45, 7  ;;  %v10872_v7 = vld [vmem:[#allocation2 + $0x460] sm:$0xff] }
 0x3e2   : > { %7516 = vst.msk [vmem:[#allocation4 + $0xf8] sm:$0xff] %vm1443_vm1, %v7463_v41  ;;  %5293 = vst.msk [vmem:[#allocation2 + $0x628] sm:$0xff] %vm1443_vm1, %v5081_v44  ;;  %v7077_v33 = vadd.f32 %v13202_v59, %v6965_v47  ;;  %v5082_v49 = vadd.f32 %v4849_v40, %v3680_v60  ;;  %v6116_v13 = vadd.f32 %v10870_v48, %v5870_v22  ;;  %v6507_v24 = vrot.slane %v13326_v21, 2  ;;  %v3685_v41 = vld [vmem:[#allocation2 + $0x658] sm:$0xff]  ;;  %v10755_v60 = vld [vmem:[%s13981_s2 + $0x28] sm:$0xff]  }
 0x3e3   : > { %v6854_v29 = vmax.f32 %v6749_v50, 0.0  ;;  %v4851_v32 = vpop.f32.mrf.mxu0  ;;  %v5718_v37 = vsel %vm5521_vm4, %v5715_v52, %v5717_v15  ;;  %v7726_v55 = vrot.slane %v7725_v27, 4  ;;  %7731 = vst.msk [vmem:[#allocation5 + $0x30] sm:$0xe] %vm7640_vm10, %v7725_v27  ;;  %v6509_v26 = vrot.slane %v13344_v62, 2  ;;  %v13363_v27 = vld [vmem:[#allocation2 + $0x498] sm:$0xff]  ;;  %10355 = vmatpush3.bf16.msra.mxu1 %v10755_v60 }
 0x3e4   : > { %7182 = vst.msk [vmem:[#allocation3 + $0x210] sm:$0xff] %vm1443_vm1, %v7077_v33  ;;  %5294 = vst [vmem:[#allocation2 + $0x630] sm:$0xff] %v5082_v49  ;;  %v5083_v39 = vadd.f32 %v4851_v32, %v3681_v42  ;;  %v6750_v63 = vadd.f32 %v6504_v3, %v6116_v13  ;;  %5927 = vrot.lane.b32.xlu1 %v5718_v37, %s10919_s11  ;;  %v5719_v16 = vrot.slane %v5082_v49, 1  ;;  %v3686_v33 = vld [vmem:[#allocation2 + $0x660] sm:$0xff]  ;;  %v10873_v37 = vld [vmem:[#allocation2 + $0x470] sm:$0xff]  ;;  %10356 = vmatprep.subr.bf16.mxu1 %v10918_v19 }
 0x3e5   : > { %v6966_v54 = vmul.f32 %v13193_v58, %v6854_v29  ;;  %v4855_v10 = vpop.f32.mrf.mxu0  ;;  %v5872_v23 = vpop.permute.xlu1 %5871  ;;  %v7728_v1 = vsel %vm12886_vm0, %v7726_v55, %v7727_v35  ;;  %v6508_v47 = vsel %vm4082_vm3, %v6505_v5, %v6507_v24  ;;  %v6511_v21 = vrot.slane %v13363_v27, 2  ;;  %v10875_v60 = vld [vmem:[#allocation2 + $0x490] sm:$0xff]  ;;  %v3691_v27 = vld [vmem:[#allocation2 + $0x688] sm:$0xff] }
 0x3e6   : > { %5295 = vst.msk [vmem:[#allocation2 + $0x638] sm:$0xff] %vm1443_vm1, %v5083_v39  ;;  %v13332_v36 = vadd.f32 %v4855_v10, %v3682_v57  ;;  %v6855_v46 = vmax.f32 %v6750_v63, 0.0  ;;  %v6117_v34 = vadd.f32 %v10871_v6, %v5872_v23  ;;  %v5720_v14 = vsel %vm5521_vm4, %v5717_v15, %v5719_v16  ;;  %v3687_v39 = vld [vmem:[#allocation2 + $0x668] sm:$0xff] }
 0x3e7   : > { %v7078_v38 = vadd.f32 %v13202_v59, %v6966_v54  ;;  %7732 = vst.msk [vmem:[#allocation5 + $0x34] sm:$0xf] %vm7537_vm6, %v7728_v1  ;;  %v7285_v52 = vld [vmem:[#allocation3 + $0x200] ss:$2 sm:$0xff]  ;;  %v7391_v4 = vld [vmem:[#allocation3 + $0x201] ss:$2 sm:$0xff]  ;;  %v4857_v18 = vpop.f32.mrf.mxu0  ;;  %5929 = vrot.lane.b32.xlu0 %v5720_v14, %s10919_s11  ;;  %v6510_v63 = vsel %vm4082_vm3, %v6507_v24, %v6509_v26 }
 0x3e8   : > { %v7464_v25 = vadd.f32 %v7391_v4, %v7285_v52  ;;  %5296 = vst [vmem:[#allocation2 + $0x640] sm:$0xff] %v13332_v36  ;;  %v5085_v11 = vadd.f32 %v4857_v18, %v3683_v61  ;;  %v6967_v30 = vmul.f32 %v13193_v58, %v6855_v46  ;;  %v6751_v0 = vadd.f32 %v6506_v12, %v6117_v34  ;;  %v10874_v12 = vld [vmem:[#allocation2 + $0x480] sm:$0xff]  ;;  %v7733_v24 = vld [vmem:[#allocation4 + $0xf0] sm:$0xff] }
 0x3e9   : > { %7183 = vst.msk [vmem:[#allocation3 + $0x218] sm:$0xff] %vm1443_vm1, %v7078_v38  ;;  %v4859_v20 = vpop.f32.mrf.mxu0  ;;  %v5874_v8 = vpop.permute.xlu0 %5873  ;;  %v5721_v53 = vrot.slane %v13332_v36, 1  ;;  %v13378_v38 = vld [vmem:[#allocation2 + $0x4a8] sm:$0xff]  ;;  %v3688_v36 = vld [vmem:[#allocation2 + $0x670] sm:$0xff] }
 0x3ea   : > { %7517 = vst.msk [vmem:[#allocation4 + $0x100] sm:$0xff] %vm1443_vm1, %v7464_v25  ;;  %5297 = vst.msk [vmem:[#allocation2 + $0x648] sm:$0xff] %vm1443_vm1, %v5085_v11  ;;  %v7079_v43 = vadd.f32 %v13202_v59, %v6967_v30  ;;  %v13350_v51 = vadd.f32 %v4859_v20, %v3684_v56  ;;  %v6856_v31 = vmax.f32 %v6751_v0, 0.0  ;;  %v6118_v45 = vadd.f32 %v10872_v7, %v5874_v8  ;;  %v3689_v25 = vld [vmem:[#allocation2 + $0x678] sm:$0xff]  ;;  %v3690_v7 = vld [vmem:[#allocation2 + $0x680] sm:$0xff] }
 0x3eb   : > { %v4861_v44 = vpop.f32.mrf.mxu0  ;;  %v5722_v50 = vsel %vm5521_vm4, %v5719_v16, %v5721_v53  ;;  %v6512_v30 = vsel %vm4082_vm3, %v6509_v26, %v6511_v21  ;;  %v6513_v62 = vrot.slane %v13378_v38, 2 }
 0x3ec   : > { %7184 = vst.msk [vmem:[#allocation3 + $0x220] sm:$0xff] %vm1443_vm1, %v7079_v43  ;;  %5298 = vst [vmem:[#allocation2 + $0x650] sm:$0xff] %v13350_v51  ;;  %v5087_v40 = vadd.f32 %v4861_v44, %v3685_v41  ;;  %v6968_v22 = vmul.f32 %v13193_v58, %v6856_v31  ;;  %v6752_v3 = vadd.f32 %v6508_v47, %v6118_v45  ;;  %5931 = vrot.lane.b32.xlu1 %v5722_v50, %s10919_s11  ;;  %v13396_v31 = vld [vmem:[#allocation2 + $0x4b8] sm:$0xff] }
 0x3ed   : > { %v5723_v15 = vrot.slane %v13350_v51, 1  ;;  %v4865_v49 = vpop.f32.mrf.mxu0  ;;  %v5876_v29 = vpop.permute.xlu1 %5875 }
 0x3ee   : > { %v10750_v48 = vld [vmem:[#allocation5 + $0x30] sm:$0xff]   ;;  %5299 = vst.msk [vmem:[#allocation2 + $0x658] sm:$0xff] %vm1443_vm1, %v5087_v40  ;;  %v7080_v13 = vadd.f32 %v13202_v59, %v6968_v22  ;;  %v13367_v42 = vadd.f32 %v4865_v49, %v3686_v33  ;;  %v6857_v32 = vmax.f32 %v6752_v3, 0.0  ;;  %v6119_v5 = vadd.f32 %v10873_v37, %v5876_v29 }
 0x3ef   : > { %v4867_v54 = vpop.f32.mrf.mxu0  ;;  %10331 = vmatmul.mubr.msk.bf16.gmra.mxu1 %vm1443_vm1, %v10750_v48  ;;  %v5724_v16 = vsel %vm5521_vm4, %v5721_v53, %v5723_v15  ;;  %v6514_v49 = vsel %vm4082_vm3, %v6511_v21, %v6513_v62  ;;  %v6515_v48 = vrot.slane %v13396_v31, 2 }
 0x3f0   : > { %v7287_v55 = vld [vmem:[#allocation3 + $0x210] ss:$2 sm:$0xff]  ;;  %v7393_v35 = vld [vmem:[#allocation3 + $0x211] ss:$2 sm:$0xff]  ;;  %7185 = vst.msk [vmem:[#allocation3 + $0x228] sm:$0xff] %vm1443_vm1, %v7080_v13  ;;  %5300 = vst [vmem:[#allocation2 + $0x660] sm:$0xff] %v13367_v42  ;;  %v5089_v10 = vadd.f32 %v4867_v54, %v3687_v39  ;;  %v6969_v23 = vmul.f32 %v13193_v58, %v6857_v32  ;;  %v6753_v1 = vadd.f32 %v6510_v63, %v6119_v5  ;;  %5933 = vrot.lane.b32.xlu0 %v5724_v16, %s10919_s11 }
 0x3f1   : > { %v7465_v57 = vadd.f32 %v7393_v35, %v7287_v55  ;;  %v4869_v46 = vpop.f32.mrf.mxu0  ;;  %v5878_v6 = vpop.permute.xlu0 %5877  ;;  %v5725_v34 = vrot.slane %v13367_v42, 1  ;;  %10334 = vmatprep.mubr.msk.bf16.mxu1 %vm10920_vm5, %v10918_v19  ;;  %v7735_v52 = vld [vmem:[#allocation4 + $0xff] sm:$0xff]  ;;  %v3692_v35 = vld [vmem:[#allocation2 + $0x690] sm:$0x3] }
 0x3f2   : > { %5301 = vst.msk [vmem:[#allocation2 + $0x668] sm:$0xff] %vm1443_vm1, %v5089_v10  ;;  %v7081_v4 = vadd.f32 %v13202_v59, %v6969_v23  ;;  %v13386_v61 = vadd.f32 %v4869_v46, %v3688_v36  ;;  %v6858_v18 = vmax.f32 %v6753_v1, 0.0  ;;  %v6120_v14 = vadd.f32 %v10874_v12, %v5878_v6  ;;  %v6229_v16 = vld [vmem:[#allocation2 + $0x4c8] sm:$0xff]  ;;  %v10876_v1 = vld [vmem:[#allocation2 + $0x4a0] sm:$0xff]  ;;  %v3693_v6 = vld [vmem:[#allocation2 + $0x698] sm:$0x3] }
 0x3f3   : > { %7518 = vst.msk [vmem:[#allocation4 + $0x108] sm:$0xff] %vm1443_vm1, %v7465_v57  ;;  %v4871_v11 = vpop.f32.mrf.mxu0  ;;  %v5726_v0 = vsel %vm5521_vm4, %v5723_v15, %v5725_v34  ;;  %v7737_v56 = vadd.f32 %v7735_v52, %v7733_v24  ;;  %v8044_v43 = vpop.f32.mrf.mxu1  ;;  %v7734_v46 = vld [vmem:[#allocation4 + $0xf8] sm:$0x3f]  ;;  %v6516_v52 = vsel %vm4082_vm3, %v6513_v62, %v6515_v48 }
 0x3f4   : > { %7186 = vst.msk [vmem:[#allocation3 + $0x230] sm:$0xff] %vm1443_vm1, %v7081_v4  ;;  %5302 = vst [vmem:[#allocation2 + $0x670] sm:$0xff] %v13386_v61  ;;  %v5091_v20 = vadd.f32 %v4871_v11, %v3689_v25  ;;  %v6970_v8 = vmul.f32 %v13193_v58, %v6858_v18  ;;  %v6754_v53 = vadd.f32 %v6512_v30, %v6120_v14  ;;  %5935 = vrot.lane.b32.xlu1 %v5726_v0, %s10919_s11  ;;  %v10757_v18 = vld [vmem:[%s13981_s2 + $0x20] sm:$0xff]   ;;  %v6230_v11 = vld [vmem:[#allocation2 + $0x4d8] sm:$0xff] }
 0x3f5   : > { %v5727_v51 = vrot.slane %v13386_v61, 1  ;;  %v4875_v45 = vpop.f32.mrf.mxu0  ;;  %8132 = vst.msk [vmem:[#allocation6] sm:$0xff] %vm8131_vm13, %v8044_v43  ;;  %v5880_v41 = vpop.permute.xlu1 %5879  ;;  %v7739_v44 = vmul.f32 0.25, %v7737_v56  ;;  %v6517_v25 = vrot.slane %v6229_v16, 2  ;;  %10357 = vmatpush3.bf16.msra.mxu1 %v10757_v18 }
 0x3f6   : > { %5303 = vst.msk [vmem:[#allocation2 + $0x678] sm:$0xff] %vm1443_vm1, %v5091_v20  ;;  %v7082_v47 = vadd.f32 %v13202_v59, %v6970_v8  ;;  %v13401_v50 = vadd.f32 %v4875_v45, %v3690_v7  ;;  %v6859_v26 = vmax.f32 %v6754_v53, 0.0  ;;  %v6121_v40 = vadd.f32 %v10875_v60, %v5880_v41  ;;  %v10308_v22 = vpop.f32.mrf.mxu1  ;;  %10402 = vmatprep.subr.bf16.mxu1 %v10918_v19  ;;  %v10877_v53 = vld [vmem:[#allocation2 + $0x4b0] sm:$0xff] }
 0x3f7   : > { %v7289_v3 = vld [vmem:[#allocation3 + $0x220] ss:$2 sm:$0xff]  ;;  %v7395_v15 = vld [vmem:[#allocation3 + $0x221] ss:$2 sm:$0xff]  ;;  %v4877_v33 = vpop.f32.mrf.mxu0  ;;  %v5728_v29 = vsel %vm5521_vm4, %v5725_v34, %v5727_v51  ;;  %v10225_v13 = vpack.c.bf16 %v7739_v44, %v7739_v44  ;;  %v6518_v41 = vsel %vm4082_vm3, %v6515_v48, %v6517_v25  ;;  %v6232_v48 = vld [vmem:[#allocation2 + $0x4f8] sm:$0xff] }
 0x3f8   : > { %v7466_v42 = vadd.f32 %v7395_v15, %v7289_v3  ;;  %7187 = vst.msk [vmem:[#allocation3 + $0x238] sm:$0xff] %vm1443_vm1, %v7082_v47  ;;  %5304 = vst [vmem:[#allocation2 + $0x680] sm:$0xff] %v13401_v50  ;;  %v5093_v32 = vadd.f32 %v4877_v33, %v3691_v27  ;;  %v6971_v37 = vmul.f32 %v13193_v58, %v6859_v26  ;;  %5937 = vrot.lane.b32.xlu0 %v5728_v29, %s10919_s11  ;;  %v8047_v55 = vpop.f32.mrf.mxu1  ;;  %v6231_v44 = vld [vmem:[#allocation2 + $0x4e8] sm:$0xff] }
 0x3f9   : > { %v6755_v5 = vadd.f32 %v6514_v49, %v6121_v40  ;;  %v4879_v39 = vpop.f32.mrf.mxu0  ;;  %8133 = vst.msk [vmem:[#allocation6 + $0x8] sm:$0xff] %vm8131_vm13, %v8047_v55  ;;  %v5882_v54 = vpop.permute.xlu0 %5881  ;;  %v5729_v63 = vrot.slane %v13401_v50, 1  ;;  %v10878_v40 = vld [vmem:[#allocation2 + $0x4c0] sm:$0xff]  ;;  %v6521_v33 = vrot.slane %v6231_v44, 2 }
 0x3fa   : > { %v7736_v21 = vld [vmem:[#allocation4 + $0x107] sm:$0x3f]  ;;  %7749 = vst.msk [vmem:[#allocation5 + $0x38] sm:$0xf] %vm7537_vm6, %v10225_v13  ;;  %v7083_v57 = vadd.f32 %v13202_v59, %v6971_v37  ;;  %v5094_v10 = vadd.f32 %v4879_v39, %v3692_v35  ;;  %v6122_v38 = vadd.f32 %v10876_v1, %v5882_v54  ;;  %v10309_v36 = vpop.f32.mrf.mxu1 }
 0x3fb   : > { %7519 = vst.msk [vmem:[#allocation4 + $0x110] sm:$0xff] %vm1443_vm1, %v7466_v42  ;;  %5305 = vst.msk [vmem:[#allocation2 + $0x688] sm:$0xff] %vm1443_vm1, %v5093_v32  ;;  %v6860_v23 = vmax.f32 %v6755_v5, 0.0  ;;  %v4881_v34 = vpop.f32.mrf.mxu0  ;;  %v5730_v4 = vsel %vm5521_vm4, %v5727_v51, %v5729_v63  ;;  %v7738_v61 = vadd.f32 %v7736_v21, %v7734_v46  ;;  %v6519_v51 = vrot.slane %v6230_v11, 2  ;;  %v10879_v5 = vld [vmem:[#allocation2 + $0x4d0] sm:$0xff]  ;;  %v6233_v1 = vld [vmem:[#allocation2 + $0x508] sm:$0xff] }
 0x3fc   : > { %7188 = vst.msk [vmem:[#allocation3 + $0x240] sm:$0xff] %vm1443_vm1, %v7083_v57  ;;  %5306 = vst [vmem:[#allocation2 + $0x690] sm:$0x3] %v5094_v10  ;;  %v5095_v12 = vadd.f32 %v4881_v34, %v3693_v6  ;;  %v6756_v24 = vadd.f32 %v6516_v52, %v6122_v38  ;;  %5939 = vrot.lane.b32.xlu1 %v5730_v4, %s10919_s11  ;;  %v6523_v21 = vrot.slane %v6232_v48, 2  ;;  %v10880_v36 = vld [vmem:[#allocation2 + $0x4e0] sm:$0xff]  ;;  %v6525_v34 = vrot.slane %v6233_v1, 2 }
 0x3fd   : > { %v6972_v14 = vmul.f32 %v13193_v58, %v6860_v23  ;;  %v7740_v30 = vmul.f32 0.25, %v7738_v61  ;;  %v5884_v56 = vpop.permute.xlu1 %5883  ;;  %v6520_v27 = vsel %vm4082_vm3, %v6517_v25, %v6519_v51  ;;  %v6522_v16 = vsel %vm4082_vm3, %v6519_v51, %v6521_v33  ;;  %v6234_v61 = vld [vmem:[#allocation2 + $0x518] sm:$0xff]  ;;  %v10883_v48 = vld [vmem:[#allocation2 + $0x510] sm:$0xff] }
 0x3fe   : > { %5307 = vst.msk [vmem:[#allocation2 + $0x698] sm:$0x3] %vm1654_vm2, %v5095_v12  ;;  %v6861_v62 = vmax.f32 %v6756_v24, 0.0  ;;  %v6123_v43 = vadd.f32 %v10877_v53, %v5884_v56  ;;  %v6524_v6 = vsel %vm4082_vm3, %v6521_v33, %v6523_v21  ;;  %v10881_v24 = vld [vmem:[#allocation2 + $0x4f0] sm:$0xff]  ;;  %v6526_v11 = vsel %vm4082_vm3, %v6523_v21, %v6525_v34 }
 0x3ff   : > { %v7084_v0 = vadd.f32 %v13202_v59, %v6972_v14  ;;  %v7291_v20 = vld [vmem:[#allocation3 + $0x230] ss:$2 sm:$0xff]  ;;  %v7397_v8 = vld [vmem:[#allocation3 + $0x231] ss:$2 sm:$0xff]  ;;  %v10226_v31 = vpack.c.bf16 %v7740_v30, %v7740_v30  ;;  %v6527_v30 = vrot.slane %v6234_v61, 2 }
 0x400   : > { %v7467_v7 = vadd.f32 %v7397_v8, %v7291_v20  ;;  %v6973_v45 = vmul.f32 %v13193_v58, %v6861_v62  ;;  %v6757_v47 = vadd.f32 %v6518_v41, %v6123_v43  ;;  %v6235_v8 = vld [vmem:[#allocation2 + $0x528] sm:$0xff]  ;;  %v10882_v41 = vld [vmem:[#allocation2 + $0x500] sm:$0xff] }
 0x401   : > { %7189 = vst.msk [vmem:[#allocation3 + $0x248] sm:$0xff] %vm1443_vm1, %v7084_v0  ;;  %v5886_v26 = vpop.permute.xlu0 %5885 }
 0x402   : > { %7750 = vst.msk [vmem:[#allocation5 + $0x3c] sm:$0x7] %vm7556_vm7, %v10226_v31  ;;  %v7085_v60 = vadd.f32 %v13202_v59, %v6973_v45  ;;  %v6124_v22 = vadd.f32 %v10878_v40, %v5886_v26  ;;  %v6862_v3 = vmax.f32 %v6757_v47, 0.0  ;;  %v7751_v51 = vld [vmem:[#allocation4 + $0x10e] sm:$0xff]  ;;  %v6528_v26 = vsel %vm4082_vm3, %v6525_v34, %v6527_v30 }
 0x403   : > { %7520 = vst.msk [vmem:[#allocation4 + $0x118] sm:$0xff] %vm1443_vm1, %v7467_v7  ;;  %v5414_v15 = vld [vmem:[#allocation2 + $0x690] sm:$0x1] }
 0x404   : > { %7190 = vst.msk [vmem:[#allocation3 + $0x250] sm:$0xff] %vm1443_vm1, %v7085_v60  ;;  %v5731_v49 = vrot.slane %v5414_v15, 1  ;;  %v6758_v29 = vadd.f32 %v6520_v27, %v6124_v22  ;;  %v6974_v13 = vmul.f32 %v13193_v58, %v6862_v3  ;;  %v6529_v60 = vrot.slane %v6235_v8, 2  ;;  %v6236_v15 = vld [vmem:[#allocation2 + $0x538] sm:$0xff] }
 0x405   : > { %v5888_v42 = vpop.permute.xlu1 %5887 }
 0x406   : > { %v5732_v32 = vsel %vm5521_vm4, %v5729_v63, %v5731_v49  ;;  %v6863_v37 = vmax.f32 %v6758_v29, 0.0  ;;  %v6125_v55 = vadd.f32 %v10879_v5, %v5888_v42  ;;  %v7086_v54 = vadd.f32 %v13202_v59, %v6974_v13 }
 0x407   : > { %5941 = vrot.lane.b32.xlu0 %v5732_v32, %s10919_s11  ;;  %vm7866_vm4 = vcmask 518146  }
 0x408   : > { %v7293_v35 = vld [vmem:[#allocation3 + $0x240] ss:$2 sm:$0xff]  ;;  %v7399_v39 = vld [vmem:[#allocation3 + $0x241] ss:$2 sm:$0xff]  ;;  %v6975_v10 = vmul.f32 %v13193_v58, %v6863_v37  ;;  %v6759_v23 = vadd.f32 %v6522_v16, %v6125_v55  ;;  %7191 = vst.msk [vmem:[#allocation3 + $0x258] sm:$0xff] %vm1443_vm1, %v7086_v54  ;;  %v6530_v55 = vsel %vm4082_vm3, %v6527_v30, %v6529_v60  ;;  %v10885_v30 = vld [vmem:[#allocation2 + $0x530] sm:$0xff] }
 0x409   : > { %v7468_v57 = vadd.f32 %v7399_v39, %v7293_v35  ;;  %v5890_v50 = vpop.permute.xlu0 %5889  ;;  %v6531_v35 = vrot.slane %v6236_v15, 2  ;;  %7867 = vst.msk [vmem:[#allocation5 + $0x60] sm:$0x4] %vm7866_vm4, %v10917_v2  ;;  %vm9314_vm4 = vcmask 257027  }
 0x40a   : > { %v7087_v63 = vadd.f32 %v13202_v59, %v6975_v10  ;;  %v6864_v38 = vmax.f32 %v6759_v23, 0.0  ;;  %v6126_v46 = vadd.f32 %v10880_v36, %v5890_v50 }
 0x40b   : > { %7521 = vst.msk [vmem:[#allocation4 + $0x120] sm:$0xff] %vm1443_vm1, %v7468_v57  ;;  %v6237_v57 = vld [vmem:[#allocation2 + $0x548] sm:$0xff]  ;;  %v6532_v34 = vsel %vm4082_vm3, %v6529_v60, %v6531_v35 }
 0x40c   : > { %7192 = vst.msk [vmem:[#allocation3 + $0x260] sm:$0xff] %vm1443_vm1, %v7087_v63  ;;  %v6976_v52 = vmul.f32 %v13193_v58, %v6864_v38  ;;  %v6760_v4 = vadd.f32 %v6524_v6, %v6126_v46  ;;  %v10884_v63 = vld [vmem:[#allocation2 + $0x520] sm:$0xff] }
 0x40d   : > { %v5892_v18 = vpop.permute.xlu1 %5891  ;;  %v7752_v46 = vld [vmem:[#allocation4 + $0x116] sm:$0x3f] }
 0x40e   : > { %v7088_v12 = vadd.f32 %v13202_v59, %v6976_v52  ;;  %v6865_v14 = vmax.f32 %v6760_v4, 0.0  ;;  %v6127_v25 = vadd.f32 %v10881_v24, %v5892_v18  ;;  %v6533_v52 = vrot.slane %v6237_v57, 2  ;;  %v6238_v4 = vld [vmem:[#allocation2 + $0x558] sm:$0xff] }
 0x40f   : > { %v7295_v0 = vld [vmem:[#allocation3 + $0x250] ss:$2 sm:$0xff]  ;;  %v7401_v62 = vld [vmem:[#allocation3 + $0x251] ss:$2 sm:$0xff] }
 0x410   : > { %7193 = vst.msk [vmem:[#allocation3 + $0x268] sm:$0xff] %vm1443_vm1, %v7088_v12  ;;  %v6977_v56 = vmul.f32 %v13193_v58, %v6865_v14  ;;  %v6761_v20 = vadd.f32 %v6526_v11, %v6127_v25  ;;  %v7469_v53 = vadd.f32 %v7401_v62, %v7295_v0  ;;  %v6535_v62 = vrot.slane %v6238_v4, 2 }
 0x411   : > { %v5894_v43 = vpop.permute.xlu0 %5893  ;;  %v6534_v8 = vsel %vm4082_vm3, %v6531_v35, %v6533_v52 }
 0x412   : > { %v7753_v31 = vld [vmem:[#allocation4 + $0x11d] sm:$0xff]  ;;  %v7089_v7 = vadd.f32 %v13202_v59, %v6977_v56  ;;  %v6866_v45 = vmax.f32 %v6761_v20, 0.0  ;;  %v6128_v44 = vadd.f32 %v10882_v41, %v5894_v43  ;;  %7522 = vst.msk [vmem:[#allocation4 + $0x128] sm:$0xff] %vm1443_vm1, %v7469_v53 }
 0x413   : > { %v7755_v47 = vadd.f32 %v7753_v31, %v7751_v51  ;;  %v6239_v31 = vld [vmem:[#allocation2 + $0x568] sm:$0xff] }
 0x414   : > { %7194 = vst.msk [vmem:[#allocation3 + $0x270] sm:$0xff] %vm1443_vm1, %v7089_v7  ;;  %v6978_v40 = vmul.f32 %v13193_v58, %v6866_v45  ;;  %v6762_v22 = vadd.f32 %v6528_v26, %v6128_v44  ;;  %v8052_v3 = vpop.f32.mrf.mxu1  ;;  %v6537_v15 = vrot.slane %v6239_v31, 2  ;;  %v10892_v31 = vld [vmem:[#allocation2 + $0x580] sm:$0xff] }
 0x415   : > { %v7757_v27 = vmul.f32 0.25, %v7755_v47  ;;  %8134 = vst.msk [vmem:[#allocation6 + $0x10] sm:$0xff] %vm8131_vm13, %v8052_v3  ;;  %v5896_v33 = vpop.permute.xlu1 %5895  ;;  %v13485_v47 = vld [vmem:[%s13984_s5] ss:$0 sm:$0xff]  ;;  %v6536_v3 = vsel %vm4082_vm3, %v6533_v52, %v6535_v62  ;;  %v6242_v52 = vld [vmem:[#allocation2 + $0x598] sm:$0xff] }
 0x416   : > { %v7090_v49 = vadd.f32 %v13202_v59, %v6978_v40  ;;  %v6867_v29 = vmax.f32 %v6762_v22, 0.0  ;;  %v6129_v13 = vadd.f32 %v10883_v48, %v5896_v33  ;;  %v10312_v42 = vpop.f32.mrf.mxu1  ;;  %v10888_v40 = vld [vmem:[#allocation2 + $0x540] sm:$0xff]  ;;  %v6240_v48 = vld [vmem:[#allocation2 + $0x578] sm:$0xff] }
 0x417   : > { %v10227_v32 = vpack.c.bf16 %v7757_v27, %v7757_v27  ;;  %v7297_v37 = vld [vmem:[#allocation3 + $0x260] ss:$2 sm:$0xff]  ;;  %v7403_v5 = vld [vmem:[#allocation3 + $0x261] ss:$2 sm:$0xff] }
 0x418   : > { %v7470_v39 = vadd.f32 %v7403_v5, %v7297_v37  ;;  %7195 = vst.msk [vmem:[#allocation3 + $0x278] sm:$0xff] %vm1443_vm1, %v7090_v49  ;;  %v6979_v54 = vmul.f32 %v13193_v58, %v6867_v29  ;;  %v6763_v16 = vadd.f32 %v6530_v55, %v6129_v13  ;;  %v8055_v21 = vpop.f32.mrf.mxu1  ;;  %v10889_v37 = vld [vmem:[#allocation2 + $0x550] sm:$0xff] }
 0x419   : > { %v7765_v10 = vrot.slane %v10227_v32, 5  ;;  %8135 = vst.msk [vmem:[#allocation6 + $0x18] sm:$0xff] %vm8131_vm13, %v8055_v21  ;;  %v5898_v23 = vpop.permute.xlu0 %5897  ;;  %v7754_v6 = vld [vmem:[#allocation4 + $0x125] sm:$0x3f] }
 0x41a   : > { %7523 = vst.msk [vmem:[#allocation4 + $0x130] sm:$0xff] %vm1443_vm1, %v7470_v39  ;;  %v7091_v1 = vadd.f32 %v13202_v59, %v6979_v54  ;;  %v6868_v50 = vmax.f32 %v6763_v16, 0.0  ;;  %v6130_v38 = vadd.f32 %v10884_v63, %v5898_v23  ;;  %v10313_v36 = vpop.f32.mrf.mxu1  ;;  %v7756_v61 = vadd.f32 %v7754_v6, %v7752_v46  ;;  %v10890_v63 = vld [vmem:[#allocation2 + $0x560] sm:$0xff] }
 0x41b   : > { %7773 = vst.msk [vmem:[#allocation5 + $0x3c] sm:$0x8] %vm7583_vm8, %v7765_v10  ;;  %v7766_v45 = vrot.slane %v7765_v10, 4  ;;  %v6538_v39 = vsel %vm4082_vm3, %v6535_v62, %v6537_v15  ;;  %v6539_v54 = vrot.slane %v6240_v48, 2  ;;  %v6241_v10 = vld [vmem:[#allocation2 + $0x588] sm:$0xff] }
 0x41c   : > { %7196 = vst.msk [vmem:[#allocation3 + $0x280] sm:$0xff] %vm1443_vm1, %v7091_v1  ;;  %v6980_v18 = vmul.f32 %v13193_v58, %v6868_v50  ;;  %v6764_v12 = vadd.f32 %v6532_v34, %v6130_v38  ;;  %v7758_v24 = vmul.f32 0.25, %v7756_v61  ;;  %v13478_v58 = vld [vmem:[%s13983_s4] ss:$0 sm:$0xff]  ;;  %v6541_v46 = vrot.slane %v6241_v10, 2 }
 0x41d   : > { %v5900_v14 = vpop.permute.xlu1 %5899  ;;  %v6540_v36 = vsel %vm4082_vm3, %v6537_v15, %v6539_v54 }
 0x41e   : > { %v7092_v25 = vadd.f32 %v13202_v59, %v6980_v18  ;;  %v6869_v11 = vmax.f32 %v6764_v12, 0.0  ;;  %v6131_v0 = vadd.f32 %v10885_v30, %v5900_v14  ;;  %v10228_v53 = vpack.c.bf16 %v7758_v24, %v7758_v24  ;;  %v10891_v12 = vld [vmem:[#allocation2 + $0x570] sm:$0xff] }
 0x41f   : > { %v7299_v56 = vld [vmem:[#allocation3 + $0x270] ss:$2 sm:$0xff]  ;;  %v7405_v20 = vld [vmem:[#allocation3 + $0x271] ss:$2 sm:$0xff]  ;;  %v6543_v30 = vrot.slane %v6242_v52, 2 }
 0x420   : > { %v7471_v43 = vadd.f32 %v7405_v20, %v7299_v56  ;;  %7197 = vst.msk [vmem:[#allocation3 + $0x288] sm:$0xff] %vm1443_vm1, %v7092_v25  ;;  %v6981_v51 = vmul.f32 %v13478_v58, %v6869_v11  ;;  %v6765_v59 = vadd.f32 %v6534_v8, %v6131_v0  ;;  %v7767_v44 = vrot.slane %v10228_v53, 5  ;;  %v6243_v20 = vld [vmem:[#allocation2 + $0x5a8] sm:$0xff] }
 0x421   : > { %v5902_v7 = vpop.permute.xlu0 %5901  ;;  %v6542_v11 = vsel %vm4082_vm3, %v6539_v54, %v6541_v46  ;;  %v7776_v53 = vld [vmem:[#allocation4 + $0x12c] sm:$0xff] }
 0x422   : > { %v10751_v41 = vld [vmem:[#allocation5 + $0x38] sm:$0xff]   ;;  %7524 = vst.msk [vmem:[#allocation4 + $0x138] sm:$0xff] %vm1443_vm1, %v7471_v43  ;;  %v7093_v26 = vadd.f32 %v13485_v47, %v6981_v51  ;;  %v6870_v60 = vmax.f32 %v6765_v59, 0.0  ;;  %v6132_v22 = vadd.f32 %v10888_v40, %v5902_v7  ;;  %v7768_v27 = vsel %vm12667_vm11, %v7766_v45, %v7767_v44 }
 0x423   : > { %10335 = vmatmul.mubr.msk.bf16.gmra.mxu1 %vm1443_vm1, %v10751_v41  ;;  %v7769_v33 = vrot.slane %v7767_v44, 4  ;;  %7774 = vst.msk [vmem:[#allocation5 + $0x40] sm:$0xf] %vm7537_vm6, %v7768_v27  ;;  %v6544_v41 = vsel %vm4082_vm3, %v6541_v46, %v6543_v30 }
 0x424   : > { %7198 = vst.msk [vmem:[#allocation3 + $0x290] sm:$0xff] %vm1443_vm1, %v7093_v26  ;;  %v6982_v49 = vmul.f32 %v13478_v58, %v6870_v60  ;;  %v6766_v29 = vadd.f32 %v6536_v3, %v6132_v22  ;;  %10338 = vmatprep.mubr.msk.bf16.mxu1 %vm10920_vm5, %v10918_v19  ;;  %v6545_v26 = vrot.slane %v6243_v20, 2  ;;  %v6244_v22 = vld [vmem:[#allocation2 + $0x5b8] sm:$0xff] }
 0x425   : > { %v5904_v13 = vpop.permute.xlu1 %5903  ;;  %7775 = vst.msk [vmem:[#allocation5 + $0x44] sm:$0x3] %vm1654_vm2, %v7769_v33 }
 0x426   : > { %v7094_v42 = vadd.f32 %v13485_v47, %v6982_v49  ;;  %v6871_v32 = vmax.f32 %v6766_v29, 0.0  ;;  %v6133_v5 = vadd.f32 %v10889_v37, %v5904_v13  ;;  %v10893_v29 = vld [vmem:[#allocation2 + $0x590] sm:$0xff]  ;;  %v6546_v37 = vsel %vm4082_vm3, %v6543_v30, %v6545_v26 }
 0x427   : > { %v7301_v55 = vld [vmem:[#allocation3 + $0x280] ss:$2 sm:$0xff]  ;;  %v7407_v35 = vld [vmem:[#allocation3 + $0x281] ss:$2 sm:$0xff] }
 0x428   : > { %v7472_v16 = vadd.f32 %v7407_v35, %v7301_v55  ;;  %7199 = vst.msk [vmem:[#allocation3 + $0x298] sm:$0xff] %vm1443_vm1, %v7094_v42  ;;  %v6983_v21 = vmul.f32 %v13478_v58, %v6871_v32  ;;  %v6767_v57 = vadd.f32 %v6538_v39, %v6133_v5  ;;  %v6547_v55 = vrot.slane %v6244_v22, 2 }
 0x429   : > { %v5906_v23 = vpop.permute.xlu0 %5905 }
 0x42a   : > { %7525 = vst.msk [vmem:[#allocation4 + $0x140] sm:$0xff] %vm1443_vm1, %v7472_v16  ;;  %v7095_v1 = vadd.f32 %v13485_v47, %v6983_v21  ;;  %v6872_v50 = vmax.f32 %v6767_v57, 0.0  ;;  %v6134_v38 = vadd.f32 %v10890_v63, %v5906_v23  ;;  %v6245_v16 = vld [vmem:[#allocation2 + $0x5c8] sm:$0xff]  ;;  %v10894_v63 = vld [vmem:[#allocation2 + $0x5a0] sm:$0xff]  ;;  %v6548_v46 = vsel %vm4082_vm3, %v6545_v26, %v6547_v55 }
 0x42b   : > { %v10896_v26 = vld [vmem:[#allocation2 + $0x5c0] sm:$0xff] }
 0x42c   : > { %7200 = vst.msk [vmem:[#allocation3 + $0x2a0] sm:$0xff] %vm1443_vm1, %v7095_v1  ;;  %v6984_v6 = vmul.f32 %v13478_v58, %v6872_v50  ;;  %v6768_v34 = vadd.f32 %v6540_v36, %v6134_v38  ;;  %v7777_v36 = vld [vmem:[#allocation4 + $0x134] sm:$0x3f] }
 0x42d   : > { %v5908_v4 = vpop.permute.xlu1 %5907 }
 0x42e   : > { %v7096_v61 = vadd.f32 %v13485_v47, %v6984_v6  ;;  %v6873_v18 = vmax.f32 %v6768_v34, 0.0  ;;  %v6135_v14 = vadd.f32 %v10891_v12, %v5908_v4  ;;  %v6549_v6 = vrot.slane %v6245_v16, 2  ;;  %v6249_v16 = vld [vmem:[#allocation2 + $0x608] sm:$0xff] }
 0x42f   : > { %v7303_v24 = vld [vmem:[#allocation3 + $0x290] ss:$2 sm:$0xff]  ;;  %v7409_v25 = vld [vmem:[#allocation3 + $0x291] ss:$2 sm:$0xff] }
 0x430   : > { %v7473_v0 = vadd.f32 %v7409_v25, %v7303_v24  ;;  %7201 = vst.msk [vmem:[#allocation3 + $0x2a8] sm:$0xff] %vm1443_vm1, %v7096_v61  ;;  %v6985_v62 = vmul.f32 %v13478_v58, %v6873_v18  ;;  %v6769_v56 = vadd.f32 %v6542_v11, %v6135_v14  ;;  %v6246_v61 = vld [vmem:[#allocation2 + $0x5d8] sm:$0xff]  ;;  %v10895_v25 = vld [vmem:[#allocation2 + $0x5b0] sm:$0xff] }
 0x431   : > { %v5910_v8 = vpop.permute.xlu0 %5909  ;;  %v7778_v43 = vld [vmem:[#allocation4 + $0x13b] sm:$0xff] }
 0x432   : > { %7526 = vst.msk [vmem:[#allocation4 + $0x148] sm:$0xff] %vm1443_vm1, %v7473_v0  ;;  %v7097_v51 = vadd.f32 %v13485_v47, %v6985_v62  ;;  %v6874_v59 = vmax.f32 %v6769_v56, 0.0  ;;  %v6136_v7 = vadd.f32 %v10892_v31, %v5910_v8  ;;  %v7780_v45 = vadd.f32 %v7778_v43, %v7776_v53 }
 0x433   : > { %v8060_v44 = vpop.f32.mrf.mxu1  ;;  %v6550_v62 = vsel %vm4082_vm3, %v6547_v55, %v6549_v6  ;;  %v6551_v56 = vrot.slane %v6246_v61, 2 }
 0x434   : > { %7202 = vst.msk [vmem:[#allocation3 + $0x2b0] sm:$0xff] %vm1443_vm1, %v7097_v51  ;;  %v6986_v60 = vmul.f32 %v13478_v58, %v6874_v59  ;;  %v6770_v40 = vadd.f32 %v6544_v41, %v6136_v7  ;;  %v7782_v3 = vmul.f32 0.25, %v7780_v45  ;;  %v6247_v7 = vld [vmem:[#allocation2 + $0x5e8] sm:$0xff] }
 0x435   : > { %8136 = vst.msk [vmem:[#allocation6 + $0x20] sm:$0xff] %vm8131_vm13, %v8060_v44  ;;  %v5912_v15 = vpop.permute.xlu1 %5911  ;;  %v10316_v27 = vpop.f32.mrf.mxu1 }
 0x436   : > { %v7098_v33 = vadd.f32 %v13485_v47, %v6986_v60  ;;  %v6875_v49 = vmax.f32 %v6770_v40, 0.0  ;;  %v6137_v48 = vadd.f32 %v10893_v29, %v5912_v15  ;;  %v10229_v13 = vpack.c.bf16 %v7782_v3, %v7782_v3 }
 0x437   : > { %v7305_v42 = vld [vmem:[#allocation3 + $0x2a0] ss:$2 sm:$0xff]  ;;  %v7411_v32 = vld [vmem:[#allocation3 + $0x2a1] ss:$2 sm:$0xff]  ;;  %v8063_v5 = vpop.f32.mrf.mxu1  ;;  %v6552_v40 = vsel %vm4082_vm3, %v6549_v6, %v6551_v56 }
 0x438   : > { %v7474_v35 = vadd.f32 %v7411_v32, %v7305_v42  ;;  %7203 = vst.msk [vmem:[#allocation3 + $0x2b8] sm:$0xff] %vm1443_vm1, %v7098_v33  ;;  %v6987_v39 = vmul.f32 %v13478_v58, %v6875_v49  ;;  %v6771_v54 = vadd.f32 %v6546_v37, %v6137_v48  ;;  %v7790_v21 = vrot.slane %v10229_v13, 6  ;;  %v6248_v49 = vld [vmem:[#allocation2 + $0x5f8] sm:$0xff]  ;;  %v10897_v32 = vld [vmem:[#allocation2 + $0x5d0] sm:$0xff] }
 0x439   : > { %8137 = vst.msk [vmem:[#allocation6 + $0x28] sm:$0xff] %vm8131_vm13, %v8063_v5  ;;  %v5914_v57 = vpop.permute.xlu0 %5913  ;;  %v10317_v10 = vpop.f32.mrf.mxu1  ;;  %v7779_v23 = vld [vmem:[#allocation4 + $0x143] sm:$0x3f]  ;;  %v6553_v33 = vrot.slane %v6247_v7, 2 }
 0x43a   : > { %7527 = vst.msk [vmem:[#allocation4 + $0x150] sm:$0xff] %vm1443_vm1, %v7474_v35  ;;  %v7099_v1 = vadd.f32 %v13485_v47, %v6987_v39  ;;  %v6876_v50 = vmax.f32 %v6771_v54, 0.0  ;;  %v6138_v38 = vadd.f32 %v10894_v63, %v5914_v57  ;;  %v7781_v34 = vadd.f32 %v7779_v23, %v7777_v36  ;;  %v10898_v23 = vld [vmem:[#allocation2 + $0x5e0] sm:$0xff] }
 0x43b   : > { %7798 = vst.msk [vmem:[#allocation5 + $0x44] sm:$0xc] %vm7612_vm12, %v7790_v21  ;;  %v7791_v59 = vrot.slane %v7790_v21, 4  ;;  %v6554_v35 = vsel %vm4082_vm3, %v6551_v56, %v6553_v33  ;;  %v6555_v39 = vrot.slane %v6248_v49, 2  ;;  %v6252_v49 = vld [vmem:[#allocation2 + $0x638] sm:$0xff] }
 0x43c   : > { %7204 = vst.msk [vmem:[#allocation3 + $0x2c0] sm:$0xff] %vm1443_vm1, %v7099_v1  ;;  %v6988_v52 = vmul.f32 %v13478_v58, %v6876_v50  ;;  %v6772_v4 = vadd.f32 %v6548_v46, %v6138_v38  ;;  %v7783_v12 = vmul.f32 0.25, %v7781_v34  ;;  %v6557_v38 = vrot.slane %v6249_v16, 2  ;;  %v6250_v34 = vld [vmem:[#allocation2 + $0x618] sm:$0xff] }
 0x43d   : > { %v5916_v18 = vpop.permute.xlu1 %5915  ;;  %v6556_v63 = vsel %vm4082_vm3, %v6553_v33, %v6555_v39 }
 0x43e   : > { %v7100_v14 = vadd.f32 %v13485_v47, %v6988_v52  ;;  %v6877_v24 = vmax.f32 %v6772_v4, 0.0  ;;  %v6139_v11 = vadd.f32 %v10895_v25, %v5916_v18  ;;  %v10230_v20 = vpack.c.bf16 %v7783_v12, %v7783_v12 }
 0x43f   : > { %v7307_v30 = vld [vmem:[#allocation3 + $0x2b0] ss:$2 sm:$0xff]  ;;  %v7413_v0 = vld [vmem:[#allocation3 + $0x2b1] ss:$2 sm:$0xff] }
 0x440   : > { %v7475_v8 = vadd.f32 %v7413_v0, %v7307_v30  ;;  %7205 = vst.msk [vmem:[#allocation3 + $0x2c8] sm:$0xff] %vm1443_vm1, %v7100_v14  ;;  %v6989_v53 = vmul.f32 %v13478_v58, %v6877_v24  ;;  %v6773_v43 = vadd.f32 %v6550_v62, %v6139_v11  ;;  %v7792_v45 = vrot.slane %v10230_v20, 6  ;;  %v10899_v14 = vld [vmem:[#allocation2 + $0x5f0] sm:$0xff]  ;;  %v6251_v62 = vld [vmem:[#allocation2 + $0x628] sm:$0xff] }
 0x441   : > { %v5918_v51 = vpop.permute.xlu0 %5917  ;;  %v6558_v30 = vsel %vm4082_vm3, %v6555_v39, %v6557_v38  ;;  %v6559_v0 = vrot.slane %v6250_v34, 2  ;;  %v7801_v56 = vld [vmem:[#allocation4 + $0x14a] sm:$0xff]  ;;  %v6563_v39 = vrot.slane %v6252_v49, 2 }
 0x442   : > { %v10754_v31 = vld [vmem:[#allocation5 + $0x40] sm:$0xff]   ;;  %7528 = vst.msk [vmem:[#allocation4 + $0x158] sm:$0xff] %vm1443_vm1, %v7475_v8  ;;  %v7101_v41 = vadd.f32 %v13485_v47, %v6989_v53  ;;  %v6878_v44 = vmax.f32 %v6773_v43, 0.0  ;;  %v6140_v60 = vadd.f32 %v10896_v26, %v5918_v51  ;;  %v7793_v22 = vsel %vm12801_vm15, %v7791_v59, %v7792_v45  ;;  %v7802_v51 = vld [vmem:[#allocation4 + $0x152] sm:$0x3f]  ;;  %v10900_v26 = vld [vmem:[#allocation2 + $0x600] sm:$0xff] }
 0x443   : > { %10339 = vmatmul.mubr.msk.bf16.gmra.mxu1 %vm1443_vm1, %v10754_v31  ;;  %v7794_v3 = vrot.slane %v7792_v45, 4  ;;  %7799 = vst.msk [vmem:[#allocation5 + $0x48] sm:$0xf] %vm7537_vm6, %v7793_v22  ;;  %v6561_v22 = vrot.slane %v6251_v62, 2 }
 0x444   : > { %7206 = vst.msk [vmem:[#allocation3 + $0x2d0] sm:$0xff] %vm1443_vm1, %v7101_v41  ;;  %v6990_v15 = vmul.f32 %v13478_v58, %v6878_v44  ;;  %v6774_v27 = vadd.f32 %v6552_v40, %v6140_v60  ;;  %10342 = vmatprep.mubr.msk.bf16.mxu1 %vm10920_vm5, %v10918_v19  ;;  %v6560_v40 = vsel %vm4082_vm3, %v6557_v38, %v6559_v0 }
 0x445   : > { %7800 = vst.msk [vmem:[#allocation5 + $0x4c] sm:$0x1] %vm7615_vm9, %v7794_v3 }
 0x446   : > { %v7102_v29 = vadd.f32 %v13485_v47, %v6990_v15  ;;  %v6879_v48 = vmax.f32 %v6774_v27, 0.0  ;;  %v5920_v17 = vpop.permute.xlu1 %5919 }
 0x447   : > { %v7309_v13 = vld [vmem:[#allocation3 + $0x2c0] ss:$2 sm:$0xff]  ;;  %v7415_v42 = vld [vmem:[#allocation3 + $0x2c1] ss:$2 sm:$0xff]  ;;  %v6141_v37 = vadd.f32 %v10897_v32, %v5920_v17  ;;  %v10901_v32 = vld [vmem:[#allocation2 + $0x610] sm:$0xff] }
 0x448   : > { %v7476_v5 = vadd.f32 %v7415_v42, %v7309_v13  ;;  %7207 = vst.msk [vmem:[#allocation3 + $0x2d8] sm:$0xff] %vm1443_vm1, %v7102_v29  ;;  %v6991_v55 = vmul.f32 %v13478_v58, %v6879_v48 }
 0x449   : > { %v6775_v54 = vadd.f32 %v6554_v35, %v6141_v37  ;;  %v6562_v35 = vsel %vm4082_vm3, %v6559_v0, %v6561_v22 }
 0x44a   : > { %7529 = vst.msk [vmem:[#allocation4 + $0x160] sm:$0xff] %vm1443_vm1, %v7476_v5  ;;  %v7103_v21 = vadd.f32 %v13485_v47, %v6991_v55  ;;  %v5922_v57 = vpop.permute.xlu0 %5921  ;;  %v8068_v50 = vpop.f32.mrf.mxu1 }
 0x44b   : > { %v6880_v10 = vmax.f32 %v6775_v54, 0.0  ;;  %v6142_v1 = vadd.f32 %v10898_v23, %v5922_v57  ;;  %8138 = vst.msk [vmem:[#allocation6 + $0x30] sm:$0xff] %vm8131_vm13, %v8068_v50 }
 0x44c   : > { %7208 = vst.msk [vmem:[#allocation3 + $0x2e0] sm:$0xff] %vm1443_vm1, %v7103_v21  ;;  %v10320_v6 = vpop.f32.mrf.mxu1 }
 0x44d   : > { %v6992_v36 = vmul.f32 %v13478_v58, %v6880_v10  ;;  %v6776_v46 = vadd.f32 %v6556_v63, %v6142_v1  ;;  %v6253_v10 = vld [vmem:[#allocation2 + $0x648] sm:$0xff]  ;;  %v6564_v6 = vsel %vm4082_vm3, %v6561_v22, %v6563_v39 }
 0x44e   : > { %v5924_v52 = vpop.permute.xlu1 %5923  ;;  %v8071_v25 = vpop.f32.mrf.mxu1  ;;  %v6565_v34 = vrot.slane %v6253_v10, 2 }
 0x44f   : > { %v7311_v4 = vld [vmem:[#allocation3 + $0x2d0] ss:$2 sm:$0xff]  ;;  %v7417_v61 = vld [vmem:[#allocation3 + $0x2d1] ss:$2 sm:$0xff]  ;;  %v7104_v18 = vadd.f32 %v13485_v47, %v6992_v36  ;;  %v6881_v12 = vmax.f32 %v6776_v46, 0.0  ;;  %v6143_v24 = vadd.f32 %v10899_v14, %v5924_v52  ;;  %8139 = vst.msk [vmem:[#allocation6 + $0x38] sm:$0xff] %vm8131_vm13, %v8071_v25 }
 0x450   : > { %v7477_v11 = vadd.f32 %v7417_v61, %v7311_v4  ;;  %v10321_v53 = vpop.f32.mrf.mxu1  ;;  %v10902_v36 = vld [vmem:[#allocation2 + $0x620] sm:$0xff]  ;;  %v10903_v25 = vld [vmem:[#allocation2 + $0x630] sm:$0xff]  ;;  %v6566_v62 = vsel %vm4082_vm3, %v6563_v39, %v6565_v34 }
 0x451   : > { %7209 = vst.msk [vmem:[#allocation3 + $0x2e8] sm:$0xff] %vm1443_vm1, %v7104_v18  ;;  %v6993_v20 = vmul.f32 %v13478_v58, %v6881_v12  ;;  %v6777_v8 = vadd.f32 %v6558_v30, %v6143_v24  ;;  %v7803_v43 = vld [vmem:[#allocation4 + $0x159] sm:$0xff]  ;;  %v7804_v59 = vld [vmem:[#allocation4 + $0x161] sm:$0x3f]  ;;  %v6254_v18 = vld [vmem:[#allocation2 + $0x658] sm:$0xff] }
 0x452   : > { %7530 = vst.msk [vmem:[#allocation4 + $0x168] sm:$0xff] %vm1443_vm1, %v7477_v11  ;;  %v5926_v31 = vpop.permute.xlu0 %5925  ;;  %v7805_v7 = vadd.f32 %v7803_v43, %v7801_v56  ;;  %v7806_v45 = vadd.f32 %v7804_v59, %v7802_v51  ;;  %v6567_v28 = vrot.slane %v6254_v18, 2  ;;  %v6255_v56 = vld [vmem:[#allocation2 + $0x668] sm:$0xff] }
 0x453   : > { %v7105_v41 = vadd.f32 %v13485_v47, %v6993_v20  ;;  %v6882_v44 = vmax.f32 %v6777_v8, 0.0  ;;  %v6144_v60 = vadd.f32 %v10900_v26, %v5926_v31 }
 0x454   : > { %v7807_v3 = vmul.f32 0.25, %v7805_v7  ;;  %v7808_v15 = vmul.f32 0.25, %v7806_v45  ;;  %v10904_v7 = vld [vmem:[#allocation2 + $0x640] sm:$0xff] }
 0x455   : > { %7210 = vst.msk [vmem:[#allocation3 + $0x2f0] sm:$0xff] %vm1443_vm1, %v7105_v41  ;;  %v6994_v27 = vmul.f32 %v13478_v58, %v6882_v44  ;;  %v6778_v33 = vadd.f32 %v6560_v40, %v6144_v60  ;;  %v6568_v41 = vsel %vm4082_vm3, %v6565_v34, %v6567_v28  ;;  %v6569_v44 = vrot.slane %v6255_v56, 2  ;;  %v6256_v40 = vld [vmem:[#allocation2 + $0x678] sm:$0xff] }
 0x456   : > { %v5928_v29 = vpop.permute.xlu1 %5927  ;;  %v10231_v48 = vpack.c.bf16 %v7807_v3, %v7807_v3  ;;  %v10232_v17 = vpack.c.bf16 %v7808_v15, %v7808_v15 }
 0x457   : > { %v7106_v13 = vadd.f32 %v13485_v47, %v6994_v27  ;;  %v6883_v42 = vmax.f32 %v6778_v33, 0.0  ;;  %v6145_v37 = vadd.f32 %v10901_v32, %v5928_v29  ;;  %v10905_v27 = vld [vmem:[#allocation2 + $0x650] sm:$0xff] }
 0x458   : > { %v7313_v5 = vld [vmem:[#allocation3 + $0x2e0] ss:$2 sm:$0xff]  ;;  %v7419_v55 = vld [vmem:[#allocation3 + $0x2e1] ss:$2 sm:$0xff]  ;;  %v7815_v54 = vrot.slane %v10231_v48, 7  ;;  %v7817_v50 = vrot.slane %v10232_v17, 7  ;;  %v6570_v48 = vsel %vm4082_vm3, %v6567_v28, %v6569_v44 }
 0x459   : > { %v7478_v16 = vadd.f32 %v7419_v55, %v7313_v5  ;;  %7211 = vst.msk [vmem:[#allocation3 + $0x2f8] sm:$0xff] %vm1443_vm1, %v7106_v13  ;;  %v6995_v21 = vmul.f32 %v13478_v58, %v6883_v42  ;;  %v6779_v57 = vadd.f32 %v6562_v35, %v6145_v37  ;;  %v5930_v23 = vpop.permute.xlu0 %5929  ;;  %v6571_v17 = vrot.slane %v6256_v40, 2  ;;  %v6257_v37 = vld [vmem:[#allocation2 + $0x688] sm:$0xff]  ;;  %v7823_v55 = vld [vmem:[#allocation4 + $0x168] sm:$0xff]  ;;  %v6258_v28 = vld [vmem:[#allocation2 + $0x698] sm:$0x3] }
 0x45a   : > { %v7816_v1 = vrot.slane %v7815_v54, 4  ;;  %7821 = vst.msk [vmem:[#allocation5 + $0x4c] sm:$0xe] %vm7640_vm10, %v7815_v54  ;;  %v6146_v46 = vadd.f32 %v10902_v36, %v5930_v23  ;;  %v6573_v23 = vrot.slane %v6257_v37, 2 }
 0x45b   : > { %7531 = vst.msk [vmem:[#allocation4 + $0x170] sm:$0xff] %vm1443_vm1, %v7478_v16  ;;  %v7107_v63 = vadd.f32 %v13485_v47, %v6995_v21  ;;  %v6884_v38 = vmax.f32 %v6779_v57, 0.0  ;;  %v10906_v16 = vld [vmem:[#allocation2 + $0x660] sm:$0xff]  ;;  %v6572_v10 = vsel %vm4082_vm3, %v6569_v44, %v6571_v17 }
 0x45c   : > { %v7818_v52 = vsel %vm12886_vm0, %v7816_v1, %v7817_v50  ;;  %v6780_v61 = vadd.f32 %v6564_v6, %v6146_v46  ;;  %v10907_v6 = vld [vmem:[#allocation2 + $0x670] sm:$0xff]  ;;  %v6574_v18 = vsel %vm4082_vm3, %v6571_v17, %v6573_v23  ;;  %vm13997_vm0 = vcmask 1044480  }
 0x45d   : > { %7212 = vst.msk [vmem:[#allocation3 + $0x300] sm:$0xff] %vm1443_vm1, %v7107_v63  ;;  %v6996_v4 = vmul.f32 %v13478_v58, %v6884_v38  ;;  %vm13999_vm12 = vmmov %vm13997_vm0 }
 0x45e   : > { %7822 = vst.msk [vmem:[#allocation5 + $0x50] sm:$0xf] %vm7537_vm6, %v7818_v52  ;;  %v5932_v12 = vpop.permute.xlu1 %5931  ;;  %v6885_v24 = vmax.f32 %v6780_v61, 0.0  ;;  %vm14000_vm15 = vmmov %vm13997_vm0 }
 0x45f   : > { %v7108_v14 = vadd.f32 %v13485_v47, %v6996_v4  ;;  %v6147_v11 = vadd.f32 %v10903_v25, %v5932_v12  ;;  %vm14002_vm9 = vmmov %vm13997_vm0 }
 0x460   : > { %v7315_v30 = vld [vmem:[#allocation3 + $0x2f0] ss:$2 sm:$0xff]  ;;  %v7421_v0 = vld [vmem:[#allocation3 + $0x2f1] ss:$2 sm:$0xff]  ;;  %v6997_v8 = vmul.f32 %v13478_v58, %v6885_v24  ;;  %vm14006_vm10 = vmmov %vm13997_vm0 }
 0x461   : > { %v7479_v20 = vadd.f32 %v7421_v0, %v7315_v30  ;;  %7213 = vst.msk [vmem:[#allocation3 + $0x308] sm:$0xff] %vm1443_vm1, %v7108_v14  ;;  %v6781_v53 = vadd.f32 %v6566_v62, %v6147_v11  ;;  %v10756_v43 = vld [vmem:[#allocation5 + $0x48] sm:$0xff]  }
 0x462   : > { %v5934_v51 = vpop.permute.xlu0 %5933  ;;  %v7109_v59 = vadd.f32 %v13485_v47, %v6997_v8  ;;  %10343 = vmatmul.mubr.msk.bf16.gmra.mxu1 %vm1443_vm1, %v10756_v43  ;;  %v7824_v25 = vld [vmem:[#allocation4 + $0x170] sm:$0x3f]  ;;  %v6575_v43 = vrot.slane %v6258_v28, 2 }
 0x463   : > { %7532 = vst.msk [vmem:[#allocation4 + $0x178] sm:$0xff] %vm1443_vm1, %v7479_v20  ;;  %v6886_v31 = vmax.f32 %v6781_v53, 0.0  ;;  %v6148_v45 = vadd.f32 %v10904_v7, %v5934_v51  ;;  %10346 = vmatprep.mubr.msk.bf16.mxu1 %vm10920_vm5, %v10918_v19 }
 0x464   : > { %7214 = vst.msk [vmem:[#allocation3 + $0x310] sm:$0xff] %vm1443_vm1, %v7109_v59 }
 0x465   : > { %v6998_v26 = vmul.f32 %v13478_v58, %v6886_v31  ;;  %v6782_v60 = vadd.f32 %v6568_v41, %v6148_v45 }
 0x466   : > { %v5936_v22 = vpop.permute.xlu1 %5935 }
 0x467   : > { %v7110_v3 = vadd.f32 %v13485_v47, %v6998_v26  ;;  %v6887_v15 = vmax.f32 %v6782_v60, 0.0  ;;  %v6149_v33 = vadd.f32 %v10905_v27, %v5936_v22  ;;  %v10908_v60 = vld [vmem:[#allocation2 + $0x680] sm:$0xff] }
 0x468   : > { %v7317_v49 = vld [vmem:[#allocation3 + $0x300] ss:$2 sm:$0xff]  ;;  %v7423_v29 = vld [vmem:[#allocation3 + $0x301] ss:$2 sm:$0xff] }
 0x469   : > { %v7480_v13 = vadd.f32 %v7423_v29, %v7317_v49  ;;  %7215 = vst.msk [vmem:[#allocation3 + $0x318] sm:$0xff] %vm1443_vm1, %v7110_v3  ;;  %v6999_v42 = vmul.f32 %v13478_v58, %v6887_v15  ;;  %v6783_v32 = vadd.f32 %v6570_v48, %v6149_v33  ;;  %v10760_v22 = vld [vmem:[#allocation5 + $0xc] sm:$0xff]   ;;  %v6576_v3 = vsel %vm4082_vm3, %v6573_v23, %v6575_v43  ;;  %v10759_v33 = vld [vmem:[#allocation5 + $0x4] sm:$0xf8]  }
 0x46a   : > { %v5938_v5 = vpop.permute.xlu0 %5937  ;;  %v7825_v35 = vld [vmem:[#allocation4 + $0x177] sm:$0xff]  ;;  %v8264_v29 = vrot.slane %v10760_v22, 3 }
 0x46b   : > { %7533 = vst.msk [vmem:[#allocation4 + $0x180] sm:$0xff] %vm1443_vm1, %v7480_v13  ;;  %v7111_v39 = vadd.f32 %v13485_v47, %v6999_v42  ;;  %v6888_v54 = vmax.f32 %v6783_v32, 0.0  ;;  %v6150_v21 = vadd.f32 %v10906_v16, %v5938_v5  ;;  %v7827_v57 = vadd.f32 %v7825_v35, %v7823_v55  ;;  %v10761_v32 = vld [vmem:[%s13981_s2 + $0x58] sm:$0xff]   ;;  %v10762_v35 = vld [vmem:[#allocation5 + $0x14] sm:$0xff]   ;;  %v10763_v16 = vld [vmem:[#allocation5 + $0x1c] sm:$0xff]  }
 0x46c   : > { %v8263_v42 = vrot.slane %v10759_v33, 3 }
 0x46d   : > { %7216 = vst.msk [vmem:[#allocation3 + $0x320] sm:$0xff] %vm1443_vm1, %v7111_v39  ;;  %v7000_v1 = vmul.f32 %v13478_v58, %v6888_v54  ;;  %v6784_v50 = vadd.f32 %v6572_v10, %v6150_v21  ;;  %v7829_v63 = vmul.f32 0.25, %v7827_v57  ;;  %v10768_v39 = vld [vmem:[%s13981_s2 + $0x48] sm:$0xff]  }
 0x46e   : > { %v5940_v38 = vpop.permute.xlu1 %5939  ;;  %v8265_v55 = vsel %vm13997_vm0, %v8263_v42, %v8264_v29  ;;  %v10774_v42 = vld [vmem:[#allocation5 + $0xc] sm:$0xfc]  }
 0x46f   : > { %v7112_v36 = vadd.f32 %v13485_v47, %v7000_v1  ;;  %v6889_v46 = vmax.f32 %v6784_v50, 0.0  ;;  %v6151_v34 = vadd.f32 %v10907_v6, %v5940_v38  ;;  %v10233_v52 = vpack.c.bf16 %v7829_v63, %v7829_v63  ;;  %v10772_v63 = vld [vmem:[%s13981_s2 + $0x40] sm:$0xff]  }
 0x470   : > { %v7319_v4 = vld [vmem:[#allocation3 + $0x310] ss:$2 sm:$0xff]  ;;  %v7425_v61 = vld [vmem:[#allocation3 + $0x311] ss:$2 sm:$0xff] }
 0x471   : > { %v7481_v12 = vadd.f32 %v7425_v61, %v7319_v4  ;;  %7217 = vst.msk [vmem:[#allocation3 + $0x328] sm:$0xff] %vm1443_vm1, %v7112_v36  ;;  %v7001_v14 = vmul.f32 %v13478_v58, %v6889_v46  ;;  %v6785_v24 = vadd.f32 %v6574_v18, %v6151_v34  ;;  %v8268_v36 = vrot.slane %v10763_v16, 3 }
 0x472   : > { %7839 = vst.msk [vmem:[#allocation5 + $0x54] sm:$0xf] %vm7537_vm6, %v10233_v52  ;;  %v7826_v11 = vld [vmem:[#allocation4 + $0x17f] sm:$0x3f]  ;;  %v10765_v52 = vld [vmem:[#allocation5 + $0x24] sm:$0xff]  }
 0x473   : > { %7534 = vst.msk [vmem:[#allocation4 + $0x188] sm:$0xff] %vm1443_vm1, %v7481_v12  ;;  %v7113_v30 = vadd.f32 %v13485_v47, %v7001_v14  ;;  %v6890_v0 = vmax.f32 %v6785_v24, 0.0  ;;  %v7828_v62 = vadd.f32 %v7826_v11, %v7824_v25  ;;  %v8270_v12 = vrot.slane %v10765_v52, 3  ;;  %v10781_v52 = vld [vmem:[#allocation5 + $0x44] sm:$0xff]  }
 0x474   : > { %v8076_v20 = vpop.f32.mrf.mxu1 }
 0x475   : > { %7218 = vst.msk [vmem:[#allocation3 + $0x330] sm:$0xff] %vm1443_vm1, %v7113_v30  ;;  %v7002_v56 = vmul.f32 %v13478_v58, %v6890_v0  ;;  %v7830_v8 = vmul.f32 0.25, %v7828_v62  ;;  %v8271_v30 = vsel %vm14000_vm15, %v8268_v36, %v8270_v12  ;;  %v10766_v0 = vld [vmem:[#allocation5 + $0x2c] sm:$0xff]   ;;  %vm9344_vm15 = vcmask 257025  }
 0x476   : > { %8140 = vst.msk [vmem:[#allocation6 + $0x40] sm:$0xff] %vm8131_vm13, %v8076_v20  ;;  %v10324_v51 = vpop.f32.mrf.mxu1 }
 0x477   : > { %v7114_v53 = vadd.f32 %v13485_v47, %v7002_v56  ;;  %v10234_v59 = vpack.c.bf16 %v7830_v8, %v7830_v8  ;;  %v8272_v8 = vrot.slane %v10766_v0, 3 }
 0x478   : > { %v7321_v31 = vld [vmem:[#allocation3 + $0x320] ss:$2 sm:$0xff]  ;;  %v7427_v7 = vld [vmem:[#allocation3 + $0x321] ss:$2 sm:$0xff]  ;;  %v8079_v44 = vpop.f32.mrf.mxu1 }
 0x479   : > { %v7482_v45 = vadd.f32 %v7427_v7, %v7321_v31  ;;  %7219 = vst.msk [vmem:[#allocation3 + $0x338] sm:$0xff] %vm1443_vm1, %v7114_v53  ;;  %v5942_v41 = vpop.permute.xlu0 %5941  ;;  %v10758_v26 = vld [vmem:[#allocation5 + $0x50] sm:$0x1f]  }
 0x47a   : > { %7840 = vst.msk [vmem:[#allocation5 + $0x58] sm:$0x7] %vm7556_vm7, %v10234_v59  ;;  %v6152_v40 = vadd.f32 %v10908_v60, %v5942_v41  ;;  %10347 = vmatmul.mubr.msk.bf16.gmra.mxu1 %vm1443_vm1, %v10758_v26  ;;  %v10325_v15 = vpop.f32.mrf.mxu1  ;;  %vm13998_vm7 = vmmov %vm13997_vm0  ;;  %v7841_v21 = vld [vmem:[#allocation4 + $0x186] sm:$0xff]  ;;  %v10767_v59 = vld [vmem:[#allocation5 + $0x34] sm:$0xff]  }
 0x47b   : > { %8141 = vst.msk [vmem:[#allocation6 + $0x48] sm:$0xff] %vm8131_vm13, %v8079_v44  ;;  %10358 = vmatprep.mubr.msk.bf16.mxu1 %vm10920_vm5, %v10918_v19  ;;  %v8274_v31 = vrot.slane %v10767_v59, 3  ;;  %v10770_v60 = vld [vmem:[#allocation5 + $0x44] sm:$0xff]  }
 0x47c   : > { %7535 = vst.msk [vmem:[#allocation4 + $0x190] sm:$0xff] %vm1443_vm1, %v7482_v45  ;;  %v6786_v27 = vadd.f32 %v6576_v3, %v6152_v40  ;;  %v10769_v45 = vld [vmem:[#allocation5 + $0x3c] sm:$0xff]   ;;  %v8278_v3 = vrot.slane %v10770_v60, 3  ;;  %v8156_v60 = vld [vmem:[#allocation6 + $0x8] sm:$0xff] }
 0x47d   : > { %v8275_v7 = vsel %vm14002_vm9, %v8272_v8, %v8274_v31  ;;  %v8276_v9 = vrot.slane %v10769_v45, 3 }
 0x47e   : > { %v6891_v49 = vmax.f32 %v6786_v27, 0.0  ;;  %v10771_v27 = vld [vmem:[#allocation5 + $0x4c] sm:$0xff]  }
 0x47f   : > { %v8280_v33 = vrot.slane %v10771_v27, 3 }
 0x480   : > { %v7323_v48 = vld [vmem:[#allocation3 + $0x330] ss:$2 sm:$0xff]  ;;  %v7429_v17 = vld [vmem:[#allocation3 + $0x331] ss:$2 sm:$0xff]  ;;  %v7003_v13 = vmul.f32 %v13478_v58, %v6891_v49 }
 0x481   : > { %v7483_v37 = vadd.f32 %v7429_v17, %v7323_v48  ;;  %v10764_v58 = vld [vmem:[%s13981_s2 + $0x50] sm:$0xff]  }
 0x482   : > { %v7115_v5 = vadd.f32 %v13485_v47, %v7003_v13  ;;  %10359 = vmatmul.mubr.msk.bf16.vlgmr.msra.gmra.mxu1 %vm1443_vm1, %v8265_v55  ;;  %v8266_v47 = vrot.slane %v10762_v35, 3  ;;  %v10775_v13 = vld [vmem:[#allocation5 + $0x14] sm:$0xff]   ;;  %v10776_v55 = vld [vmem:[#allocation5 + $0x1c] sm:$0xff]  }
 0x483   : > { %7536 = vst.msk [vmem:[#allocation4 + $0x198] sm:$0xff] %vm1443_vm1, %v7483_v37  ;;  %10403 = vmatpush3.bf16.msra.mxu1 %v10761_v32  ;;  %10362 = vmatprep.mubr.msk.bf16.mxu1 %vm10920_vm5, %v10918_v19  ;;  %v7842_v61 = vld [vmem:[#allocation4 + $0x18e] sm:$0x3f]  ;;  %v8615_v32 = vrot.slane %v10775_v13, 2  ;;  %v8614_v37 = vrot.slane %v10774_v42, 2  ;;  %v8617_v35 = vrot.slane %v10776_v55, 2 }
 0x484   : > { %7220 = vst.msk [vmem:[#allocation3 + $0x340] sm:$0xff] %vm1443_vm1, %v7115_v5  ;;  %10404 = vmatprep.subr.bf16.mxu1 %v10918_v19  ;;  %v8267_v54 = vsel %vm13998_vm7, %v8264_v29, %v8266_v47  ;;  %v8269_v34 = vsel %vm13999_vm12, %v8266_v47, %v8268_v36  ;;  %v10777_v47 = vld [vmem:[#allocation5 + $0x24] sm:$0xff]   ;;  %v8160_v55 = vld [vmem:[#allocation6 + $0x28] sm:$0xff]  ;;  %vm9330_vm7 = vcmask 257026   ;;  %vm9332_vm12 = vcmask 253952  }
 0x485   : > { %v8616_v5 = vsel %vm4082_vm3, %v8614_v37, %v8615_v32  ;;  %v8619_v16 = vrot.slane %v10777_v47, 2  ;;  %v8159_v42 = vld [vmem:[#allocation6 + $0x20] sm:$0xff] }
 0x487   : > { %10405 = vmatpush3.bf16.msra.mxu1 %v10764_v58  ;;  %v8618_v58 = vsel %vm4082_vm3, %v8615_v32, %v8617_v35 }
 0x488   : > { %10406 = vmatprep.subr.bf16.mxu1 %v10918_v19 }
 0x48a   : > { %v7843_v57 = vld [vmem:[#allocation4 + $0x195] sm:$0xff]  ;;  %10363 = vmatmul.mubr.msk.bf16.gmra.mxu1 %vm1443_vm1, %v8267_v54 }
 0x48b   : > { %v7325_v10 = vld [vmem:[#allocation3 + $0x340] ss:$2 sm:$0xf]  ;;  %v7431_v23 = vld [vmem:[#allocation3 + $0x341] ss:$2 sm:$0xf]  ;;  %v7845_v1 = vadd.f32 %v7843_v57, %v7841_v21  ;;  %10366 = vmatprep.mubr.msk.bf16.mxu1 %vm10920_vm5, %v10918_v19  ;;  %10407 = vmatpush3.bf16.msra.mxu1 %v10768_v39 }
 0x48c   : > { %v7484_v50 = vadd.f32 %v7431_v23, %v7325_v10  ;;  %10408 = vmatprep.subr.bf16.mxu1 %v10918_v19  ;;  %v8620_v10 = vsel %vm4082_vm3, %v8617_v35, %v8619_v16  ;;  %v10778_v23 = vld [vmem:[#allocation5 + $0x2c] sm:$0xff]  }
 0x48d   : > { %v7847_v38 = vmul.f32 0.25, %v7845_v1  ;;  %v8621_v1 = vrot.slane %v10778_v23, 2 }
 0x48e   : > { %7538 = vst.msk [vmem:[#allocation4 + $0x1a0] sm:$0xf] %vm7537_vm6, %v7484_v50 }
 0x48f   : > { %v10235_v46 = vpack.c.bf16 %v7847_v38, %v7847_v38  ;;  %10409 = vmatpush3.bf16.msra.mxu1 %v10772_v63  ;;  %v8622_v50 = vsel %vm4082_vm3, %v8619_v16, %v8621_v1  ;;  %v10779_v63 = vld [vmem:[#allocation5 + $0x34] sm:$0xff]  }
 0x490   : > { %v8623_v38 = vrot.slane %v10779_v63, 2 }
 0x491   : > { %v7855_v6 = vrot.slane %v10235_v46, 5  ;;  %v10780_v46 = vld [vmem:[#allocation5 + $0x3c] sm:$0xff]  }
 0x492   : > { %10367 = vmatmul.mubr.msk.bf16.gmra.mxu1 %vm1443_vm1, %v8269_v34  ;;  %v8624_v36 = vsel %vm4082_vm3, %v8621_v1, %v8623_v38 }
 0x493   : > { %7863 = vst.msk [vmem:[#allocation5 + $0x58] sm:$0x8] %vm7583_vm8, %v7855_v6  ;;  %10370 = vmatprep.mubr.msk.bf16.mxu1 %vm10920_vm5, %v10918_v19  ;;  %v7856_v56 = vrot.slane %v7855_v6, 4  ;;  %vm14001_vm8 = vmmov %vm13997_vm0  ;;  %v8625_v6 = vrot.slane %v10780_v46, 2  ;;  %v8164_v46 = vld [vmem:[#allocation6 + $0x48] sm:$0xff] }
 0x494   : > { %v8273_v51 = vsel %vm14001_vm8, %v8270_v12, %v8272_v8  ;;  %vm9293_vm8 = vcmask 257024  }
 0x495   : > { %v8084_v4 = vpop.f32.mrf.mxu1  ;;  %v7844_v18 = vld [vmem:[#allocation4 + $0x19d] sm:$0x3f]  ;;  %v8626_v34 = vsel %vm4082_vm3, %v8623_v38, %v8625_v6 }
 0x496   : > { %8142 = vst.msk [vmem:[#allocation6 + $0x50] sm:$0xff] %vm8131_vm13, %v8084_v4  ;;  %v7846_v14 = vadd.f32 %v7844_v18, %v7842_v61  ;;  %v8627_v18 = vrot.slane %v10781_v52, 2 }
 0x497   : > { %v10328_v24 = vpop.f32.mrf.mxu1 }
 0x498   : > { %v7848_v25 = vmul.f32 0.25, %v7846_v14  ;;  %v8628_v24 = vsel %vm4082_vm3, %v8625_v6, %v8627_v18 }
 0x499   : > { %v8087_v11 = vpop.f32.mrf.mxu1 }
 0x49a   : > { %8143 = vst.msk [vmem:[#allocation6 + $0x58] sm:$0xff] %vm8131_vm13, %v8087_v11  ;;  %v10236_v62 = vpack.c.bf16 %v7848_v25, %v7848_v25  ;;  %10371 = vmatmul.mubr.msk.bf16.gmra.mxu1 %vm1443_vm1, %v8271_v30  ;;  %v10773_v29 = vld [vmem:[#allocation5 + $0x54] sm:$0xff]   ;;  %v10782_v25 = vld [vmem:[#allocation5 + $0x4c] sm:$0xff]  }
 0x49b   : > { %v10329_v28 = vpop.f32.mrf.mxu1  ;;  %10374 = vmatprep.mubr.msk.bf16.mxu1 %vm10920_vm5, %v10918_v19  ;;  %v8282_v48 = vrot.slane %v10773_v29, 3  ;;  %v8629_v11 = vrot.slane %v10782_v25, 2  ;;  %v10783_v0 = vld [vmem:[#allocation5 + $0x54] sm:$0xff]   ;;  %v8158_v29 = vld [vmem:[#allocation6 + $0x18] sm:$0xff] }
 0x49c   : > { %v7857_v20 = vrot.slane %v10236_v62, 5  ;;  %v8631_v62 = vrot.slane %v10783_v0, 2 }
 0x49d   : > { %v8283_v17 = vsel %vm14006_vm10, %v8280_v33, %v8282_v48  ;;  %v8630_v30 = vsel %vm4082_vm3, %v8627_v18, %v8629_v11  ;;  %vm9743_vm10 = vcmask 123904  }
 0x49e   : > { %v7858_v53 = vsel %vm12667_vm11, %v7856_v56, %v7857_v20  ;;  %v7859_v43 = vrot.slane %v7857_v20, 4  ;;  %vm14005_vm11 = vmmov %vm13997_vm0  ;;  %v8632_v28 = vsel %vm4082_vm3, %v8629_v11, %v8631_v62 }
 0x49f   : > { %7864 = vst.msk [vmem:[#allocation5 + $0x5c] sm:$0xf] %vm7537_vm6, %v7858_v53  ;;  %vm14004_vm6 = vmmov %vm13997_vm0  ;;  %v8281_v49 = vsel %vm14005_vm11, %v8278_v3, %v8280_v33  ;;  %vm9737_vm11 = vcmask 125952  }
 0x4a0   : > { %7865 = vst.msk [vmem:[#allocation5 + $0x60] sm:$0x3] %vm1654_vm2, %v7859_v43  ;;  %vm14003_vm2 = vmmov %vm13997_vm0  ;;  %v8279_v15 = vsel %vm14004_vm6, %v8276_v9, %v8278_v3  ;;  %vm9316_vm0 = vcmask 254976   ;;  %vm9457_vm6 = vcmask 386048  }
 0x4a1   : > { %v8277_v26 = vsel %vm14003_vm2, %v8274_v31, %v8276_v9  ;;  %vm14007_vm9 = vmmov %vm14003_vm2  ;;  %vm9453_vm2 = vcmask 392192  }
 0x4a2   : > { %10375 = vmatmul.mubr.msk.bf16.gmra.mxu1 %vm1443_vm1, %v8273_v51 }
 0x4a3   : > { %10378 = vmatprep.mubr.msk.bf16.mxu1 %vm10920_vm5, %v10918_v19 }
 0x4a7   : > { %v10784_v56 = vld [vmem:[#allocation5 + $0x5c] sm:$0x7f]  }
 0x4a8   : > { %v8633_v20 = vrot.slane %v10784_v56, 2 }
 0x4aa   : > { %10379 = vmatmul.mubr.msk.bf16.gmra.mxu1 %vm1443_vm1, %v8275_v7  ;;  %v8634_v8 = vsel %vm4082_vm3, %v8631_v62, %v8633_v20 }
 0x4ab   : > { %10382 = vmatprep.mubr.msk.bf16.mxu1 %vm10920_vm5, %v10918_v19 }
 0x4af   : > { %v8092_v41 = vpop.f32.mrf.mxu1 }
 0x4b0   : > { %8144 = vst.msk [vmem:[#allocation6 + $0x60] sm:$0xff] %vm8131_vm13, %v8092_v41  ;;  %v8155_v41 = vld [vmem:[#allocation6] sm:$0xff] }
 0x4b1   : > { %v10332_v44 = vpop.f32.mrf.mxu1 }
 0x4b2   : > { %10383 = vmatmul.mubr.msk.bf16.gmra.mxu1 %vm1443_vm1, %v8277_v26 }
 0x4b3   : > { %v8095_v40 = vpop.f32.mrf.mxu1  ;;  %10386 = vmatprep.mubr.msk.bf16.mxu1 %vm10920_vm5, %v10918_v19 }
 0x4b4   : > { %8145 = vst.msk [vmem:[#allocation6 + $0x68] sm:$0xff] %vm8131_vm13, %v8095_v40 }
 0x4b5   : > { %v10333_v22 = vpop.f32.mrf.mxu1 }
 0x4ba   : > { %10387 = vmatmul.mubr.msk.bf16.gmra.mxu1 %vm1443_vm1, %v8279_v15  ;;  %v8157_v15 = vld [vmem:[#allocation6 + $0x10] sm:$0xff] }
 0x4bb   : > { %10390 = vmatprep.mubr.msk.bf16.mxu1 %vm10920_vm5, %v10918_v19  ;;  %v8168_v56 = vld [vmem:[#allocation6 + $0x68] sm:$0xff] }
 0x4c2   : > { %10391 = vmatmul.mubr.msk.bf16.gmra.mxu1 %vm1443_vm1, %v8281_v49 }
 0x4c3   : > { %10394 = vmatprep.mubr.msk.bf16.mxu1 %vm10920_vm5, %v10918_v19 }
 0x4ca   : > { %10395 = vmatmul.mubr.msk.bf16.gmra.mxu1 %vm1443_vm1, %v8283_v17 }
 0x4cb   : > { %10398 = vmatprep.mubr.msk.bf16.mxu1 %vm10920_vm5, %v10918_v19 }
 0x4d2   : > { %10399 = vmatmul.mubr.msk.bf16.gmra.mxu1 %vm1443_vm1, %v8282_v48 }
 0x4d3   : > { %10410 = vmatprep.mubr.msk.bf16.mxu1 %vm10920_vm5, %v10918_v19 }
 0x4da   : > { %10411 = vmatmul.mubr.msk.bf16.vlgmr.msra.gmra.mxu1 %vm1443_vm1, %v8616_v5 }
 0x4db   : > { %10414 = vmatprep.mubr.msk.bf16.mxu1 %vm10920_vm5, %v10918_v19 }
 0x4e2   : > { %10415 = vmatmul.mubr.msk.bf16.gmra.mxu1 %vm1443_vm1, %v8618_v58 }
 0x4e3   : > { %v8100_v39 = vpop.f32.mrf.mxu1  ;;  %10418 = vmatprep.mubr.msk.bf16.mxu1 %vm10920_vm5, %v10918_v19 }
 0x4e4   : > { %8146 = vst.msk [vmem:[#allocation6 + $0x70] sm:$0xff] %vm8131_vm13, %v8100_v39  ;;  %v8161_v39 = vld [vmem:[#allocation6 + $0x30] sm:$0xff] }
 0x4e5   : > { %v10336_v54 = vpop.f32.mrf.mxu1 }
 0x4e7   : > { %v8103_v21 = vpop.f32.mrf.mxu1 }
 0x4e8   : > { %8147 = vst.msk [vmem:[#allocation6 + $0x78] sm:$0xff] %vm8131_vm13, %v8103_v21 }
 0x4e9   : > { %v10337_v57 = vpop.f32.mrf.mxu1 }
 0x4ea   : > { %10419 = vmatmul.mubr.msk.bf16.gmra.mxu1 %vm1443_vm1, %v8620_v10  ;;  %v8162_v57 = vld [vmem:[#allocation6 + $0x38] sm:$0xff] }
 0x4eb   : > { %10422 = vmatprep.mubr.msk.bf16.mxu1 %vm10920_vm5, %v10918_v19 }
 0x4f2   : > { %10423 = vmatmul.mubr.msk.bf16.gmra.mxu1 %vm1443_vm1, %v8622_v50  ;;  %v8163_v50 = vld [vmem:[#allocation6 + $0x40] sm:$0xff] }
 0x4f3   : > { %10426 = vmatprep.mubr.msk.bf16.mxu1 %vm10920_vm5, %v10918_v19 }
 0x4fa   : > { %10427 = vmatmul.mubr.msk.bf16.gmra.mxu1 %vm1443_vm1, %v8624_v36 }
 0x4fb   : > { %10430 = vmatprep.mubr.msk.bf16.mxu1 %vm10920_vm5, %v10918_v19 }
 0x502   : > { %10431 = vmatmul.mubr.msk.bf16.gmra.mxu1 %vm1443_vm1, %v8626_v34 }
 0x503   : > { %v8108_v4 = vpop.f32.mrf.mxu1  ;;  %10434 = vmatprep.mubr.msk.bf16.mxu1 %vm10920_vm5, %v10918_v19 }
 0x504   : > { %8148 = vst.msk [vmem:[#allocation6 + $0x80] sm:$0xff] %vm8131_vm13, %v8108_v4  ;;  %v8165_v4 = vld [vmem:[#allocation6 + $0x50] sm:$0xff] }
 0x505   : > { %v10340_v61 = vpop.f32.mrf.mxu1 }
 0x507   : > { %v8111_v12 = vpop.f32.mrf.mxu1 }
 0x508   : > { %8149 = vst.msk [vmem:[#allocation6 + $0x88] sm:$0xff] %vm8131_vm13, %v8111_v12 }
 0x509   : > { %v10341_v14 = vpop.f32.mrf.mxu1 }
 0x50a   : > { %10435 = vmatmul.mubr.msk.bf16.gmra.mxu1 %vm1443_vm1, %v8628_v24  ;;  %v8166_v14 = vld [vmem:[#allocation6 + $0x58] sm:$0xff] }
 0x50b   : > { %10438 = vmatprep.mubr.msk.bf16.mxu1 %vm10920_vm5, %v10918_v19 }
 0x512   : > { %10439 = vmatmul.mubr.msk.bf16.gmra.mxu1 %vm1443_vm1, %v8630_v30  ;;  %v8167_v30 = vld [vmem:[#allocation6 + $0x60] sm:$0xff] }
 0x513   : > { %10442 = vmatprep.mubr.msk.bf16.mxu1 %vm10920_vm5, %v10918_v19 }
 0x51a   : > { %10443 = vmatmul.mubr.msk.bf16.gmra.mxu1 %vm1443_vm1, %v8632_v28 }
 0x51b   : > { %10446 = vmatprep.mubr.msk.bf16.mxu1 %vm10920_vm5, %v10918_v19 }
 0x522   : > { %10447 = vmatmul.mubr.msk.bf16.gmra.mxu1 %vm1443_vm1, %v8634_v8  ;;  %v8116_v53 = vpop.f32.mrf.mxu1 }
 0x523   : > { %8150 = vst.msk [vmem:[#allocation6 + $0x90] sm:$0xff] %vm8131_vm13, %v8116_v53  ;;  %10450 = vmatprep.mubr.msk.bf16.mxu1 %vm10920_vm5, %v10918_v19  ;;  %vm9207_vm5 = vcmask 261120  }
 0x524   : > { %v10344_v43 = vpop.f32.mrf.mxu1 }
 0x525   : > { %v8169_v43 = vld [vmem:[#allocation6 + $0x70] sm:$0xff] }
 0x526   : > { %v8119_v51 = vpop.f32.mrf.mxu1 }
 0x527   : > { %8151 = vst.msk [vmem:[#allocation6 + $0x98] sm:$0xff] %vm8131_vm13, %v8119_v51 }
 0x528   : > { %v10345_v59 = vpop.f32.mrf.mxu1 }
 0x52a   : > { %10451 = vmatmul.mubr.msk.bf16.gmra.mxu1 %vm1443_vm1, %v8633_v20  ;;  %vm9366_vm1 = vcmask 256002  }
 0x52b   : > { %9367 = vst.msk [vmem:[#allocation9 + $0x10] sm:$0x4] %vm9366_vm1, %v10917_v2 }
 0x53a   : > { %v8124_v31 = vpop.f32.mrf.mxu1 }
 0x53b   : > { %8152 = vst.msk [vmem:[#allocation6 + $0xa0] sm:$0xff] %vm8131_vm13, %v8124_v31 }
 0x53c   : > { %v10348_v7 = vpop.f32.mrf.mxu1 }
 0x53d   : > { %v8170_v7 = vld [vmem:[#allocation6 + $0x78] sm:$0xff] }
 0x53e   : > { %v8127_v45 = vpop.f32.mrf.mxu1 }
 0x53f   : > { %8154 = vst.msk [vmem:[#allocation6 + $0xa8] sm:$0x3] %vm8153_vm14, %v8127_v45 }
 0x540   : > { %v10349_v9 = vpop.f32.mrf.mxu1 }
 0x542   : > { %v8375_v44 = vpop.f32.mrf.mxu1 }
 0x543   : > { %v8462_v26 = vadd.f32 %v8375_v44, %v8155_v41  ;;  %v8171_v44 = vld [vmem:[#allocation6 + $0x80] sm:$0xff] }
 0x544   : > { %v10360_v19 = vpop.f32.mrf.mxu1 }
 0x545   : > { %8484 = vst.msk [vmem:[#allocation6] sm:$0xff] %vm8131_vm13, %v8462_v26 }
 0x546   : > { %v8378_v40 = vpop.f32.mrf.mxu1 }
 0x547   : > { %v8463_v22 = vadd.f32 %v8378_v40, %v8156_v60  ;;  %v8172_v40 = vld [vmem:[#allocation6 + $0x88] sm:$0xff] }
 0x548   : > { %v10361_v3 = vpop.f32.mrf.mxu1 }
 0x549   : > { %8485 = vst.msk [vmem:[#allocation6 + $0x8] sm:$0xff] %vm8131_vm13, %v8463_v22 }
 0x54a   : > { %v8383_v27 = vpop.f32.mrf.mxu1 }
 0x54b   : > { %v8464_v33 = vadd.f32 %v8383_v27, %v8157_v15  ;;  %v8173_v27 = vld [vmem:[#allocation6 + $0x90] sm:$0xff] }
 0x54c   : > { %v10364_v49 = vpop.f32.mrf.mxu1 }
 0x54d   : > { %8486 = vst.msk [vmem:[#allocation6 + $0x10] sm:$0xff] %vm8131_vm13, %v8464_v33 }
 0x54e   : > { %v8386_v48 = vpop.f32.mrf.mxu1 }
 0x54f   : > { %v8465_v17 = vadd.f32 %v8386_v48, %v8158_v29  ;;  %v8174_v48 = vld [vmem:[#allocation6 + $0x98] sm:$0xff] }
 0x550   : > { %v10365_v13 = vpop.f32.mrf.mxu1 }
 0x551   : > { %8487 = vst.msk [vmem:[#allocation6 + $0x18] sm:$0xff] %vm8131_vm13, %v8465_v17 }
 0x552   : > { %v8391_v32 = vpop.f32.mrf.mxu1 }
 0x553   : > { %v8466_v37 = vadd.f32 %v8391_v32, %v8159_v42  ;;  %v8175_v32 = vld [vmem:[#allocation6 + $0xa0] sm:$0xff] }
 0x554   : > { %v10368_v5 = vpop.f32.mrf.mxu1 }
 0x555   : > { %8488 = vst.msk [vmem:[#allocation6 + $0x20] sm:$0xff] %vm8131_vm13, %v8466_v37 }
 0x556   : > { %v8394_v35 = vpop.f32.mrf.mxu1 }
 0x557   : > { %v8467_v58 = vadd.f32 %v8394_v35, %v8160_v55  ;;  %v8176_v35 = vld [vmem:[#allocation6 + $0xa8] sm:$0x3] }
 0x558   : > { %v10369_v47 = vpop.f32.mrf.mxu1 }
 0x559   : > { %8489 = vst.msk [vmem:[#allocation6 + $0x28] sm:$0xff] %vm8131_vm13, %v8467_v58 }
 0x55a   : > { %v8399_v54 = vpop.f32.mrf.mxu1 }
 0x55b   : > { %v8468_v16 = vadd.f32 %v8399_v54, %v8161_v39  ;;  %v8506_v54 = vld [vmem:[#allocation6] sm:$0xff] }
 0x55c   : > { %v10372_v21 = vpop.f32.mrf.mxu1 }
 0x55d   : > { %8490 = vst.msk [vmem:[#allocation6 + $0x30] sm:$0xff] %vm8131_vm13, %v8468_v16 }
 0x55e   : > { %v8402_v10 = vpop.f32.mrf.mxu1 }
 0x55f   : > { %v8469_v23 = vadd.f32 %v8402_v10, %v8162_v57  ;;  %v8507_v10 = vld [vmem:[#allocation6 + $0x8] sm:$0xff] }
 0x560   : > { %v10373_v1 = vpop.f32.mrf.mxu1 }
 0x561   : > { %8491 = vst.msk [vmem:[#allocation6 + $0x38] sm:$0xff] %vm8131_vm13, %v8469_v23 }
 0x562   : > { %v8407_v63 = vpop.f32.mrf.mxu1 }
 0x563   : > { %v8470_v38 = vadd.f32 %v8407_v63, %v8163_v50  ;;  %v8508_v63 = vld [vmem:[#allocation6 + $0x10] sm:$0xff] }
 0x564   : > { %v10376_v36 = vpop.f32.mrf.mxu1 }
 0x565   : > { %8492 = vst.msk [vmem:[#allocation6 + $0x40] sm:$0xff] %vm8131_vm13, %v8470_v38 }
 0x566   : > { %v8410_v6 = vpop.f32.mrf.mxu1 }
 0x567   : > { %v8471_v34 = vadd.f32 %v8410_v6, %v8164_v46  ;;  %v8509_v6 = vld [vmem:[#allocation6 + $0x18] sm:$0xff] }
 0x568   : > { %v10377_v52 = vpop.f32.mrf.mxu1 }
 0x569   : > { %8493 = vst.msk [vmem:[#allocation6 + $0x48] sm:$0xff] %vm8131_vm13, %v8471_v34 }
 0x56a   : > { %v8415_v61 = vpop.f32.mrf.mxu1 }
 0x56b   : > { %v8472_v18 = vadd.f32 %v8415_v61, %v8165_v4 }
 0x56c   : > { %v10380_v12 = vpop.f32.mrf.mxu1 }
 0x56d   : > { %8494 = vst.msk [vmem:[#allocation6 + $0x50] sm:$0xff] %vm8131_vm13, %v8472_v18  ;;  %v8510_v18 = vld [vmem:[#allocation6 + $0x20] sm:$0xff] }
 0x56e   : > { %v8418_v24 = vpop.f32.mrf.mxu1 }
 0x56f   : > { %v8473_v25 = vadd.f32 %v8418_v24, %v8166_v14 }
 0x570   : > { %v10381_v11 = vpop.f32.mrf.mxu1 }
 0x571   : > { %8495 = vst.msk [vmem:[#allocation6 + $0x58] sm:$0xff] %vm8131_vm13, %v8473_v25 }
 0x572   : > { %v8423_v0 = vpop.f32.mrf.mxu1 }
 0x573   : > { %v8474_v62 = vadd.f32 %v8423_v0, %v8167_v30  ;;  %v8511_v30 = vld [vmem:[#allocation6 + $0x28] sm:$0xff] }
 0x574   : > { %v10384_v28 = vpop.f32.mrf.mxu1 }
 0x575   : > { %8496 = vst.msk [vmem:[#allocation6 + $0x60] sm:$0xff] %vm8131_vm13, %v8474_v62 }
 0x576   : > { %v8426_v20 = vpop.f32.mrf.mxu1 }
 0x577   : > { %v8475_v8 = vadd.f32 %v8426_v20, %v8168_v56 }
 0x578   : > { %v10385_v53 = vpop.f32.mrf.mxu1 }
 0x579   : > { %8497 = vst.msk [vmem:[#allocation6 + $0x68] sm:$0xff] %vm8131_vm13, %v8475_v8  ;;  %v8512_v8 = vld [vmem:[#allocation6 + $0x30] sm:$0xff] }
 0x57a   : > { %v8431_v51 = vpop.f32.mrf.mxu1 }
 0x57b   : > { %v8476_v59 = vadd.f32 %v8431_v51, %v8169_v43 }
 0x57c   : > { %v10388_v31 = vpop.f32.mrf.mxu1 }
 0x57d   : > { %8498 = vst.msk [vmem:[#allocation6 + $0x70] sm:$0xff] %vm8131_vm13, %v8476_v59 }
 0x57e   : > { %v8434_v45 = vpop.f32.mrf.mxu1 }
 0x57f   : > { %v8477_v9 = vadd.f32 %v8434_v45, %v8170_v7  ;;  %v8513_v7 = vld [vmem:[#allocation6 + $0x38] sm:$0xff] }
 0x580   : > { %v10389_v41 = vpop.f32.mrf.mxu1 }
 0x581   : > { %8499 = vst.msk [vmem:[#allocation6 + $0x78] sm:$0xff] %vm8131_vm13, %v8477_v9 }
 0x582   : > { %v8439_v26 = vpop.f32.mrf.mxu1 }
 0x583   : > { %v8478_v19 = vadd.f32 %v8439_v26, %v8171_v44 }
 0x584   : > { %v10392_v60 = vpop.f32.mrf.mxu1 }
 0x585   : > { %8500 = vst.msk [vmem:[#allocation6 + $0x80] sm:$0xff] %vm8131_vm13, %v8478_v19  ;;  %v8514_v19 = vld [vmem:[#allocation6 + $0x40] sm:$0xff] }
 0x586   : > { %v8442_v22 = vpop.f32.mrf.mxu1 }
 0x587   : > { %v8479_v3 = vadd.f32 %v8442_v22, %v8172_v40 }
 0x588   : > { %v10393_v15 = vpop.f32.mrf.mxu1 }
 0x589   : > { %8501 = vst.msk [vmem:[#allocation6 + $0x88] sm:$0xff] %vm8131_vm13, %v8479_v3 }
 0x58a   : > { %v8447_v33 = vpop.f32.mrf.mxu1 }
 0x58b   : > { %v8480_v49 = vadd.f32 %v8447_v33, %v8173_v27  ;;  %v8515_v27 = vld [vmem:[#allocation6 + $0x48] sm:$0xff] }
 0x58c   : > { %v10396_v29 = vpop.f32.mrf.mxu1 }
 0x58d   : > { %8502 = vst.msk [vmem:[#allocation6 + $0x90] sm:$0xff] %vm8131_vm13, %v8480_v49 }
 0x58e   : > { %v8450_v17 = vpop.f32.mrf.mxu1 }
 0x58f   : > { %v8481_v13 = vadd.f32 %v8450_v17, %v8174_v48 }
 0x590   : > { %v10397_v42 = vpop.f32.mrf.mxu1 }
 0x591   : > { %8503 = vst.msk [vmem:[#allocation6 + $0x98] sm:$0xff] %vm8131_vm13, %v8481_v13  ;;  %v8516_v13 = vld [vmem:[#allocation6 + $0x50] sm:$0xff] }
 0x592   : > { %v8455_v37 = vpop.f32.mrf.mxu1 }
 0x593   : > { %v8482_v5 = vadd.f32 %v8455_v37, %v8175_v32 }
 0x594   : > { %v10400_v55 = vpop.f32.mrf.mxu1 }
 0x595   : > { %8504 = vst.msk [vmem:[#allocation6 + $0xa0] sm:$0xff] %vm8131_vm13, %v8482_v5 }
 0x596   : > { %v8458_v58 = vpop.f32.mrf.mxu1 }
 0x597   : > { %v8483_v47 = vadd.f32 %v8458_v58, %v8176_v35  ;;  %v8517_v35 = vld [vmem:[#allocation6 + $0x58] sm:$0xff] }
 0x598   : > { %v10401_v39 = vpop.f32.mrf.mxu1 }
 0x599   : > { %8505 = vst.msk [vmem:[#allocation6 + $0xa8] sm:$0x3] %vm8153_vm14, %v8483_v47 }
 0x59a   : > { %v8726_v16 = vpop.f32.mrf.mxu1 }
 0x59b   : > { %v8813_v21 = vadd.f32 %v8726_v16, %v8506_v54 }
 0x59c   : > { %v10412_v57 = vpop.f32.mrf.mxu1 }
 0x59d   : > { %8835 = vst.msk [vmem:[#allocation6] sm:$0xff] %vm8131_vm13, %v8813_v21  ;;  %v8518_v21 = vld [vmem:[#allocation6 + $0x60] sm:$0xff] }
 0x59e   : > { %v8729_v23 = vpop.f32.mrf.mxu1 }
 0x59f   : > { %v8814_v1 = vadd.f32 %v8729_v23, %v8507_v10 }
 0x5a0   : > { %v10413_v50 = vpop.f32.mrf.mxu1 }
 0x5a1   : > { %8836 = vst.msk [vmem:[#allocation6 + $0x8] sm:$0xff] %vm8131_vm13, %v8814_v1 }
 0x5a2   : > { %v8734_v38 = vpop.f32.mrf.mxu1 }
 0x5a3   : > { %v8815_v36 = vadd.f32 %v8734_v38, %v8508_v63  ;;  %v8519_v63 = vld [vmem:[#allocation6 + $0x68] sm:$0xff] }
 0x5a4   : > { %v10416_v46 = vpop.f32.mrf.mxu1 }
 0x5a5   : > { %8837 = vst.msk [vmem:[#allocation6 + $0x10] sm:$0xff] %vm8131_vm13, %v8815_v36  ;;  %v10785_v36 = vld [vmem:[%s13982_s3 + $0x8] sm:$0xff]  }
 0x5a6   : > { %v8737_v34 = vpop.f32.mrf.mxu1  ;;  %10454 = vmatprep.subr.bf16.mxu1 %v10785_v36 }
 0x5a7   : > { %v8816_v52 = vadd.f32 %v8737_v34, %v8509_v6  ;;  %10455 = vmatpush3.bf16.msra.mxu1 %v10785_v36 }
 0x5a8   : > { %v10417_v4 = vpop.f32.mrf.mxu1  ;;  %v8878_v61 = vld [vmem:[#allocation6 + $0x1] sm:$0xff] }
 0x5a9   : > { %8838 = vst.msk [vmem:[#allocation6 + $0x18] sm:$0xff] %vm8131_vm13, %v8816_v52  ;;  %8920 = vrot.lane.b32.xlu1 %v8878_v61, %s10921_s23  ;;  %v9004_v25 = vld [vmem:[#allocation6 + $0x2] sm:$0xff]  ;;  %v8520_v4 = vld [vmem:[#allocation6 + $0x70] sm:$0xff] }
 0x5aa   : > { %v8742_v12 = vpop.f32.mrf.mxu1 }
 0x5ab   : > { %v8817_v14 = vadd.f32 %v8742_v12, %v8510_v18 }
 0x5ac   : > { %v10420_v24 = vpop.f32.mrf.mxu1  ;;  %v8879_v11 = vld [vmem:[#allocation6 + $0x9] sm:$0xff] }
 0x5ad   : > { %8839 = vst.msk [vmem:[#allocation6 + $0x20] sm:$0xff] %vm8131_vm13, %v8817_v14  ;;  %9046 = vrot.lane.b32.xlu1 %v9004_v25, %s10919_s11  ;;  %8922 = vrot.lane.b32.xlu0 %v8879_v11, %s10921_s23  ;;  %v9005_v56 = vld [vmem:[#allocation6 + $0xa] sm:$0xff]  ;;  %v8521_v25 = vld [vmem:[#allocation6 + $0x78] sm:$0xff] }
 0x5ae   : > { %v8745_v0 = vpop.f32.mrf.mxu1 }
 0x5af   : > { %v8818_v62 = vadd.f32 %v8745_v0, %v8511_v30 }
 0x5b0   : > { %v10421_v28 = vpop.f32.mrf.mxu1  ;;  %v8880_v20 = vld [vmem:[#allocation6 + $0x11] sm:$0xff] }
 0x5b1   : > { %8840 = vst.msk [vmem:[#allocation6 + $0x28] sm:$0xff] %vm8131_vm13, %v8818_v62  ;;  %9048 = vrot.lane.b32.xlu0 %v9005_v56, %s10919_s11  ;;  %8924 = vrot.lane.b32.xlu1 %v8880_v20, %s10921_s23  ;;  %v9006_v59 = vld [vmem:[#allocation6 + $0x12] sm:$0xff]  ;;  %v8522_v56 = vld [vmem:[#allocation6 + $0x80] sm:$0xff] }
 0x5b2   : > { %v8750_v53 = vpop.f32.mrf.mxu1 }
 0x5b3   : > { %v8819_v43 = vadd.f32 %v8750_v53, %v8512_v8 }
 0x5b4   : > { %v10424_v51 = vpop.f32.mrf.mxu1  ;;  %v8881_v31 = vld [vmem:[#allocation6 + $0x19] sm:$0xff] }
 0x5b5   : > { %8841 = vst.msk [vmem:[#allocation6 + $0x30] sm:$0xff] %vm8131_vm13, %v8819_v43  ;;  %9050 = vrot.lane.b32.xlu1 %v9006_v59, %s10919_s11  ;;  %8926 = vrot.lane.b32.xlu0 %v8881_v31, %s10921_s23  ;;  %v9007_v44 = vld [vmem:[#allocation6 + $0x1a] sm:$0xff]  ;;  %v8523_v59 = vld [vmem:[#allocation6 + $0x88] sm:$0xff] }
 0x5b6   : > { %v8753_v45 = vpop.f32.mrf.mxu1 }
 0x5b7   : > { %v8820_v9 = vadd.f32 %v8753_v45, %v8513_v7 }
 0x5b8   : > { %v10425_v41 = vpop.f32.mrf.mxu1  ;;  %v8882_v26 = vld [vmem:[#allocation6 + $0x21] sm:$0xff] }
 0x5b9   : > { %8842 = vst.msk [vmem:[#allocation6 + $0x38] sm:$0xff] %vm8131_vm13, %v8820_v9  ;;  %9052 = vrot.lane.b32.xlu0 %v9007_v44, %s10919_s11  ;;  %8928 = vrot.lane.b32.xlu1 %v8882_v26, %s10921_s23  ;;  %v9008_v3 = vld [vmem:[#allocation6 + $0x22] sm:$0xff]  ;;  %v8524_v44 = vld [vmem:[#allocation6 + $0x90] sm:$0xff] }
 0x5ba   : > { %v8758_v60 = vpop.f32.mrf.mxu1 }
 0x5bb   : > { %v8821_v40 = vadd.f32 %v8758_v60, %v8514_v19 }
 0x5bc   : > { %v10428_v22 = vpop.f32.mrf.mxu1  ;;  %v8883_v15 = vld [vmem:[#allocation6 + $0x29] sm:$0xff] }
 0x5bd   : > { %8843 = vst.msk [vmem:[#allocation6 + $0x40] sm:$0xff] %vm8131_vm13, %v8821_v40  ;;  %9054 = vrot.lane.b32.xlu1 %v9008_v3, %s10919_s11  ;;  %8930 = vrot.lane.b32.xlu0 %v8883_v15, %s10921_s23  ;;  %v9009_v48 = vld [vmem:[#allocation6 + $0x2a] sm:$0xff]  ;;  %v8525_v3 = vld [vmem:[#allocation6 + $0x98] sm:$0xff] }
 0x5be   : > { %v8761_v33 = vpop.f32.mrf.mxu1 }
 0x5bf   : > { %v8822_v49 = vadd.f32 %v8761_v33, %v8515_v27 }
 0x5c0   : > { %v10429_v29 = vpop.f32.mrf.mxu1  ;;  %v8884_v17 = vld [vmem:[#allocation6 + $0x31] sm:$0xff] }
 0x5c1   : > { %8844 = vst.msk [vmem:[#allocation6 + $0x48] sm:$0xff] %vm8131_vm13, %v8822_v49  ;;  %9056 = vrot.lane.b32.xlu0 %v9009_v48, %s10919_s11  ;;  %8932 = vrot.lane.b32.xlu1 %v8884_v17, %s10921_s23  ;;  %v9010_v5 = vld [vmem:[#allocation6 + $0x32] sm:$0xff]  ;;  %v8526_v48 = vld [vmem:[#allocation6 + $0xa0] sm:$0xff] }
 0x5c2   : > { %v8766_v42 = vpop.f32.mrf.mxu1 }
 0x5c3   : > { %v8823_v32 = vadd.f32 %v8766_v42, %v8516_v13 }
 0x5c4   : > { %v10432_v37 = vpop.f32.mrf.mxu1  ;;  %v8885_v55 = vld [vmem:[#allocation6 + $0x39] sm:$0xff] }
 0x5c5   : > { %8845 = vst.msk [vmem:[#allocation6 + $0x50] sm:$0xff] %vm8131_vm13, %v8823_v32  ;;  %9058 = vrot.lane.b32.xlu1 %v9010_v5, %s10919_s11  ;;  %8934 = vrot.lane.b32.xlu0 %v8885_v55, %s10921_s23  ;;  %v9011_v54 = vld [vmem:[#allocation6 + $0x3a] sm:$0xff]  ;;  %v8527_v5 = vld [vmem:[#allocation6 + $0xa8] sm:$0x3] }
 0x5c6   : > { %v8769_v58 = vpop.f32.mrf.mxu1 }
 0x5c7   : > { %v8824_v47 = vadd.f32 %v8769_v58, %v8517_v35 }
 0x5c8   : > { %v10433_v39 = vpop.f32.mrf.mxu1  ;;  %v8886_v16 = vld [vmem:[#allocation6 + $0x41] sm:$0xff] }
 0x5c9   : > { %8846 = vst.msk [vmem:[#allocation6 + $0x58] sm:$0xff] %vm8131_vm13, %v8824_v47  ;;  %9060 = vrot.lane.b32.xlu0 %v9011_v54, %s10919_s11  ;;  %8936 = vrot.lane.b32.xlu1 %v8886_v16, %s10921_s23  ;;  %v9012_v1 = vld [vmem:[#allocation6 + $0x42] sm:$0xff] }
 0x5ca   : > { %v8774_v57 = vpop.f32.mrf.mxu1 }
 0x5cb   : > { %v8825_v10 = vadd.f32 %v8774_v57, %v8518_v21  ;;  %v10786_v57 = vld [vmem:[%s13982_s3] sm:$0xff]  }
 0x5cc   : > { %v10436_v23 = vpop.f32.mrf.mxu1  ;;  %v8887_v50 = vld [vmem:[#allocation6 + $0x49] sm:$0xff]  ;;  %10456 = vmatprep.subr.bf16.mxu1 %v10786_v57 }
 0x5cd   : > { %8847 = vst.msk [vmem:[#allocation6 + $0x60] sm:$0xff] %vm8131_vm13, %v8825_v10  ;;  %9062 = vrot.lane.b32.xlu1 %v9012_v1, %s10919_s11  ;;  %8938 = vrot.lane.b32.xlu0 %v8887_v50, %s10921_s23  ;;  %v9013_v34 = vld [vmem:[#allocation6 + $0x4a] sm:$0xff] }
 0x5ce   : > { %v8777_v38 = vpop.f32.mrf.mxu1  ;;  %10457 = vmatpush3.bf16.msra.mxu1 %v10786_v57  ;;  %v13834_v1 = vld [vmem:[%s13982_s3 + $0x18] sm:$0xff]  }
 0x5cf   : > { %v8826_v46 = vadd.f32 %v8777_v38, %v8519_v63  ;;  %10462 = vmatprep.subr.bf16.mxu1 %v13834_v1  ;;  %v8857_v63 = vld [vmem:[#allocation6] sm:$0xff] }
 0x5d0   : > { %v10437_v6 = vpop.f32.mrf.mxu1  ;;  %v8888_v52 = vld [vmem:[#allocation6 + $0x51] sm:$0xff] }
 0x5d1   : > { %8848 = vst.msk [vmem:[#allocation6 + $0x68] sm:$0xff] %vm8131_vm13, %v8826_v46  ;;  %9064 = vrot.lane.b32.xlu0 %v9013_v34, %s10919_s11  ;;  %8940 = vrot.lane.b32.xlu1 %v8888_v52, %s10921_s23  ;;  %v9014_v14 = vld [vmem:[#allocation6 + $0x52] sm:$0xff]  ;;  %v13841_v34 = vld [vmem:[%s13985_s6] ss:$0 sm:$0xff] }
 0x5d2   : > { %v8782_v61 = vpop.f32.mrf.mxu1  ;;  %v8858_v52 = vld [vmem:[#allocation6 + $0x8] sm:$0xff] }
 0x5d3   : > { %v8827_v18 = vadd.f32 %v8782_v61, %v8520_v4 }
 0x5d4   : > { %v10440_v12 = vpop.f32.mrf.mxu1  ;;  %v8889_v24 = vld [vmem:[#allocation6 + $0x59] sm:$0xff] }
 0x5d5   : > { %8849 = vst.msk [vmem:[#allocation6 + $0x70] sm:$0xff] %vm8131_vm13, %v8827_v18  ;;  %9066 = vrot.lane.b32.xlu1 %v9014_v14, %s10919_s11  ;;  %8942 = vrot.lane.b32.xlu0 %v8889_v24, %s10921_s23  ;;  %v9015_v62 = vld [vmem:[#allocation6 + $0x5a] sm:$0xff]  ;;  %v13846_v18 = vld [vmem:[%s13986_s7] ss:$0 sm:$0xff] }
 0x5d6   : > { %v8785_v11 = vpop.f32.mrf.mxu1 }
 0x5d7   : > { %v8828_v30 = vadd.f32 %v8785_v11, %v8521_v25  ;;  %v8859_v25 = vld [vmem:[#allocation6 + $0x10] sm:$0xff] }
 0x5d8   : > { %v10441_v0 = vpop.f32.mrf.mxu1  ;;  %v8890_v28 = vld [vmem:[#allocation6 + $0x61] sm:$0xff] }
 0x5d9   : > { %8850 = vst.msk [vmem:[#allocation6 + $0x78] sm:$0xff] %vm8131_vm13, %v8828_v30  ;;  %9068 = vrot.lane.b32.xlu0 %v9015_v62, %s10919_s11  ;;  %8944 = vrot.lane.b32.xlu1 %v8890_v28, %s10921_s23  ;;  %v9016_v43 = vld [vmem:[#allocation6 + $0x62] sm:$0xff] }
 0x5da   : > { %v8790_v20 = vpop.f32.mrf.mxu1 }
 0x5db   : > { %v8829_v8 = vadd.f32 %v8790_v20, %v8522_v56 }
 0x5dc   : > { %v10444_v53 = vpop.f32.mrf.mxu1  ;;  %v8891_v51 = vld [vmem:[#allocation6 + $0x69] sm:$0xff] }
 0x5dd   : > { %8851 = vst.msk [vmem:[#allocation6 + $0x80] sm:$0xff] %vm8131_vm13, %v8829_v8  ;;  %9070 = vrot.lane.b32.xlu1 %v9016_v43, %s10919_s11  ;;  %8946 = vrot.lane.b32.xlu0 %v8891_v51, %s10921_s23  ;;  %v9017_v9 = vld [vmem:[#allocation6 + $0x6a] sm:$0xff]  ;;  %v8860_v8 = vld [vmem:[#allocation6 + $0x18] sm:$0xff] }
 0x5de   : > { %v8793_v31 = vpop.f32.mrf.mxu1 }
 0x5df   : > { %v8830_v7 = vadd.f32 %v8793_v31, %v8523_v59 }
 0x5e0   : > { %v10445_v45 = vpop.f32.mrf.mxu1  ;;  %v8892_v41 = vld [vmem:[#allocation6 + $0x71] sm:$0xff] }
 0x5e1   : > { %8852 = vst.msk [vmem:[#allocation6 + $0x88] sm:$0xff] %vm8131_vm13, %v8830_v7  ;;  %9072 = vrot.lane.b32.xlu0 %v9017_v9, %s10919_s11  ;;  %8948 = vrot.lane.b32.xlu1 %v8892_v41, %s10921_s23  ;;  %v9018_v40 = vld [vmem:[#allocation6 + $0x72] sm:$0xff]  ;;  %v8861_v9 = vld [vmem:[#allocation6 + $0x20] sm:$0xff] }
 0x5e2   : > { %v8798_v26 = vpop.f32.mrf.mxu1 }
 0x5e3   : > { %v8831_v19 = vadd.f32 %v8798_v26, %v8524_v44 }
 0x5e4   : > { %v10448_v60 = vpop.f32.mrf.mxu1  ;;  %v9019_v22 = vld [vmem:[#allocation6 + $0x7a] sm:$0xff] }
 0x5e5   : > { %8853 = vst.msk [vmem:[#allocation6 + $0x90] sm:$0xff] %vm8131_vm13, %v8831_v19  ;;  %9074 = vrot.lane.b32.xlu0 %v9018_v40, %s10919_s11  ;;  %9076 = vrot.lane.b32.xlu1 %v9019_v22, %s10919_s11  ;;  %v8893_v49 = vld [vmem:[#allocation6 + $0x79] sm:$0xff] }
 0x5e6   : > { %v8801_v15 = vpop.f32.mrf.mxu1 }
 0x5e7   : > { %v8832_v27 = vadd.f32 %v8801_v15, %v8525_v3  ;;  %v8862_v3 = vld [vmem:[#allocation6 + $0x28] sm:$0xff] }
 0x5e8   : > { %v10449_v33 = vpop.f32.mrf.mxu1  ;;  %v8894_v29 = vld [vmem:[#allocation6 + $0x81] sm:$0xff] }
 0x5e9   : > { %8854 = vst.msk [vmem:[#allocation6 + $0x98] sm:$0xff] %vm8131_vm13, %v8832_v27  ;;  %8950 = vrot.lane.b32.xlu0 %v8893_v49, %s10921_s23  ;;  %8952 = vrot.lane.b32.xlu1 %v8894_v29, %s10921_s23  ;;  %v9020_v32 = vld [vmem:[#allocation6 + $0x82] sm:$0xff] }
 0x5ea   : > { %v8806_v17 = vpop.f32.mrf.mxu1 }
 0x5eb   : > { %v8833_v13 = vadd.f32 %v8806_v17, %v8526_v48 }
 0x5ec   : > { %v10452_v42 = vpop.f32.mrf.mxu1  ;;  %v9021_v37 = vld [vmem:[#allocation6 + $0x8a] sm:$0xff] }
 0x5ed   : > { %8855 = vst.msk [vmem:[#allocation6 + $0xa0] sm:$0xff] %vm8131_vm13, %v8833_v13  ;;  %9078 = vrot.lane.b32.xlu0 %v9020_v32, %s10919_s11  ;;  %9080 = vrot.lane.b32.xlu1 %v9021_v37, %s10919_s11  ;;  %v8895_v47 = vld [vmem:[#allocation6 + $0x89] sm:$0xff]  ;;  %vm9300_vm13 = vcmask 256000  }
 0x5ee   : > { %v8809_v55 = vpop.f32.mrf.mxu1  ;;  %v8863_v37 = vld [vmem:[#allocation6 + $0x30] sm:$0xff] }
 0x5ef   : > { %v8834_v35 = vadd.f32 %v8809_v55, %v8527_v5 }
 0x5f0   : > { %v10453_v58 = vpop.f32.mrf.mxu1  ;;  %v8896_v39 = vld [vmem:[#allocation6 + $0x91] sm:$0xff] }
 0x5f1   : > { %8856 = vst.msk [vmem:[#allocation6 + $0xa8] sm:$0x3] %vm8153_vm14, %v8834_v35  ;;  %8954 = vrot.lane.b32.xlu0 %v8895_v47, %s10921_s23  ;;  %8956 = vrot.lane.b32.xlu1 %v8896_v39, %s10921_s23  ;;  %v9022_v54 = vld [vmem:[#allocation6 + $0x92] sm:$0xff] }
 0x5f4   : > { %v8897_v16 = vld [vmem:[#allocation6 + $0x99] sm:$0xff] }
 0x5f5   : > { %9082 = vrot.lane.b32.xlu0 %v9022_v54, %s10919_s11  ;;  %v9023_v23 = vld [vmem:[#allocation6 + $0x9a] sm:$0xff] }
 0x5f8   : > { %v8898_v21 = vld [vmem:[#allocation6 + $0xa1] sm:$0xff] }
 0x5f9   : > { %8958 = vrot.lane.b32.xlu0 %v8897_v16, %s10921_s23  ;;  %8960 = vrot.lane.b32.xlu1 %v8898_v21, %s10921_s23  ;;  %v9024_v10 = vld [vmem:[#allocation6 + $0xa2] sm:$0xff]  ;;  %v8864_v16 = vld [vmem:[#allocation6 + $0x38] sm:$0xff] }
 0x5fd   : > { %9086 = vrot.lane.b32.xlu0 %v9024_v10, %s10919_s11  ;;  %9084 = vrot.lane.b32.xlu1 %v9023_v23, %s10919_s11 }
 0x61b   : > { %v8921_v50 = vpop.permute.xlu1 %8920 }
 0x61c   : > { %v8983_v38 = vadd.f32 %v8921_v50, %v8857_v63 }
 0x61f   : > { %v9047_v36 = vpop.permute.xlu1 %9046  ;;  %v8923_v46 = vpop.permute.xlu0 %8922 }
 0x620   : > { %v9109_v6 = vadd.f32 %v9047_v36, %v8983_v38  ;;  %v8984_v61 = vadd.f32 %v8923_v46, %v8858_v52  ;;  %v8865_v52 = vld [vmem:[#allocation6 + $0x40] sm:$0xff] }
 0x622   : > { %v9130_v4 = vmax.f32 %v9109_v6, 0.0 }
 0x623   : > { %v9049_v2 = vpop.permute.xlu0 %9048  ;;  %v8925_v12 = vpop.permute.xlu1 %8924 }
 0x624   : > { %v9158_v14 = vmul.f32 %v13841_v34, %v9130_v4  ;;  %v9110_v24 = vadd.f32 %v9049_v2, %v8984_v61  ;;  %v8985_v0 = vadd.f32 %v8925_v12, %v8859_v25 }
 0x626   : > { %v9186_v11 = vadd.f32 %v13846_v18, %v9158_v14  ;;  %v9131_v30 = vmax.f32 %v9110_v24, 0.0 }
 0x627   : > { %v9051_v62 = vpop.permute.xlu1 %9050  ;;  %v8927_v28 = vpop.permute.xlu0 %8926 }
 0x628   : > { %9208 = vst.msk [vmem:[#allocation7] sm:$0xff] %vm9207_vm5, %v9186_v11  ;;  %v9159_v56 = vmul.f32 %v13841_v34, %v9131_v30  ;;  %v9111_v20 = vadd.f32 %v9051_v62, %v8985_v0  ;;  %v8986_v51 = vadd.f32 %v8927_v28, %v8860_v8  ;;  %v8866_v11 = vld [vmem:[#allocation6 + $0x48] sm:$0xff] }
 0x62a   : > { %v9187_v53 = vadd.f32 %v13846_v18, %v9159_v56  ;;  %v9132_v43 = vmax.f32 %v9111_v20, 0.0 }
 0x62b   : > { %v9053_v59 = vpop.permute.xlu0 %9052  ;;  %v8929_v31 = vpop.permute.xlu1 %8928 }
 0x62c   : > { %9209 = vst.msk [vmem:[#allocation7 + $0x8] sm:$0xff] %vm9207_vm5, %v9187_v53  ;;  %v9160_v7 = vmul.f32 %v13841_v34, %v9132_v43  ;;  %v9112_v45 = vadd.f32 %v9053_v59, %v8986_v51  ;;  %v8987_v26 = vadd.f32 %v8929_v31, %v8861_v9  ;;  %v8867_v59 = vld [vmem:[#allocation6 + $0x50] sm:$0xff] }
 0x62e   : > { %v9188_v41 = vadd.f32 %v13846_v18, %v9160_v7  ;;  %v9133_v44 = vmax.f32 %v9112_v45, 0.0 }
 0x62f   : > { %v9055_v19 = vpop.permute.xlu1 %9054  ;;  %v8931_v60 = vpop.permute.xlu0 %8930 }
 0x630   : > { %9210 = vst.msk [vmem:[#allocation7 + $0x10] sm:$0xff] %vm9207_vm5, %v9188_v41  ;;  %v9161_v40 = vmul.f32 %v13841_v34, %v9133_v44  ;;  %v9113_v22 = vadd.f32 %v9055_v19, %v8987_v26  ;;  %v8988_v33 = vadd.f32 %v8931_v60, %v8862_v3  ;;  %v8868_v3 = vld [vmem:[#allocation6 + $0x58] sm:$0xff] }
 0x632   : > { %v9189_v15 = vadd.f32 %v13846_v18, %v9161_v40  ;;  %v9134_v27 = vmax.f32 %v9113_v22, 0.0 }
 0x633   : > { %v9229_v49 = vld [vmem:[#allocation7] ss:$2 sm:$0xff]  ;;  %v9251_v29 = vld [vmem:[#allocation7 + $0x1] ss:$2 sm:$0xff]  ;;  %v9057_v48 = vpop.permute.xlu0 %9056  ;;  %v8933_v17 = vpop.permute.xlu1 %8932 }
 0x634   : > { %v9272_v13 = vadd.f32 %v9251_v29, %v9229_v49  ;;  %9211 = vst.msk [vmem:[#allocation7 + $0x18] sm:$0xff] %vm9207_vm5, %v9189_v15  ;;  %v9162_v42 = vmul.f32 %v13841_v34, %v9134_v27  ;;  %v9114_v32 = vadd.f32 %v9057_v48, %v8988_v33  ;;  %v8989_v35 = vadd.f32 %v8933_v17, %v8863_v37 }
 0x636   : > { %9283 = vst.msk [vmem:[#allocation8] sm:$0xff] %vm9207_vm5, %v9272_v13  ;;  %v9190_v5 = vadd.f32 %v13846_v18, %v9162_v42  ;;  %v9135_v55 = vmax.f32 %v9114_v32, 0.0 }
 0x637   : > { %v9059_v58 = vpop.permute.xlu1 %9058  ;;  %v8935_v47 = vpop.permute.xlu0 %8934 }
 0x638   : > { %9212 = vst.msk [vmem:[#allocation7 + $0x20] sm:$0xff] %vm9207_vm5, %v9190_v5  ;;  %v9163_v39 = vmul.f32 %v13841_v34, %v9135_v55  ;;  %v9115_v54 = vadd.f32 %v9059_v58, %v8989_v35  ;;  %v8990_v10 = vadd.f32 %v8935_v47, %v8864_v16  ;;  %v8869_v5 = vld [vmem:[#allocation6 + $0x60] sm:$0xff] }
 0x63a   : > { %v9191_v21 = vadd.f32 %v13846_v18, %v9163_v39  ;;  %v9136_v57 = vmax.f32 %v9115_v54, 0.0 }
 0x63b   : > { %v9231_v23 = vld [vmem:[#allocation7 + $0x10] ss:$2 sm:$0xff]  ;;  %v9253_v50 = vld [vmem:[#allocation7 + $0x11] ss:$2 sm:$0xff]  ;;  %v9061_v63 = vpop.permute.xlu0 %9060  ;;  %v8937_v38 = vpop.permute.xlu1 %8936 }
 0x63c   : > { %v9273_v36 = vadd.f32 %v9253_v50, %v9231_v23  ;;  %9213 = vst.msk [vmem:[#allocation7 + $0x28] sm:$0xff] %vm9207_vm5, %v9191_v21  ;;  %v9164_v46 = vmul.f32 %v13841_v34, %v9136_v57  ;;  %v9116_v6 = vadd.f32 %v9061_v63, %v8990_v10  ;;  %v8991_v2 = vadd.f32 %v8937_v38, %v8865_v52  ;;  %v8870_v21 = vld [vmem:[#allocation6 + $0x68] sm:$0xff] }
 0x63d   : > { %v9295_v31 = vld [vmem:[#allocation8] sm:$0x3f] }
 0x63e   : > { %9284 = vst.msk [vmem:[#allocation8 + $0x8] sm:$0xff] %vm9207_vm5, %v9273_v36  ;;  %v9192_v4 = vadd.f32 %v13846_v18, %v9164_v46  ;;  %v9137_v61 = vmax.f32 %v9116_v6, 0.0 }
 0x63f   : > { %v9063_v12 = vpop.permute.xlu1 %9062  ;;  %v8939_v14 = vpop.permute.xlu0 %8938 }
 0x640   : > { %9214 = vst.msk [vmem:[#allocation7 + $0x30] sm:$0xff] %vm9207_vm5, %v9192_v4  ;;  %v9165_v24 = vmul.f32 %v13841_v34, %v9137_v61  ;;  %v9117_v25 = vadd.f32 %v9063_v12, %v8991_v2  ;;  %v8992_v62 = vadd.f32 %v8939_v14, %v8866_v11  ;;  %v8871_v4 = vld [vmem:[#allocation6 + $0x70] sm:$0xff] }
 0x642   : > { %v9193_v30 = vadd.f32 %v13846_v18, %v9165_v24  ;;  %v9138_v0 = vmax.f32 %v9117_v25, 0.0 }
 0x643   : > { %v9233_v28 = vld [vmem:[#allocation7 + $0x20] ss:$2 sm:$0xff]  ;;  %v9255_v56 = vld [vmem:[#allocation7 + $0x21] ss:$2 sm:$0xff]  ;;  %v9065_v20 = vpop.permute.xlu0 %9064  ;;  %v8941_v8 = vpop.permute.xlu1 %8940 }
 0x644   : > { %v9274_v53 = vadd.f32 %v9255_v56, %v9233_v28  ;;  %9215 = vst.msk [vmem:[#allocation7 + $0x38] sm:$0xff] %vm9207_vm5, %v9193_v30  ;;  %v9166_v43 = vmul.f32 %v13841_v34, %v9138_v0  ;;  %v9118_v51 = vadd.f32 %v9065_v20, %v8992_v62  ;;  %v8993_v41 = vadd.f32 %v8941_v8, %v8867_v59 }
 0x645   : > { %v9296_v7 = vld [vmem:[#allocation8 + $0x7] sm:$0x3f] }
 0x646   : > { %9285 = vst.msk [vmem:[#allocation8 + $0x10] sm:$0xff] %vm9207_vm5, %v9274_v53  ;;  %v9194_v45 = vadd.f32 %v13846_v18, %v9166_v43  ;;  %v9139_v9 = vmax.f32 %v9118_v51, 0.0  ;;  %v9297_v44 = vadd.f32 %v9296_v7, %v9295_v31  ;;  %v8872_v51 = vld [vmem:[#allocation6 + $0x78] sm:$0xff] }
 0x647   : > { %v9067_v26 = vpop.permute.xlu1 %9066  ;;  %v8943_v19 = vpop.permute.xlu0 %8942 }
 0x648   : > { %9216 = vst.msk [vmem:[#allocation7 + $0x40] sm:$0xff] %vm9207_vm5, %v9194_v45  ;;  %v9167_v60 = vmul.f32 %v13841_v34, %v9139_v9  ;;  %v9119_v40 = vadd.f32 %v9067_v26, %v8993_v41  ;;  %v9298_v22 = vmul.f32 0.25, %v9297_v44  ;;  %v8994_v33 = vadd.f32 %v8943_v19, %v8868_v3  ;;  %v8873_v41 = vld [vmem:[#allocation6 + $0x80] sm:$0xff] }
 0x64a   : > { %v9195_v15 = vadd.f32 %v13846_v18, %v9167_v60  ;;  %v9140_v27 = vmax.f32 %v9119_v40, 0.0  ;;  %v9299_v49 = vpack.c.bf16 %v9298_v22, %v9298_v22 }
 0x64b   : > { %v9235_v29 = vld [vmem:[#allocation7 + $0x30] ss:$2 sm:$0xff]  ;;  %v9257_v48 = vld [vmem:[#allocation7 + $0x31] ss:$2 sm:$0xff]  ;;  %v9069_v17 = vpop.permute.xlu0 %9068  ;;  %v8945_v13 = vpop.permute.xlu1 %8944 }
 0x64c   : > { %v9275_v42 = vadd.f32 %v9257_v48, %v9235_v29  ;;  %9217 = vst.msk [vmem:[#allocation7 + $0x48] sm:$0xff] %vm9207_vm5, %v9195_v15  ;;  %v9168_v32 = vmul.f32 %v13841_v34, %v9140_v27  ;;  %v9120_v37 = vadd.f32 %v9069_v17, %v8994_v33  ;;  %v8995_v58 = vadd.f32 %v8945_v13, %v8869_v5  ;;  %v8874_v17 = vld [vmem:[#allocation6 + $0x88] sm:$0xff] }
 0x64d   : > { %9301 = vst.msk [vmem:[#allocation9] sm:$0x7] %vm9300_vm13, %v9299_v49  ;;  %v9302_v61 = vld [vmem:[#allocation8 + $0xe] sm:$0x3f] }
 0x64e   : > { %9286 = vst.msk [vmem:[#allocation8 + $0x18] sm:$0xff] %vm9207_vm5, %v9275_v42  ;;  %v9196_v55 = vadd.f32 %v13846_v18, %v9168_v32  ;;  %v9141_v35 = vmax.f32 %v9120_v37, 0.0 }
 0x64f   : > { %v9071_v47 = vpop.permute.xlu1 %9070  ;;  %v8947_v39 = vpop.permute.xlu0 %8946 }
 0x650   : > { %9218 = vst.msk [vmem:[#allocation7 + $0x50] sm:$0xff] %vm9207_vm5, %v9196_v55  ;;  %v9169_v54 = vmul.f32 %v13841_v34, %v9141_v35  ;;  %v9121_v16 = vadd.f32 %v9071_v47, %v8995_v58  ;;  %v8996_v23 = vadd.f32 %v8947_v39, %v8870_v21  ;;  %v8875_v35 = vld [vmem:[#allocation6 + $0x90] sm:$0xff] }
 0x652   : > { %v9197_v57 = vadd.f32 %v13846_v18, %v9169_v54  ;;  %v9142_v10 = vmax.f32 %v9121_v16, 0.0 }
 0x653   : > { %v9237_v50 = vld [vmem:[#allocation7 + $0x40] ss:$2 sm:$0xff]  ;;  %v9259_v63 = vld [vmem:[#allocation7 + $0x41] ss:$2 sm:$0xff]  ;;  %v9073_v38 = vpop.permute.xlu0 %9072  ;;  %v8949_v36 = vpop.permute.xlu1 %8948 }
 0x654   : > { %v9276_v46 = vadd.f32 %v9259_v63, %v9237_v50  ;;  %9219 = vst.msk [vmem:[#allocation7 + $0x58] sm:$0xff] %vm9207_vm5, %v9197_v57  ;;  %v9170_v6 = vmul.f32 %v13841_v34, %v9142_v10  ;;  %v9122_v52 = vadd.f32 %v9073_v38, %v8996_v23  ;;  %v8997_v24 = vadd.f32 %v8949_v36, %v8871_v4 }
 0x655   : > { %v9303_v2 = vld [vmem:[#allocation8 + $0x15] sm:$0x3f] }
 0x656   : > { %9287 = vst.msk [vmem:[#allocation8 + $0x20] sm:$0xff] %vm9207_vm5, %v9276_v46  ;;  %v9198_v12 = vadd.f32 %v13846_v18, %v9170_v6  ;;  %v9143_v14 = vmax.f32 %v9122_v52, 0.0  ;;  %v9304_v25 = vadd.f32 %v9303_v2, %v9302_v61  ;;  %v8876_v61 = vld [vmem:[#allocation6 + $0x98] sm:$0xff] }
 0x657   : > { %v9075_v11 = vpop.permute.xlu0 %9074  ;;  %v9077_v30 = vpop.permute.xlu1 %9076 }
 0x658   : > { %9220 = vst.msk [vmem:[#allocation7 + $0x60] sm:$0xff] %vm9207_vm5, %v9198_v12  ;;  %v9171_v0 = vmul.f32 %v13841_v34, %v9143_v14  ;;  %v9123_v62 = vadd.f32 %v9075_v11, %v8997_v24  ;;  %v9305_v28 = vmul.f32 0.25, %v9304_v25  ;;  %v8877_v14 = vld [vmem:[#allocation6 + $0xa0] sm:$0xff] }
 0x65a   : > { %v9199_v56 = vadd.f32 %v13846_v18, %v9171_v0  ;;  %v9144_v20 = vmax.f32 %v9123_v62, 0.0  ;;  %v10237_v8 = vpack.c.bf16 %v9305_v28, %v9305_v28 }
 0x65b   : > { %v9239_v53 = vld [vmem:[#allocation7 + $0x50] ss:$2 sm:$0xff]  ;;  %v9261_v43 = vld [vmem:[#allocation7 + $0x51] ss:$2 sm:$0xff]  ;;  %v8951_v59 = vpop.permute.xlu0 %8950  ;;  %v8953_v31 = vpop.permute.xlu1 %8952 }
 0x65c   : > { %v9277_v7 = vadd.f32 %v9261_v43, %v9239_v53  ;;  %9221 = vst.msk [vmem:[#allocation7 + $0x68] sm:$0xff] %vm9207_vm5, %v9199_v56  ;;  %v9172_v45 = vmul.f32 %v13841_v34, %v9144_v20  ;;  %v8998_v9 = vadd.f32 %v8951_v59, %v8872_v51  ;;  %v9310_v44 = vrot.slane %v10237_v8, 5 }
 0x65d   : > { %v8999_v60 = vadd.f32 %v8953_v31, %v8873_v41  ;;  %v9318_v58 = vld [vmem:[#allocation8 + $0x1c] sm:$0x3f] }
 0x65e   : > { %9288 = vst.msk [vmem:[#allocation8 + $0x28] sm:$0xff] %vm9207_vm5, %v9277_v7  ;;  %v9200_v26 = vadd.f32 %v13846_v18, %v9172_v45  ;;  %v9124_v19 = vadd.f32 %v9077_v30, %v8998_v9  ;;  %v9311_v3 = vrot.slane %v9310_v44, 4 }
 0x65f   : > { %v9079_v40 = vpop.permute.xlu0 %9078  ;;  %v9081_v22 = vpop.permute.xlu1 %9080  ;;  %9315 = vst.msk [vmem:[#allocation9] sm:$0x8] %vm9314_vm4, %v9310_v44 }
 0x660   : > { %9222 = vst.msk [vmem:[#allocation7 + $0x70] sm:$0xff] %vm9207_vm5, %v9200_v26  ;;  %v9145_v15 = vmax.f32 %v9124_v19, 0.0  ;;  %v9125_v27 = vadd.f32 %v9079_v40, %v8999_v60 }
 0x661   : > { %9317 = vst.msk [vmem:[#allocation9 + $0x4] sm:$0x3] %vm9316_vm0, %v9311_v3 }
 0x662   : > { %v9173_v33 = vmul.f32 %v13841_v34, %v9145_v15  ;;  %v9146_v49 = vmax.f32 %v9125_v27, 0.0 }
 0x663   : > { %v9241_v29 = vld [vmem:[#allocation7 + $0x60] ss:$2 sm:$0xff]  ;;  %v9263_v48 = vld [vmem:[#allocation7 + $0x61] ss:$2 sm:$0xff]  ;;  %v8955_v13 = vpop.permute.xlu0 %8954  ;;  %v8957_v42 = vpop.permute.xlu1 %8956 }
 0x664   : > { %v9278_v32 = vadd.f32 %v9263_v48, %v9241_v29  ;;  %v9201_v37 = vadd.f32 %v13846_v18, %v9173_v33  ;;  %v9174_v5 = vmul.f32 %v13841_v34, %v9146_v49  ;;  %v9000_v55 = vadd.f32 %v8955_v13, %v8874_v17 }
 0x665   : > { %v9319_v47 = vld [vmem:[#allocation8 + $0x23] sm:$0x3f]  ;;  %v9001_v16 = vadd.f32 %v8957_v42, %v8875_v35  ;;  %v9334_v62 = vld [vmem:[#allocation8 + $0x2a] sm:$0x3f] }
 0x666   : > { %9289 = vst.msk [vmem:[#allocation8 + $0x30] sm:$0xff] %vm9207_vm5, %v9278_v32  ;;  %9223 = vst.msk [vmem:[#allocation7 + $0x78] sm:$0xff] %vm9207_vm5, %v9201_v37  ;;  %v9202_v39 = vadd.f32 %v13846_v18, %v9174_v5  ;;  %v9126_v54 = vadd.f32 %v9081_v22, %v9000_v55  ;;  %v9320_v21 = vadd.f32 %v9319_v47, %v9318_v58  ;;  %v10790_v58 = vld [vmem:[%s13982_s3 + $0x10] sm:$0xff]  }
 0x667   : > { %v9083_v57 = vpop.permute.xlu0 %9082 }
 0x668   : > { %9224 = vst.msk [vmem:[#allocation7 + $0x80] sm:$0xff] %vm9207_vm5, %v9202_v39  ;;  %v9147_v10 = vmax.f32 %v9126_v54, 0.0  ;;  %v9127_v23 = vadd.f32 %v9083_v57, %v9001_v16  ;;  %v9321_v50 = vmul.f32 0.25, %v9320_v21  ;;  %v10793_v54 = vld [vmem:[%s13982_s3 + $0x28] sm:$0xff]  }
 0x66a   : > { %v9175_v63 = vmul.f32 %v13841_v34, %v9147_v10  ;;  %v9148_v38 = vmax.f32 %v9127_v23, 0.0  ;;  %v10238_v36 = vpack.c.bf16 %v9321_v50, %v9321_v50 }
 0x66b   : > { %v8959_v46 = vpop.permute.xlu0 %8958  ;;  %v8961_v6 = vpop.permute.xlu1 %8960 }
 0x66c   : > { %v9203_v52 = vadd.f32 %v13846_v18, %v9175_v63  ;;  %v9176_v4 = vmul.f32 %v13841_v34, %v9148_v38  ;;  %v9326_v24 = vrot.slane %v10238_v36, 6  ;;  %v9002_v30 = vadd.f32 %v8959_v46, %v8876_v61  ;;  %v10796_v46 = vld [vmem:[%s13982_s3 + $0x20] sm:$0xff]  }
 0x66d   : > { %v9243_v2 = vld [vmem:[#allocation7 + $0x70] ss:$2 sm:$0xff]  ;;  %v9265_v12 = vld [vmem:[#allocation7 + $0x71] ss:$2 sm:$0xff]  ;;  %v9003_v0 = vadd.f32 %v8961_v6, %v8877_v14 }
 0x66e   : > { %v9279_v25 = vadd.f32 %v9265_v12, %v9243_v2  ;;  %9225 = vst.msk [vmem:[#allocation7 + $0x88] sm:$0xff] %vm9207_vm5, %v9203_v52  ;;  %v9204_v11 = vadd.f32 %v13846_v18, %v9176_v4  ;;  %v9335_v28 = vld [vmem:[#allocation8 + $0x31] sm:$0x3f]  ;;  %v9327_v8 = vrot.slane %v9326_v24, 4 }
 0x66f   : > { %v9087_v56 = vpop.permute.xlu0 %9086  ;;  %v9085_v20 = vpop.permute.xlu1 %9084  ;;  %9331 = vst.msk [vmem:[#allocation9 + $0x4] sm:$0xc] %vm9330_vm7, %v9326_v24  ;;  %v9336_v53 = vadd.f32 %v9335_v28, %v9334_v62 }
 0x670   : > { %9290 = vst.msk [vmem:[#allocation8 + $0x38] sm:$0xff] %vm9207_vm5, %v9279_v25  ;;  %9226 = vst.msk [vmem:[#allocation7 + $0x90] sm:$0xff] %vm9207_vm5, %v9204_v11  ;;  %v9129_v43 = vadd.f32 %v9087_v56, %v9003_v0  ;;  %v9128_v51 = vadd.f32 %v9085_v20, %v9002_v30 }
 0x671   : > { %9333 = vst.msk [vmem:[#allocation9 + $0x8] sm:$0x1] %vm9332_vm12, %v9327_v8  ;;  %v9337_v59 = vmul.f32 0.25, %v9336_v53 }
 0x672   : > { %v9150_v31 = vmax.f32 %v9129_v43, 0.0  ;;  %v9149_v7 = vmax.f32 %v9128_v51, 0.0 }
 0x673   : > { %v10239_v45 = vpack.c.bf16 %v9337_v59, %v9337_v59 }
 0x674   : > { %v9178_v9 = vmul.f32 %v13841_v34, %v9150_v31  ;;  %v9177_v41 = vmul.f32 %v13841_v34, %v9149_v7 }
 0x675   : > { %v9245_v44 = vld [vmem:[#allocation7 + $0x80] ss:$2 sm:$0xff]  ;;  %v9267_v26 = vld [vmem:[#allocation7 + $0x81] ss:$2 sm:$0xff]  ;;  %v9342_v19 = vrot.slane %v10239_v45, 7 }
 0x676   : > { %v9280_v60 = vadd.f32 %v9267_v26, %v9245_v44  ;;  %v9206_v40 = vadd.f32 %v13846_v18, %v9178_v9  ;;  %v9205_v22 = vadd.f32 %v13846_v18, %v9177_v41  ;;  %v10787_v3 = vld [vmem:[#allocation9] sm:$0xff]  }
 0x677   : > { %9345 = vst.msk [vmem:[#allocation9 + $0x8] sm:$0xe] %vm9344_vm15, %v9342_v19  ;;  %10458 = vmatprep.mubr.msk.bf16.mxu1 %vm9207_vm5, %v10787_v3  ;;  %v9346_v34 = vld [vmem:[#allocation8 + $0x38] sm:$0x3f] }
 0x678   : > { %9291 = vst.msk [vmem:[#allocation8 + $0x40] sm:$0xff] %vm9207_vm5, %v9280_v60  ;;  %9228 = vst.msk [vmem:[#allocation7 + $0xa0] sm:$0xff] %vm9207_vm5, %v9206_v40  ;;  %v10791_v21 = vld [vmem:[#allocation9] sm:$0xf8]  }
 0x679   : > { %9227 = vst.msk [vmem:[#allocation7 + $0x98] sm:$0xff] %vm9207_vm5, %v9205_v22  ;;  %v9482_v23 = vrot.slane %v10791_v21, 3 }
 0x67e   : > { %v10794_v57 = vld [vmem:[#allocation9 + $0x4] sm:$0xfc]  }
 0x67f   : > { %v9249_v15 = vld [vmem:[#allocation7 + $0xa0] ss:$2 sm:$0xf]  ;;  %v9271_v27 = vld [vmem:[#allocation7 + $0xa1] ss:$2 sm:$0xf] }
 0x680   : > { %v9282_v33 = vadd.f32 %v9271_v27, %v9249_v15  ;;  %v9247_v49 = vld [vmem:[#allocation7 + $0x90] ss:$2 sm:$0xff]  ;;  %v9269_v29 = vld [vmem:[#allocation7 + $0x91] ss:$2 sm:$0xff]  ;;  %v9347_v48 = vld [vmem:[#allocation8 + $0x3f] sm:$0x3f] }
 0x681   : > { %v9281_v17 = vadd.f32 %v9269_v29, %v9247_v49  ;;  %v9348_v18 = vadd.f32 %v9347_v48, %v9346_v34  ;;  %v9583_v38 = vrot.slane %v10794_v57, 2 }
 0x682   : > { %9294 = vst.msk [vmem:[#allocation8 + $0x50] sm:$0xf] %vm9293_vm8, %v9282_v33 }
 0x683   : > { %9292 = vst.msk [vmem:[#allocation8 + $0x48] sm:$0xff] %vm9207_vm5, %v9281_v17  ;;  %v9349_v13 = vmul.f32 0.25, %v9348_v18 }
 0x685   : > { %v9350_v42 = vpack.c.bf16 %v9349_v13, %v9349_v13 }
 0x687   : > { %9351 = vst.msk [vmem:[#allocation9 + $0xc] sm:$0x7] %vm9300_vm13, %v9350_v42 }
 0x68a   : > { %v9352_v32 = vld [vmem:[#allocation8 + $0x46] sm:$0x3f]  ;;  %v9353_v37 = vld [vmem:[#allocation8 + $0x4d] sm:$0x3f] }
 0x68b   : > { %v9354_v5 = vadd.f32 %v9353_v37, %v9352_v32  ;;  %v10205_v37 = vld [vmem:[%s13987_s8] ss:$0 sm:$0xff] }
 0x68d   : > { %v9355_v55 = vmul.f32 0.25, %v9354_v5 }
 0x68e   : > { %v10788_v35 = vld [vmem:[#allocation9 + $0x8] sm:$0x1f]  }
 0x68f   : > { %v10240_v47 = vpack.c.bf16 %v9355_v55, %v9355_v55  ;;  %10459 = vmatmul.mubr.msk.bf16.vlgmr.msra.gmra.mxu1 %vm9207_vm5, %v10788_v35 }
 0x690   : > { %10463 = vmatpush3.bf16.msra.mxu1 %v13834_v1 }
 0x691   : > { %v9360_v39 = vrot.slane %v10240_v47, 5  ;;  %10464 = vmatprep.subr.bf16.mxu1 %v10790_v58  ;;  %v10206_v47 = vld [vmem:[%s13988_s9] ss:$0 sm:$0xff] }
 0x693   : > { %9364 = vst.msk [vmem:[#allocation9 + $0xc] sm:$0x8] %vm9314_vm4, %v9360_v39  ;;  %v9361_v16 = vrot.slane %v9360_v39, 4 }
 0x694   : > { %10465 = vmatpush3.bf16.msra.mxu1 %v10790_v58 }
 0x695   : > { %9365 = vst.msk [vmem:[#allocation9 + $0x10] sm:$0x3] %vm9316_vm0, %v9361_v16  ;;  %10470 = vmatprep.subr.bf16.mxu1 %v10793_v54 }
 0x69a   : > { %v10792_v10 = vld [vmem:[#allocation9 + $0x8] sm:$0xff]  }
 0x69b   : > { %v9483_v50 = vrot.slane %v10792_v10, 3 }
 0x69c   : > { %v10795_v63 = vld [vmem:[#allocation9 + $0xc] sm:$0x7f]  }
 0x69d   : > { %v9484_v1 = vsel %vm14007_vm9, %v9482_v23, %v9483_v50  ;;  %v9584_v36 = vrot.slane %v10795_v63, 2 }
 0x69e   : > { %10466 = vmatprep.mubr.msk.bf16.mxu1 %vm9207_vm5, %v9484_v1 }
 0x69f   : > { %10467 = vmatmul.mubr.msk.bf16.vlgmr.msra.gmra.mxu1 %vm9207_vm5, %v9483_v50  ;;  %v9585_v6 = vsel %vm4082_vm3, %v9583_v38, %v9584_v36  ;;  %vm9723_vm3 = vcmask 130048  }
 0x6a0   : > { %10471 = vmatpush3.bf16.msra.mxu1 %v10793_v54  ;;  %10474 = vmatprep.mubr.msk.bf16.mxu1 %vm9207_vm5, %v9585_v6 }
 0x6a1   : > { %10472 = vmatprep.subr.bf16.mxu1 %v10796_v46 }
 0x6a4   : > { %10473 = vmatpush3.bf16.msra.mxu1 %v10796_v46 }
 0x6a7   : > { %10475 = vmatmul.mubr.msk.bf16.vlgmr.msra.gmra.mxu1 %vm9207_vm5, %v9584_v36 }
 0x74f   : > { %v10460_v52 = vpop.f32.mrf.mxu1 }
 0x750   : > { %9456 = vst.msk [vmem:[#allocation10 + $0x10] sm:$0xff] %vm9453_vm2, %v10460_v52 }
 0x751   : > { %v9438_v4 = vpop.f32.mrf.mxu1 }
 0x752   : > { %9454 = vst.msk [vmem:[#allocation10] sm:$0xff] %vm9453_vm2, %v9438_v4 }
 0x753   : > { %v10461_v61 = vpop.f32.mrf.mxu1 }
 0x754   : > { %9458 = vst.msk [vmem:[#allocation10 + $0x18] sm:$0x3] %vm9457_vm6, %v10461_v61 }
 0x755   : > { %v9441_v2 = vpop.f32.mrf.mxu1 }
 0x756   : > { %9455 = vst.msk [vmem:[#allocation10 + $0x8] sm:$0xff] %vm9453_vm2, %v9441_v2 }
 0x757   : > { %v9461_v12 = vld [vmem:[#allocation10 + $0x10] sm:$0xff] }
 0x759   : > { %v9459_v25 = vld [vmem:[#allocation10] sm:$0xff] }
 0x75b   : > { %v9462_v0 = vld [vmem:[#allocation10 + $0x18] sm:$0x3] }
 0x75d   : > { %v9460_v56 = vld [vmem:[#allocation10 + $0x8] sm:$0xff] }
 0x75f   : > { %v10468_v14 = vpop.f32.mrf.mxu1 }
 0x760   : > { %v9554_v24 = vadd.f32 %v10468_v14, %v9461_v12 }
 0x761   : > { %v9537_v11 = vpop.f32.mrf.mxu1 }
 0x762   : > { %9558 = vst.msk [vmem:[#allocation10 + $0x10] sm:$0xff] %vm9453_vm2, %v9554_v24  ;;  %v9552_v30 = vadd.f32 %v9537_v11, %v9459_v25 }
 0x763   : > { %v10469_v62 = vpop.f32.mrf.mxu1 }
 0x764   : > { %9556 = vst.msk [vmem:[#allocation10] sm:$0xff] %vm9453_vm2, %v9552_v30  ;;  %v9555_v28 = vadd.f32 %v10469_v62, %v9462_v0 }
 0x765   : > { %v9540_v20 = vpop.f32.mrf.mxu1 }
 0x766   : > { %9559 = vst.msk [vmem:[#allocation10 + $0x18] sm:$0x3] %vm9457_vm6, %v9555_v28  ;;  %v9553_v8 = vadd.f32 %v9540_v20, %v9460_v56 }
 0x767   : > { %v10476_v53 = vpop.f32.mrf.mxu1 }
 0x768   : > { %9557 = vst.msk [vmem:[#allocation10 + $0x8] sm:$0xff] %vm9453_vm2, %v9553_v8 }
 0x769   : > { %v9562_v43 = vld [vmem:[#allocation10 + $0x10] sm:$0xff]  ;;  %v9638_v51 = vpop.f32.mrf.mxu1 }
 0x76a   : > { %v9655_v59 = vadd.f32 %v10476_v53, %v9562_v43 }
 0x76b   : > { %v9560_v31 = vld [vmem:[#allocation10] sm:$0xff]  ;;  %v10477_v7 = vpop.f32.mrf.mxu1 }
 0x76c   : > { %9659 = vst.msk [vmem:[#allocation10 + $0x10] sm:$0xff] %vm9453_vm2, %v9655_v59  ;;  %v9653_v45 = vadd.f32 %v9638_v51, %v9560_v31 }
 0x76d   : > { %v9563_v9 = vld [vmem:[#allocation10 + $0x18] sm:$0x3]  ;;  %v9641_v26 = vpop.f32.mrf.mxu1 }
 0x76e   : > { %9657 = vst.msk [vmem:[#allocation10] sm:$0xff] %vm9453_vm2, %v9653_v45  ;;  %v9656_v41 = vadd.f32 %v10477_v7, %v9563_v9 }
 0x76f   : > { %v9561_v44 = vld [vmem:[#allocation10 + $0x8] sm:$0xff] }
 0x770   : > { %9660 = vst.msk [vmem:[#allocation10 + $0x18] sm:$0x3] %vm9457_vm6, %v9656_v41  ;;  %v9654_v19 = vadd.f32 %v9641_v26, %v9561_v44 }
 0x772   : > { %9658 = vst.msk [vmem:[#allocation10 + $0x8] sm:$0xff] %vm9453_vm2, %v9654_v19 }
 0x773   : > { %v9663_v32 = vld [vmem:[#allocation10 + $0x10] sm:$0xff] }
 0x775   : > { %v9661_v49 = vld [vmem:[#allocation10] sm:$0xff] }
 0x777   : > { %v9666_v60 = vld [vmem:[#allocation10 + $0x11] sm:$0xff] }
 0x778   : > { %9674 = vrot.lane.b32.xlu1 %v9666_v60, %s10922_s22  ;;  %v9684_v15 = vld [vmem:[#allocation10 + $0x12] sm:$0xff] }
 0x779   : > { %v9665_v40 = vld [vmem:[#allocation10 + $0x9] sm:$0xff]  ;;  %v9664_v22 = vld [vmem:[#allocation10 + $0x1] sm:$0xff] }
 0x77a   : > { %9672 = vrot.lane.b32.xlu0 %v9665_v40, %s10922_s22  ;;  %v9682_v3 = vld [vmem:[#allocation10 + $0x2] sm:$0xff]  ;;  %v9683_v34 = vld [vmem:[#allocation10 + $0xa] sm:$0xff] }
 0x77b   : > { %v9662_v17 = vld [vmem:[#allocation10 + $0x8] sm:$0xff] }
 0x77c   : > { %9670 = vrot.lane.b32.xlu1 %v9664_v22, %s10922_s22 }
 0x77e   : > { %9688 = vrot.lane.b32.xlu0 %v9682_v3, %s10921_s23 }
 0x780   : > { %9690 = vrot.lane.b32.xlu1 %v9683_v34, %s10921_s23 }
 0x782   : > { %9692 = vrot.lane.b32.xlu0 %v9684_v15, %s10921_s23 }
 0x7ea   : > { %v9675_v27 = vpop.permute.xlu1 %9674 }
 0x7eb   : > { %v9681_v55 = vadd.f32 %v9675_v27, %v9663_v32 }
 0x7ec   : > { %v9673_v33 = vpop.permute.xlu0 %9672 }
 0x7ed   : > { %v9680_v13 = vadd.f32 %v9673_v33, %v9662_v17 }
 0x7ee   : > { %v9671_v29 = vpop.permute.xlu1 %9670 }
 0x7ef   : > { %v9679_v48 = vadd.f32 %v9671_v29, %v9661_v49 }
 0x7f0   : > { %v9689_v18 = vpop.permute.xlu0 %9688 }
 0x7f1   : > { %v9697_v42 = vadd.f32 %v9689_v18, %v9679_v48 }
 0x7f2   : > { %v9691_v5 = vpop.permute.xlu1 %9690 }
 0x7f3   : > { %v9700_v35 = vmax.f32 %v9697_v42, 0.0  ;;  %v9698_v58 = vadd.f32 %v9691_v5, %v9680_v13 }
 0x7f4   : > { %v9693_v39 = vpop.permute.xlu0 %9692 }
 0x7f5   : > { %v9710_v54 = vmul.f32 %v10205_v37, %v9700_v35  ;;  %v9701_v16 = vmax.f32 %v9698_v58, 0.0  ;;  %v9699_v21 = vadd.f32 %v9693_v39, %v9681_v55 }
 0x7f7   : > { %v9720_v57 = vadd.f32 %v10206_v47, %v9710_v54  ;;  %v9711_v10 = vmul.f32 %v10205_v37, %v9701_v16  ;;  %v9702_v23 = vmax.f32 %v9699_v21, 0.0 }
 0x7f9   : > { %9724 = vst.msk [vmem:[#allocation11] sm:$0xff] %vm9723_vm3, %v9720_v57  ;;  %v9721_v50 = vadd.f32 %v10206_v47, %v9711_v10  ;;  %v9712_v63 = vmul.f32 %v10205_v37, %v9702_v23 }
 0x7fb   : > { %9725 = vst.msk [vmem:[#allocation11 + $0x8] sm:$0xff] %vm9723_vm3, %v9721_v50  ;;  %v9722_v1 = vadd.f32 %v10206_v47, %v9712_v63 }
 0x7fd   : > { %9726 = vst.msk [vmem:[#allocation11 + $0x10] sm:$0xff] %vm9723_vm3, %v9722_v1 }
 0x802   : > { %v9727_v38 = vld [vmem:[#allocation11] ss:$2 sm:$0xff]  ;;  %v9731_v36 = vld [vmem:[#allocation11 + $0x1] ss:$2 sm:$0xff] }
 0x803   : > { %v9734_v46 = vadd.f32 %v9731_v36, %v9727_v38 }
 0x804   : > { %v9729_v6 = vld [vmem:[#allocation11 + $0x10] ss:$2 sm:$0xf]  ;;  %v9733_v52 = vld [vmem:[#allocation11 + $0x11] ss:$2 sm:$0xf] }
 0x805   : > { %9736 = vst.msk [vmem:[#allocation12] sm:$0xff] %vm9723_vm3, %v9734_v46  ;;  %v9735_v4 = vadd.f32 %v9733_v52, %v9729_v6 }
 0x807   : > { %9738 = vst.msk [vmem:[#allocation12 + $0x8] sm:$0xf] %vm9737_vm11, %v9735_v4 }
 0x80c   : > { %v9739_v61 = vld [vmem:[#allocation12] sm:$0x3]  ;;  %v9740_v2 = vld [vmem:[#allocation12 + $0x3] sm:$0x3]  ;;  %v9745_v14 = vld [vmem:[#allocation12 + $0x6] sm:$0x3] }
 0x80d   : > { %v9741_v12 = vadd.f32 %v9740_v2, %v9739_v61 }
 0x80e   : > { %v9746_v24 = vld [vmem:[#allocation12 + $0x9] sm:$0x3] }
 0x80f   : > { %v9742_v25 = vmul.f32 0.25, %v9741_v12  ;;  %v9747_v11 = vadd.f32 %v9746_v24, %v9745_v14 }
 0x811   : > { %9744 = vst.msk [vmem:[%s357_s29] sm:$0x3] %vm9743_vm10, %v9742_v25  ;;  %v9748_v30 = vmul.f32 0.25, %v9747_v11 }
 0x813   : > { %9749 = vst.msk [vmem:[%s357_s29 + $0x2] sm:$0x3] %vm9743_vm10, %v9748_v30 }
 0x814 PF: > { %s20_s13 = sadd.s32 1, %s10915_s13  }
 0x815   : > { %p17_p4 = scmp.ge.s32.totalorder %s20_s13, 4  }
 0x817   :  { %19 = sbr.rel (!%p17_p4) target bundleno = 1 (0x1), region = 225 }

</bundles_post_ra>
